<compile_context>
chip_gen: v6e
topology: v6e:2x2x1
jax: 0.10.0
libtpu: 0.0.40
codegen_flags: <defaults>
</compile_context>

<pallas_src>
import functools

import numpy as np

import jax
import jax.numpy as jnp
from jax.experimental import pallas as pl
from jax.experimental.pallas import tpu as pltpu

EPS = 1e-5  # PyTorch BatchNorm default eps


# ---------------------------------------------------------------------------
# Fused forward kernel (one batch tile of TB images = Mt = TB*H*W rows)
# ---------------------------------------------------------------------------
def _alphazero_kernel(
        phase_ref,                                    # SMEM (1,) f32
        x_ref,                                        # (Mt, C) f32, rows p = bt*HW + y*W + x (ch 3..C-1 zero)
        cmask_ref,                                    # (Mt, 9*C) f32 tap boundary masks (0/1)
        w1_ref, w2_ref, w3_ref, w4_ref,               # (9*C, C) bf16 stacked tap weights
        cs_ref, cb_ref,                               # (4, 1, C) f32 folded conv-bias+BN scale / bias
        trep_ref,                                     # (C, HW*C) bf16 channel-replication matrix
        fmask_ref,                                    # (Mt, HW*C) bf16 flatten scatter mask
        rsel_ref,                                     # (TB, Mt) bf16 image-row selector
        f1w_ref, f1s_ref, f1b_ref,                    # (HW*C, 1024) bf16, (1,1024) f32 x2
        f2w_ref, f2s_ref, f2b_ref,                    # (1024, 512) bf16, (1, 512) f32 x2
        f3w_ref, f3b_ref,                             # (512, A) bf16, (1, A) f32
        f4w_ref, f4b_ref,                             # (1, 512) f32, (1, 1) f32
        pi_ref, v_ref,                                # (TB, A) f32, (TB, 1) f32
        xcat_ref,                                     # VMEM scratch (Mt, 9*C) f32
        *, width):
    mt = x_ref.shape[0]
    c = w2_ref.shape[1]
    pm = 1.0 + 0.2 * phase_ref[0]                     # post-ReLU multiplier

    def conv3x3(x, w_ref, lyr):
        # im2col via sublane rolls (XLU) + static boundary masks, then ONE
        # bf16 MXU matmul (Mt, 9C) @ (9C, C).  Padding=1 -> masked-to-zero rows.
        for ky in range(3):
            for kx in range(3):
                t = ky * 3 + kx
                d = (ky - 1) * width + (kx - 1)       # source-row offset
                xcat_ref[:, t * c:(t + 1) * c] = pltpu.roll(x, shift=(-d) % mt, axis=0)
        xcat = (xcat_ref[...] * cmask_ref[...]).astype(jnp.bfloat16)
        y = jnp.dot(xcat, w_ref[...], preferred_element_type=jnp.float32)
        y = y * cs_ref[lyr] + cb_ref[lyr]             # conv-bias + BN(eval) folded
        return jnp.maximum(y, 0.0) * pm

    act = conv3x3(x_ref[...], w1_ref, 0)
    act = conv3x3(act, w2_ref, 1)
    act = conv3x3(act, w3_ref, 2)
    act = conv3x3(act, w4_ref, 3)                     # (Mt, C) f32

    # relayout-free flatten (Mt, C) -> (TB, HW*C), feature j = hw*C + ch.
    # Constants are host-precomputed 0/1 arrays (no in-kernel iota/where).
    a_exp = jnp.dot(act.astype(jnp.bfloat16), trep_ref[...],
                    preferred_element_type=jnp.float32)          # a_exp[p, j] = act[p, j % C]
    scat = (a_exp * fmask_ref[...]).astype(jnp.bfloat16)         # keep j // C == hw(p)
    flat = jnp.dot(rsel_ref[...], scat,
                   preferred_element_type=jnp.float32)           # (TB, HW*C)

    # fc1 -> BN -> ReLU   (dropout p=0.3 is identity in eval mode)
    h = jnp.dot(flat.astype(jnp.bfloat16), f1w_ref[...],
                preferred_element_type=jnp.float32)
    h = jnp.maximum(h * f1s_ref[...] + f1b_ref[...], 0.0)
    # fc2 -> BN -> ReLU
    h = jnp.dot(h.astype(jnp.bfloat16), f2w_ref[...],
                preferred_element_type=jnp.float32)
    h = jnp.maximum(h * f2s_ref[...] + f2b_ref[...], 0.0)

    # policy head: log_softmax(fc3(h), dim=1)
    logits = jnp.dot(h.astype(jnp.bfloat16), f3w_ref[...],
                     preferred_element_type=jnp.float32) + f3b_ref[...]
    zc = logits - jnp.max(logits, axis=1, keepdims=True)
    pi_ref[...] = zc - jnp.log(jnp.sum(jnp.exp(zc), axis=1, keepdims=True))

    # value head: tanh(fc4(h)) as a VPU reduction (avoids an N=1 MXU matmul)
    vlin = jnp.sum(h * f4w_ref[...], axis=1, keepdims=True) + f4b_ref[...]
    v_ref[...] = jnp.tanh(vlin)


# ---------------------------------------------------------------------------
# Host-side constant construction / parameter folding
# ---------------------------------------------------------------------------
def _conv_boundary_masks(tb, h, w, c):
    """(Mt, 9*C) f32 0/1: mask[p, t*C+ci] = 1 iff tap t of row p is in-bounds."""
    hw = h * w
    mt = tb * hw
    m9 = np.zeros((mt, 9), np.float32)
    rem = np.arange(mt) % hw
    ys, xs = rem // w, rem % w
    for ky in range(3):
        for kx in range(3):
            t = ky * 3 + kx
            ok = (ys + ky - 1 >= 0) & (ys + ky - 1 < h) & (xs + kx - 1 >= 0) & (xs + kx - 1 < w)
            m9[:, t] = ok.astype(np.float32)
    return jnp.asarray(np.repeat(m9, c, axis=1))


def _flatten_constants(tb, hw, c):
    """0/1 bf16 constants for the (Mt, C) -> (TB, HW*C) flatten."""
    hwc = hw * c
    mt = tb * hw
    j = np.arange(hwc)
    trep = (j[None, :] % c == np.arange(c)[:, None]).astype(np.float32)          # (C, HWC)
    fmask = (j[None, :] // c == (np.arange(mt) % hw)[:, None]).astype(np.float32)  # (Mt, HWC)
    rsel = (np.arange(mt)[None, :] // hw == np.arange(tb)[:, None]).astype(np.float32)  # (TB, Mt)
    return (jnp.asarray(trep, jnp.bfloat16),
            jnp.asarray(fmask, jnp.bfloat16),
            jnp.asarray(rsel, jnp.bfloat16))


def _fold_conv(cblk, cout, cin_pad):
    cin = cblk["w"].shape[1]
    w = jnp.transpose(cblk["w"], (2, 3, 1, 0))            # (ky, kx, Cin, Cout)
    if cin < cin_pad:
        w = jnp.pad(w, ((0, 0), (0, 0), (0, cin_pad - cin), (0, 0)))
    w9 = w.reshape(9 * cin_pad, cout)                      # row = (ky*3+kx)*Cpad + ci
    scale = cblk["gamma"] / jnp.sqrt(cblk["var"] + EPS)
    bias = (cblk["b"] - cblk["mean"]) * scale + cblk["beta"]
    return w9.astype(jnp.bfloat16), scale, bias


def _fold_fc(fblk):
    scale = fblk["gamma"] / jnp.sqrt(fblk["var"] + EPS)
    bias = fblk["b"] * scale + fblk["beta"] - fblk["mean"] * scale
    return scale, bias


def alphazero_forward(params, s_nchw, game_phase, game_size, num_channels):
    assert num_channels >= 3
    s = s_nchw.reshape(-1, 3, game_size, game_size).astype(jnp.float32)
    batch = s.shape[0]
    h = w = game_size
    hw = h * w
    c = num_channels
    action_size = params["fc3"]["w"].shape[0]

    # batch tiling: one tile when B <= 8, else tiles of 8 (sublane-aligned)
    if batch <= 8:
        tb, b_pad = batch, batch
    else:
        tb = 8
        b_pad = ((batch + 7) // 8) * 8
    mt = tb * hw
    n_tiles = b_pad // tb

    # input rows p = b*HW + y*W + x, channels in the lane dim, padded to C
    x0 = jnp.transpose(s, (0, 2, 3, 1)).reshape(batch * hw, 3)
    x0 = jnp.pad(x0, ((0, (b_pad - batch) * hw), (0, c - 3)))

    cmask = _conv_boundary_masks(tb, h, w, c)
    trep, fmask, rsel = _flatten_constants(tb, hw, c)

    conv_w, conv_s, conv_b = [], [], []
    for i in range(1, 5):
        w9, csc, cbs = _fold_conv(params[f"conv{i}"], c, c)
        conv_w.append(w9)
        conv_s.append(csc)
        conv_b.append(cbs)
    cscale = jnp.stack(conv_s).reshape(4, 1, c)
    cbias = jnp.stack(conv_b).reshape(4, 1, c)

    # fc1: transpose to (In, Out) and permute rows from PyTorch's (C,H,W)
    # flatten order (index ch*HW + hw) to the kernel's (HW, C) order
    # (index hw*C + ch) -> no activation permutation needed at runtime.
    f1 = params["fc1"]
    w1t = jnp.transpose(f1["w"])                                  # rows = ch*HW + hw
    w1t = w1t.reshape(c, hw, -1).transpose(1, 0, 2).reshape(hw * c, -1)
    f1w = w1t.astype(jnp.bfloat16)
    s1, b1 = _fold_fc(f1)

    f2 = params["fc2"]
    f2w = jnp.transpose(f2["w"]).astype(jnp.bfloat16)             # (1024, 512)
    s2, b2 = _fold_fc(f2)

    f3w = jnp.transpose(params["fc3"]["w"]).astype(jnp.bfloat16)  # (512, A)
    f3b = params["fc3"]["b"].reshape(1, action_size)
    f4w = params["fc4"]["w"].reshape(1, -1)                       # (1, 512)
    f4b = params["fc4"]["b"].reshape(1, 1)

    phase_arr = jnp.reshape(jnp.asarray(game_phase, jnp.float32), (1,))

    vmem = pltpu.MemorySpace.VMEM
    smem = pltpu.MemorySpace.SMEM
    in_specs = (
        [pl.BlockSpec(memory_space=smem)]                                  # phase
        + [pl.BlockSpec((mt, c), lambda i: (i, 0))]                        # x0 (batch-row tiled)
        + [pl.BlockSpec(memory_space=vmem)] * 20                           # weights / constants (loaded once)
    )
    out_specs = (pl.BlockSpec((tb, action_size), lambda i: (i, 0)),
                 pl.BlockSpec((tb, 1), lambda i: (i, 0)))

    pi, v = pl.pallas_call(
        functools.partial(_alphazero_kernel, width=w),
        out_shape=(jax.ShapeDtypeStruct((b_pad, action_size), jnp.float32),
                   jax.ShapeDtypeStruct((b_pad, 1), jnp.float32)),
        grid=(n_tiles,),
        in_specs=in_specs,
        out_specs=out_specs,
        scratch_shapes=[pltpu.VMEM((mt, 9 * c), jnp.float32)],
        compiler_params=pltpu.CompilerParams(dimension_semantics=("parallel",)),
    )(phase_arr, x0, cmask,
      conv_w[0], conv_w[1], conv_w[2], conv_w[3], cscale, cbias,
      trep, fmask, rsel,
      f1w, s1.reshape(1, -1), b1.reshape(1, -1),
      f2w, s2.reshape(1, -1), b2.reshape(1, -1),
      f3w, f3b, f4w, f4b)
    return pi[:batch], v[:batch]


# ---------------------------------------------------------------------------
# Pure-JAX (XLA) reference of the same eval-mode forward, for self-validation
# ---------------------------------------------------------------------------
def _reference_forward(params, s_nchw, game_phase, game_size, num_channels):
    s = s_nchw.reshape(-1, 3, game_size, game_size).astype(jnp.float32)
    x = s
    pm = 1.0 + 0.2 * game_phase
    for i in range(1, 5):
        cp = params[f"conv{i}"]
        x = jax.lax.conv_general_dilated(
            x, cp["w"], (1, 1), "SAME",
            dimension_numbers=("NCHW", "OIHW", "NCHW"))
        x = x + cp["b"][None, :, None, None]
        x = (x - cp["mean"][None, :, None, None]) / jnp.sqrt(
            cp["var"][None, :, None, None] + EPS)
        x = x * cp["gamma"][None, :, None, None] + cp["beta"][None, :, None, None]
        x = jnp.maximum(x, 0.0) * pm
    bsz = x.shape[0]
    x = x.reshape(bsz, num_channels * game_size * game_size)
    for name in ("fc1", "fc2"):
        f = params[name]
        x = x @ f["w"].T + f["b"]
        x = (x - f["mean"]) / jnp.sqrt(f["var"] + EPS) * f["gamma"] + f["beta"]
        x = jnp.maximum(x, 0.0)
    logits = x @ params["fc3"]["w"].T + params["fc3"]["b"]
    pi = jax.nn.log_softmax(logits, axis=1)
    v = jnp.tanh(x @ params["fc4"]["w"].T + params["fc4"]["b"])
    return pi, v


# ---------------------------------------------------------------------------
# Deterministic parameter init (synthetic; matches nn.Module shapes)
# ---------------------------------------------------------------------------
def init_params(key, game_size, action_size, num_channels):
    ks = iter(jax.random.split(key, 64))

    def conv_blk(cin, cout):
        return dict(
            w=0.1 * jax.random.normal(next(ks), (cout, cin, 3, 3), jnp.float32),
            b=0.05 * jax.random.normal(next(ks), (cout,), jnp.float32),
            gamma=1.0 + 0.1 * jax.random.normal(next(ks), (cout,), jnp.float32),
            beta=0.05 * jax.random.normal(next(ks), (cout,), jnp.float32),
            mean=0.1 * jax.random.normal(next(ks), (cout,), jnp.float32),
            var=1.0 + 0.1 * jnp.abs(jax.random.normal(next(ks), (cout,), jnp.float32)),
        )

    def lin(out, inp, with_bn):
        d = dict(
            w=0.05 * jax.random.normal(next(ks), (out, inp), jnp.float32),
            b=0.05 * jax.random.normal(next(ks), (out,), jnp.float32),
        )
        if with_bn:
            d.update(
                gamma=1.0 + 0.1 * jax.random.normal(next(ks), (out,), jnp.float32),
                beta=0.05 * jax.random.normal(next(ks), (out,), jnp.float32),
                mean=0.1 * jax.random.normal(next(ks), (out,), jnp.float32),
                var=1.0 + 0.1 * jnp.abs(jax.random.normal(next(ks), (out,), jnp.float32)),
            )
        return d

    flat = num_channels * game_size * game_size
    return dict(
        conv1=conv_blk(3, num_channels),
        conv2=conv_blk(num_channels, num_channels),
        conv3=conv_blk(num_channels, num_channels),
        conv4=conv_blk(num_channels, num_channels),
        # NOTE: bn1..bn4 of AlphaZeroNet are unused in forward(); omitted.
        fc1=lin(1024, flat, True),
        fc2=lin(512, 1024, True),
        fc3=lin(action_size, 512, False),
        fc4=lin(1, 512, False),
    )


if __name__ == "__main__":
    GAME_SIZE = 8
    ACTION_SIZE = 16
    NUM_CHANNELS = 16
    BATCH = 2

    key = jax.random.PRNGKey(0)
    k_params, k_x = jax.random.split(key)
    params = init_params(k_params, GAME_SIZE, ACTION_SIZE, NUM_CHANNELS)

    x = jax.random.normal(k_x, (BATCH, 3, GAME_SIZE, GAME_SIZE), jnp.float32)
    game_phase = jnp.float32(0.5)

    fwd = jax.jit(functools.partial(alphazero_forward,
                                    game_size=GAME_SIZE,
                                    num_channels=NUM_CHANNELS))
    pi, v = fwd(params, x, game_phase)
    pi, v = jax.block_until_ready((pi, v))

    assert pi.shape == (BATCH, ACTION_SIZE) and v.shape == (BATCH, 1)
    assert bool(jnp.all(jnp.isfinite(pi))) and bool(jnp.all(jnp.isfinite(v)))
    # log_softmax rows must exponentiate-sum to 1; v must lie in [-1, 1]
    assert bool(jnp.allclose(jnp.sum(jnp.exp(pi), axis=1), 1.0, atol=1e-3))
    assert bool(jnp.all(jnp.abs(v) <= 1.0 + 1e-6))

    # cross-check against a pure-JAX reference (loose tol: conv/fc matmuls in bf16)
    pi_exp, v_exp = jax.jit(functools.partial(
        _reference_forward, game_size=GAME_SIZE,
        num_channels=NUM_CHANNELS))(params, x, game_phase)
    assert bool(jnp.allclose(pi, pi_exp, atol=0.15)), \
        float(jnp.max(jnp.abs(pi - pi_exp)))
    assert bool(jnp.allclose(v, v_exp, atol=0.1)), \
        float(jnp.max(jnp.abs(v - v_exp)))

    print("KERNEL_OK")
</pallas_src>

<mosaic_0001>
module attributes {stable_mosaic.version = 11 : i64} {
  func.func @_alphazero_kernel(%arg0: i32, %arg1: memref<1xf32, #tpu.memory_space<smem>>, %arg2: memref<128x16xf32, #tpu.memory_space<vmem>>, %arg3: memref<128x144xf32, #tpu.memory_space<vmem>>, %arg4: memref<144x16xbf16, #tpu.memory_space<vmem>>, %arg5: memref<144x16xbf16, #tpu.memory_space<vmem>>, %arg6: memref<144x16xbf16, #tpu.memory_space<vmem>>, %arg7: memref<144x16xbf16, #tpu.memory_space<vmem>>, %arg8: memref<4x1x16xf32, #tpu.memory_space<vmem>>, %arg9: memref<4x1x16xf32, #tpu.memory_space<vmem>>, %arg10: memref<16x1024xbf16, #tpu.memory_space<vmem>>, %arg11: memref<128x1024xbf16, #tpu.memory_space<vmem>>, %arg12: memref<2x128xbf16, #tpu.memory_space<vmem>>, %arg13: memref<1024x1024xbf16, #tpu.memory_space<vmem>>, %arg14: memref<1x1024xf32, #tpu.memory_space<vmem>>, %arg15: memref<1x1024xf32, #tpu.memory_space<vmem>>, %arg16: memref<1024x512xbf16, #tpu.memory_space<vmem>>, %arg17: memref<1x512xf32, #tpu.memory_space<vmem>>, %arg18: memref<1x512xf32, #tpu.memory_space<vmem>>, %arg19: memref<512x16xbf16, #tpu.memory_space<vmem>>, %arg20: memref<1x16xf32, #tpu.memory_space<vmem>>, %arg21: memref<1x512xf32, #tpu.memory_space<vmem>>, %arg22: memref<1x1xf32, #tpu.memory_space<vmem>>, %arg23: memref<2x16xf32, #tpu.memory_space<vmem>>, %arg24: memref<2x1xf32, #tpu.memory_space<vmem>>, %arg25: memref<128x144xf32, #tpu.memory_space<vmem>>) attributes {dimension_semantics = [#tpu.dimension_semantics<parallel>], iteration_bounds = array<i64: 1>, scalar_prefetch = 0 : i64, scratch_operands = 1 : i64, tpu.core_type = #tpu.core_type<tc>, window_params = [{transform_indices = @transform_0, window_bounds = array<i64: 1>}, {transform_indices = @transform_1, window_bounds = array<i64: 128, 16>}, {pipeline_mode = #tpu.pipeline_mode<synchronous>, transform_indices = @transform_2, window_bounds = array<i64: 128, 144>}, {pipeline_mode = #tpu.pipeline_mode<synchronous>, transform_indices = @transform_3, window_bounds = array<i64: 144, 16>}, {pipeline_mode = #tpu.pipeline_mode<synchronous>, transform_indices = @transform_4, window_bounds = array<i64: 144, 16>}, {pipeline_mode = #tpu.pipeline_mode<synchronous>, transform_indices = @transform_5, window_bounds = array<i64: 144, 16>}, {pipeline_mode = #tpu.pipeline_mode<synchronous>, transform_indices = @transform_6, window_bounds = array<i64: 144, 16>}, {pipeline_mode = #tpu.pipeline_mode<synchronous>, transform_indices = @transform_7, window_bounds = array<i64: 4, 1, 16>}, {pipeline_mode = #tpu.pipeline_mode<synchronous>, transform_indices = @transform_8, window_bounds = array<i64: 4, 1, 16>}, {pipeline_mode = #tpu.pipeline_mode<synchronous>, transform_indices = @transform_9, window_bounds = array<i64: 16, 1024>}, {pipeline_mode = #tpu.pipeline_mode<synchronous>, transform_indices = @transform_10, window_bounds = array<i64: 128, 1024>}, {pipeline_mode = #tpu.pipeline_mode<synchronous>, transform_indices = @transform_11, window_bounds = array<i64: 2, 128>}, {pipeline_mode = #tpu.pipeline_mode<synchronous>, transform_indices = @transform_12, window_bounds = array<i64: 1024, 1024>}, {pipeline_mode = #tpu.pipeline_mode<synchronous>, transform_indices = @transform_13, window_bounds = array<i64: 1, 1024>}, {pipeline_mode = #tpu.pipeline_mode<synchronous>, transform_indices = @transform_14, window_bounds = array<i64: 1, 1024>}, {pipeline_mode = #tpu.pipeline_mode<synchronous>, transform_indices = @transform_15, window_bounds = array<i64: 1024, 512>}, {pipeline_mode = #tpu.pipeline_mode<synchronous>, transform_indices = @transform_16, window_bounds = array<i64: 1, 512>}, {pipeline_mode = #tpu.pipeline_mode<synchronous>, transform_indices = @transform_17, window_bounds = array<i64: 1, 512>}, {pipeline_mode = #tpu.pipeline_mode<synchronous>, transform_indices = @transform_18, window_bounds = array<i64: 512, 16>}, {pipeline_mode = #tpu.pipeline_mode<synchronous>, transform_indices = @transform_19, window_bounds = array<i64: 1, 16>}, {pipeline_mode = #tpu.pipeline_mode<synchronous>, transform_indices = @transform_20, window_bounds = array<i64: 1, 512>}, {pipeline_mode = #tpu.pipeline_mode<synchronous>, transform_indices = @transform_21, window_bounds = array<i64: 1, 1>}, {transform_indices = @transform_22, window_bounds = array<i64: 2, 16>}, {transform_indices = @transform_23, window_bounds = array<i64: 2, 1>}]} {
    %c0 = arith.constant 0 : index
    %0 = memref.load %arg1[%c0] : memref<1xf32, #tpu.memory_space<smem>>
    %cst = arith.constant 2.000000e-01 : f32
    %1 = arith.mulf %cst, %0 : f32
    %cst_0 = arith.constant 1.000000e+00 : f32
    %2 = arith.addf %cst_0, %1 : f32
    %c0_1 = arith.constant 0 : index
    %c0_2 = arith.constant 0 : index
    %3 = vector.load %arg2[%c0_1, %c0_2] : memref<128x16xf32, #tpu.memory_space<vmem>>, vector<128x16xf32>
    %c9_i32 = arith.constant 9 : i32
    %4 = tpu.dynamic_rotate %3 by %c9_i32 dim 0 : vector<128x16xf32>, i32 -> vector<128x16xf32>
    %c0_3 = arith.constant 0 : index
    %c0_4 = arith.constant 0 : index
    %5 = vector.load %arg25[%c0_3, %c0_4] : memref<128x144xf32, #tpu.memory_space<vmem>>, vector<128x16xf32>
    tpu.vector_store %arg25[%c0_3, %c0_4], %4 {strides = array<i32>} : memref<128x144xf32, #tpu.memory_space<vmem>>, vector<128x16xf32>,
    %c8_i32 = arith.constant 8 : i32
    %6 = tpu.dynamic_rotate %3 by %c8_i32 dim 0 : vector<128x16xf32>, i32 -> vector<128x16xf32>
    %c0_5 = arith.constant 0 : index
    %c16 = arith.constant 16 : index
    %7 = vector.load %arg25[%c0_5, %c16] : memref<128x144xf32, #tpu.memory_space<vmem>>, vector<128x16xf32>
    tpu.vector_store %arg25[%c0_5, %c16], %6 {strides = array<i32>} : memref<128x144xf32, #tpu.memory_space<vmem>>, vector<128x16xf32>,
    %c7_i32 = arith.constant 7 : i32
    %8 = tpu.dynamic_rotate %3 by %c7_i32 dim 0 : vector<128x16xf32>, i32 -> vector<128x16xf32>
    %c0_6 = arith.constant 0 : index
    %c32 = arith.constant 32 : index
    %9 = vector.load %arg25[%c0_6, %c32] : memref<128x144xf32, #tpu.memory_space<vmem>>, vector<128x16xf32>
    tpu.vector_store %arg25[%c0_6, %c32], %8 {strides = array<i32>} : memref<128x144xf32, #tpu.memory_space<vmem>>, vector<128x16xf32>,
    %c1_i32 = arith.constant 1 : i32
    %10 = tpu.dynamic_rotate %3 by %c1_i32 dim 0 : vector<128x16xf32>, i32 -> vector<128x16xf32>
    %c0_7 = arith.constant 0 : index
    %c48 = arith.constant 48 : index
    %11 = vector.load %arg25[%c0_7, %c48] : memref<128x144xf32, #tpu.memory_space<vmem>>, vector<128x16xf32>
    tpu.vector_store %arg25[%c0_7, %c48], %10 {strides = array<i32>} : memref<128x144xf32, #tpu.memory_space<vmem>>, vector<128x16xf32>,
    %c0_i32 = arith.constant 0 : i32
    %12 = tpu.dynamic_rotate %3 by %c0_i32 dim 0 : vector<128x16xf32>, i32 -> vector<128x16xf32>
    %c0_8 = arith.constant 0 : index
    %c64 = arith.constant 64 : index
    %13 = vector.load %arg25[%c0_8, %c64] : memref<128x144xf32, #tpu.memory_space<vmem>>, vector<128x16xf32>
    tpu.vector_store %arg25[%c0_8, %c64], %12 {strides = array<i32>} : memref<128x144xf32, #tpu.memory_space<vmem>>, vector<128x16xf32>,
    %c127_i32 = arith.constant 127 : i32
    %14 = tpu.dynamic_rotate %3 by %c127_i32 dim 0 : vector<128x16xf32>, i32 -> vector<128x16xf32>
    %c0_9 = arith.constant 0 : index
    %c80 = arith.constant 80 : index
    %15 = vector.load %arg25[%c0_9, %c80] : memref<128x144xf32, #tpu.memory_space<vmem>>, vector<128x16xf32>
    tpu.vector_store %arg25[%c0_9, %c80], %14 {strides = array<i32>} : memref<128x144xf32, #tpu.memory_space<vmem>>, vector<128x16xf32>,
    %c121_i32 = arith.constant 121 : i32
    %16 = tpu.dynamic_rotate %3 by %c121_i32 dim 0 : vector<128x16xf32>, i32 -> vector<128x16xf32>
    %c0_10 = arith.constant 0 : index
    %c96 = arith.constant 96 : index
    %17 = vector.load %arg25[%c0_10, %c96] : memref<128x144xf32, #tpu.memory_space<vmem>>, vector<128x16xf32>
    tpu.vector_store %arg25[%c0_10, %c96], %16 {strides = array<i32>} : memref<128x144xf32, #tpu.memory_space<vmem>>, vector<128x16xf32>,
    %c120_i32 = arith.constant 120 : i32
    %18 = tpu.dynamic_rotate %3 by %c120_i32 dim 0 : vector<128x16xf32>, i32 -> vector<128x16xf32>
    %c0_11 = arith.constant 0 : index
    %c112 = arith.constant 112 : index
    %19 = vector.load %arg25[%c0_11, %c112] : memref<128x144xf32, #tpu.memory_space<vmem>>, vector<128x16xf32>
    tpu.vector_store %arg25[%c0_11, %c112], %18 {strides = array<i32>} : memref<128x144xf32, #tpu.memory_space<vmem>>, vector<128x16xf32>,
    %c119_i32 = arith.constant 119 : i32
    %20 = tpu.dynamic_rotate %3 by %c119_i32 dim 0 : vector<128x16xf32>, i32 -> vector<128x16xf32>
    %c0_12 = arith.constant 0 : index
    %c128 = arith.constant 128 : index
    %21 = vector.load %arg25[%c0_12, %c128] : memref<128x144xf32, #tpu.memory_space<vmem>>, vector<128x16xf32>
    tpu.vector_store %arg25[%c0_12, %c128], %20 {strides = array<i32>} : memref<128x144xf32, #tpu.memory_space<vmem>>, vector<128x16xf32>,
    %c0_13 = arith.constant 0 : index
    %c0_14 = arith.constant 0 : index
    %22 = vector.load %arg25[%c0_13, %c0_14] : memref<128x144xf32, #tpu.memory_space<vmem>>, vector<128x144xf32>
    %c0_15 = arith.constant 0 : index
    %c0_16 = arith.constant 0 : index
    %23 = vector.load %arg3[%c0_15, %c0_16] : memref<128x144xf32, #tpu.memory_space<vmem>>, vector<128x144xf32>
    %24 = arith.mulf %22, %23 : vector<128x144xf32>
    %25 = arith.truncf %24 : vector<128x144xf32> to vector<128x144xbf16>
    %c0_17 = arith.constant 0 : index
    %c0_18 = arith.constant 0 : index
    %26 = vector.load %arg4[%c0_17, %c0_18] : memref<144x16xbf16, #tpu.memory_space<vmem>>, vector<144x16xbf16>
    %cst_19 = arith.constant dense<0.000000e+00> : vector<128x16xf32>
    %27 = tpu.matmul %25, %26, %cst_19 {dimension_numbers = #tpu.dot_dimension_numbers<[1], [0], [0], [1], [0, 0, 1, 1], [], []>} : vector<128x144xbf16>, vector<144x16xbf16>, vector<128x16xf32> -> vector<128x16xf32>
    %c0_20 = arith.constant 0 : index
    %c0_21 = arith.constant 0 : index
    %c0_22 = arith.constant 0 : index
    %28 = vector.load %arg8[%c0_20, %c0_21, %c0_22] : memref<4x1x16xf32, #tpu.memory_space<vmem>>, vector<1x1x16xf32>
    %29 = vector.shape_cast %28 : vector<1x1x16xf32> to vector<1x16xf32>
    %30 = vector.broadcast %29 : vector<1x16xf32> to vector<128x16xf32>
    %31 = arith.mulf %27, %30 : vector<128x16xf32>
    %c0_23 = arith.constant 0 : index
    %c0_24 = arith.constant 0 : index
    %c0_25 = arith.constant 0 : index
    %32 = vector.load %arg9[%c0_23, %c0_24, %c0_25] : memref<4x1x16xf32, #tpu.memory_space<vmem>>, vector<1x1x16xf32>
    %33 = vector.shape_cast %32 : vector<1x1x16xf32> to vector<1x16xf32>
    %34 = vector.broadcast %33 : vector<1x16xf32> to vector<128x16xf32>
    %35 = arith.addf %31, %34 : vector<128x16xf32>
    %cst_26 = arith.constant 0.000000e+00 : f32
    %36 = vector.broadcast %cst_26 : f32 to vector<128x16xf32>
    %37 = arith.maximumf %35, %36 : vector<128x16xf32>
    %38 = vector.broadcast %2 : f32 to vector<128x16xf32>
    %39 = arith.mulf %37, %38 : vector<128x16xf32>
    %c9_i32_27 = arith.constant 9 : i32
    %40 = tpu.dynamic_rotate %39 by %c9_i32_27 dim 0 : vector<128x16xf32>, i32 -> vector<128x16xf32>
    %c0_28 = arith.constant 0 : index
    %c0_29 = arith.constant 0 : index
    %41 = vector.load %arg25[%c0_28, %c0_29] : memref<128x144xf32, #tpu.memory_space<vmem>>, vector<128x16xf32>
    tpu.vector_store %arg25[%c0_28, %c0_29], %40 {strides = array<i32>} : memref<128x144xf32, #tpu.memory_space<vmem>>, vector<128x16xf32>,
    %c8_i32_30 = arith.constant 8 : i32
    %42 = tpu.dynamic_rotate %39 by %c8_i32_30 dim 0 : vector<128x16xf32>, i32 -> vector<128x16xf32>
    %c0_31 = arith.constant 0 : index
    %c16_32 = arith.constant 16 : index
    %43 = vector.load %arg25[%c0_31, %c16_32] : memref<128x144xf32, #tpu.memory_space<vmem>>, vector<128x16xf32>
    tpu.vector_store %arg25[%c0_31, %c16_32], %42 {strides = array<i32>} : memref<128x144xf32, #tpu.memory_space<vmem>>, vector<128x16xf32>,
    %c7_i32_33 = arith.constant 7 : i32
    %44 = tpu.dynamic_rotate %39 by %c7_i32_33 dim 0 : vector<128x16xf32>, i32 -> vector<128x16xf32>
    %c0_34 = arith.constant 0 : index
    %c32_35 = arith.constant 32 : index
    %45 = vector.load %arg25[%c0_34, %c32_35] : memref<128x144xf32, #tpu.memory_space<vmem>>, vector<128x16xf32>
    tpu.vector_store %arg25[%c0_34, %c32_35], %44 {strides = array<i32>} : memref<128x144xf32, #tpu.memory_space<vmem>>, vector<128x16xf32>,
    %c1_i32_36 = arith.constant 1 : i32
    %46 = tpu.dynamic_rotate %39 by %c1_i32_36 dim 0 : vector<128x16xf32>, i32 -> vector<128x16xf32>
    %c0_37 = arith.constant 0 : index
    %c48_38 = arith.constant 48 : index
    %47 = vector.load %arg25[%c0_37, %c48_38] : memref<128x144xf32, #tpu.memory_space<vmem>>, vector<128x16xf32>
    tpu.vector_store %arg25[%c0_37, %c48_38], %46 {strides = array<i32>} : memref<128x144xf32, #tpu.memory_space<vmem>>, vector<128x16xf32>,
    %c0_i32_39 = arith.constant 0 : i32
    %48 = tpu.dynamic_rotate %39 by %c0_i32_39 dim 0 : vector<128x16xf32>, i32 -> vector<128x16xf32>
    %c0_40 = arith.constant 0 : index
    %c64_41 = arith.constant 64 : index
    %49 = vector.load %arg25[%c0_40, %c64_41] : memref<128x144xf32, #tpu.memory_space<vmem>>, vector<128x16xf32>
    tpu.vector_store %arg25[%c0_40, %c64_41], %48 {strides = array<i32>} : memref<128x144xf32, #tpu.memory_space<vmem>>, vector<128x16xf32>,
    %c127_i32_42 = arith.constant 127 : i32
    %50 = tpu.dynamic_rotate %39 by %c127_i32_42 dim 0 : vector<128x16xf32>, i32 -> vector<128x16xf32>
    %c0_43 = arith.constant 0 : index
    %c80_44 = arith.constant 80 : index
    %51 = vector.load %arg25[%c0_43, %c80_44] : memref<128x144xf32, #tpu.memory_space<vmem>>, vector<128x16xf32>
    tpu.vector_store %arg25[%c0_43, %c80_44], %50 {strides = array<i32>} : memref<128x144xf32, #tpu.memory_space<vmem>>, vector<128x16xf32>,
    %c121_i32_45 = arith.constant 121 : i32
    %52 = tpu.dynamic_rotate %39 by %c121_i32_45 dim 0 : vector<128x16xf32>, i32 -> vector<128x16xf32>
    %c0_46 = arith.constant 0 : index
    %c96_47 = arith.constant 96 : index
    %53 = vector.load %arg25[%c0_46, %c96_47] : memref<128x144xf32, #tpu.memory_space<vmem>>, vector<128x16xf32>
    tpu.vector_store %arg25[%c0_46, %c96_47], %52 {strides = array<i32>} : memref<128x144xf32, #tpu.memory_space<vmem>>, vector<128x16xf32>,
    %c120_i32_48 = arith.constant 120 : i32
    %54 = tpu.dynamic_rotate %39 by %c120_i32_48 dim 0 : vector<128x16xf32>, i32 -> vector<128x16xf32>
    %c0_49 = arith.constant 0 : index
    %c112_50 = arith.constant 112 : index
    %55 = vector.load %arg25[%c0_49, %c112_50] : memref<128x144xf32, #tpu.memory_space<vmem>>, vector<128x16xf32>
    tpu.vector_store %arg25[%c0_49, %c112_50], %54 {strides = array<i32>} : memref<128x144xf32, #tpu.memory_space<vmem>>, vector<128x16xf32>,
    %c119_i32_51 = arith.constant 119 : i32
    %56 = tpu.dynamic_rotate %39 by %c119_i32_51 dim 0 : vector<128x16xf32>, i32 -> vector<128x16xf32>
    %c0_52 = arith.constant 0 : index
    %c128_53 = arith.constant 128 : index
    %57 = vector.load %arg25[%c0_52, %c128_53] : memref<128x144xf32, #tpu.memory_space<vmem>>, vector<128x16xf32>
    tpu.vector_store %arg25[%c0_52, %c128_53], %56 {strides = array<i32>} : memref<128x144xf32, #tpu.memory_space<vmem>>, vector<128x16xf32>,
    %c0_54 = arith.constant 0 : index
    %c0_55 = arith.constant 0 : index
    %58 = vector.load %arg25[%c0_54, %c0_55] : memref<128x144xf32, #tpu.memory_space<vmem>>, vector<128x144xf32>
    %c0_56 = arith.constant 0 : index
    %c0_57 = arith.constant 0 : index
    %59 = vector.load %arg3[%c0_56, %c0_57] : memref<128x144xf32, #tpu.memory_space<vmem>>, vector<128x144xf32>
    %60 = arith.mulf %58, %59 : vector<128x144xf32>
    %61 = arith.truncf %60 : vector<128x144xf32> to vector<128x144xbf16>
    %c0_58 = arith.constant 0 : index
    %c0_59 = arith.constant 0 : index
    %62 = vector.load %arg5[%c0_58, %c0_59] : memref<144x16xbf16, #tpu.memory_space<vmem>>, vector<144x16xbf16>
    %cst_60 = arith.constant dense<0.000000e+00> : vector<128x16xf32>
    %63 = tpu.matmul %61, %62, %cst_60 {dimension_numbers = #tpu.dot_dimension_numbers<[1], [0], [0], [1], [0, 0, 1, 1], [], []>} : vector<128x144xbf16>, vector<144x16xbf16>, vector<128x16xf32> -> vector<128x16xf32>
    %c1 = arith.constant 1 : index
    %c0_61 = arith.constant 0 : index
    %c0_62 = arith.constant 0 : index
    %64 = vector.load %arg8[%c1, %c0_61, %c0_62] : memref<4x1x16xf32, #tpu.memory_space<vmem>>, vector<1x1x16xf32>
    %65 = vector.shape_cast %64 : vector<1x1x16xf32> to vector<1x16xf32>
    %66 = vector.broadcast %65 : vector<1x16xf32> to vector<128x16xf32>
    %67 = arith.mulf %63, %66 : vector<128x16xf32>
    %c1_63 = arith.constant 1 : index
    %c0_64 = arith.constant 0 : index
    %c0_65 = arith.constant 0 : index
    %68 = vector.load %arg9[%c1_63, %c0_64, %c0_65] : memref<4x1x16xf32, #tpu.memory_space<vmem>>, vector<1x1x16xf32>
    %69 = vector.shape_cast %68 : vector<1x1x16xf32> to vector<1x16xf32>
    %70 = vector.broadcast %69 : vector<1x16xf32> to vector<128x16xf32>
    %71 = arith.addf %67, %70 : vector<128x16xf32>
    %cst_66 = arith.constant 0.000000e+00 : f32
    %72 = vector.broadcast %cst_66 : f32 to vector<128x16xf32>
    %73 = arith.maximumf %71, %72 : vector<128x16xf32>
    %74 = vector.broadcast %2 : f32 to vector<128x16xf32>
    %75 = arith.mulf %73, %74 : vector<128x16xf32>
    %c9_i32_67 = arith.constant 9 : i32
    %76 = tpu.dynamic_rotate %75 by %c9_i32_67 dim 0 : vector<128x16xf32>, i32 -> vector<128x16xf32>
    %c0_68 = arith.constant 0 : index
    %c0_69 = arith.constant 0 : index
    %77 = vector.load %arg25[%c0_68, %c0_69] : memref<128x144xf32, #tpu.memory_space<vmem>>, vector<128x16xf32>
    tpu.vector_store %arg25[%c0_68, %c0_69], %76 {strides = array<i32>} : memref<128x144xf32, #tpu.memory_space<vmem>>, vector<128x16xf32>,
    %c8_i32_70 = arith.constant 8 : i32
    %78 = tpu.dynamic_rotate %75 by %c8_i32_70 dim 0 : vector<128x16xf32>, i32 -> vector<128x16xf32>
    %c0_71 = arith.constant 0 : index
    %c16_72 = arith.constant 16 : index
    %79 = vector.load %arg25[%c0_71, %c16_72] : memref<128x144xf32, #tpu.memory_space<vmem>>, vector<128x16xf32>
    tpu.vector_store %arg25[%c0_71, %c16_72], %78 {strides = array<i32>} : memref<128x144xf32, #tpu.memory_space<vmem>>, vector<128x16xf32>,
    %c7_i32_73 = arith.constant 7 : i32
    %80 = tpu.dynamic_rotate %75 by %c7_i32_73 dim 0 : vector<128x16xf32>, i32 -> vector<128x16xf32>
    %c0_74 = arith.constant 0 : index
    %c32_75 = arith.constant 32 : index
    %81 = vector.load %arg25[%c0_74, %c32_75] : memref<128x144xf32, #tpu.memory_space<vmem>>, vector<128x16xf32>
    tpu.vector_store %arg25[%c0_74, %c32_75], %80 {strides = array<i32>} : memref<128x144xf32, #tpu.memory_space<vmem>>, vector<128x16xf32>,
    %c1_i32_76 = arith.constant 1 : i32
    %82 = tpu.dynamic_rotate %75 by %c1_i32_76 dim 0 : vector<128x16xf32>, i32 -> vector<128x16xf32>
    %c0_77 = arith.constant 0 : index
    %c48_78 = arith.constant 48 : index
    %83 = vector.load %arg25[%c0_77, %c48_78] : memref<128x144xf32, #tpu.memory_space<vmem>>, vector<128x16xf32>
    tpu.vector_store %arg25[%c0_77, %c48_78], %82 {strides = array<i32>} : memref<128x144xf32, #tpu.memory_space<vmem>>, vector<128x16xf32>,
    %c0_i32_79 = arith.constant 0 : i32
    %84 = tpu.dynamic_rotate %75 by %c0_i32_79 dim 0 : vector<128x16xf32>, i32 -> vector<128x16xf32>
    %c0_80 = arith.constant 0 : index
    %c64_81 = arith.constant 64 : index
    %85 = vector.load %arg25[%c0_80, %c64_81] : memref<128x144xf32, #tpu.memory_space<vmem>>, vector<128x16xf32>
    tpu.vector_store %arg25[%c0_80, %c64_81], %84 {strides = array<i32>} : memref<128x144xf32, #tpu.memory_space<vmem>>, vector<128x16xf32>,
    %c127_i32_82 = arith.constant 127 : i32
    %86 = tpu.dynamic_rotate %75 by %c127_i32_82 dim 0 : vector<128x16xf32>, i32 -> vector<128x16xf32>
    %c0_83 = arith.constant 0 : index
    %c80_84 = arith.constant 80 : index
    %87 = vector.load %arg25[%c0_83, %c80_84] : memref<128x144xf32, #tpu.memory_space<vmem>>, vector<128x16xf32>
    tpu.vector_store %arg25[%c0_83, %c80_84], %86 {strides = array<i32>} : memref<128x144xf32, #tpu.memory_space<vmem>>, vector<128x16xf32>,
    %c121_i32_85 = arith.constant 121 : i32
    %88 = tpu.dynamic_rotate %75 by %c121_i32_85 dim 0 : vector<128x16xf32>, i32 -> vector<128x16xf32>
    %c0_86 = arith.constant 0 : index
    %c96_87 = arith.constant 96 : index
    %89 = vector.load %arg25[%c0_86, %c96_87] : memref<128x144xf32, #tpu.memory_space<vmem>>, vector<128x16xf32>
    tpu.vector_store %arg25[%c0_86, %c96_87], %88 {strides = array<i32>} : memref<128x144xf32, #tpu.memory_space<vmem>>, vector<128x16xf32>,
    %c120_i32_88 = arith.constant 120 : i32
    %90 = tpu.dynamic_rotate %75 by %c120_i32_88 dim 0 : vector<128x16xf32>, i32 -> vector<128x16xf32>
    %c0_89 = arith.constant 0 : index
    %c112_90 = arith.constant 112 : index
    %91 = vector.load %arg25[%c0_89, %c112_90] : memref<128x144xf32, #tpu.memory_space<vmem>>, vector<128x16xf32>
    tpu.vector_store %arg25[%c0_89, %c112_90], %90 {strides = array<i32>} : memref<128x144xf32, #tpu.memory_space<vmem>>, vector<128x16xf32>,
    %c119_i32_91 = arith.constant 119 : i32
    %92 = tpu.dynamic_rotate %75 by %c119_i32_91 dim 0 : vector<128x16xf32>, i32 -> vector<128x16xf32>
    %c0_92 = arith.constant 0 : index
    %c128_93 = arith.constant 128 : index
    %93 = vector.load %arg25[%c0_92, %c128_93] : memref<128x144xf32, #tpu.memory_space<vmem>>, vector<128x16xf32>
    tpu.vector_store %arg25[%c0_92, %c128_93], %92 {strides = array<i32>} : memref<128x144xf32, #tpu.memory_space<vmem>>, vector<128x16xf32>,
    %c0_94 = arith.constant 0 : index
    %c0_95 = arith.constant 0 : index
    %94 = vector.load %arg25[%c0_94, %c0_95] : memref<128x144xf32, #tpu.memory_space<vmem>>, vector<128x144xf32>
    %c0_96 = arith.constant 0 : index
    %c0_97 = arith.constant 0 : index
    %95 = vector.load %arg3[%c0_96, %c0_97] : memref<128x144xf32, #tpu.memory_space<vmem>>, vector<128x144xf32>
    %96 = arith.mulf %94, %95 : vector<128x144xf32>
    %97 = arith.truncf %96 : vector<128x144xf32> to vector<128x144xbf16>
    %c0_98 = arith.constant 0 : index
    %c0_99 = arith.constant 0 : index
    %98 = vector.load %arg6[%c0_98, %c0_99] : memref<144x16xbf16, #tpu.memory_space<vmem>>, vector<144x16xbf16>
    %cst_100 = arith.constant dense<0.000000e+00> : vector<128x16xf32>
    %99 = tpu.matmul %97, %98, %cst_100 {dimension_numbers = #tpu.dot_dimension_numbers<[1], [0], [0], [1], [0, 0, 1, 1], [], []>} : vector<128x144xbf16>, vector<144x16xbf16>, vector<128x16xf32> -> vector<128x16xf32>
    %c2 = arith.constant 2 : index
    %c0_101 = arith.constant 0 : index
    %c0_102 = arith.constant 0 : index
    %100 = vector.load %arg8[%c2, %c0_101, %c0_102] : memref<4x1x16xf32, #tpu.memory_space<vmem>>, vector<1x1x16xf32>
    %101 = vector.shape_cast %100 : vector<1x1x16xf32> to vector<1x16xf32>
    %102 = vector.broadcast %101 : vector<1x16xf32> to vector<128x16xf32>
    %103 = arith.mulf %99, %102 : vector<128x16xf32>
    %c2_103 = arith.constant 2 : index
    %c0_104 = arith.constant 0 : index
    %c0_105 = arith.constant 0 : index
    %104 = vector.load %arg9[%c2_103, %c0_104, %c0_105] : memref<4x1x16xf32, #tpu.memory_space<vmem>>, vector<1x1x16xf32>
    %105 = vector.shape_cast %104 : vector<1x1x16xf32> to vector<1x16xf32>
    %106 = vector.broadcast %105 : vector<1x16xf32> to vector<128x16xf32>
    %107 = arith.addf %103, %106 : vector<128x16xf32>
    %cst_106 = arith.constant 0.000000e+00 : f32
    %108 = vector.broadcast %cst_106 : f32 to vector<128x16xf32>
    %109 = arith.maximumf %107, %108 : vector<128x16xf32>
    %110 = vector.broadcast %2 : f32 to vector<128x16xf32>
    %111 = arith.mulf %109, %110 : vector<128x16xf32>
    %c9_i32_107 = arith.constant 9 : i32
    %112 = tpu.dynamic_rotate %111 by %c9_i32_107 dim 0 : vector<128x16xf32>, i32 -> vector<128x16xf32>
    %c0_108 = arith.constant 0 : index
    %c0_109 = arith.constant 0 : index
    %113 = vector.load %arg25[%c0_108, %c0_109] : memref<128x144xf32, #tpu.memory_space<vmem>>, vector<128x16xf32>
    tpu.vector_store %arg25[%c0_108, %c0_109], %112 {strides = array<i32>} : memref<128x144xf32, #tpu.memory_space<vmem>>, vector<128x16xf32>,
    %c8_i32_110 = arith.constant 8 : i32
    %114 = tpu.dynamic_rotate %111 by %c8_i32_110 dim 0 : vector<128x16xf32>, i32 -> vector<128x16xf32>
    %c0_111 = arith.constant 0 : index
    %c16_112 = arith.constant 16 : index
    %115 = vector.load %arg25[%c0_111, %c16_112] : memref<128x144xf32, #tpu.memory_space<vmem>>, vector<128x16xf32>
    tpu.vector_store %arg25[%c0_111, %c16_112], %114 {strides = array<i32>} : memref<128x144xf32, #tpu.memory_space<vmem>>, vector<128x16xf32>,
    %c7_i32_113 = arith.constant 7 : i32
    %116 = tpu.dynamic_rotate %111 by %c7_i32_113 dim 0 : vector<128x16xf32>, i32 -> vector<128x16xf32>
    %c0_114 = arith.constant 0 : index
    %c32_115 = arith.constant 32 : index
    %117 = vector.load %arg25[%c0_114, %c32_115] : memref<128x144xf32, #tpu.memory_space<vmem>>, vector<128x16xf32>
    tpu.vector_store %arg25[%c0_114, %c32_115], %116 {strides = array<i32>} : memref<128x144xf32, #tpu.memory_space<vmem>>, vector<128x16xf32>,
    %c1_i32_116 = arith.constant 1 : i32
    %118 = tpu.dynamic_rotate %111 by %c1_i32_116 dim 0 : vector<128x16xf32>, i32 -> vector<128x16xf32>
    %c0_117 = arith.constant 0 : index
    %c48_118 = arith.constant 48 : index
    %119 = vector.load %arg25[%c0_117, %c48_118] : memref<128x144xf32, #tpu.memory_space<vmem>>, vector<128x16xf32>
    tpu.vector_store %arg25[%c0_117, %c48_118], %118 {strides = array<i32>} : memref<128x144xf32, #tpu.memory_space<vmem>>, vector<128x16xf32>,
    %c0_i32_119 = arith.constant 0 : i32
    %120 = tpu.dynamic_rotate %111 by %c0_i32_119 dim 0 : vector<128x16xf32>, i32 -> vector<128x16xf32>
    %c0_120 = arith.constant 0 : index
    %c64_121 = arith.constant 64 : index
    %121 = vector.load %arg25[%c0_120, %c64_121] : memref<128x144xf32, #tpu.memory_space<vmem>>, vector<128x16xf32>
    tpu.vector_store %arg25[%c0_120, %c64_121], %120 {strides = array<i32>} : memref<128x144xf32, #tpu.memory_space<vmem>>, vector<128x16xf32>,
    %c127_i32_122 = arith.constant 127 : i32
    %122 = tpu.dynamic_rotate %111 by %c127_i32_122 dim 0 : vector<128x16xf32>, i32 -> vector<128x16xf32>
    %c0_123 = arith.constant 0 : index
    %c80_124 = arith.constant 80 : index
    %123 = vector.load %arg25[%c0_123, %c80_124] : memref<128x144xf32, #tpu.memory_space<vmem>>, vector<128x16xf32>
    tpu.vector_store %arg25[%c0_123, %c80_124], %122 {strides = array<i32>} : memref<128x144xf32, #tpu.memory_space<vmem>>, vector<128x16xf32>,
    %c121_i32_125 = arith.constant 121 : i32
    %124 = tpu.dynamic_rotate %111 by %c121_i32_125 dim 0 : vector<128x16xf32>, i32 -> vector<128x16xf32>
    %c0_126 = arith.constant 0 : index
    %c96_127 = arith.constant 96 : index
    %125 = vector.load %arg25[%c0_126, %c96_127] : memref<128x144xf32, #tpu.memory_space<vmem>>, vector<128x16xf32>
    tpu.vector_store %arg25[%c0_126, %c96_127], %124 {strides = array<i32>} : memref<128x144xf32, #tpu.memory_space<vmem>>, vector<128x16xf32>,
    %c120_i32_128 = arith.constant 120 : i32
    %126 = tpu.dynamic_rotate %111 by %c120_i32_128 dim 0 : vector<128x16xf32>, i32 -> vector<128x16xf32>
    %c0_129 = arith.constant 0 : index
    %c112_130 = arith.constant 112 : index
    %127 = vector.load %arg25[%c0_129, %c112_130] : memref<128x144xf32, #tpu.memory_space<vmem>>, vector<128x16xf32>
    tpu.vector_store %arg25[%c0_129, %c112_130], %126 {strides = array<i32>} : memref<128x144xf32, #tpu.memory_space<vmem>>, vector<128x16xf32>,
    %c119_i32_131 = arith.constant 119 : i32
    %128 = tpu.dynamic_rotate %111 by %c119_i32_131 dim 0 : vector<128x16xf32>, i32 -> vector<128x16xf32>
    %c0_132 = arith.constant 0 : index
    %c128_133 = arith.constant 128 : index
    %129 = vector.load %arg25[%c0_132, %c128_133] : memref<128x144xf32, #tpu.memory_space<vmem>>, vector<128x16xf32>
    tpu.vector_store %arg25[%c0_132, %c128_133], %128 {strides = array<i32>} : memref<128x144xf32, #tpu.memory_space<vmem>>, vector<128x16xf32>,
    %c0_134 = arith.constant 0 : index
    %c0_135 = arith.constant 0 : index
    %130 = vector.load %arg25[%c0_134, %c0_135] : memref<128x144xf32, #tpu.memory_space<vmem>>, vector<128x144xf32>
    %c0_136 = arith.constant 0 : index
    %c0_137 = arith.constant 0 : index
    %131 = vector.load %arg3[%c0_136, %c0_137] : memref<128x144xf32, #tpu.memory_space<vmem>>, vector<128x144xf32>
    %132 = arith.mulf %130, %131 : vector<128x144xf32>
    %133 = arith.truncf %132 : vector<128x144xf32> to vector<128x144xbf16>
    %c0_138 = arith.constant 0 : index
    %c0_139 = arith.constant 0 : index
    %134 = vector.load %arg7[%c0_138, %c0_139] : memref<144x16xbf16, #tpu.memory_space<vmem>>, vector<144x16xbf16>
    %cst_140 = arith.constant dense<0.000000e+00> : vector<128x16xf32>
    %135 = tpu.matmul %133, %134, %cst_140 {dimension_numbers = #tpu.dot_dimension_numbers<[1], [0], [0], [1], [0, 0, 1, 1], [], []>} : vector<128x144xbf16>, vector<144x16xbf16>, vector<128x16xf32> -> vector<128x16xf32>
    %c3 = arith.constant 3 : index
    %c0_141 = arith.constant 0 : index
    %c0_142 = arith.constant 0 : index
    %136 = vector.load %arg8[%c3, %c0_141, %c0_142] : memref<4x1x16xf32, #tpu.memory_space<vmem>>, vector<1x1x16xf32>
    %137 = vector.shape_cast %136 : vector<1x1x16xf32> to vector<1x16xf32>
    %138 = vector.broadcast %137 : vector<1x16xf32> to vector<128x16xf32>
    %139 = arith.mulf %135, %138 : vector<128x16xf32>
    %c3_143 = arith.constant 3 : index
    %c0_144 = arith.constant 0 : index
    %c0_145 = arith.constant 0 : index
    %140 = vector.load %arg9[%c3_143, %c0_144, %c0_145] : memref<4x1x16xf32, #tpu.memory_space<vmem>>, vector<1x1x16xf32>
    %141 = vector.shape_cast %140 : vector<1x1x16xf32> to vector<1x16xf32>
    %142 = vector.broadcast %141 : vector<1x16xf32> to vector<128x16xf32>
    %143 = arith.addf %139, %142 : vector<128x16xf32>
    %cst_146 = arith.constant 0.000000e+00 : f32
    %144 = vector.broadcast %cst_146 : f32 to vector<128x16xf32>
    %145 = arith.maximumf %143, %144 : vector<128x16xf32>
    %146 = vector.broadcast %2 : f32 to vector<128x16xf32>
    %147 = arith.mulf %145, %146 : vector<128x16xf32>
    %148 = arith.truncf %147 : vector<128x16xf32> to vector<128x16xbf16>
    %c0_147 = arith.constant 0 : index
    %c0_148 = arith.constant 0 : index
    %149 = vector.load %arg10[%c0_147, %c0_148] : memref<16x1024xbf16, #tpu.memory_space<vmem>>, vector<16x1024xbf16>
    %cst_149 = arith.constant dense<0.000000e+00> : vector<128x1024xf32>
    %150 = tpu.matmul %148, %149, %cst_149 {dimension_numbers = #tpu.dot_dimension_numbers<[1], [0], [0], [1], [0, 0, 1, 1], [], []>} : vector<128x16xbf16>, vector<16x1024xbf16>, vector<128x1024xf32> -> vector<128x1024xf32>
    %c0_150 = arith.constant 0 : index
    %c0_151 = arith.constant 0 : index
    %151 = vector.load %arg11[%c0_150, %c0_151] : memref<128x1024xbf16, #tpu.memory_space<vmem>>, vector<128x1024xbf16>
    %152 = arith.extf %151 : vector<128x1024xbf16> to vector<128x1024xf32>
    %153 = arith.mulf %150, %152 : vector<128x1024xf32>
    %154 = arith.truncf %153 : vector<128x1024xf32> to vector<128x1024xbf16>
    %c0_152 = arith.constant 0 : index
    %c0_153 = arith.constant 0 : index
    %155 = vector.load %arg12[%c0_152, %c0_153] : memref<2x128xbf16, #tpu.memory_space<vmem>>, vector<2x128xbf16>
    %cst_154 = arith.constant dense<0.000000e+00> : vector<2x1024xf32>
    %156 = tpu.matmul %155, %154, %cst_154 {dimension_numbers = #tpu.dot_dimension_numbers<[1], [0], [0], [1], [0, 0, 1, 1], [], []>} : vector<2x128xbf16>, vector<128x1024xbf16>, vector<2x1024xf32> -> vector<2x1024xf32>
    %157 = arith.truncf %156 : vector<2x1024xf32> to vector<2x1024xbf16>
    %c0_155 = arith.constant 0 : index
    %c0_156 = arith.constant 0 : index
    %158 = vector.load %arg13[%c0_155, %c0_156] : memref<1024x1024xbf16, #tpu.memory_space<vmem>>, vector<1024x1024xbf16>
    %cst_157 = arith.constant dense<0.000000e+00> : vector<2x1024xf32>
    %159 = tpu.matmul %157, %158, %cst_157 {dimension_numbers = #tpu.dot_dimension_numbers<[1], [0], [0], [1], [0, 0, 1, 1], [], []>} : vector<2x1024xbf16>, vector<1024x1024xbf16>, vector<2x1024xf32> -> vector<2x1024xf32>
    %c0_158 = arith.constant 0 : index
    %c0_159 = arith.constant 0 : index
    %160 = vector.load %arg14[%c0_158, %c0_159] : memref<1x1024xf32, #tpu.memory_space<vmem>>, vector<1x1024xf32>
    %161 = vector.broadcast %160 : vector<1x1024xf32> to vector<2x1024xf32>
    %162 = arith.mulf %159, %161 : vector<2x1024xf32>
    %c0_160 = arith.constant 0 : index
    %c0_161 = arith.constant 0 : index
    %163 = vector.load %arg15[%c0_160, %c0_161] : memref<1x1024xf32, #tpu.memory_space<vmem>>, vector<1x1024xf32>
    %164 = vector.broadcast %163 : vector<1x1024xf32> to vector<2x1024xf32>
    %165 = arith.addf %162, %164 : vector<2x1024xf32>
    %cst_162 = arith.constant 0.000000e+00 : f32
    %166 = vector.broadcast %cst_162 : f32 to vector<2x1024xf32>
    %167 = arith.maximumf %165, %166 : vector<2x1024xf32>
    %168 = arith.truncf %167 : vector<2x1024xf32> to vector<2x1024xbf16>
    %c0_163 = arith.constant 0 : index
    %c0_164 = arith.constant 0 : index
    %169 = vector.load %arg16[%c0_163, %c0_164] : memref<1024x512xbf16, #tpu.memory_space<vmem>>, vector<1024x512xbf16>
    %cst_165 = arith.constant dense<0.000000e+00> : vector<2x512xf32>
    %170 = tpu.matmul %168, %169, %cst_165 {dimension_numbers = #tpu.dot_dimension_numbers<[1], [0], [0], [1], [0, 0, 1, 1], [], []>} : vector<2x1024xbf16>, vector<1024x512xbf16>, vector<2x512xf32> -> vector<2x512xf32>
    %c0_166 = arith.constant 0 : index
    %c0_167 = arith.constant 0 : index
    %171 = vector.load %arg17[%c0_166, %c0_167] : memref<1x512xf32, #tpu.memory_space<vmem>>, vector<1x512xf32>
    %172 = vector.broadcast %171 : vector<1x512xf32> to vector<2x512xf32>
    %173 = arith.mulf %170, %172 : vector<2x512xf32>
    %c0_168 = arith.constant 0 : index
    %c0_169 = arith.constant 0 : index
    %174 = vector.load %arg18[%c0_168, %c0_169] : memref<1x512xf32, #tpu.memory_space<vmem>>, vector<1x512xf32>
    %175 = vector.broadcast %174 : vector<1x512xf32> to vector<2x512xf32>
    %176 = arith.addf %173, %175 : vector<2x512xf32>
    %cst_170 = arith.constant 0.000000e+00 : f32
    %177 = vector.broadcast %cst_170 : f32 to vector<2x512xf32>
    %178 = arith.maximumf %176, %177 : vector<2x512xf32>
    %179 = arith.truncf %178 : vector<2x512xf32> to vector<2x512xbf16>
    %c0_171 = arith.constant 0 : index
    %c0_172 = arith.constant 0 : index
    %180 = vector.load %arg19[%c0_171, %c0_172] : memref<512x16xbf16, #tpu.memory_space<vmem>>, vector<512x16xbf16>
    %cst_173 = arith.constant dense<0.000000e+00> : vector<2x16xf32>
    %181 = tpu.matmul %179, %180, %cst_173 {dimension_numbers = #tpu.dot_dimension_numbers<[1], [0], [0], [1], [0, 0, 1, 1], [], []>} : vector<2x512xbf16>, vector<512x16xbf16>, vector<2x16xf32> -> vector<2x16xf32>
    %c0_174 = arith.constant 0 : index
    %c0_175 = arith.constant 0 : index
    %182 = vector.load %arg20[%c0_174, %c0_175] : memref<1x16xf32, #tpu.memory_space<vmem>>, vector<1x16xf32>
    %183 = vector.broadcast %182 : vector<1x16xf32> to vector<2x16xf32>
    %184 = arith.addf %181, %183 : vector<2x16xf32>
    %cst_176 = arith.constant dense<0xFF800000> : vector<2xf32>
    %185 = vector.multi_reduction <maximumf>, %184, %cst_176 [1] : vector<2x16xf32> to vector<2xf32>
    %186 = vector.shape_cast %185 : vector<2xf32> to vector<2x1xf32>
    %187 = vector.broadcast %186 : vector<2x1xf32> to vector<2x16xf32>
    %188 = arith.subf %184, %187 : vector<2x16xf32>
    %189 = math.exp %188 : vector<2x16xf32>
    %cst_177 = arith.constant dense<0.000000e+00> : vector<2xf32>
    %190 = vector.multi_reduction <add>, %189, %cst_177 [1] : vector<2x16xf32> to vector<2xf32>
    %191 = vector.shape_cast %190 : vector<2xf32> to vector<2x1xf32>
    %192 = math.log %191 : vector<2x1xf32>
    %193 = vector.broadcast %192 : vector<2x1xf32> to vector<2x16xf32>
    %194 = arith.subf %188, %193 : vector<2x16xf32>
    %c0_178 = arith.constant 0 : index
    %c0_179 = arith.constant 0 : index
    %195 = vector.load %arg23[%c0_178, %c0_179] : memref<2x16xf32, #tpu.memory_space<vmem>>, vector<2x16xf32>
    tpu.vector_store %arg23[%c0_178, %c0_179], %194 {strides = array<i32>} : memref<2x16xf32, #tpu.memory_space<vmem>>, vector<2x16xf32>,
    %c0_180 = arith.constant 0 : index
    %c0_181 = arith.constant 0 : index
    %196 = vector.load %arg21[%c0_180, %c0_181] : memref<1x512xf32, #tpu.memory_space<vmem>>, vector<1x512xf32>
    %197 = vector.broadcast %196 : vector<1x512xf32> to vector<2x512xf32>
    %198 = arith.mulf %178, %197 : vector<2x512xf32>
    %cst_182 = arith.constant dense<0.000000e+00> : vector<2xf32>
    %199 = vector.multi_reduction <add>, %198, %cst_182 [1] : vector<2x512xf32> to vector<2xf32>
    %200 = vector.shape_cast %199 : vector<2xf32> to vector<2x1xf32>
    %c0_183 = arith.constant 0 : index
    %c0_184 = arith.constant 0 : index
    %201 = vector.load %arg22[%c0_183, %c0_184] : memref<1x1xf32, #tpu.memory_space<vmem>>, vector<1x1xf32>
    %202 = vector.broadcast %201 : vector<1x1xf32> to vector<2x1xf32>
    %203 = arith.addf %200, %202 : vector<2x1xf32>
    %204 = math.tanh %203 : vector<2x1xf32>
    %c0_185 = arith.constant 0 : index
    %c0_186 = arith.constant 0 : index
    %205 = vector.load %arg24[%c0_185, %c0_186] : memref<2x1xf32, #tpu.memory_space<vmem>>, vector<2x1xf32>
    tpu.vector_store %arg24[%c0_185, %c0_186], %204 {strides = array<i32>} : memref<2x1xf32, #tpu.memory_space<vmem>>, vector<2x1xf32>,
    return
  }
  func.func @transform_0(%arg0: i32) -> i32 {
    %c0_i32 = arith.constant 0 : i32
    %c0_i32_0 = arith.constant 0 : i32
    return %c0_i32 : i32
  }
  func.func @transform_1(%arg0: i32) -> (i32, i32) {
    %c0_i32 = arith.constant 0 : i32
    %c0_i32_0 = arith.constant 0 : i32
    return %arg0, %c0_i32 : i32, i32
  }
  func.func @transform_2(%arg0: i32) -> (i32, i32) {
    %c0_i32 = arith.constant 0 : i32
    %c0_i32_0 = arith.constant 0 : i32
    %c0_i32_1 = arith.constant 0 : i32
    return %c0_i32, %c0_i32_0 : i32, i32
  }
  func.func @transform_3(%arg0: i32) -> (i32, i32) {
    %c0_i32 = arith.constant 0 : i32
    %c0_i32_0 = arith.constant 0 : i32
    %c0_i32_1 = arith.constant 0 : i32
    return %c0_i32, %c0_i32_0 : i32, i32
  }
  func.func @transform_4(%arg0: i32) -> (i32, i32) {
    %c0_i32 = arith.constant 0 : i32
    %c0_i32_0 = arith.constant 0 : i32
    %c0_i32_1 = arith.constant 0 : i32
    return %c0_i32, %c0_i32_0 : i32, i32
  }
  func.func @transform_5(%arg0: i32) -> (i32, i32) {
    %c0_i32 = arith.constant 0 : i32
    %c0_i32_0 = arith.constant 0 : i32
    %c0_i32_1 = arith.constant 0 : i32
    return %c0_i32, %c0_i32_0 : i32, i32
  }
  func.func @transform_6(%arg0: i32) -> (i32, i32) {
    %c0_i32 = arith.constant 0 : i32
    %c0_i32_0 = arith.constant 0 : i32
    %c0_i32_1 = arith.constant 0 : i32
    return %c0_i32, %c0_i32_0 : i32, i32
  }
  func.func @transform_7(%arg0: i32) -> (i32, i32, i32) {
    %c0_i32 = arith.constant 0 : i32
    %c0_i32_0 = arith.constant 0 : i32
    %c0_i32_1 = arith.constant 0 : i32
    %c0_i32_2 = arith.constant 0 : i32
    return %c0_i32, %c0_i32_0, %c0_i32_1 : i32, i32, i32
  }
  func.func @transform_8(%arg0: i32) -> (i32, i32, i32) {
    %c0_i32 = arith.constant 0 : i32
    %c0_i32_0 = arith.constant 0 : i32
    %c0_i32_1 = arith.constant 0 : i32
    %c0_i32_2 = arith.constant 0 : i32
    return %c0_i32, %c0_i32_0, %c0_i32_1 : i32, i32, i32
  }
  func.func @transform_9(%arg0: i32) -> (i32, i32) {
    %c0_i32 = arith.constant 0 : i32
    %c0_i32_0 = arith.constant 0 : i32
    %c0_i32_1 = arith.constant 0 : i32
    return %c0_i32, %c0_i32_0 : i32, i32
  }
  func.func @transform_10(%arg0: i32) -> (i32, i32) {
    %c0_i32 = arith.constant 0 : i32
    %c0_i32_0 = arith.constant 0 : i32
    %c0_i32_1 = arith.constant 0 : i32
    return %c0_i32, %c0_i32_0 : i32, i32
  }
  func.func @transform_11(%arg0: i32) -> (i32, i32) {
    %c0_i32 = arith.constant 0 : i32
    %c0_i32_0 = arith.constant 0 : i32
    %c0_i32_1 = arith.constant 0 : i32
    return %c0_i32, %c0_i32_0 : i32, i32
  }
  func.func @transform_12(%arg0: i32) -> (i32, i32) {
    %c0_i32 = arith.constant 0 : i32
    %c0_i32_0 = arith.constant 0 : i32
    %c0_i32_1 = arith.constant 0 : i32
    return %c0_i32, %c0_i32_0 : i32, i32
  }
  func.func @transform_13(%arg0: i32) -> (i32, i32) {
    %c0_i32 = arith.constant 0 : i32
    %c0_i32_0 = arith.constant 0 : i32
    %c0_i32_1 = arith.constant 0 : i32
    return %c0_i32, %c0_i32_0 : i32, i32
  }
  func.func @transform_14(%arg0: i32) -> (i32, i32) {
    %c0_i32 = arith.constant 0 : i32
    %c0_i32_0 = arith.constant 0 : i32
    %c0_i32_1 = arith.constant 0 : i32
    return %c0_i32, %c0_i32_0 : i32, i32
  }
  func.func @transform_15(%arg0: i32) -> (i32, i32) {
    %c0_i32 = arith.constant 0 : i32
    %c0_i32_0 = arith.constant 0 : i32
    %c0_i32_1 = arith.constant 0 : i32
    return %c0_i32, %c0_i32_0 : i32, i32
  }
  func.func @transform_16(%arg0: i32) -> (i32, i32) {
    %c0_i32 = arith.constant 0 : i32
    %c0_i32_0 = arith.constant 0 : i32
    %c0_i32_1 = arith.constant 0 : i32
    return %c0_i32, %c0_i32_0 : i32, i32
  }
  func.func @transform_17(%arg0: i32) -> (i32, i32) {
    %c0_i32 = arith.constant 0 : i32
    %c0_i32_0 = arith.constant 0 : i32
    %c0_i32_1 = arith.constant 0 : i32
    return %c0_i32, %c0_i32_0 : i32, i32
  }
  func.func @transform_18(%arg0: i32) -> (i32, i32) {
    %c0_i32 = arith.constant 0 : i32
    %c0_i32_0 = arith.constant 0 : i32
    %c0_i32_1 = arith.constant 0 : i32
    return %c0_i32, %c0_i32_0 : i32, i32
  }
  func.func @transform_19(%arg0: i32) -> (i32, i32) {
    %c0_i32 = arith.constant 0 : i32
    %c0_i32_0 = arith.constant 0 : i32
    %c0_i32_1 = arith.constant 0 : i32
    return %c0_i32, %c0_i32_0 : i32, i32
  }
  func.func @transform_20(%arg0: i32) -> (i32, i32) {
    %c0_i32 = arith.constant 0 : i32
    %c0_i32_0 = arith.constant 0 : i32
    %c0_i32_1 = arith.constant 0 : i32
    return %c0_i32, %c0_i32_0 : i32, i32
  }
  func.func @transform_21(%arg0: i32) -> (i32, i32) {
    %c0_i32 = arith.constant 0 : i32
    %c0_i32_0 = arith.constant 0 : i32
    %c0_i32_1 = arith.constant 0 : i32
    return %c0_i32, %c0_i32_0 : i32, i32
  }
  func.func @transform_22(%arg0: i32) -> (i32, i32) {
    %c0_i32 = arith.constant 0 : i32
    %c0_i32_0 = arith.constant 0 : i32
    return %arg0, %c0_i32 : i32, i32
  }
  func.func @transform_23(%arg0: i32) -> (i32, i32) {
    %c0_i32 = arith.constant 0 : i32
    %c0_i32_0 = arith.constant 0 : i32
    return %arg0, %c0_i32 : i32, i32
  }
}

</mosaic_0001>

<bundles_post_ra>
// kernel: alphazero_forward.1
= control target key start
LH: loop header
LB: loop body
LE: loop exit
PB: predicated region body
PF: predicated region fallthrough
CT: control target
= control target key end

     0   :  { %s19715_s0 = inlined_call_operand.<no memory space> [shape: f32[1], index: 0, kind: input, shape index: {}]   ;;  %s19716_s1 = inlined_call_operand.vmem [shape: f32[128,16], index: 1, kind: input, shape index: {}]   ;;  %s19717_s2 = inlined_call_operand.vmem [shape: f32[128,144], index: 2, kind: input, shape index: {}]   ;;  %s19718_s3 = inlined_call_operand.vmem [shape: bf16[144,16], index: 3, kind: input, shape index: {}]   ;;  %s19719_s4 = inlined_call_operand.vmem [shape: bf16[144,16], index: 4, kind: input, shape index: {}]   ;;  %s19720_s5 = inlined_call_operand.vmem [shape: bf16[144,16], index: 5, kind: input, shape index: {}]   ;;  %s19721_s6 = inlined_call_operand.vmem [shape: bf16[144,16], index: 6, kind: input, shape index: {}]   ;;  %s19722_s7 = inlined_call_operand.vmem [shape: f32[4,1,16], index: 7, kind: input, shape index: {}]   ;;  %s19723_s8 = inlined_call_operand.vmem [shape: f32[4,1,16], index: 8, kind: input, shape index: {}]   ;;  %s19724_s9 = inlined_call_operand.vmem [shape: bf16[16,1024], index: 9, kind: input, shape index: {}]   ;;  %s19725_s10 = inlined_call_operand.vmem [shape: bf16[128,1024], index: 10, kind: input, shape index: {}]   ;;  %s19726_s11 = inlined_call_operand.vmem [shape: bf16[2,128], index: 11, kind: input, shape index: {}]   ;;  %s19727_s12 = inlined_call_operand.vmem [shape: bf16[1024,1024], index: 12, kind: input, shape index: {}]   ;;  %s19728_s13 = inlined_call_operand.vmem [shape: f32[1,1024], index: 13, kind: input, shape index: {}]   ;;  %s19729_s14 = inlined_call_operand.vmem [shape: f32[1,1024], index: 14, kind: input, shape index: {}]   ;;  %s19730_s15 = inlined_call_operand.vmem [shape: bf16[1024,512], index: 15, kind: input, shape index: {}]   ;;  %s19731_s16 = inlined_call_operand.vmem [shape: f32[1,512], index: 16, kind: input, shape index: {}]   ;;  %s19732_s17 = inlined_call_operand.vmem [shape: f32[1,512], index: 17, kind: input, shape index: {}]   ;;  %s19733_s18 = inlined_call_operand.vmem [shape: bf16[512,16], index: 18, kind: input, shape index: {}]   ;;  %s19734_s19 = inlined_call_operand.vmem [shape: f32[1,16], index: 19, kind: input, shape index: {}]   ;;  %s19735_s20 = inlined_call_operand.vmem [shape: f32[1,512], index: 20, kind: input, shape index: {}]   ;;  %s19736_s21 = inlined_call_operand.<no memory space> [shape: f32[1,1], index: 21, kind: input, shape index: {}]   ;;  %s19737_s22 = inlined_call_operand.hbm [shape: f32[2,16], index: 22, kind: output, shape index: {0}]   ;;  %s19738_s23 = inlined_call_operand.vmem [shape: f32[2,1], index: 23, kind: output, shape index: {1}]  }
   0x1   :  { %19826 = sst [smem:[#allocation69_spill]] %s19715_s0  ;;  %v30_v0 = vstv %s19736_s21 }
   0x2   :  { %19827 = sst [smem:[#allocation70_spill]] %s19716_s1  ;;  %31 = vst [vmem:[#allocation4] sm:$0x1] %v30_v0 }
   0x3   :  { %19828 = sst [smem:[#allocation71_spill]] %s19717_s2 }
   0x4   :  { %19829 = sst [smem:[#allocation72_spill]] %s19718_s3 }
   0x5   :  { %19830 = sst [smem:[#allocation73_spill]] %s19719_s4 }
   0x6   :  { %19831 = sst [smem:[#allocation74_spill]] %s19720_s5 }
   0x7   :  { %19832 = sst [smem:[#allocation75_spill]] %s19721_s6 }
   0x8   :  { %19833 = sst [smem:[#allocation76_spill]] %s19722_s7 }
   0x9   :  { %19834 = sst [smem:[#allocation77_spill]] %s19737_s22 }
   0xa   :  { %s19835_s5 = sld [smem:[#allocation70_spill]]  ;;  %v113_v3 = vlaneseq  ;;  %s19756_s27 = smov 16   ;;  %vm132_vm0 = vcmask 130048   ;;  %v19760_v59 = vmov 0   ;;  %vm213_vm3 = vcmask 261248  }
   0xb   :  { %s19754_s2 = smov 32   ;;  %s19750_s29 = smov 48   ;;  %909 = vmatprep.subr.bf16.mxu0 %v19760_v59  ;;  %1885 = vmatprep.subr.bf16.mxu1 %v19760_v59  ;;  %vm327_vm4 = vcmask 392448   ;;  %vm408_vm5 = vcmask 523648   ;;  %vm473_vm6 = vcmask 654848   ;;  %vm538_vm7 = vcmask 786048  }
   0xc   :  { %v12914_v9 = vshrl.u32 %v113_v3, 7  ;;  %s19837_s24 = sld [smem:[#allocation72_spill]]  ;;  %s19758_s26 = smov 64   ;;  %vm603_vm8 = vcmask 917248   ;;  %vm668_vm9 = vcmask 1048448  }
   0xd   :  { %s19752_s3 = smov 80   ;;  %s19748_s1 = smov 96  }
   0xe   :  { %19836 = vst [vmem:[#allocation8_spill] sm:$0xff] %v12914_v9  ;;  %vm246_vm1 = vcmp.lt.s32.totalorder %v12914_v9, 7  ;;  %vm115_vm2 = vcmp.lt.s32.totalorder %v12914_v9, 1  ;;  %s19838_s7 = sld [smem:[#allocation71_spill]]  ;;  %s19746_s4 = smov 112  }
  0x10   :  { %v12896_v1 = vld [vmem:[%s19835_s5 + $0x78] sm:$0xff]  ;;  %v12901_v2 = vld [vmem:[%s19835_s5] sm:$0xff]  ;;  %v12906_v4 = vld [vmem:[%s19835_s5 + $0x8] sm:$0xff] }
  0x11   :  { %165 = vrot.lane.b32.xlu0 %v12896_v1, %s19756_s27  ;;  %v230_v5 = vrot.slane %v12901_v2, 1  ;;  %v245_v6 = vrot.slane %v12896_v1, 1  ;;  %v231_v7 = vrot.slane %v12906_v4, 1  ;;  %v97_v8 = vrot.slane %v12901_v2, 7  ;;  %v12921_v12 = vld [vmem:[%s19835_s5 + $0x10] sm:$0xff]  ;;  %v12928_v15 = vld [vmem:[%s19835_s5 + $0x18] sm:$0xff] }
  0x12   :  { %v112_v10 = vrot.slane %v12896_v1, 7  ;;  %v98_v11 = vrot.slane %v12906_v4, 7  ;;  %v232_v13 = vrot.slane %v12921_v12, 1  ;;  %v99_v14 = vrot.slane %v12921_v12, 7  ;;  %v12937_v18 = vld [vmem:[%s19835_s5 + $0x20] sm:$0xff]  ;;  %v12942_v19 = vld [vmem:[%s19835_s5 + $0x28] sm:$0xff] }
  0x13   :  { %v233_v16 = vrot.slane %v12928_v15, 1  ;;  %v100_v17 = vrot.slane %v12928_v15, 7  ;;  %v12948_v20 = vsel %vm246_vm1, %v245_v6, %v230_v5  ;;  %v12954_v21 = vsel %vm246_vm1, %v230_v5, %v231_v7  ;;  %v12969_v24 = vld [vmem:[%s19835_s5 + $0x30] sm:$0xff]  ;;  %v12974_v25 = vld [vmem:[%s19835_s5 + $0x38] sm:$0xff]  ;;  %v13005_v30 = vld [vmem:[%s19835_s5 + $0x40] sm:$0xff] }
  0x14   :  { %v12960_v22 = vsel %vm115_vm2, %v112_v10, %v97_v8  ;;  %v12964_v23 = vsel %vm115_vm2, %v97_v8, %v98_v11  ;;  %279 = vrot.lane.b32.xlu1 %v12948_v20, %s19754_s2  ;;  %699 = vst.msk [vmem:[#allocation2 + $0xe8] sm:$0xff] %vm132_vm0, %v12948_v20  ;;  %700 = vst.msk [vmem:[#allocation2 + $0xf8] sm:$0xff] %vm132_vm0, %v12954_v21  ;;  %v12988_v26 = vsel %vm246_vm1, %v231_v7, %v232_v13  ;;  %v13010_v31 = vld [vmem:[%s19835_s5 + $0x70] sm:$0xff]  ;;  %v13049_v44 = vld [vmem:[%s19835_s5 + $0x48] sm:$0xff] }
  0x15   :  { %167 = vrot.lane.b32.xlu0 %v12901_v2, %s19756_s27  ;;  %134 = vst.msk [vmem:[#allocation2 + $0x10] sm:$0xff] %vm132_vm0, %v12960_v22  ;;  %135 = vst.msk [vmem:[#allocation2 + $0x20] sm:$0xff] %vm132_vm0, %v12964_v23  ;;  %v12992_v27 = vsel %vm115_vm2, %v98_v11, %v99_v14  ;;  %v12996_v28 = vsel %vm246_vm1, %v232_v13, %v233_v16  ;;  %v13000_v29 = vsel %vm115_vm2, %v99_v14, %v100_v17  ;;  %v12272_v49 = vld [vmem:[%s19837_s24 + $0x38] sm:$0xff]   ;;  %v91_v53 = vld [vmem:[%s19835_s5 + $0x50] sm:$0xff] }
  0x16   :  { %685 = vst.msk [vmem:[#allocation2 + $0x8] sm:$0xff] %vm132_vm0, %v12988_v26  ;;  %136 = vst.msk [vmem:[#allocation2 + $0x30] sm:$0xff] %vm132_vm0, %v12992_v27  ;;  %v234_v32 = vrot.slane %v12937_v18, 1  ;;  %v101_v33 = vrot.slane %v12937_v18, 7  ;;  %v235_v34 = vrot.slane %v12942_v19, 1  ;;  %v102_v35 = vrot.slane %v12942_v19, 7  ;;  %910 = vmatpush1.bf16.msra.mxu0 %v12272_v49 }
  0x17   :  { %686 = vst.msk [vmem:[#allocation2 + $0x18] sm:$0xff] %vm132_vm0, %v12996_v28  ;;  %137 = vst.msk [vmem:[#allocation2 + $0x40] sm:$0xff] %vm132_vm0, %v13000_v29  ;;  %v236_v36 = vrot.slane %v12969_v24, 1  ;;  %v103_v37 = vrot.slane %v12969_v24, 7  ;;  %v237_v38 = vrot.slane %v12974_v25, 1  ;;  %v104_v39 = vrot.slane %v12974_v25, 7  ;;  %911 = vmatprep.subr.bf16.mxu0 %v19760_v59 }
  0x18   :  { %v13032_v40 = vsel %vm246_vm1, %v233_v16, %v234_v32  ;;  %v13036_v41 = vsel %vm115_vm2, %v100_v17, %v101_v33  ;;  %v13040_v42 = vsel %vm246_vm1, %v234_v32, %v235_v34  ;;  %v13044_v43 = vsel %vm115_vm2, %v101_v33, %v102_v35  ;;  %281 = vrot.lane.b32.xlu1 %v12954_v21, %s19754_s2  ;;  %v12273_v61 = vld [vmem:[%s19837_s24 + $0x30] sm:$0xff]   ;;  %v92_v7 = vld [vmem:[%s19835_s5 + $0x58] sm:$0xff]  ;;  %v734_v17 = vld [vmem:[%s19838_s7 + $0x8] sm:$0xff] }
  0x19   :  { %360 = vrot.lane.b32.xlu0 %v12960_v22, %s19750_s29  ;;  %687 = vst.msk [vmem:[#allocation2 + $0x28] sm:$0xff] %vm132_vm0, %v13032_v40  ;;  %138 = vst.msk [vmem:[#allocation2 + $0x50] sm:$0xff] %vm132_vm0, %v13036_v41  ;;  %v13063_v45 = vsel %vm246_vm1, %v235_v34, %v236_v36  ;;  %v13067_v46 = vsel %vm115_vm2, %v102_v35, %v103_v37  ;;  %v13071_v47 = vsel %vm246_vm1, %v236_v36, %v237_v38  ;;  %v12276_v32 = vld [vmem:[%s19837_s24 + $0x18] sm:$0xff]   ;;  %v12277_v36 = vld [vmem:[%s19837_s24 + $0x10] sm:$0xff]  }
  0x1a   :  { %688 = vst.msk [vmem:[#allocation2 + $0x38] sm:$0xff] %vm132_vm0, %v13040_v42  ;;  %139 = vst.msk [vmem:[#allocation2 + $0x60] sm:$0xff] %vm132_vm0, %v13044_v43  ;;  %v13075_v48 = vsel %vm115_vm2, %v103_v37, %v104_v39  ;;  %v238_v50 = vrot.slane %v13005_v30, 1  ;;  %v105_v51 = vrot.slane %v13005_v30, 7  ;;  %v111_v52 = vrot.slane %v13010_v31, 7  ;;  %912 = vmatpush1.bf16.msra.mxu0 %v12273_v61  ;;  %v93_v37 = vld [vmem:[%s19835_s5 + $0x60] sm:$0xff] }
  0x1b   :  { %689 = vst.msk [vmem:[#allocation2 + $0x48] sm:$0xff] %vm132_vm0, %v13063_v45  ;;  %140 = vst.msk [vmem:[#allocation2 + $0x70] sm:$0xff] %vm132_vm0, %v13067_v46  ;;  %v239_v54 = vrot.slane %v13049_v44, 1  ;;  %v106_v55 = vrot.slane %v13049_v44, 7  ;;  %v240_v63 = vrot.slane %v91_v53, 1  ;;  %v107_v0 = vrot.slane %v91_v53, 7  ;;  %913 = vmatprep.subr.bf16.mxu0 %v19760_v59 }
  0x1c   :  { %690 = vst.msk [vmem:[#allocation2 + $0x58] sm:$0xff] %vm132_vm0, %v13071_v47  ;;  %141 = vst.msk [vmem:[#allocation2 + $0x80] sm:$0xff] %vm132_vm0, %v13075_v48  ;;  %v13100_v56 = vsel %vm246_vm1, %v237_v38, %v238_v50  ;;  %v13104_v57 = vsel %vm115_vm2, %v104_v39, %v105_v51  ;;  %v13112_v58 = vsel %vm115_vm2, %v111_v52, %v112_v10  ;;  %362 = vrot.lane.b32.xlu1 %v12964_v23, %s19750_s29  ;;  %v12275_v10 = vld [vmem:[%s19837_s24 + $0x20] sm:$0xff]   ;;  %v12278_v39 = vld [vmem:[%s19837_s24 + $0x8] sm:$0xff]  }
  0x1d   :  { %425 = vrot.lane.b32.xlu0 %v12901_v2, %s19758_s26  ;;  %691 = vst.msk [vmem:[#allocation2 + $0x68] sm:$0xff] %vm132_vm0, %v13100_v56  ;;  %142 = vst.msk [vmem:[#allocation2 + $0x90] sm:$0xff] %vm132_vm0, %v13104_v57  ;;  %v13125_v60 = vsel %vm246_vm1, %v238_v50, %v239_v54  ;;  %v13132_v62 = vsel %vm115_vm2, %v105_v51, %v106_v55  ;;  %v12274_v2 = vld [vmem:[%s19837_s24 + $0x28] sm:$0xff]   ;;  %v13145_v3 = vsel %vm246_vm1, %v239_v54, %v240_v63  ;;  %v12279_v50 = vld [vmem:[%s19837_s24] sm:$0xff]  }
  0x1e   :  { %133 = vst.msk [vmem:[#allocation2] sm:$0xff] %vm132_vm0, %v13112_v58  ;;  %692 = vst.msk [vmem:[#allocation2 + $0x78] sm:$0xff] %vm132_vm0, %v13125_v60  ;;  %v13153_v5 = vsel %vm115_vm2, %v106_v55, %v107_v0  ;;  %v241_v8 = vrot.slane %v92_v7, 1  ;;  %914 = vmatpush1.bf16.msra.mxu0 %v12274_v2  ;;  %v108_v13 = vrot.slane %v92_v7, 7  ;;  %v702_v14 = vld [vmem:[#allocation2 + $0x8] sm:$0xff]  ;;  %v704_v16 = vld [vmem:[#allocation2 + $0x18] sm:$0xff] }
  0x1f   :  { %143 = vst.msk [vmem:[#allocation2 + $0xa0] sm:$0xff] %vm132_vm0, %v13132_v62  ;;  %693 = vst.msk [vmem:[#allocation2 + $0x88] sm:$0xff] %vm132_vm0, %v13145_v3  ;;  %915 = vmatprep.subr.bf16.mxu0 %v19760_v59  ;;  %v242_v38 = vrot.slane %v93_v37, 1  ;;  %v109_v49 = vrot.slane %v93_v37, 7  ;;  %v12280_v51 = vld [vmem:[%s19837_s24 + $0x40] sm:$0xff]   ;;  %v740_v61 = vld [vmem:[%s19838_s7 + $0x38] sm:$0xff] }
  0x20   :  { %427 = vrot.lane.b32.xlu1 %v12906_v4, %s19758_s26  ;;  %144 = vst.msk [vmem:[#allocation2 + $0xb0] sm:$0xff] %vm132_vm0, %v13153_v5  ;;  %v13170_v11 = vsel %vm246_vm1, %v240_v63, %v241_v8  ;;  %v13190_v33 = vsel %vm115_vm2, %v107_v0, %v108_v13 }
  0x21   :  { %490 = vrot.lane.b32.xlu0 %v12954_v21, %s19752_s3  ;;  %694 = vst.msk [vmem:[#allocation2 + $0x98] sm:$0xff] %vm132_vm0, %v13170_v11  ;;  %v736_v21 = vld [vmem:[%s19838_s7 + $0x18] sm:$0xff]  ;;  %145 = vst.msk [vmem:[#allocation2 + $0xc0] sm:$0xff] %vm132_vm0, %v13190_v33 }
  0x22   :  { %v768_v34 = vmul.f32 %v736_v21, %v704_v16  ;;  %916 = vmatpush1.bf16.msra.mxu0 %v12275_v10 }
  0x23   :  { %917 = vmatprep.subr.bf16.mxu0 %v19760_v59 }
  0x24   :  { %492 = vrot.lane.b32.xlu1 %v12988_v26, %s19752_s3 }
  0x25   :  { %555 = vrot.lane.b32.xlu0 %v12964_v23, %s19748_s1  ;;  %v766_v23 = vmul.f32 %v734_v17, %v702_v14 }
  0x26   :  { %918 = vmatpush1.bf16.msra.mxu0 %v12276_v32 }
  0x27   :  { %v798_v35 = vpack.c.bf16 %v768_v34, %v766_v23  ;;  %919 = vmatprep.subr.bf16.mxu0 %v19760_v59 }
  0x28   :  { %557 = vrot.lane.b32.xlu1 %v12992_v27, %s19748_s1 }
  0x29   :  { %620 = vrot.lane.b32.xlu0 %v12906_v4, %s19746_s4  ;;  %11304 = vmatprep.mubr.msk.bf16.mxu0 %vm132_vm0, %v798_v35 }
  0x2a   :  { %920 = vmatpush1.bf16.msra.mxu0 %v12277_v36 }
  0x2b   :  { %921 = vmatprep.subr.bf16.mxu0 %v19760_v59 }
  0x2c   :  { %622 = vrot.lane.b32.xlu1 %v12921_v12, %s19746_s4 }
  0x2d   :  { %169 = vrot.lane.b32.xlu0 %v12906_v4, %s19756_s27  ;;  %v13216_v4 = vsel %vm246_vm1, %v241_v8, %v242_v38 }
  0x2e   :  { %695 = vst.msk [vmem:[#allocation2 + $0xa8] sm:$0xff] %vm132_vm0, %v13216_v4  ;;  %922 = vmatpush1.bf16.msra.mxu0 %v12278_v39 }
  0x2f   :  { %923 = vmatprep.subr.bf16.mxu0 %v19760_v59 }
  0x30   :  { %171 = vrot.lane.b32.xlu1 %v12921_v12, %s19756_s27 }
  0x31   :  { %283 = vrot.lane.b32.xlu0 %v12988_v26, %s19754_s2  ;;  %v13230_v26 = vsel %vm115_vm2, %v108_v13, %v109_v49 }
  0x32   :  { %146 = vst.msk [vmem:[#allocation2 + $0xd0] sm:$0xff] %vm132_vm0, %v13230_v26  ;;  %924 = vmatpush1.bf16.msra.mxu0 %v12279_v50 }
  0x33   :  { %939 = vmatprep.subr.bf16.mxu0 %v19760_v59 }
  0x34   :  { %285 = vrot.lane.b32.xlu1 %v12996_v28, %s19754_s2 }
  0x35   :  { %364 = vrot.lane.b32.xlu0 %v12992_v27, %s19750_s29  ;;  %v13252_v27 = vld [vmem:[%s19835_s5 + $0x68] sm:$0xff] }
  0x36   :  { %940 = vmatpush2.bf16.msra.mxu0 %v12280_v51 }
  0x37   :  { %2862 = vmatprep.subr.bf16.mxu0 %v19760_v59 }
  0x38   :  { %366 = vrot.lane.b32.xlu1 %v13000_v29, %s19750_s29 }
  0x39   :  { %429 = vrot.lane.b32.xlu0 %v12921_v12, %s19758_s26  ;;  %v243_v12 = vrot.slane %v13252_v27, 1 }
  0x3b   :  { %v13260_v53 = vsel %vm246_vm1, %v242_v38, %v243_v12 }
  0x3c   :  { %431 = vrot.lane.b32.xlu1 %v12928_v15, %s19758_s26  ;;  %696 = vst.msk [vmem:[#allocation2 + $0xb8] sm:$0xff] %vm132_vm0, %v13260_v53 }
  0x3d   :  { %494 = vrot.lane.b32.xlu0 %v12996_v28, %s19752_s3  ;;  %v110_v28 = vrot.slane %v13252_v27, 7 }
  0x3f   :  { %v13271_v54 = vsel %vm115_vm2, %v109_v49, %v110_v28 }
  0x40   :  { %496 = vrot.lane.b32.xlu1 %v13032_v40, %s19752_s3  ;;  %147 = vst.msk [vmem:[#allocation2 + $0xe0] sm:$0xff] %vm132_vm0, %v13271_v54 }
  0x41   :  { %559 = vrot.lane.b32.xlu0 %v13000_v29, %s19748_s1  ;;  %v244_v29 = vrot.slane %v13010_v31, 1 }
  0x43   :  { %v13286_v55 = vsel %vm246_vm1, %v243_v12, %v244_v29  ;;  %v13318_v31 = vsel %vm246_vm1, %v244_v29, %v245_v6 }
  0x44   :  { %561 = vrot.lane.b32.xlu1 %v13036_v41, %s19748_s1  ;;  %697 = vst.msk [vmem:[#allocation2 + $0xc8] sm:$0xff] %vm132_vm0, %v13286_v55  ;;  %698 = vst.msk [vmem:[#allocation2 + $0xd8] sm:$0xff] %vm132_vm0, %v13318_v31 }
  0x45   :  { %624 = vrot.lane.b32.xlu0 %v12928_v15, %s19746_s4 }
  0x48   :  { %626 = vrot.lane.b32.xlu1 %v12937_v18, %s19746_s4 }
  0x49   :  { %173 = vrot.lane.b32.xlu0 %v12928_v15, %s19756_s27  ;;  %v13298_v15 = vsel %vm115_vm2, %v110_v28, %v111_v52 }
  0x4a   :  { %148 = vst.msk [vmem:[#allocation2 + $0xf0] sm:$0xff] %vm132_vm0, %v13298_v15 }
  0x4c   :  { %175 = vrot.lane.b32.xlu1 %v12937_v18, %s19756_s27 }
  0x4d   :  { %287 = vrot.lane.b32.xlu0 %v13032_v40, %s19754_s2 }
  0x50   :  { %289 = vrot.lane.b32.xlu1 %v13040_v42, %s19754_s2 }
  0x51   :  { %368 = vrot.lane.b32.xlu0 %v13036_v41, %s19750_s29 }
  0x54   :  { %370 = vrot.lane.b32.xlu1 %v13044_v43, %s19750_s29 }
  0x55   :  { %433 = vrot.lane.b32.xlu0 %v12937_v18, %s19758_s26 }
  0x58   :  { %435 = vrot.lane.b32.xlu1 %v12942_v19, %s19758_s26 }
  0x59   :  { %498 = vrot.lane.b32.xlu0 %v13040_v42, %s19752_s3 }
  0x5c   :  { %500 = vrot.lane.b32.xlu1 %v13063_v45, %s19752_s3 }
  0x5d   :  { %563 = vrot.lane.b32.xlu0 %v13044_v43, %s19748_s1 }
  0x60   :  { %565 = vrot.lane.b32.xlu1 %v13067_v46, %s19748_s1 }
  0x61   :  { %628 = vrot.lane.b32.xlu0 %v12942_v19, %s19746_s4 }
  0x64   :  { %630 = vrot.lane.b32.xlu1 %v12969_v24, %s19746_s4 }
  0x65   :  { %177 = vrot.lane.b32.xlu0 %v12942_v19, %s19756_s27 }
  0x68   :  { %179 = vrot.lane.b32.xlu1 %v12969_v24, %s19756_s27 }
  0x69   :  { %291 = vrot.lane.b32.xlu0 %v13063_v45, %s19754_s2 }
  0x6c   :  { %293 = vrot.lane.b32.xlu1 %v13071_v47, %s19754_s2 }
  0x6d   :  { %372 = vrot.lane.b32.xlu0 %v13067_v46, %s19750_s29 }
  0x70   :  { %374 = vrot.lane.b32.xlu1 %v13075_v48, %s19750_s29 }
  0x71   :  { %437 = vrot.lane.b32.xlu0 %v12969_v24, %s19758_s26 }
  0x74   :  { %439 = vrot.lane.b32.xlu1 %v12974_v25, %s19758_s26 }
  0x75   :  { %502 = vrot.lane.b32.xlu0 %v13071_v47, %s19752_s3  ;;  %v12731_v47 = vld [vmem:[%s19835_s5 + $0x50] sm:$0xff] }
  0x78   :  { %504 = vrot.lane.b32.xlu1 %v13100_v56, %s19752_s3 }
  0x79   :  { %567 = vrot.lane.b32.xlu0 %v13075_v48, %s19748_s1 }
  0x7c   :  { %569 = vrot.lane.b32.xlu1 %v13104_v57, %s19748_s1 }
  0x7d   :  { %632 = vrot.lane.b32.xlu0 %v12974_v25, %s19746_s4 }
  0x80   :  { %634 = vrot.lane.b32.xlu1 %v13005_v30, %s19746_s4 }
  0x81   :  { %181 = vrot.lane.b32.xlu0 %v12974_v25, %s19756_s27 }
  0x83   :  { %v166_v1 = vpop.permute.xlu0 %165 }
  0x84   :  { %214 = vst.msk [vmem:[#allocation2] sm:$0xff] %vm213_vm3, %v166_v1  ;;  %183 = vrot.lane.b32.xlu1 %v13005_v30, %s19756_s27 }
  0x85   :  { %295 = vrot.lane.b32.xlu0 %v13100_v56, %s19754_s2  ;;  %v706_v56 = vld [vmem:[#allocation2 + $0x28] sm:$0xff] }
  0x86   :  { %v280_v18 = vpop.permute.xlu1 %279 }
  0x87   :  { %v168_v6 = vpop.permute.xlu0 %167  ;;  %328 = vst.msk [vmem:[#allocation2] sm:$0xff] %vm327_vm4, %v280_v18 }
  0x88   :  { %215 = vst.msk [vmem:[#allocation2 + $0x10] sm:$0xff] %vm213_vm3, %v168_v6  ;;  %297 = vrot.lane.b32.xlu1 %v13125_v60, %s19754_s2 }
  0x89   :  { %376 = vrot.lane.b32.xlu0 %v13104_v57, %s19750_s29  ;;  %v708_v57 = vld [vmem:[#allocation2 + $0x38] sm:$0xff] }
  0x8a   :  { %v282_v24 = vpop.permute.xlu1 %281  ;;  %v772_v8 = vmul.f32 %v740_v61, %v708_v57 }
  0x8b   :  { %v361_v19 = vpop.permute.xlu0 %360  ;;  %329 = vst.msk [vmem:[#allocation2 + $0x10] sm:$0xff] %vm327_vm4, %v282_v24 }
  0x8c   :  { %409 = vst.msk [vmem:[#allocation2] sm:$0xff] %vm408_vm5, %v361_v19  ;;  %378 = vrot.lane.b32.xlu1 %v13132_v62, %s19750_s29 }
  0x8d   :  { %441 = vrot.lane.b32.xlu0 %v13005_v30, %s19758_s26 }
  0x8e   :  { %v363_v40 = vpop.permute.xlu1 %362 }
  0x8f   :  { %v426_v25 = vpop.permute.xlu0 %425  ;;  %410 = vst.msk [vmem:[#allocation2 + $0x10] sm:$0xff] %vm408_vm5, %v363_v40 }
  0x90   :  { %474 = vst.msk [vmem:[#allocation2] sm:$0xff] %vm473_vm6, %v426_v25  ;;  %443 = vrot.lane.b32.xlu1 %v13049_v44, %s19758_s26  ;;  %v12730_v44 = vld [vmem:[%s19835_s5 + $0x48] sm:$0xff] }
  0x91   :  { %506 = vrot.lane.b32.xlu0 %v13125_v60, %s19752_s3  ;;  %v738_v60 = vld [vmem:[%s19838_s7 + $0x28] sm:$0xff] }
  0x92   :  { %v428_v30 = vpop.permute.xlu1 %427  ;;  %v770_v7 = vmul.f32 %v738_v60, %v706_v56 }
  0x93   :  { %v491_v41 = vpop.permute.xlu0 %490  ;;  %475 = vst.msk [vmem:[#allocation2 + $0x10] sm:$0xff] %vm473_vm6, %v428_v30 }
  0x94   :  { %539 = vst.msk [vmem:[#allocation2] sm:$0xff] %vm538_vm7, %v491_v41  ;;  %508 = vrot.lane.b32.xlu1 %v13145_v3, %s19752_s3 }
  0x95   :  { %571 = vrot.lane.b32.xlu0 %v13132_v62, %s19748_s1  ;;  %v733_v62 = vld [vmem:[%s19838_s7] sm:$0xff] }
  0x96   :  { %v493_v43 = vpop.permute.xlu1 %492 }
  0x97   :  { %v556_v42 = vpop.permute.xlu0 %555  ;;  %540 = vst.msk [vmem:[#allocation2 + $0x10] sm:$0xff] %vm538_vm7, %v493_v43 }
  0x98   :  { %604 = vst.msk [vmem:[#allocation2] sm:$0xff] %vm603_vm8, %v556_v42  ;;  %573 = vrot.lane.b32.xlu1 %v13153_v5, %s19748_s1 }
  0x99   :  { %636 = vrot.lane.b32.xlu0 %v12730_v44, %s19746_s4 }
  0x9a   :  { %v558_v46 = vpop.permute.xlu1 %557 }
  0x9b   :  { %v621_v45 = vpop.permute.xlu0 %620  ;;  %605 = vst.msk [vmem:[#allocation2 + $0x10] sm:$0xff] %vm603_vm8, %v558_v46 }
  0x9c   :  { %669 = vst.msk [vmem:[#allocation2] sm:$0xff] %vm668_vm9, %v621_v45  ;;  %638 = vrot.lane.b32.xlu1 %v12731_v47, %s19746_s4 }
  0x9d   :  { %185 = vrot.lane.b32.xlu0 %v12730_v44, %s19756_s27 }
  0x9e   :  { %v623_v52 = vpop.permute.xlu1 %622 }
  0x9f   :  { %v170_v48 = vpop.permute.xlu0 %169  ;;  %670 = vst.msk [vmem:[#allocation2 + $0x10] sm:$0xff] %vm668_vm9, %v623_v52 }
  0xa0   :  { %216 = vst.msk [vmem:[#allocation2 + $0x20] sm:$0xff] %vm213_vm3, %v170_v48  ;;  %187 = vrot.lane.b32.xlu1 %v12731_v47, %s19756_s27 }
  0xa1   :  { %299 = vrot.lane.b32.xlu0 %v13145_v3, %s19754_s2  ;;  %v735_v3 = vld [vmem:[%s19838_s7 + $0x10] sm:$0xff] }
  0xa2   :  { %v172_v2 = vpop.permute.xlu1 %171 }
  0xa3   :  { %v284_v63 = vpop.permute.xlu0 %283  ;;  %v701_v0 = vld [vmem:[#allocation2] sm:$0xff]  ;;  %217 = vst.msk [vmem:[#allocation2 + $0x30] sm:$0xff] %vm213_vm3, %v172_v2 }
  0xa4   :  { %330 = vst.msk [vmem:[#allocation2 + $0x20] sm:$0xff] %vm327_vm4, %v284_v63  ;;  %301 = vrot.lane.b32.xlu1 %v13170_v11, %s19754_s2  ;;  %v765_v13 = vmul.f32 %v733_v62, %v701_v0 }
  0xa5   :  { %380 = vrot.lane.b32.xlu0 %v13153_v5, %s19750_s29  ;;  %v800_v5 = vpack.c.bf16 %v772_v8, %v770_v7 }
  0xa6   :  { %v286_v14 = vpop.permute.xlu1 %285  ;;  %v703_v16 = vld [vmem:[#allocation2 + $0x10] sm:$0xff] }
  0xa7   :  { %v365_v10 = vpop.permute.xlu0 %364  ;;  %331 = vst.msk [vmem:[#allocation2 + $0x30] sm:$0xff] %vm327_vm4, %v286_v14  ;;  %v767_v17 = vmul.f32 %v735_v3, %v703_v16 }
  0xa8   :  { %411 = vst.msk [vmem:[#allocation2 + $0x20] sm:$0xff] %vm408_vm5, %v365_v10  ;;  %382 = vrot.lane.b32.xlu1 %v13190_v33, %s19750_s29 }
  0xa9   :  { %445 = vrot.lane.b32.xlu0 %v12731_v47, %s19758_s26 }
  0xaa   :  { %32 = vsyncpa [#allocation6], 0  ;;  %v797_v21 = vpack.c.bf16 %v767_v17, %v765_v13  ;;  %v367_v32 = vpop.permute.xlu1 %366  ;;  %v12732_v34 = vld [vmem:[%s19835_s5 + $0x58] sm:$0xff]  ;;  %s19839_s30 = smov 112   ;;  %v710_v51 = vld [vmem:[#allocation2 + $0x48] sm:$0xff]  ;;  %s19846_s28 = smov 96  }
  0xab   :  { %v430_v23 = vpop.permute.xlu0 %429  ;;  %412 = vst.msk [vmem:[#allocation2 + $0x30] sm:$0xff] %vm408_vm5, %v367_v32  ;;  %v712_v28 = vld [vmem:[#allocation2 + $0x58] sm:$0xff]  ;;  %v742_v29 = vld [vmem:[%s19838_s7 + $0x48] sm:$0xff]  ;;  %v739_v19 = vld [vmem:[%s19838_s7 + $0x30] sm:$0xff]  ;;  %s19847_s21 = sld [smem:[#allocation73_spill]]  ;;  %vm11256_vm10 = vcmask 1041408  }
  0xac   :  { %476 = vst.msk [vmem:[#allocation2 + $0x20] sm:$0xff] %vm473_vm6, %v430_v23  ;;  %942 = vmatmul.mubr.bf16.vlgmr.msra.gmra.mxu0 %v797_v21  ;;  %447 = vrot.lane.b32.xlu1 %v12732_v34, %s19758_s26  ;;  %v744_v1 = vld [vmem:[%s19838_s7 + $0x58] sm:$0xff]  ;;  %v774_v24 = vmul.f32 %v742_v29, %v710_v51  ;;  %v714_v62 = vld [vmem:[#allocation2 + $0x68] sm:$0xff]  ;;  %v743_v8 = vld [vmem:[%s19838_s7 + $0x50] sm:$0xff]  ;;  %s19850_s6 = sld [smem:[#allocation75_spill]]  ;;  %vm11216_vm11 = vcmask 123904  }
  0xad   :  { %510 = vrot.lane.b32.xlu0 %v13170_v11, %s19752_s3  ;;  %11305 = vmatprep.mubr.msk.bf16.mxu0 %vm132_vm0, %v800_v5  ;;  %v776_v25 = vmul.f32 %v744_v1, %v712_v28  ;;  %v746_v0 = vld [vmem:[%s19838_s7 + $0x68] sm:$0xff]  ;;  %v748_v2 = vld [vmem:[%s19838_s7 + $0x78] sm:$0xff]  ;;  %v745_v1 = vld [vmem:[%s19838_s7 + $0x60] sm:$0xff]  ;;  %vm11275_vm12 = vcmask 1024  }
  0xae   :  { %v432_v36 = vpop.permute.xlu1 %431  ;;  %v778_v10 = vmul.f32 %v746_v0, %v714_v62  ;;  %v750_v51 = vld [vmem:[%s19838_s7 + $0x88] sm:$0xff]  ;;  %v756_v62 = vld [vmem:[%s19838_s7 + $0xb8] sm:$0xff]  ;;  %v749_v0 = vld [vmem:[%s19838_s7 + $0x80] sm:$0xff] }
  0xaf   :  { %v495_v35 = vpop.permute.xlu0 %494  ;;  %477 = vst.msk [vmem:[#allocation2 + $0x30] sm:$0xff] %vm473_vm6, %v432_v36 }
  0xb0   :  { %541 = vst.msk [vmem:[#allocation2 + $0x20] sm:$0xff] %vm538_vm7, %v495_v35  ;;  %512 = vrot.lane.b32.xlu1 %v13216_v4, %s19752_s3  ;;  %v12735_v35 = vld [vmem:[%s19835_s5 + $0x78] sm:$0xff] }
  0xb1   :  { %575 = vrot.lane.b32.xlu0 %v13190_v33, %s19748_s1  ;;  %v12733_v33 = vld [vmem:[%s19835_s5 + $0x60] sm:$0xff] }
  0xb2   :  { %v497_v37 = vpop.permute.xlu1 %496 }
  0xb3   :  { %v560_v11 = vpop.permute.xlu0 %559  ;;  %542 = vst.msk [vmem:[#allocation2 + $0x30] sm:$0xff] %vm538_vm7, %v497_v37 }
  0xb4   :  { %606 = vst.msk [vmem:[#allocation2 + $0x20] sm:$0xff] %vm603_vm8, %v560_v11  ;;  %577 = vrot.lane.b32.xlu1 %v13230_v26, %s19748_s1 }
  0xb5   :  { %640 = vrot.lane.b32.xlu0 %v12732_v34, %s19839_s30 }
  0xb6   :  { %v562_v39 = vpop.permute.xlu1 %561 }
  0xb7   :  { %v625_v38 = vpop.permute.xlu0 %624  ;;  %607 = vst.msk [vmem:[#allocation2 + $0x30] sm:$0xff] %vm603_vm8, %v562_v39 }
  0xb8   :  { %671 = vst.msk [vmem:[#allocation2 + $0x20] sm:$0xff] %vm668_vm9, %v625_v38  ;;  %642 = vrot.lane.b32.xlu1 %v12733_v33, %s19839_s30 }
  0xb9   :  { %189 = vrot.lane.b32.xlu0 %v12732_v34, %s19756_s27 }
  0xba   :  { %v627_v50 = vpop.permute.xlu1 %626 }
  0xbb   :  { %v174_v49 = vpop.permute.xlu0 %173  ;;  %672 = vst.msk [vmem:[#allocation2 + $0x30] sm:$0xff] %vm668_vm9, %v627_v50  ;;  %v720_v50 = vld [vmem:[#allocation2 + $0x98] sm:$0xff] }
  0xbc   :  { %218 = vst.msk [vmem:[#allocation2 + $0x40] sm:$0xff] %vm213_vm3, %v174_v49  ;;  %191 = vrot.lane.b32.xlu1 %v12733_v33, %s19756_s27  ;;  %v718_v49 = vld [vmem:[#allocation2 + $0x88] sm:$0xff] }
  0xbd   :  { %303 = vrot.lane.b32.xlu0 %v13216_v4, %s19754_s2  ;;  %v737_v4 = vld [vmem:[%s19838_s7 + $0x20] sm:$0xff] }
  0xbe   :  { %v176_v6 = vpop.permute.xlu1 %175 }
  0xbf   :  { %v288_v12 = vpop.permute.xlu0 %287  ;;  %v705_v18 = vld [vmem:[#allocation2 + $0x20] sm:$0xff]  ;;  %219 = vst.msk [vmem:[#allocation2 + $0x50] sm:$0xff] %vm213_vm3, %v176_v6  ;;  %v747_v6 = vld [vmem:[%s19838_s7 + $0x70] sm:$0xff] }
  0xc0   :  { %332 = vst.msk [vmem:[#allocation2 + $0x40] sm:$0xff] %vm327_vm4, %v288_v12  ;;  %305 = vrot.lane.b32.xlu1 %v13260_v53, %s19754_s2  ;;  %v769_v41 = vmul.f32 %v737_v4, %v705_v18  ;;  %v752_v12 = vld [vmem:[%s19838_s7 + $0x98] sm:$0xff]  ;;  %v782_v18 = vmul.f32 %v750_v51, %v718_v49 }
  0xc1   :  { %384 = vrot.lane.b32.xlu0 %v13230_v26, %s19750_s29  ;;  %v802_v26 = vpack.c.bf16 %v776_v25, %v774_v24  ;;  %v784_v4 = vmul.f32 %v752_v12, %v720_v50  ;;  %v755_v50 = vld [vmem:[%s19838_s7 + $0xb0] sm:$0xff] }
  0xc2   :  { %v290_v30 = vpop.permute.xlu1 %289  ;;  %v707_v42 = vld [vmem:[#allocation2 + $0x30] sm:$0xff] }
  0xc3   :  { %v369_v40 = vpop.permute.xlu0 %368  ;;  %333 = vst.msk [vmem:[#allocation2 + $0x50] sm:$0xff] %vm327_vm4, %v290_v30  ;;  %v771_v43 = vmul.f32 %v739_v19, %v707_v42  ;;  %v806_v30 = vpack.c.bf16 %v784_v4, %v782_v18 }
  0xc4   :  { %413 = vst.msk [vmem:[#allocation2 + $0x40] sm:$0xff] %vm408_vm5, %v369_v40  ;;  %386 = vrot.lane.b32.xlu1 %v13271_v54, %s19750_s29 }
  0xc5   :  { %449 = vrot.lane.b32.xlu0 %v12733_v33, %s19758_s26  ;;  %v799_v44 = vpack.c.bf16 %v771_v43, %v769_v41 }
  0xc6   :  { %v371_v46 = vpop.permute.xlu1 %370 }
  0xc7   :  { %v434_v45 = vpop.permute.xlu0 %433  ;;  %414 = vst.msk [vmem:[#allocation2 + $0x50] sm:$0xff] %vm408_vm5, %v371_v46  ;;  %950 = vmatmul.mubr.bf16.gmra.mxu0 %v799_v44 }
  0xc8   :  { %478 = vst.msk [vmem:[#allocation2 + $0x40] sm:$0xff] %vm473_vm6, %v434_v45  ;;  %451 = vrot.lane.b32.xlu1 %v13252_v27, %s19758_s26  ;;  %11306 = vmatprep.mubr.msk.bf16.mxu0 %vm132_vm0, %v802_v26 }
  0xc9   :  { %514 = vrot.lane.b32.xlu0 %v13260_v53, %s19752_s3 }
  0xca   :  { %v436_v48 = vpop.permute.xlu1 %435 }
  0xcb   :  { %v499_v47 = vpop.permute.xlu0 %498  ;;  %479 = vst.msk [vmem:[#allocation2 + $0x50] sm:$0xff] %vm473_vm6, %v436_v48 }
  0xcc   :  { %543 = vst.msk [vmem:[#allocation2 + $0x40] sm:$0xff] %vm538_vm7, %v499_v47  ;;  %516 = vrot.lane.b32.xlu1 %v13286_v55, %s19752_s3 }
  0xcd   :  { %579 = vrot.lane.b32.xlu0 %v13271_v54, %s19748_s1  ;;  %v12734_v54 = vld [vmem:[%s19835_s5 + $0x70] sm:$0xff] }
  0xce   :  { %v501_v56 = vpop.permute.xlu1 %500 }
  0xcf   :  { %v564_v52 = vpop.permute.xlu0 %563  ;;  %544 = vst.msk [vmem:[#allocation2 + $0x50] sm:$0xff] %vm538_vm7, %v501_v56 }
  0xd0   :  { %608 = vst.msk [vmem:[#allocation2 + $0x40] sm:$0xff] %vm603_vm8, %v564_v52  ;;  %581 = vrot.lane.b32.xlu1 %v13298_v15, %s19748_s1 }
  0xd1   :  { %644 = vrot.lane.b32.xlu0 %v13252_v27, %s19839_s30 }
  0xd2   :  { %v566_v57 = vpop.permute.xlu1 %565 }
  0xd3   :  { %v629_v53 = vpop.permute.xlu0 %628  ;;  %609 = vst.msk [vmem:[#allocation2 + $0x50] sm:$0xff] %vm603_vm8, %v566_v57  ;;  %v722_v57 = vld [vmem:[#allocation2 + $0xa8] sm:$0xff] }
  0xd4   :  { %673 = vst.msk [vmem:[#allocation2 + $0x40] sm:$0xff] %vm668_vm9, %v629_v53  ;;  %646 = vrot.lane.b32.xlu1 %v12734_v54, %s19839_s30 }
  0xd5   :  { %193 = vrot.lane.b32.xlu0 %v13252_v27, %s19756_s27  ;;  %v716_v27 = vld [vmem:[#allocation2 + $0x78] sm:$0xff] }
  0xd6   :  { %v631_v61 = vpop.permute.xlu1 %630  ;;  %v780_v13 = vmul.f32 %v748_v2, %v716_v27  ;;  %v751_v2 = vld [vmem:[%s19838_s7 + $0x90] sm:$0xff] }
  0xd7   :  { %v178_v60 = vpop.permute.xlu0 %177  ;;  %674 = vst.msk [vmem:[#allocation2 + $0x50] sm:$0xff] %vm668_vm9, %v631_v61  ;;  %v754_v61 = vld [vmem:[%s19838_s7 + $0xa8] sm:$0xff] }
  0xd8   :  { %220 = vst.msk [vmem:[#allocation2 + $0x60] sm:$0xff] %vm213_vm3, %v178_v60  ;;  %195 = vrot.lane.b32.xlu1 %v12734_v54, %s19756_s27  ;;  %v724_v60 = vld [vmem:[#allocation2 + $0xb8] sm:$0xff]  ;;  %s19842_s27 = smov 16  }
  0xd9   :  { %307 = vrot.lane.b32.xlu0 %v13286_v55, %s19754_s2  ;;  %v741_v55 = vld [vmem:[%s19838_s7 + $0x40] sm:$0xff] }
  0xda   :  { %v180_v3 = vpop.permute.xlu1 %179 }
  0xdb   :  { %v292_v63 = vpop.permute.xlu0 %291  ;;  %v709_v7 = vld [vmem:[#allocation2 + $0x40] sm:$0xff]  ;;  %221 = vst.msk [vmem:[#allocation2 + $0x70] sm:$0xff] %vm213_vm3, %v180_v3  ;;  %v786_v3 = vmul.f32 %v754_v61, %v722_v57 }
  0xdc   :  { %334 = vst.msk [vmem:[#allocation2 + $0x60] sm:$0xff] %vm327_vm4, %v292_v63  ;;  %309 = vrot.lane.b32.xlu1 %v13318_v31, %s19754_s2  ;;  %v773_v16 = vmul.f32 %v741_v55, %v709_v7  ;;  %v788_v7 = vmul.f32 %v756_v62, %v724_v60  ;;  %v759_v60 = vld [vmem:[%s19838_s7 + $0xd0] sm:$0xff] }
  0xdd   :  { %388 = vrot.lane.b32.xlu0 %v13298_v15, %s19750_s29  ;;  %v804_v15 = vpack.c.bf16 %v780_v13, %v778_v10 }
  0xde   :  { %v294_v17 = vpop.permute.xlu1 %293  ;;  %v711_v5 = vld [vmem:[#allocation2 + $0x50] sm:$0xff] }
  0xdf   :  { %v373_v14 = vpop.permute.xlu0 %372  ;;  %335 = vst.msk [vmem:[#allocation2 + $0x70] sm:$0xff] %vm327_vm4, %v294_v17  ;;  %v775_v21 = vmul.f32 %v743_v8, %v711_v5 }
  0xe0   :  { %415 = vst.msk [vmem:[#allocation2 + $0x60] sm:$0xff] %vm408_vm5, %v373_v14  ;;  %390 = vrot.lane.b32.xlu1 %v13112_v58, %s19750_s29  ;;  %s19844_s29 = smov 80  }
  0xe1   :  { %453 = vrot.lane.b32.xlu0 %v12734_v54, %s19758_s26  ;;  %v801_v23 = vpack.c.bf16 %v775_v21, %v773_v16  ;;  %v808_v16 = vpack.c.bf16 %v788_v7, %v786_v3 }
  0xe2   :  { %v375_v34 = vpop.permute.xlu1 %374 }
  0xe3   :  { %v438_v32 = vpop.permute.xlu0 %437  ;;  %416 = vst.msk [vmem:[#allocation2 + $0x70] sm:$0xff] %vm408_vm5, %v375_v34  ;;  %958 = vmatmul.mubr.bf16.gmra.mxu0 %v801_v23 }
  0xe4   :  { %480 = vst.msk [vmem:[#allocation2 + $0x60] sm:$0xff] %vm473_vm6, %v438_v32  ;;  %455 = vrot.lane.b32.xlu1 %v12735_v35, %s19758_s26  ;;  %11307 = vmatprep.mubr.msk.bf16.mxu0 %vm132_vm0, %v804_v15 }
  0xe5   :  { %518 = vrot.lane.b32.xlu0 %v13318_v31, %s19752_s3 }
  0xe6   :  { %v440_v11 = vpop.permute.xlu1 %439 }
  0xe7   :  { %v503_v36 = vpop.permute.xlu0 %502  ;;  %481 = vst.msk [vmem:[#allocation2 + $0x70] sm:$0xff] %vm473_vm6, %v440_v11 }
  0xe8   :  { %545 = vst.msk [vmem:[#allocation2 + $0x60] sm:$0xff] %vm538_vm7, %v503_v36  ;;  %520 = vrot.lane.b32.xlu1 %v12948_v20, %s19752_s3  ;;  %v12736_v20 = vld [vmem:[%s19835_s5] sm:$0xff]  ;;  %s19840_s5 = sld [smem:[#allocation69_spill]] }
  0xe9   :  { %583 = vrot.lane.b32.xlu0 %v13112_v58, %s19748_s1  ;;  %s19841_s3 = sld [smem:[#allocation76_spill]] }
  0xea   :  { %v505_v37 = vpop.permute.xlu1 %504 }
  0xeb   :  { %v568_v31 = vpop.permute.xlu0 %567  ;;  %546 = vst.msk [vmem:[#allocation2 + $0x70] sm:$0xff] %vm538_vm7, %v505_v37  ;;  %v726_v37 = vld [vmem:[#allocation2 + $0xc8] sm:$0xff] }
  0xec   :  { %610 = vst.msk [vmem:[#allocation2 + $0x60] sm:$0xff] %vm603_vm8, %v568_v31  ;;  %585 = vrot.lane.b32.xlu1 %v12960_v22, %s19748_s1  ;;  %s19845_s1 = smov 48  }
  0xed   :  { %648 = vrot.lane.b32.xlu0 %v12735_v35, %s19839_s30 }
  0xee   :  { %v570_v39 = vpop.permute.xlu1 %569  ;;  %s79_s25 = smul.f32 0.2, %s19840_s5 }
  0xef   :  { %v633_v38 = vpop.permute.xlu0 %632  ;;  %611 = vst.msk [vmem:[#allocation2 + $0x70] sm:$0xff] %vm603_vm8, %v570_v39  ;;  %v728_v39 = vld [vmem:[#allocation2 + $0xd8] sm:$0xff] }
  0xf0   :  { %675 = vst.msk [vmem:[#allocation2 + $0x60] sm:$0xff] %vm668_vm9, %v633_v38  ;;  %650 = vrot.lane.b32.xlu1 %v12736_v20, %s19839_s30  ;;  %v758_v20 = vld [vmem:[%s19838_s7 + $0xc8] sm:$0xff]  ;;  %s80_s2 = sadd.f32 1.0, %s79_s25 }
  0xf1   :  { %v790_v51 = vmul.f32 %v758_v20, %v726_v37  ;;  %v13694_v37 = vld [vmem:[%s19723_s8] ss:$0 sm:$0xff]  ;;  %s19849_s25 = sld [smem:[#allocation74_spill]] }
  0xf2   :  { %v635_v33 = vpop.permute.xlu1 %634 }
  0xf3   :  { %v182_v58 = vpop.permute.xlu0 %181  ;;  %676 = vst.msk [vmem:[#allocation2 + $0x70] sm:$0xff] %vm668_vm9, %v635_v33 }
  0xf4   :  { %222 = vst.msk [vmem:[#allocation2 + $0x80] sm:$0xff] %vm213_vm3, %v182_v58  ;;  %v760_v58 = vld [vmem:[%s19838_s7 + $0xd8] sm:$0xff] }
  0xf5   :  { %v792_v12 = vmul.f32 %v760_v58, %v728_v39 }
  0xf6   :  { %v184_v28 = vpop.permute.xlu1 %183 }
  0xf7   :  { %v296_v22 = vpop.permute.xlu0 %295  ;;  %v713_v29 = vld [vmem:[#allocation2 + $0x60] sm:$0xff]  ;;  %223 = vst.msk [vmem:[#allocation2 + $0x90] sm:$0xff] %vm213_vm3, %v184_v28  ;;  %v810_v4 = vpack.c.bf16 %v792_v12, %v790_v51 }
  0xf8   :  { %336 = vst.msk [vmem:[#allocation2 + $0x80] sm:$0xff] %vm327_vm4, %v296_v22  ;;  %v777_v24 = vmul.f32 %v745_v1, %v713_v29  ;;  %v753_v22 = vld [vmem:[%s19838_s7 + $0xa0] sm:$0xff] }
  0xfa   :  { %v298_v25 = vpop.permute.xlu1 %297  ;;  %v715_v40 = vld [vmem:[#allocation2 + $0x70] sm:$0xff] }
  0xfb   :  { %v377_v19 = vpop.permute.xlu0 %376  ;;  %337 = vst.msk [vmem:[#allocation2 + $0x90] sm:$0xff] %vm327_vm4, %v298_v25  ;;  %v779_v41 = vmul.f32 %v747_v6, %v715_v40 }
  0xfc   :  { %417 = vst.msk [vmem:[#allocation2 + $0x80] sm:$0xff] %vm408_vm5, %v377_v19 }
  0xfd   :  { %v803_v42 = vpack.c.bf16 %v779_v41, %v777_v24 }
  0xfe   :  { %v379_v26 = vpop.permute.xlu1 %378 }
  0xff   :  { %v442_v43 = vpop.permute.xlu0 %441  ;;  %418 = vst.msk [vmem:[#allocation2 + $0x90] sm:$0xff] %vm408_vm5, %v379_v26  ;;  %966 = vmatmul.mubr.bf16.gmra.mxu0 %v803_v42 }
 0x100   :  { %482 = vst.msk [vmem:[#allocation2 + $0x80] sm:$0xff] %vm473_vm6, %v442_v43  ;;  %11308 = vmatprep.mubr.msk.bf16.mxu0 %vm132_vm0, %v806_v30 }
 0x102   :  { %v444_v45 = vpop.permute.xlu1 %443 }
 0x103   :  { %v507_v44 = vpop.permute.xlu0 %506  ;;  %483 = vst.msk [vmem:[#allocation2 + $0x90] sm:$0xff] %vm473_vm6, %v444_v45 }
 0x104   :  { %547 = vst.msk [vmem:[#allocation2 + $0x80] sm:$0xff] %vm538_vm7, %v507_v44 }
 0x106   :  { %v509_v47 = vpop.permute.xlu1 %508 }
 0x107   :  { %v572_v46 = vpop.permute.xlu0 %571  ;;  %548 = vst.msk [vmem:[#allocation2 + $0x90] sm:$0xff] %vm538_vm7, %v509_v47 }
 0x108   :  { %612 = vst.msk [vmem:[#allocation2 + $0x80] sm:$0xff] %vm603_vm8, %v572_v46  ;;  %v730_v46 = vld [vmem:[#allocation2 + $0xe8] sm:$0xff] }
 0x10a   :  { %v574_v52 = vpop.permute.xlu1 %573 }
 0x10b   :  { %v637_v48 = vpop.permute.xlu0 %636  ;;  %613 = vst.msk [vmem:[#allocation2 + $0x90] sm:$0xff] %vm603_vm8, %v574_v52  ;;  %v762_v52 = vld [vmem:[%s19838_s7 + $0xe8] sm:$0xff] }
 0x10c   :  { %677 = vst.msk [vmem:[#allocation2 + $0x80] sm:$0xff] %vm668_vm9, %v637_v48  ;;  %v732_v48 = vld [vmem:[#allocation2 + $0xf8] sm:$0xff]  ;;  %v794_v61 = vmul.f32 %v762_v52, %v730_v46 }
 0x10e   :  { %v639_v53 = vpop.permute.xlu1 %638 }
 0x10f   :  { %v186_v56 = vpop.permute.xlu0 %185  ;;  %678 = vst.msk [vmem:[#allocation2 + $0x90] sm:$0xff] %vm668_vm9, %v639_v53 }
 0x110   :  { %224 = vst.msk [vmem:[#allocation2 + $0xa0] sm:$0xff] %vm213_vm3, %v186_v56  ;;  %v764_v56 = vld [vmem:[%s19838_s7 + $0xf8] sm:$0xff] }
 0x111   :  { %v796_v62 = vmul.f32 %v764_v56, %v732_v48 }
 0x112   :  { %v188_v63 = vpop.permute.xlu1 %187 }
 0x113   :  { %v300_v54 = vpop.permute.xlu0 %299  ;;  %v717_v27 = vld [vmem:[#allocation2 + $0x80] sm:$0xff]  ;;  %225 = vst.msk [vmem:[#allocation2 + $0xb0] sm:$0xff] %vm213_vm3, %v188_v63  ;;  %v812_v7 = vpack.c.bf16 %v796_v62, %v794_v61 }
 0x114   :  { %338 = vst.msk [vmem:[#allocation2 + $0xa0] sm:$0xff] %vm327_vm4, %v300_v54  ;;  %v781_v8 = vmul.f32 %v749_v0, %v717_v27  ;;  %v757_v54 = vld [vmem:[%s19838_s7 + $0xc0] sm:$0xff] }
 0x116   :  { %v302_v10 = vpop.permute.xlu1 %301  ;;  %v719_v13 = vld [vmem:[#allocation2 + $0x90] sm:$0xff] }
 0x117   :  { %v381_v55 = vpop.permute.xlu0 %380  ;;  %339 = vst.msk [vmem:[#allocation2 + $0xb0] sm:$0xff] %vm327_vm4, %v302_v10  ;;  %v783_v14 = vmul.f32 %v751_v2, %v719_v13 }
 0x118   :  { %419 = vst.msk [vmem:[#allocation2 + $0xa0] sm:$0xff] %vm408_vm5, %v381_v55 }
 0x119   :  { %v805_v17 = vpack.c.bf16 %v783_v14, %v781_v8 }
 0x11a   :  { %v383_v21 = vpop.permute.xlu1 %382 }
 0x11b   :  { %v446_v5 = vpop.permute.xlu0 %445  ;;  %420 = vst.msk [vmem:[#allocation2 + $0xb0] sm:$0xff] %vm408_vm5, %v383_v21  ;;  %974 = vmatmul.mubr.bf16.gmra.mxu0 %v805_v17 }
 0x11c   :  { %484 = vst.msk [vmem:[#allocation2 + $0xa0] sm:$0xff] %vm473_vm6, %v446_v5  ;;  %11309 = vmatprep.mubr.msk.bf16.mxu0 %vm132_vm0, %v808_v16 }
 0x11e   :  { %v448_v23 = vpop.permute.xlu1 %447 }
 0x11f   :  { %v511_v15 = vpop.permute.xlu0 %510  ;;  %485 = vst.msk [vmem:[#allocation2 + $0xb0] sm:$0xff] %vm473_vm6, %v448_v23 }
 0x120   :  { %549 = vst.msk [vmem:[#allocation2 + $0xa0] sm:$0xff] %vm538_vm7, %v511_v15 }
 0x122   :  { %v513_v34 = vpop.permute.xlu1 %512 }
 0x123   :  { %v576_v32 = vpop.permute.xlu0 %575  ;;  %550 = vst.msk [vmem:[#allocation2 + $0xb0] sm:$0xff] %vm538_vm7, %v513_v34  ;;  %v763_v34 = vld [vmem:[%s19838_s7 + $0xf0] sm:$0xff] }
 0x124   :  { %614 = vst.msk [vmem:[#allocation2 + $0xa0] sm:$0xff] %vm603_vm8, %v576_v32  ;;  %v761_v32 = vld [vmem:[%s19838_s7 + $0xe0] sm:$0xff] }
 0x126   :  { %v578_v36 = vpop.permute.xlu1 %577 }
 0x127   :  { %v641_v35 = vpop.permute.xlu0 %640  ;;  %615 = vst.msk [vmem:[#allocation2 + $0xb0] sm:$0xff] %vm603_vm8, %v578_v36 }
 0x128   :  { %679 = vst.msk [vmem:[#allocation2 + $0xa0] sm:$0xff] %vm668_vm9, %v641_v35  ;;  %v13689_v35 = vld [vmem:[%s19841_s3] ss:$0 sm:$0xff] }
 0x12a   :  { %v643_v31 = vpop.permute.xlu1 %642 }
 0x12b   :  { %v190_v11 = vpop.permute.xlu0 %189  ;;  %680 = vst.msk [vmem:[#allocation2 + $0xb0] sm:$0xff] %vm668_vm9, %v643_v31 }
 0x12c   :  { %226 = vst.msk [vmem:[#allocation2 + $0xc0] sm:$0xff] %vm213_vm3, %v190_v11 }
 0x12e   :  { %v192_v33 = vpop.permute.xlu1 %191 }
 0x12f   :  { %v304_v38 = vpop.permute.xlu0 %303  ;;  %v721_v49 = vld [vmem:[#allocation2 + $0xa0] sm:$0xff]  ;;  %227 = vst.msk [vmem:[#allocation2 + $0xd0] sm:$0xff] %vm213_vm3, %v192_v33 }
 0x130   :  { %340 = vst.msk [vmem:[#allocation2 + $0xc0] sm:$0xff] %vm327_vm4, %v304_v38  ;;  %v785_v29 = vmul.f32 %v753_v22, %v721_v49  ;;  %v13698_v49 = vstv %s80_s2  ;;  %s19843_s2 = smov 32  }
 0x132   :  { %v306_v1 = vpop.permute.xlu1 %305  ;;  %v723_v6 = vld [vmem:[#allocation2 + $0xb0] sm:$0xff] }
 0x133   :  { %v385_v28 = vpop.permute.xlu0 %384  ;;  %341 = vst.msk [vmem:[#allocation2 + $0xd0] sm:$0xff] %vm327_vm4, %v306_v1  ;;  %v787_v18 = vmul.f32 %v755_v50, %v723_v6 }
 0x134   :  { %421 = vst.msk [vmem:[#allocation2 + $0xc0] sm:$0xff] %vm408_vm5, %v385_v28 }
 0x135   :  { %v807_v19 = vpack.c.bf16 %v787_v18, %v785_v29 }
 0x136   :  { %v387_v25 = vpop.permute.xlu1 %386 }
 0x137   :  { %v450_v24 = vpop.permute.xlu0 %449  ;;  %422 = vst.msk [vmem:[#allocation2 + $0xd0] sm:$0xff] %vm408_vm5, %v387_v25  ;;  %982 = vmatmul.mubr.bf16.gmra.mxu0 %v807_v19 }
 0x138   :  { %486 = vst.msk [vmem:[#allocation2 + $0xc0] sm:$0xff] %vm473_vm6, %v450_v24  ;;  %11310 = vmatprep.mubr.msk.bf16.mxu0 %vm132_vm0, %v810_v4 }
 0x13a   :  { %v452_v41 = vpop.permute.xlu1 %451 }
 0x13b   :  { %v515_v40 = vpop.permute.xlu0 %514  ;;  %487 = vst.msk [vmem:[#allocation2 + $0xd0] sm:$0xff] %vm473_vm6, %v452_v41 }
 0x13c   :  { %551 = vst.msk [vmem:[#allocation2 + $0xc0] sm:$0xff] %vm538_vm7, %v515_v40 }
 0x13e   :  { %v517_v42 = vpop.permute.xlu1 %516 }
 0x13f   :  { %v580_v30 = vpop.permute.xlu0 %579  ;;  %552 = vst.msk [vmem:[#allocation2 + $0xd0] sm:$0xff] %vm538_vm7, %v517_v42 }
 0x140   :  { %616 = vst.msk [vmem:[#allocation2 + $0xc0] sm:$0xff] %vm603_vm8, %v580_v30 }
 0x142   :  { %v582_v26 = vpop.permute.xlu1 %581 }
 0x143   :  { %v645_v43 = vpop.permute.xlu0 %644  ;;  %617 = vst.msk [vmem:[#allocation2 + $0xd0] sm:$0xff] %vm603_vm8, %v582_v26 }
 0x144   :  { %681 = vst.msk [vmem:[#allocation2 + $0xc0] sm:$0xff] %vm668_vm9, %v645_v43 }
 0x146   :  { %v647_v45 = vpop.permute.xlu1 %646 }
 0x147   :  { %v194_v44 = vpop.permute.xlu0 %193  ;;  %682 = vst.msk [vmem:[#allocation2 + $0xd0] sm:$0xff] %vm668_vm9, %v647_v45 }
 0x148   :  { %228 = vst.msk [vmem:[#allocation2 + $0xe0] sm:$0xff] %vm213_vm3, %v194_v44 }
 0x14a   :  { %v196_v53 = vpop.permute.xlu1 %195 }
 0x14b   :  { %v308_v47 = vpop.permute.xlu0 %307  ;;  %v725_v57 = vld [vmem:[#allocation2 + $0xc0] sm:$0xff]  ;;  %229 = vst.msk [vmem:[#allocation2 + $0xf0] sm:$0xff] %vm213_vm3, %v196_v53 }
 0x14c   :  { %342 = vst.msk [vmem:[#allocation2 + $0xe0] sm:$0xff] %vm327_vm4, %v308_v47  ;;  %v789_v27 = vmul.f32 %v757_v54, %v725_v57 }
 0x14e   :  { %v310_v0 = vpop.permute.xlu1 %309  ;;  %v727_v2 = vld [vmem:[#allocation2 + $0xd0] sm:$0xff] }
 0x14f   :  { %v389_v63 = vpop.permute.xlu0 %388  ;;  %343 = vst.msk [vmem:[#allocation2 + $0xf0] sm:$0xff] %vm327_vm4, %v310_v0  ;;  %v791_v3 = vmul.f32 %v759_v60, %v727_v2 }
 0x150   :  { %423 = vst.msk [vmem:[#allocation2 + $0xe0] sm:$0xff] %vm408_vm5, %v389_v63 }
 0x151   :  { %v809_v55 = vpack.c.bf16 %v791_v3, %v789_v27  ;;  %v12737_v3 = vld [vmem:[%s19838_s7 + $0x8] sm:$0xff] }
 0x152   :  { %v391_v10 = vpop.permute.xlu1 %390 }
 0x153   :  { %v454_v8 = vpop.permute.xlu0 %453  ;;  %424 = vst.msk [vmem:[#allocation2 + $0xf0] sm:$0xff] %vm408_vm5, %v391_v10  ;;  %990 = vmatmul.mubr.bf16.gmra.mxu0 %v809_v55  ;;  %v12738_v55 = vld [vmem:[%s19838_s7 + $0x18] sm:$0xff] }
 0x154   :  { %488 = vst.msk [vmem:[#allocation2 + $0xe0] sm:$0xff] %vm473_vm6, %v454_v8  ;;  %11311 = vmatprep.mubr.msk.bf16.mxu0 %vm132_vm0, %v812_v7 }
 0x156   :  { %v456_v14 = vpop.permute.xlu1 %455 }
 0x157   :  { %v519_v13 = vpop.permute.xlu0 %518  ;;  %489 = vst.msk [vmem:[#allocation2 + $0xf0] sm:$0xff] %vm473_vm6, %v456_v14 }
 0x158   :  { %553 = vst.msk [vmem:[#allocation2 + $0xe0] sm:$0xff] %vm538_vm7, %v519_v13 }
 0x15a   :  { %v521_v17 = vpop.permute.xlu1 %520 }
 0x15b   :  { %v584_v16 = vpop.permute.xlu0 %583  ;;  %554 = vst.msk [vmem:[#allocation2 + $0xf0] sm:$0xff] %vm538_vm7, %v521_v17 }
 0x15c   :  { %618 = vst.msk [vmem:[#allocation2 + $0xe0] sm:$0xff] %vm603_vm8, %v584_v16 }
 0x15e   :  { %v586_v21 = vpop.permute.xlu1 %585 }
 0x15f   :  { %v649_v5 = vpop.permute.xlu0 %648  ;;  %619 = vst.msk [vmem:[#allocation2 + $0xf0] sm:$0xff] %vm603_vm8, %v586_v21 }
 0x160   :  { %683 = vst.msk [vmem:[#allocation2 + $0xe0] sm:$0xff] %vm668_vm9, %v649_v5 }
 0x162   :  { %v651_v15 = vpop.permute.xlu1 %650 }
 0x163   :  { %684 = vst.msk [vmem:[#allocation2 + $0xf0] sm:$0xff] %vm668_vm9, %v651_v15 }
 0x167   :  { %v729_v23 = vld [vmem:[#allocation2 + $0xe0] sm:$0xff] }
 0x168   :  { %v793_v36 = vmul.f32 %v761_v32, %v729_v23 }
 0x16a   :  { %v731_v11 = vld [vmem:[#allocation2 + $0xf0] sm:$0xff] }
 0x16b   :  { %v795_v38 = vmul.f32 %v763_v34, %v731_v11 }
 0x16c   :  { %v943_v31 = vpop.f32.mrf.mxu0 }
 0x16d   :  { %v1013_v39 = vmul.f32 %v13689_v35, %v943_v31  ;;  %v811_v58 = vpack.c.bf16 %v795_v38, %v793_v36 }
 0x16e   :  { %v945_v20 = vpop.f32.mrf.mxu0 }
 0x16f   :  { %v1036_v33 = vadd.f32 %v13694_v37, %v1013_v39  ;;  %998 = vmatmul.mubr.bf16.gmra.mxu0 %v811_v58 }
 0x170   :  { %v946_v22 = vpop.f32.mrf.mxu0 }
 0x171   :  { %v1052_v50 = vmax.f32 %v1036_v33, 0.0  ;;  %v1014_v51 = vmul.f32 %v13689_v35, %v946_v22 }
 0x172   :  { %v948_v12 = vpop.f32.mrf.mxu0 }
 0x173   :  { %v13702_v28 = vmul.f32 %v13698_v49, %v1052_v50  ;;  %v1037_v29 = vadd.f32 %v13694_v37, %v1014_v51 }
 0x175   :  { %v1053_v1 = vmax.f32 %v1037_v29, 0.0  ;;  %1405 = vrot.lane.b32.xlu0 %v13702_v28, %s19758_s26  ;;  %1151 = vrot.lane.b32.xlu1 %v13702_v28, %s19842_s27  ;;  %v1213_v18 = vrot.slane %v13702_v28, 1  ;;  %v1085_v19 = vrot.slane %v13702_v28, 7 }
 0x177   :  { %v1070_v6 = vmul.f32 %v13698_v49, %v1053_v1 }
 0x179   :  { %1597 = vrot.lane.b32.xlu0 %v1070_v6, %s19839_s30  ;;  %1407 = vrot.lane.b32.xlu1 %v1070_v6, %s19758_s26  ;;  %v1214_v4 = vrot.slane %v1070_v6, 1  ;;  %v1086_v24 = vrot.slane %v1070_v6, 7 }
 0x17b   :  { %v1243_v25 = vsel %vm246_vm1, %v1213_v18, %v1214_v4  ;;  %v1115_v40 = vsel %vm115_vm2, %v1085_v19, %v1086_v24 }
 0x17c   :  { %1676 = vst.msk [vmem:[#allocation2 + $0xf8] sm:$0xff] %vm132_vm0, %v1243_v25  ;;  %1119 = vst.msk [vmem:[#allocation2 + $0x20] sm:$0xff] %vm132_vm0, %v1115_v40 }
 0x17d   :  { %1153 = vrot.lane.b32.xlu0 %v1070_v6, %s19842_s27  ;;  %1263 = vrot.lane.b32.xlu1 %v1243_v25, %s19843_s2 }
 0x181   :  { %1469 = vrot.lane.b32.xlu0 %v1243_v25, %s19844_s29  ;;  %1343 = vrot.lane.b32.xlu1 %v1115_v40, %s19845_s1 }
 0x185   :  { %1533 = vrot.lane.b32.xlu0 %v1115_v40, %s19846_s28 }
 0x187   :  { %v951_v41 = vpop.f32.mrf.mxu0 }
 0x188   :  { %v1015_v30 = vmul.f32 %v13689_v35, %v951_v41 }
 0x189   :  { %v953_v42 = vpop.f32.mrf.mxu0 }
 0x18a   :  { %v1038_v43 = vadd.f32 %v13694_v37, %v1015_v30 }
 0x18b   :  { %v954_v26 = vpop.f32.mrf.mxu0 }
 0x18c   :  { %v1054_v44 = vmax.f32 %v1038_v43, 0.0  ;;  %v1016_v45 = vmul.f32 %v13689_v35, %v954_v26 }
 0x18d   :  { %v956_v46 = vpop.f32.mrf.mxu0 }
 0x18e   :  { %v1071_v47 = vmul.f32 %v13698_v49, %v1054_v44  ;;  %v1039_v48 = vadd.f32 %v13694_v37, %v1016_v45 }
 0x190   :  { %v1055_v52 = vmax.f32 %v1039_v48, 0.0  ;;  %1409 = vrot.lane.b32.xlu0 %v1071_v47, %s19758_s26  ;;  %1599 = vrot.lane.b32.xlu1 %v1071_v47, %s19839_s30  ;;  %v1215_v56 = vrot.slane %v1071_v47, 1  ;;  %v1087_v53 = vrot.slane %v1071_v47, 7 }
 0x192   :  { %v1072_v57 = vmul.f32 %v13698_v49, %v1055_v52  ;;  %v1242_v54 = vsel %vm246_vm1, %v1214_v4, %v1215_v56  ;;  %v1114_v60 = vsel %vm115_vm2, %v1086_v24, %v1087_v53 }
 0x193   :  { %1661 = vst.msk [vmem:[#allocation2 + $0x8] sm:$0xff] %vm132_vm0, %v1242_v54  ;;  %1120 = vst.msk [vmem:[#allocation2 + $0x30] sm:$0xff] %vm132_vm0, %v1114_v60 }
 0x194   :  { %v1216_v61 = vrot.slane %v1072_v57, 1  ;;  %1265 = vrot.lane.b32.xlu0 %v1242_v54, %s19843_s2  ;;  %1155 = vrot.lane.b32.xlu1 %v1071_v47, %s19842_s27  ;;  %v1088_v62 = vrot.slane %v1072_v57, 7 }
 0x196   :  { %v1241_v63 = vsel %vm246_vm1, %v1215_v56, %v1216_v61  ;;  %v1113_v27 = vsel %vm115_vm2, %v1087_v53, %v1088_v62 }
 0x197   :  { %1662 = vst.msk [vmem:[#allocation2 + $0x18] sm:$0xff] %vm132_vm0, %v1241_v63  ;;  %1121 = vst.msk [vmem:[#allocation2 + $0x40] sm:$0xff] %vm132_vm0, %v1113_v27 }
 0x198   :  { %1345 = vrot.lane.b32.xlu0 %v1114_v60, %s19845_s1  ;;  %1471 = vrot.lane.b32.xlu1 %v1242_v54, %s19844_s29 }
 0x19a   :  { %v1678_v0 = vld [vmem:[#allocation2 + $0x8] sm:$0xff] }
 0x19b   :  { %v1742_v7 = vmul.f32 %v12737_v3, %v1678_v0 }
 0x19c   :  { %1601 = vrot.lane.b32.xlu0 %v1072_v57, %s19839_s30  ;;  %1535 = vrot.lane.b32.xlu1 %v1114_v60, %s19846_s28 }
 0x19e   :  { %v1680_v2 = vld [vmem:[#allocation2 + $0x18] sm:$0xff] }
 0x19f   :  { %v1744_v8 = vmul.f32 %v12738_v55, %v1680_v2 }
 0x1a0   :  { %1157 = vrot.lane.b32.xlu0 %v1072_v57, %s19842_s27  ;;  %1411 = vrot.lane.b32.xlu1 %v1072_v57, %s19758_s26 }
 0x1a1   :  { %v1774_v10 = vpack.c.bf16 %v1744_v8, %v1742_v7 }
 0x1a3   :  { %v959_v13 = vpop.f32.mrf.mxu0  ;;  %11323 = vmatprep.mubr.msk.bf16.mxu1 %vm132_vm0, %v1774_v10 }
 0x1a4   :  { %v1017_v14 = vmul.f32 %v13689_v35, %v959_v13  ;;  %1473 = vrot.lane.b32.xlu0 %v1241_v63, %s19844_s29  ;;  %1267 = vrot.lane.b32.xlu1 %v1241_v63, %s19843_s2 }
 0x1a5   :  { %v961_v16 = vpop.f32.mrf.mxu0 }
 0x1a6   :  { %v1040_v17 = vadd.f32 %v13694_v37, %v1017_v14 }
 0x1a7   :  { %v962_v5 = vpop.f32.mrf.mxu0 }
 0x1a8   :  { %v1056_v21 = vmax.f32 %v1040_v17, 0.0  ;;  %v1018_v15 = vmul.f32 %v13689_v35, %v962_v5  ;;  %1537 = vrot.lane.b32.xlu0 %v1113_v27, %s19846_s28  ;;  %1347 = vrot.lane.b32.xlu1 %v1113_v27, %s19845_s1 }
 0x1a9   :  { %v964_v23 = vpop.f32.mrf.mxu0 }
 0x1aa   :  { %v1073_v32 = vmul.f32 %v13698_v49, %v1056_v21  ;;  %v1041_v34 = vadd.f32 %v13694_v37, %v1018_v15 }
 0x1ac   :  { %v1057_v36 = vmax.f32 %v1041_v34, 0.0  ;;  %1413 = vrot.lane.b32.xlu0 %v1073_v32, %s19758_s26  ;;  %1603 = vrot.lane.b32.xlu1 %v1073_v32, %s19839_s30  ;;  %v1217_v11 = vrot.slane %v1073_v32, 1  ;;  %v1089_v31 = vrot.slane %v1073_v32, 7 }
 0x1ae   :  { %v1074_v38 = vmul.f32 %v13698_v49, %v1057_v36  ;;  %v1240_v39 = vsel %vm246_vm1, %v1216_v61, %v1217_v11  ;;  %v1112_v20 = vsel %vm115_vm2, %v1088_v62, %v1089_v31 }
 0x1af   :  { %1663 = vst.msk [vmem:[#allocation2 + $0x28] sm:$0xff] %vm132_vm0, %v1240_v39  ;;  %1122 = vst.msk [vmem:[#allocation2 + $0x50] sm:$0xff] %vm132_vm0, %v1112_v20 }
 0x1b0   :  { %1269 = vrot.lane.b32.xlu0 %v1240_v39, %s19843_s2  ;;  %1159 = vrot.lane.b32.xlu1 %v1073_v32, %s19842_s27  ;;  %v1218_v58 = vrot.slane %v1074_v38, 1  ;;  %v1090_v33 = vrot.slane %v1074_v38, 7 }
 0x1b2   :  { %v1239_v22 = vsel %vm246_vm1, %v1217_v11, %v1218_v58  ;;  %v1111_v50 = vsel %vm115_vm2, %v1089_v31, %v1090_v33 }
 0x1b3   :  { %1664 = vst.msk [vmem:[#allocation2 + $0x38] sm:$0xff] %vm132_vm0, %v1239_v22  ;;  %1123 = vst.msk [vmem:[#allocation2 + $0x60] sm:$0xff] %vm132_vm0, %v1111_v50 }
 0x1b4   :  { %1349 = vrot.lane.b32.xlu0 %v1112_v20, %s19845_s1  ;;  %1475 = vrot.lane.b32.xlu1 %v1240_v39, %s19844_s29 }
 0x1b8   :  { %1605 = vrot.lane.b32.xlu0 %v1074_v38, %s19839_s30  ;;  %1539 = vrot.lane.b32.xlu1 %v1112_v20, %s19846_s28 }
 0x1bc   :  { %1161 = vrot.lane.b32.xlu0 %v1074_v38, %s19842_s27  ;;  %1415 = vrot.lane.b32.xlu1 %v1074_v38, %s19758_s26 }
 0x1bf   :  { %v967_v51 = vpop.f32.mrf.mxu0 }
 0x1c0   :  { %v1019_v12 = vmul.f32 %v13689_v35, %v967_v51  ;;  %1477 = vrot.lane.b32.xlu0 %v1239_v22, %s19844_s29  ;;  %1271 = vrot.lane.b32.xlu1 %v1239_v22, %s19843_s2 }
 0x1c1   :  { %v969_v29 = vpop.f32.mrf.mxu0 }
 0x1c2   :  { %v1042_v1 = vadd.f32 %v13694_v37, %v1019_v12 }
 0x1c3   :  { %v970_v6 = vpop.f32.mrf.mxu0 }
 0x1c4   :  { %v1058_v4 = vmax.f32 %v1042_v1, 0.0  ;;  %v1020_v24 = vmul.f32 %v13689_v35, %v970_v6  ;;  %1541 = vrot.lane.b32.xlu0 %v1111_v50, %s19846_s28  ;;  %1351 = vrot.lane.b32.xlu1 %v1111_v50, %s19845_s1 }
 0x1c5   :  { %v972_v25 = vpop.f32.mrf.mxu0 }
 0x1c6   :  { %v1075_v40 = vmul.f32 %v13698_v49, %v1058_v4  ;;  %v1043_v41 = vadd.f32 %v13694_v37, %v1020_v24 }
 0x1c8   :  { %v1059_v30 = vmax.f32 %v1043_v41, 0.0  ;;  %1417 = vrot.lane.b32.xlu0 %v1075_v40, %s19758_s26  ;;  %1607 = vrot.lane.b32.xlu1 %v1075_v40, %s19839_s30  ;;  %v1219_v42 = vrot.slane %v1075_v40, 1  ;;  %v1091_v43 = vrot.slane %v1075_v40, 7 }
 0x1ca   :  { %v1076_v26 = vmul.f32 %v13698_v49, %v1059_v30  ;;  %v1238_v44 = vsel %vm246_vm1, %v1218_v58, %v1219_v42  ;;  %v1110_v45 = vsel %vm115_vm2, %v1090_v33, %v1091_v43 }
 0x1cb   :  { %1665 = vst.msk [vmem:[#allocation2 + $0x48] sm:$0xff] %vm132_vm0, %v1238_v44  ;;  %1124 = vst.msk [vmem:[#allocation2 + $0x70] sm:$0xff] %vm132_vm0, %v1110_v45 }
 0x1cc   :  { %1273 = vrot.lane.b32.xlu0 %v1238_v44, %s19843_s2  ;;  %1163 = vrot.lane.b32.xlu1 %v1075_v40, %s19842_s27  ;;  %v1220_v46 = vrot.slane %v1076_v26, 1  ;;  %v1092_v47 = vrot.slane %v1076_v26, 7 }
 0x1ce   :  { %v1237_v48 = vsel %vm246_vm1, %v1219_v42, %v1220_v46  ;;  %v1109_v52 = vsel %vm115_vm2, %v1091_v43, %v1092_v47 }
 0x1cf   :  { %1666 = vst.msk [vmem:[#allocation2 + $0x58] sm:$0xff] %vm132_vm0, %v1237_v48  ;;  %1125 = vst.msk [vmem:[#allocation2 + $0x80] sm:$0xff] %vm132_vm0, %v1109_v52 }
 0x1d0   :  { %1353 = vrot.lane.b32.xlu0 %v1110_v45, %s19845_s1  ;;  %1479 = vrot.lane.b32.xlu1 %v1238_v44, %s19844_s29 }
 0x1d4   :  { %1609 = vrot.lane.b32.xlu0 %v1076_v26, %s19839_s30  ;;  %1543 = vrot.lane.b32.xlu1 %v1110_v45, %s19846_s28 }
 0x1d8   :  { %1165 = vrot.lane.b32.xlu0 %v1076_v26, %s19842_s27  ;;  %1419 = vrot.lane.b32.xlu1 %v1076_v26, %s19758_s26 }
 0x1db   :  { %v975_v56 = vpop.f32.mrf.mxu0 }
 0x1dc   :  { %v1021_v53 = vmul.f32 %v13689_v35, %v975_v56  ;;  %1481 = vrot.lane.b32.xlu0 %v1237_v48, %s19844_s29  ;;  %1275 = vrot.lane.b32.xlu1 %v1237_v48, %s19843_s2 }
 0x1dd   :  { %v977_v57 = vpop.f32.mrf.mxu0 }
 0x1de   :  { %v1044_v54 = vadd.f32 %v13694_v37, %v1021_v53 }
 0x1df   :  { %v978_v60 = vpop.f32.mrf.mxu0 }
 0x1e0   :  { %v1060_v61 = vmax.f32 %v1044_v54, 0.0  ;;  %v1022_v62 = vmul.f32 %v13689_v35, %v978_v60  ;;  %1545 = vrot.lane.b32.xlu0 %v1109_v52, %s19846_s28  ;;  %1355 = vrot.lane.b32.xlu1 %v1109_v52, %s19845_s1 }
 0x1e1   :  { %v980_v63 = vpop.f32.mrf.mxu0 }
 0x1e2   :  { %v1077_v27 = vmul.f32 %v13698_v49, %v1060_v61  ;;  %v1045_v0 = vadd.f32 %v13694_v37, %v1022_v62 }
 0x1e4   :  { %v1061_v2 = vmax.f32 %v1045_v0, 0.0  ;;  %1421 = vrot.lane.b32.xlu0 %v1077_v27, %s19758_s26  ;;  %1611 = vrot.lane.b32.xlu1 %v1077_v27, %s19839_s30  ;;  %v1221_v3 = vrot.slane %v1077_v27, 1  ;;  %v1093_v7 = vrot.slane %v1077_v27, 7 }
 0x1e6   :  { %v1078_v55 = vmul.f32 %v13698_v49, %v1061_v2  ;;  %v1236_v10 = vsel %vm246_vm1, %v1220_v46, %v1221_v3  ;;  %v1108_v13 = vsel %vm115_vm2, %v1092_v47, %v1093_v7 }
 0x1e7   :  { %v13840_v8 = vpop.permute.xlu0 %1405  ;;  %1667 = vst.msk [vmem:[#allocation2 + $0x68] sm:$0xff] %vm132_vm0, %v1236_v10  ;;  %1126 = vst.msk [vmem:[#allocation2 + $0x90] sm:$0xff] %vm132_vm0, %v1108_v13  ;;  %v13858_v15 = vpop.permute.xlu1 %1151 }
 0x1e8   :  { %1277 = vrot.lane.b32.xlu0 %v1236_v10, %s19843_s2  ;;  %1167 = vrot.lane.b32.xlu1 %v1077_v27, %s19842_s27  ;;  %v1222_v14 = vrot.slane %v1078_v55, 1  ;;  %v1094_v16 = vrot.slane %v1078_v55, 7 }
 0x1ea   :  { %v1235_v5 = vsel %vm246_vm1, %v1221_v3, %v1222_v14  ;;  %v1107_v21 = vsel %vm115_vm2, %v1093_v7, %v1094_v16 }
 0x1eb   :  { %v13850_v17 = vpop.permute.xlu0 %1597  ;;  %1668 = vst.msk [vmem:[#allocation2 + $0x78] sm:$0xff] %vm132_vm0, %v1235_v5  ;;  %1127 = vst.msk [vmem:[#allocation2 + $0xa0] sm:$0xff] %vm132_vm0, %v1107_v21  ;;  %v13865_v32 = vpop.permute.xlu1 %1407 }
 0x1ec   :  { %1357 = vrot.lane.b32.xlu0 %v1108_v13, %s19845_s1  ;;  %1483 = vrot.lane.b32.xlu1 %v1236_v10, %s19844_s29 }
 0x1ef   :  { %v1154_v23 = vpop.permute.xlu0 %1153  ;;  %v13869_v36 = vpop.permute.xlu1 %1263 }
 0x1f0   :  { %1199 = vst.msk [vmem:[#allocation2 + $0x20] sm:$0xff] %vm213_vm3, %v1154_v23  ;;  %1613 = vrot.lane.b32.xlu0 %v1078_v55, %s19839_s30  ;;  %1547 = vrot.lane.b32.xlu1 %v1108_v13, %s19846_s28 }
 0x1f3   :  { %v13871_v11 = vpop.permute.xlu0 %1469  ;;  %v13880_v50 = vpop.permute.xlu1 %1343 }
 0x1f4   :  { %1169 = vrot.lane.b32.xlu0 %v1078_v55, %s19842_s27  ;;  %1423 = vrot.lane.b32.xlu1 %v1078_v55, %s19758_s26 }
 0x1f7   :  { %v983_v34 = vpop.f32.mrf.mxu0  ;;  %v13882_v51 = vpop.permute.xlu0 %1533 }
 0x1f8   :  { %v1023_v31 = vmul.f32 %v13689_v35, %v983_v34  ;;  %1485 = vrot.lane.b32.xlu0 %v1235_v5, %s19844_s29  ;;  %1279 = vrot.lane.b32.xlu1 %v1235_v5, %s19843_s2 }
 0x1f9   :  { %v985_v38 = vpop.f32.mrf.mxu0 }
 0x1fa   :  { %v1046_v39 = vadd.f32 %v13694_v37, %v1023_v31 }
 0x1fb   :  { %v986_v20 = vpop.f32.mrf.mxu0 }
 0x1fc   :  { %v1062_v58 = vmax.f32 %v1046_v39, 0.0  ;;  %v1024_v33 = vmul.f32 %v13689_v35, %v986_v20  ;;  %1549 = vrot.lane.b32.xlu0 %v1107_v21, %s19846_s28  ;;  %1359 = vrot.lane.b32.xlu1 %v1107_v21, %s19845_s1 }
 0x1fd   :  { %v988_v22 = vpop.f32.mrf.mxu0 }
 0x1fe   :  { %v1079_v12 = vmul.f32 %v13698_v49, %v1062_v58  ;;  %v1047_v29 = vadd.f32 %v13694_v37, %v1024_v33 }
 0x200   :  { %v1063_v1 = vmax.f32 %v1047_v29, 0.0  ;;  %1425 = vrot.lane.b32.xlu0 %v1079_v12, %s19758_s26  ;;  %1615 = vrot.lane.b32.xlu1 %v1079_v12, %s19839_s30  ;;  %v1223_v6 = vrot.slane %v1079_v12, 1  ;;  %v1095_v4 = vrot.slane %v1079_v12, 7 }
 0x202   :  { %v13889_v24 = vmul.f32 %v13698_v49, %v1063_v1  ;;  %v1410_v25 = vpop.permute.xlu0 %1409  ;;  %v13891_v40 = vpop.permute.xlu1 %1599  ;;  %v1234_v41 = vsel %vm246_vm1, %v1222_v14, %v1223_v6  ;;  %v1106_v30 = vsel %vm115_vm2, %v1094_v16, %v1095_v4  ;;  %v12281_v1 = vld [vmem:[%s19847_s21 + $0x38] sm:$0xff]  }
 0x203   :  { %1669 = vst.msk [vmem:[#allocation2 + $0x88] sm:$0xff] %vm132_vm0, %v1234_v41  ;;  %1128 = vst.msk [vmem:[#allocation2 + $0xb0] sm:$0xff] %vm132_vm0, %v1106_v30  ;;  %1886 = vmatpush1.bf16.msra.mxu1 %v12281_v1 }
 0x204   :  { %1281 = vrot.lane.b32.xlu0 %v1234_v41, %s19843_s2  ;;  %1171 = vrot.lane.b32.xlu1 %v1079_v12, %s19842_s27  ;;  %v1224_v42 = vrot.slane %v13889_v24, 1  ;;  %v1096_v43 = vrot.slane %v13889_v24, 7 }
 0x205   :  { %1887 = vmatprep.subr.bf16.mxu1 %v19760_v59 }
 0x206   :  { %v1266_v26 = vpop.permute.xlu0 %1265  ;;  %v1156_v44 = vpop.permute.xlu1 %1155  ;;  %v1233_v45 = vsel %vm246_vm1, %v1223_v6, %v1224_v42  ;;  %v1105_v46 = vsel %vm115_vm2, %v1095_v4, %v1096_v43 }
 0x207   :  { %1311 = vst.msk [vmem:[#allocation2 + $0x20] sm:$0xff] %vm327_vm4, %v1266_v26 }
 0x208   :  { %1200 = vst.msk [vmem:[#allocation2 + $0x30] sm:$0xff] %vm213_vm3, %v1156_v44  ;;  %1361 = vrot.lane.b32.xlu0 %v1106_v30, %s19845_s1  ;;  %1487 = vrot.lane.b32.xlu1 %v1234_v41, %s19844_s29  ;;  %v12284_v44 = vld [vmem:[%s19847_s21 + $0x20] sm:$0xff]  }
 0x209   :  { %1670 = vst.msk [vmem:[#allocation2 + $0x98] sm:$0xff] %vm132_vm0, %v1233_v45  ;;  %1129 = vst.msk [vmem:[#allocation2 + $0xc0] sm:$0xff] %vm132_vm0, %v1105_v46 }
 0x20a   :  { %v1346_v47 = vpop.permute.xlu0 %1345  ;;  %v13913_v48 = vpop.permute.xlu1 %1471 }
 0x20b   :  { %1391 = vst.msk [vmem:[#allocation2 + $0x20] sm:$0xff] %vm408_vm5, %v1346_v47 }
 0x20c   :  { %1455 = vst.msk [vmem:[#allocation2 + $0x20] sm:$0xff] %vm473_vm6, %v1410_v25  ;;  %1489 = vrot.lane.b32.xlu0 %v1233_v45, %s19844_s29  ;;  %1551 = vrot.lane.b32.xlu1 %v1106_v30, %s19846_s28  ;;  %v12282_v25 = vld [vmem:[%s19847_s21 + $0x30] sm:$0xff]  }
 0x20d   :  { %1888 = vmatpush1.bf16.msra.mxu1 %v12282_v25  ;;  %v12288_v25 = vld [vmem:[%s19847_s21] sm:$0xff]  }
 0x20e   :  { %v1602_v52 = vpop.permute.xlu0 %1601  ;;  %v13919_v56 = vpop.permute.xlu1 %1535  ;;  %1889 = vmatprep.subr.bf16.mxu1 %v19760_v59 }
 0x210   :  { %1553 = vrot.lane.b32.xlu0 %v1105_v46, %s19846_s28  ;;  %1427 = vrot.lane.b32.xlu1 %v13889_v24, %s19758_s26 }
 0x212   :  { %v1158_v53 = vpop.permute.xlu0 %1157  ;;  %v1412_v57 = vpop.permute.xlu1 %1411 }
 0x213   :  { %1201 = vst.msk [vmem:[#allocation2 + $0x40] sm:$0xff] %vm213_vm3, %v1158_v53  ;;  %v991_v54 = vpop.f32.mrf.mxu0 }
 0x214   :  { %v1025_v60 = vmul.f32 %v13689_v35, %v991_v54  ;;  %1283 = vrot.lane.b32.xlu1 %v1233_v45, %s19843_s2  ;;  %v12285_v54 = vld [vmem:[%s19847_s21 + $0x18] sm:$0xff]  }
 0x215   :  { %v993_v61 = vpop.f32.mrf.mxu0 }
 0x216   :  { %v1048_v62 = vadd.f32 %v13694_v37, %v1025_v60  ;;  %v1474_v63 = vpop.permute.xlu0 %1473  ;;  %v1268_v27 = vpop.permute.xlu1 %1267 }
 0x217   :  { %1519 = vst.msk [vmem:[#allocation2 + $0x20] sm:$0xff] %vm538_vm7, %v1474_v63  ;;  %v994_v0 = vpop.f32.mrf.mxu0 }
 0x218   :  { %1312 = vst.msk [vmem:[#allocation2 + $0x30] sm:$0xff] %vm327_vm4, %v1268_v27  ;;  %v1064_v2 = vmax.f32 %v1048_v62, 0.0  ;;  %v1026_v3 = vmul.f32 %v13689_v35, %v994_v0  ;;  %1363 = vrot.lane.b32.xlu1 %v1105_v46, %s19845_s1 }
 0x219   :  { %v996_v7 = vpop.f32.mrf.mxu0 }
 0x21a   :  { %v13933_v55 = vmul.f32 %v13698_v49, %v1064_v2  ;;  %v1049_v10 = vadd.f32 %v13694_v37, %v1026_v3  ;;  %v1538_v13 = vpop.permute.xlu0 %1537  ;;  %v1348_v14 = vpop.permute.xlu1 %1347  ;;  %v12286_v7 = vld [vmem:[%s19847_s21 + $0x10] sm:$0xff]  }
 0x21b   :  { %1583 = vst.msk [vmem:[#allocation2 + $0x20] sm:$0xff] %vm603_vm8, %v1538_v13 }
 0x21c   :  { %1392 = vst.msk [vmem:[#allocation2 + $0x30] sm:$0xff] %vm408_vm5, %v1348_v14  ;;  %v1065_v16 = vmax.f32 %v1049_v10, 0.0  ;;  %v1225_v5 = vrot.slane %v13933_v55, 1  ;;  %v1097_v21 = vrot.slane %v13933_v55, 7 }
 0x21d   :  { %1647 = vst.msk [vmem:[#allocation2 + $0x20] sm:$0xff] %vm668_vm9, %v1602_v52 }
 0x21e   :  { %1456 = vst.msk [vmem:[#allocation2 + $0x30] sm:$0xff] %vm473_vm6, %v1412_v57  ;;  %v13943_v23 = vmul.f32 %v13698_v49, %v1065_v16  ;;  %v1414_v34 = vpop.permute.xlu0 %1413  ;;  %v1604_v31 = vpop.permute.xlu1 %1603  ;;  %v13947_v38 = vsel %vm246_vm1, %v1224_v42, %v1225_v5  ;;  %v13951_v39 = vsel %vm115_vm2, %v1096_v43, %v1097_v21  ;;  %v12283_v42 = vld [vmem:[%s19847_s21 + $0x28] sm:$0xff]  }
 0x21f   :  { %1671 = vst.msk [vmem:[#allocation2 + $0xa8] sm:$0xff] %vm132_vm0, %v13947_v38  ;;  %1491 = vrot.lane.b32.xlu1 %v13947_v38, %s19844_s29  ;;  %1130 = vst.msk [vmem:[#allocation2 + $0xd0] sm:$0xff] %vm132_vm0, %v13951_v39  ;;  %1890 = vmatpush1.bf16.msra.mxu1 %v12283_v42 }
 0x220   :  { %v1226_v20 = vrot.slane %v13943_v23, 1  ;;  %v1098_v58 = vrot.slane %v13943_v23, 7  ;;  %1891 = vmatprep.subr.bf16.mxu1 %v19760_v59 }
 0x222   :  { %v1270_v33 = vpop.permute.xlu0 %1269  ;;  %v1160_v22 = vpop.permute.xlu1 %1159  ;;  %v13965_v12 = vsel %vm246_vm1, %v1225_v5, %v1226_v20  ;;  %v13971_v29 = vsel %vm115_vm2, %v1097_v21, %v1098_v58 }
 0x223   :  { %1313 = vst.msk [vmem:[#allocation2 + $0x40] sm:$0xff] %vm327_vm4, %v1270_v33  ;;  %1555 = vrot.lane.b32.xlu1 %v13951_v39, %s19846_s28  ;;  %1892 = vmatpush1.bf16.msra.mxu1 %v12284_v44 }
 0x224   :  { %1202 = vst.msk [vmem:[#allocation2 + $0x50] sm:$0xff] %vm213_vm3, %v1160_v22  ;;  %1893 = vmatprep.subr.bf16.mxu1 %v19760_v59 }
 0x225   :  { %1672 = vst.msk [vmem:[#allocation2 + $0xb8] sm:$0xff] %vm132_vm0, %v13965_v12  ;;  %1131 = vst.msk [vmem:[#allocation2 + $0xe0] sm:$0xff] %vm132_vm0, %v13971_v29 }
 0x226   :  { %v1350_v6 = vpop.permute.xlu0 %1349  ;;  %v1476_v4 = vpop.permute.xlu1 %1475 }
 0x227   :  { %1393 = vst.msk [vmem:[#allocation2 + $0x40] sm:$0xff] %vm408_vm5, %v1350_v6  ;;  %1619 = vrot.lane.b32.xlu1 %v13933_v55, %s19839_s30  ;;  %1894 = vmatpush1.bf16.msra.mxu1 %v12285_v54 }
 0x228   :  { %1520 = vst.msk [vmem:[#allocation2 + $0x30] sm:$0xff] %vm538_vm7, %v1476_v4  ;;  %1895 = vmatprep.subr.bf16.mxu1 %v19760_v59 }
 0x229   :  { %1457 = vst.msk [vmem:[#allocation2 + $0x40] sm:$0xff] %vm473_vm6, %v1414_v34  ;;  %v12287_v34 = vld [vmem:[%s19847_s21 + $0x8] sm:$0xff]  }
 0x22a   :  { %v1606_v41 = vpop.permute.xlu0 %1605  ;;  %v1540_v30 = vpop.permute.xlu1 %1539 }
 0x22b   :  { %1584 = vst.msk [vmem:[#allocation2 + $0x30] sm:$0xff] %vm603_vm8, %v1540_v30  ;;  %1175 = vrot.lane.b32.xlu1 %v13933_v55, %s19842_s27  ;;  %1896 = vmatpush1.bf16.msra.mxu1 %v12286_v7 }
 0x22c   :  { %1648 = vst.msk [vmem:[#allocation2 + $0x30] sm:$0xff] %vm668_vm9, %v1604_v31  ;;  %1897 = vmatprep.subr.bf16.mxu1 %v19760_v59 }
 0x22e   :  { %v1162_v43 = vpop.permute.xlu0 %1161  ;;  %v1416_v26 = vpop.permute.xlu1 %1415 }
 0x22f   :  { %1203 = vst.msk [vmem:[#allocation2 + $0x60] sm:$0xff] %vm213_vm3, %v1162_v43  ;;  %v999_v45 = vpop.f32.mrf.mxu0  ;;  %1287 = vrot.lane.b32.xlu1 %v13965_v12, %s19843_s2  ;;  %1898 = vmatpush1.bf16.msra.mxu1 %v12287_v34 }
 0x230   :  { %v1027_v46 = vmul.f32 %v13689_v35, %v999_v45  ;;  %1899 = vmatprep.subr.bf16.mxu1 %v19760_v59 }
 0x231   :  { %v1001_v47 = vpop.f32.mrf.mxu0 }
 0x232   :  { %v1050_v52 = vadd.f32 %v13694_v37, %v1027_v46  ;;  %v1478_v53 = vpop.permute.xlu0 %1477  ;;  %v1272_v57 = vpop.permute.xlu1 %1271 }
 0x233   :  { %1521 = vst.msk [vmem:[#allocation2 + $0x40] sm:$0xff] %vm538_vm7, %v1478_v53  ;;  %v1002_v60 = vpop.f32.mrf.mxu0  ;;  %1367 = vrot.lane.b32.xlu1 %v13971_v29, %s19845_s1  ;;  %1900 = vmatpush1.bf16.msra.mxu1 %v12288_v25  ;;  %v1682_v25 = vld [vmem:[#allocation2 + $0x28] sm:$0xff] }
 0x234   :  { %1314 = vst.msk [vmem:[#allocation2 + $0x50] sm:$0xff] %vm327_vm4, %v1272_v57  ;;  %v1066_v61 = vmax.f32 %v1050_v52, 0.0  ;;  %v1028_v62 = vmul.f32 %v13689_v35, %v1002_v60  ;;  %1915 = vmatprep.subr.bf16.mxu1 %v19760_v59 }
 0x235   :  { %v1004_v63 = vpop.f32.mrf.mxu0 }
 0x236   :  { %v14021_v27 = vmul.f32 %v13698_v49, %v1066_v61  ;;  %v1051_v0 = vadd.f32 %v13694_v37, %v1028_v62  ;;  %v1542_v2 = vpop.permute.xlu0 %1541  ;;  %v1352_v3 = vpop.permute.xlu1 %1351 }
 0x237   :  { %1585 = vst.msk [vmem:[#allocation2 + $0x40] sm:$0xff] %vm603_vm8, %v1542_v2  ;;  %1431 = vrot.lane.b32.xlu1 %v13943_v23, %s19758_s26 }
 0x238   :  { %1394 = vst.msk [vmem:[#allocation2 + $0x50] sm:$0xff] %vm408_vm5, %v1352_v3  ;;  %v1067_v35 = vmax.f32 %v1051_v0, 0.0  ;;  %v1227_v37 = vrot.slane %v14021_v27, 1  ;;  %v1099_v10 = vrot.slane %v14021_v27, 7 }
 0x239   :  { %1649 = vst.msk [vmem:[#allocation2 + $0x40] sm:$0xff] %vm668_vm9, %v1606_v41  ;;  %v12289_v41 = vld [vmem:[%s19847_s21 + $0x40] sm:$0xff]   ;;  %s19848_s21 = smov 64  }
 0x23a   :  { %1458 = vst.msk [vmem:[#allocation2 + $0x50] sm:$0xff] %vm473_vm6, %v1416_v26  ;;  %v14037_v13 = vmul.f32 %v13698_v49, %v1067_v35  ;;  %v1418_v14 = vpop.permute.xlu0 %1417  ;;  %v1608_v16 = vpop.permute.xlu1 %1607  ;;  %v14043_v5 = vsel %vm246_vm1, %v1226_v20, %v1227_v37  ;;  %v14049_v21 = vsel %vm115_vm2, %v1098_v58, %v1099_v10  ;;  %1916 = vmatpush2.bf16.msra.mxu1 %v12289_v41 }
 0x23b   :  { %1673 = vst.msk [vmem:[#allocation2 + $0xc8] sm:$0xff] %vm132_vm0, %v14043_v5  ;;  %1495 = vrot.lane.b32.xlu1 %v14043_v5, %s19844_s29  ;;  %1132 = vst.msk [vmem:[#allocation2 + $0xf0] sm:$0xff] %vm132_vm0, %v14049_v21  ;;  %3839 = vmatprep.subr.bf16.mxu1 %v19760_v59 }
 0x23c   :  { %1149 = vrot.lane.b32.xlu0 %v14037_v13, %s19842_s27  ;;  %v1228_v31 = vrot.slane %v14037_v13, 1  ;;  %v1100_v20 = vrot.slane %v14037_v13, 7 }
 0x23e   :  { %v1274_v58 = vpop.permute.xlu0 %1273  ;;  %v1164_v33 = vpop.permute.xlu1 %1163  ;;  %v1244_v22 = vsel %vm246_vm1, %v1228_v31, %v1213_v18  ;;  %v14073_v1 = vsel %vm115_vm2, %v1100_v20, %v1085_v19  ;;  %v14077_v6 = vsel %vm246_vm1, %v1227_v37, %v1228_v31  ;;  %v14081_v4 = vsel %vm115_vm2, %v1099_v10, %v1100_v20 }
 0x23f   :  { %1315 = vst.msk [vmem:[#allocation2 + $0x60] sm:$0xff] %vm327_vm4, %v1274_v58  ;;  %1559 = vrot.lane.b32.xlu1 %v14049_v21, %s19846_s28 }
 0x240   :  { %1204 = vst.msk [vmem:[#allocation2 + $0x70] sm:$0xff] %vm213_vm3, %v1164_v33  ;;  %1261 = vrot.lane.b32.xlu0 %v1244_v22, %s19843_s2 }
 0x241   :  { %1675 = vst.msk [vmem:[#allocation2 + $0xe8] sm:$0xff] %vm132_vm0, %v1244_v22  ;;  %1118 = vst.msk [vmem:[#allocation2 + $0x10] sm:$0xff] %vm132_vm0, %v14073_v1 }
 0x242   :  { %1674 = vst.msk [vmem:[#allocation2 + $0xd8] sm:$0xff] %vm132_vm0, %v14077_v6  ;;  %1117 = vst.msk [vmem:[#allocation2] sm:$0xff] %vm132_vm0, %v14081_v4  ;;  %v1354_v18 = vpop.permute.xlu0 %1353  ;;  %v1480_v19 = vpop.permute.xlu1 %1479 }
 0x243   :  { %1198 = vst.msk [vmem:[#allocation2 + $0x10] sm:$0xff] %vm213_vm3, %v13858_v15  ;;  %1623 = vrot.lane.b32.xlu1 %v14021_v27, %s19839_s30 }
 0x244   :  { %1310 = vst.msk [vmem:[#allocation2 + $0x10] sm:$0xff] %vm327_vm4, %v13869_v36  ;;  %1341 = vrot.lane.b32.xlu0 %v14073_v1, %s19845_s1 }
 0x245   :  { %1390 = vst.msk [vmem:[#allocation2 + $0x10] sm:$0xff] %vm408_vm5, %v13880_v50  ;;  %1395 = vst.msk [vmem:[#allocation2 + $0x60] sm:$0xff] %vm408_vm5, %v1354_v18  ;;  %v1714_v18 = vld [vmem:[%s19838_s7 + $0x28] sm:$0xff] }
 0x246   :  { %1522 = vst.msk [vmem:[#allocation2 + $0x50] sm:$0xff] %vm538_vm7, %v1480_v19  ;;  %v1610_v15 = vpop.permute.xlu0 %1609  ;;  %v1544_v36 = vpop.permute.xlu1 %1543 }
 0x247   :  { %1454 = vst.msk [vmem:[#allocation2 + $0x10] sm:$0xff] %vm473_vm6, %v13865_v32  ;;  %1459 = vst.msk [vmem:[#allocation2 + $0x60] sm:$0xff] %vm473_vm6, %v1418_v14  ;;  %1179 = vrot.lane.b32.xlu1 %v14021_v27, %s19842_s27 }
 0x248   :  { %1518 = vst.msk [vmem:[#allocation2 + $0x10] sm:$0xff] %vm538_vm7, %v13913_v48  ;;  %1617 = vrot.lane.b32.xlu0 %v13889_v24, %s19839_s30 }
 0x249   :  { %1582 = vst.msk [vmem:[#allocation2 + $0x10] sm:$0xff] %vm603_vm8, %v13919_v56  ;;  %1586 = vst.msk [vmem:[#allocation2 + $0x50] sm:$0xff] %vm603_vm8, %v1544_v36 }
 0x24a   :  { %1646 = vst.msk [vmem:[#allocation2 + $0x10] sm:$0xff] %vm668_vm9, %v13891_v40  ;;  %1650 = vst.msk [vmem:[#allocation2 + $0x50] sm:$0xff] %vm668_vm9, %v1608_v16  ;;  %v1166_v32 = vpop.permute.xlu0 %1165  ;;  %v1420_v50 = vpop.permute.xlu1 %1419 }
 0x24b   :  { %1205 = vst.msk [vmem:[#allocation2 + $0x80] sm:$0xff] %vm213_vm3, %v1166_v32  ;;  %1291 = vrot.lane.b32.xlu1 %v14077_v6, %s19843_s2 }
 0x24c   :  { %1173 = vrot.lane.b32.xlu0 %v13889_v24, %s19842_s27 }
 0x24e   :  { %v1482_v40 = vpop.permute.xlu0 %1481  ;;  %v1276_v48 = vpop.permute.xlu1 %1275 }
 0x24f   :  { %1523 = vst.msk [vmem:[#allocation2 + $0x60] sm:$0xff] %vm538_vm7, %v1482_v40  ;;  %1371 = vrot.lane.b32.xlu1 %v14081_v4, %s19845_s1 }
 0x250   :  { %1316 = vst.msk [vmem:[#allocation2 + $0x70] sm:$0xff] %vm327_vm4, %v1276_v48  ;;  %1285 = vrot.lane.b32.xlu0 %v13947_v38, %s19843_s2 }
 0x252   :  { %v1546_v56 = vpop.permute.xlu0 %1545  ;;  %v1356_v30 = vpop.permute.xlu1 %1355 }
 0x253   :  { %1587 = vst.msk [vmem:[#allocation2 + $0x60] sm:$0xff] %vm603_vm8, %v1546_v56  ;;  %1435 = vrot.lane.b32.xlu1 %v14037_v13, %s19758_s26 }
 0x254   :  { %1396 = vst.msk [vmem:[#allocation2 + $0x70] sm:$0xff] %vm408_vm5, %v1356_v30  ;;  %1365 = vrot.lane.b32.xlu0 %v13951_v39, %s19845_s1 }
 0x255   :  { %1651 = vst.msk [vmem:[#allocation2 + $0x60] sm:$0xff] %vm668_vm9, %v1610_v15 }
 0x256   :  { %1460 = vst.msk [vmem:[#allocation2 + $0x70] sm:$0xff] %vm473_vm6, %v1420_v50  ;;  %v1422_v24 = vpop.permute.xlu0 %1421  ;;  %v1612_v42 = vpop.permute.xlu1 %1611  ;;  %v1746_v50 = vmul.f32 %v1714_v18, %v1682_v25 }
 0x257   :  { %1499 = vrot.lane.b32.xlu1 %v1244_v22, %s19844_s29 }
 0x258   :  { %1429 = vrot.lane.b32.xlu0 %v13933_v55, %s19758_s26 }
 0x25a   :  { %v1278_v38 = vpop.permute.xlu0 %1277  ;;  %v1168_v43 = vpop.permute.xlu1 %1167 }
 0x25b   :  { %1317 = vst.msk [vmem:[#allocation2 + $0x80] sm:$0xff] %vm327_vm4, %v1278_v38  ;;  %1563 = vrot.lane.b32.xlu1 %v14073_v1, %s19846_s28  ;;  %v1688_v38 = vld [vmem:[#allocation2 + $0x58] sm:$0xff] }
 0x25c   :  { %1206 = vst.msk [vmem:[#allocation2 + $0x90] sm:$0xff] %vm213_vm3, %v1168_v43  ;;  %1493 = vrot.lane.b32.xlu0 %v13965_v12, %s19844_s29  ;;  %v1720_v43 = vld [vmem:[%s19838_s7 + $0x58] sm:$0xff] }
 0x25e   :  { %v1358_v39 = vpop.permute.xlu0 %1357  ;;  %v1484_v26 = vpop.permute.xlu1 %1483 }
 0x25f   :  { %1397 = vst.msk [vmem:[#allocation2 + $0x80] sm:$0xff] %vm408_vm5, %v1358_v39  ;;  %1627 = vrot.lane.b32.xlu1 %v13702_v28, %s19839_s30  ;;  %v1681_v39 = vld [vmem:[#allocation2 + $0x20] sm:$0xff] }
 0x260   :  { %1524 = vst.msk [vmem:[#allocation2 + $0x70] sm:$0xff] %vm538_vm7, %v1484_v26  ;;  %1557 = vrot.lane.b32.xlu0 %v13971_v29, %s19846_s28  ;;  %v1713_v26 = vld [vmem:[%s19838_s7 + $0x20] sm:$0xff] }
 0x261   :  { %1461 = vst.msk [vmem:[#allocation2 + $0x80] sm:$0xff] %vm473_vm6, %v1422_v24  ;;  %v1683_v24 = vld [vmem:[#allocation2 + $0x30] sm:$0xff] }
 0x262   :  { %v1614_v55 = vpop.permute.xlu0 %1613  ;;  %v1548_v44 = vpop.permute.xlu1 %1547 }
 0x263   :  { %1588 = vst.msk [vmem:[#allocation2 + $0x70] sm:$0xff] %vm603_vm8, %v1548_v44 }
 0x264   :  { %1652 = vst.msk [vmem:[#allocation2 + $0x70] sm:$0xff] %vm668_vm9, %v1612_v42  ;;  %1621 = vrot.lane.b32.xlu0 %v13943_v23, %s19839_s30  ;;  %v1715_v42 = vld [vmem:[%s19838_s7 + $0x30] sm:$0xff] }
 0x265   :  { %v1747_v44 = vmul.f32 %v1715_v42, %v1683_v24 }
 0x266   :  { %v1170_v12 = vpop.permute.xlu0 %1169  ;;  %v1424_v45 = vpop.permute.xlu1 %1423 }
 0x267   :  { %1207 = vst.msk [vmem:[#allocation2 + $0xa0] sm:$0xff] %vm213_vm3, %v1170_v12  ;;  %v1686_v12 = vld [vmem:[#allocation2 + $0x48] sm:$0xff] }
 0x268   :  { %1177 = vrot.lane.b32.xlu0 %v13943_v23, %s19842_s27 }
 0x26a   :  { %v1486_v28 = vpop.permute.xlu0 %1485  ;;  %v1280_v46 = vpop.permute.xlu1 %1279 }
 0x26b   :  { %1525 = vst.msk [vmem:[#allocation2 + $0x80] sm:$0xff] %vm538_vm7, %v1486_v28 }
 0x26c   :  { %1318 = vst.msk [vmem:[#allocation2 + $0x90] sm:$0xff] %vm327_vm4, %v1280_v46  ;;  %1289 = vrot.lane.b32.xlu0 %v14043_v5, %s19843_s2  ;;  %v1752_v46 = vmul.f32 %v1720_v43, %v1688_v38 }
 0x26e   :  { %v1550_v29 = vpop.permute.xlu0 %1549  ;;  %v1360_v47 = vpop.permute.xlu1 %1359 }
 0x26f   :  { %1589 = vst.msk [vmem:[#allocation2 + $0x80] sm:$0xff] %vm603_vm8, %v1550_v29  ;;  %v1745_v29 = vmul.f32 %v1713_v26, %v1681_v39 }
 0x270   :  { %1398 = vst.msk [vmem:[#allocation2 + $0x90] sm:$0xff] %vm408_vm5, %v1360_v47  ;;  %1369 = vrot.lane.b32.xlu0 %v14049_v21, %s19845_s1 }
 0x271   :  { %1653 = vst.msk [vmem:[#allocation2 + $0x80] sm:$0xff] %vm668_vm9, %v1614_v55 }
 0x272   :  { %1462 = vst.msk [vmem:[#allocation2 + $0x90] sm:$0xff] %vm473_vm6, %v1424_v45  ;;  %v1426_v23 = vpop.permute.xlu0 %1425  ;;  %v1616_v52 = vpop.permute.xlu1 %1615  ;;  %v1718_v45 = vld [vmem:[%s19838_s7 + $0x48] sm:$0xff] }
 0x273   :  { %v1750_v47 = vmul.f32 %v1718_v45, %v1686_v12  ;;  %v1704_v12 = vld [vmem:[#allocation2 + $0xd8] sm:$0xff] }
 0x274   :  { %1433 = vrot.lane.b32.xlu0 %v14021_v27, %s19758_s26  ;;  %v1736_v45 = vld [vmem:[%s19838_s7 + $0xd8] sm:$0xff] }
 0x276   :  { %v1282_v53 = vpop.permute.xlu0 %1281  ;;  %v1172_v57 = vpop.permute.xlu1 %1171 }
 0x277   :  { %1319 = vst.msk [vmem:[#allocation2 + $0xa0] sm:$0xff] %vm327_vm4, %v1282_v53 }
 0x278   :  { %1208 = vst.msk [vmem:[#allocation2 + $0xb0] sm:$0xff] %vm213_vm3, %v1172_v57  ;;  %1497 = vrot.lane.b32.xlu0 %v14077_v6, %s19844_s29  ;;  %v1709_v6 = vld [vmem:[%s19838_s7] sm:$0xff]  ;;  %v1778_v57 = vpack.c.bf16 %v1752_v46, %v1750_v47  ;;  %v1731_v46 = vld [vmem:[%s19838_s7 + $0xb0] sm:$0xff]  ;;  %v1702_v47 = vld [vmem:[#allocation2 + $0xc8] sm:$0xff] }
 0x27a   :  { %v1362_v54 = vpop.permute.xlu0 %1361  ;;  %v1488_v60 = vpop.permute.xlu1 %1487 }
 0x27b   :  { %1399 = vst.msk [vmem:[#allocation2 + $0xa0] sm:$0xff] %vm408_vm5, %v1362_v54  ;;  %v1687_v54 = vld [vmem:[#allocation2 + $0x50] sm:$0xff] }
 0x27c   :  { %1526 = vst.msk [vmem:[#allocation2 + $0x90] sm:$0xff] %vm538_vm7, %v1488_v60  ;;  %1561 = vrot.lane.b32.xlu0 %v14081_v4, %s19846_s28  ;;  %v1719_v60 = vld [vmem:[%s19838_s7 + $0x50] sm:$0xff] }
 0x27d   :  { %1463 = vst.msk [vmem:[#allocation2 + $0xa0] sm:$0xff] %vm473_vm6, %v1426_v23 }
 0x27e   :  { %v1490_v61 = vpop.permute.xlu0 %1489  ;;  %v1552_v62 = vpop.permute.xlu1 %1551 }
 0x27f   :  { %1527 = vst.msk [vmem:[#allocation2 + $0xa0] sm:$0xff] %vm538_vm7, %v1490_v61  ;;  %v1692_v61 = vld [vmem:[#allocation2 + $0x78] sm:$0xff] }
 0x280   :  { %1590 = vst.msk [vmem:[#allocation2 + $0x90] sm:$0xff] %vm603_vm8, %v1552_v62  ;;  %1625 = vrot.lane.b32.xlu0 %v14037_v13, %s19839_s30  ;;  %v1724_v62 = vld [vmem:[%s19838_s7 + $0x78] sm:$0xff] }
 0x281   :  { %1654 = vst.msk [vmem:[#allocation2 + $0x90] sm:$0xff] %vm668_vm9, %v1616_v52  ;;  %v1775_v52 = vpack.c.bf16 %v1747_v44, %v1745_v29  ;;  %v1729_v44 = vld [vmem:[%s19838_s7 + $0xa0] sm:$0xff] }
 0x282   :  { %v1554_v63 = vpop.permute.xlu0 %1553  ;;  %v1428_v27 = vpop.permute.xlu1 %1427 }
 0x283   :  { %1591 = vst.msk [vmem:[#allocation2 + $0xa0] sm:$0xff] %vm603_vm8, %v1554_v63  ;;  %v1685_v63 = vld [vmem:[#allocation2 + $0x40] sm:$0xff] }
 0x286   :  { %v1284_v0 = vpop.permute.xlu1 %1283 }
 0x287   :  { %1320 = vst.msk [vmem:[#allocation2 + $0xb0] sm:$0xff] %vm327_vm4, %v1284_v0 }
 0x28a   :  { %v1364_v2 = vpop.permute.xlu1 %1363 }
 0x28b   :  { %1400 = vst.msk [vmem:[#allocation2 + $0xb0] sm:$0xff] %vm408_vm5, %v1364_v2  ;;  %v1751_v2 = vmul.f32 %v1719_v60, %v1687_v54 }
 0x28c   :  { %1464 = vst.msk [vmem:[#allocation2 + $0xb0] sm:$0xff] %vm473_vm6, %v1428_v27  ;;  %v1717_v27 = vld [vmem:[%s19838_s7 + $0x40] sm:$0xff] }
 0x291   :  { %v1492_v3 = vpop.permute.xlu1 %1491 }
 0x292   :  { %1528 = vst.msk [vmem:[#allocation2 + $0xb0] sm:$0xff] %vm538_vm7, %v1492_v3  ;;  %v1690_v3 = vld [vmem:[#allocation2 + $0x68] sm:$0xff] }
 0x295   :  { %v1556_v7 = vpop.permute.xlu1 %1555 }
 0x296   :  { %1592 = vst.msk [vmem:[#allocation2 + $0xb0] sm:$0xff] %vm603_vm8, %v1556_v7  ;;  %v1722_v7 = vld [vmem:[%s19838_s7 + $0x68] sm:$0xff] }
 0x299   :  { %v1620_v35 = vpop.permute.xlu1 %1619 }
 0x29a   :  { %1656 = vst.msk [vmem:[#allocation2 + $0xb0] sm:$0xff] %vm668_vm9, %v1620_v35 }
 0x29d   :  { %v1176_v37 = vpop.permute.xlu1 %1175 }
 0x29e   :  { %1210 = vst.msk [vmem:[#allocation2 + $0xd0] sm:$0xff] %vm213_vm3, %v1176_v37  ;;  %v1756_v37 = vmul.f32 %v1724_v62, %v1692_v61 }
 0x2a1   :  { %v1288_v10 = vpop.permute.xlu1 %1287 }
 0x2a2   :  { %1322 = vst.msk [vmem:[#allocation2 + $0xd0] sm:$0xff] %vm327_vm4, %v1288_v10  ;;  %v1749_v10 = vmul.f32 %v1717_v27, %v1685_v63  ;;  %v1733_v27 = vld [vmem:[%s19838_s7 + $0xc0] sm:$0xff] }
 0x2a5   :  { %v1368_v13 = vpop.permute.xlu1 %1367 }
 0x2a6   :  { %1402 = vst.msk [vmem:[#allocation2 + $0xd0] sm:$0xff] %vm408_vm5, %v1368_v13  ;;  %v1754_v13 = vmul.f32 %v1722_v7, %v1690_v3  ;;  %v1735_v7 = vld [vmem:[%s19838_s7 + $0xd0] sm:$0xff] }
 0x2a9   :  { %v1432_v14 = vpop.permute.xlu1 %1431 }
 0x2aa   :  { %1466 = vst.msk [vmem:[#allocation2 + $0xd0] sm:$0xff] %vm473_vm6, %v1432_v14  ;;  %v1777_v14 = vpack.c.bf16 %v1751_v2, %v1749_v10  ;;  %v1738_v2 = vld [vmem:[%s19838_s7 + $0xe8] sm:$0xff]  ;;  %v1740_v10 = vld [vmem:[%s19838_s7 + $0xf8] sm:$0xff] }
 0x2ad   :  { %v1496_v16 = vpop.permute.xlu1 %1495 }
 0x2ae   :  { %1530 = vst.msk [vmem:[#allocation2 + $0xd0] sm:$0xff] %vm538_vm7, %v1496_v16  ;;  %v1150_v5 = vpop.permute.xlu0 %1149 }
 0x2af   :  { %1197 = vst.msk [vmem:[#allocation2] sm:$0xff] %vm213_vm3, %v1150_v5  ;;  %v1780_v5 = vpack.c.bf16 %v1756_v37, %v1754_v13  ;;  %v1708_v37 = vld [vmem:[#allocation2 + $0xf8] sm:$0xff] }
 0x2b1   :  { %v1560_v21 = vpop.permute.xlu1 %1559 }
 0x2b2   :  { %1594 = vst.msk [vmem:[#allocation2 + $0xd0] sm:$0xff] %vm603_vm8, %v1560_v21  ;;  %v1262_v34 = vpop.permute.xlu0 %1261  ;;  %v1691_v21 = vld [vmem:[#allocation2 + $0x70] sm:$0xff] }
 0x2b3   :  { %1309 = vst.msk [vmem:[#allocation2] sm:$0xff] %vm327_vm4, %v1262_v34  ;;  %v1723_v34 = vld [vmem:[%s19838_s7 + $0x70] sm:$0xff] }
 0x2b5   :  { %v1624_v31 = vpop.permute.xlu1 %1623 }
 0x2b6   :  { %1658 = vst.msk [vmem:[#allocation2 + $0xd0] sm:$0xff] %vm668_vm9, %v1624_v31  ;;  %v1342_v20 = vpop.permute.xlu0 %1341  ;;  %v1696_v31 = vld [vmem:[#allocation2 + $0x98] sm:$0xff] }
 0x2b7   :  { %1389 = vst.msk [vmem:[#allocation2] sm:$0xff] %vm408_vm5, %v1342_v20  ;;  %v1728_v20 = vld [vmem:[%s19838_s7 + $0x98] sm:$0xff] }
 0x2b8   :  { %1453 = vst.msk [vmem:[#allocation2] sm:$0xff] %vm473_vm6, %v13840_v8  ;;  %v1684_v8 = vld [vmem:[#allocation2 + $0x38] sm:$0xff] }
 0x2b9   :  { %1517 = vst.msk [vmem:[#allocation2] sm:$0xff] %vm538_vm7, %v13871_v11  ;;  %v1180_v58 = vpop.permute.xlu1 %1179  ;;  %v1716_v11 = vld [vmem:[%s19838_s7 + $0x38] sm:$0xff] }
 0x2ba   :  { %1581 = vst.msk [vmem:[#allocation2] sm:$0xff] %vm603_vm8, %v13882_v51  ;;  %v1618_v33 = vpop.permute.xlu0 %1617  ;;  %v1679_v51 = vld [vmem:[#allocation2 + $0x10] sm:$0xff]  ;;  %v1748_v15 = vmul.f32 %v1716_v11, %v1684_v8  ;;  %v1726_v8 = vld [vmem:[%s19838_s7 + $0x88] sm:$0xff] }
 0x2bb   :  { %1212 = vst.msk [vmem:[#allocation2 + $0xf0] sm:$0xff] %vm213_vm3, %v1180_v58  ;;  %v1689_v58 = vld [vmem:[#allocation2 + $0x60] sm:$0xff] }
 0x2bc   :  { %1645 = vst.msk [vmem:[#allocation2] sm:$0xff] %vm668_vm9, %v13850_v17  ;;  %1655 = vst.msk [vmem:[#allocation2 + $0xa0] sm:$0xff] %vm668_vm9, %v1618_v33  ;;  %v1711_v17 = vld [vmem:[%s19838_s7 + $0x10] sm:$0xff]  ;;  %v1776_v30 = vpack.c.bf16 %v1748_v15, %v1746_v50  ;;  %v1721_v33 = vld [vmem:[%s19838_s7 + $0x60] sm:$0xff] }
 0x2bd   :  { %v1292_v22 = vpop.permute.xlu1 %1291  ;;  %v1743_v32 = vmul.f32 %v1711_v17, %v1679_v51  ;;  %v1760_v51 = vmul.f32 %v1728_v20, %v1696_v31  ;;  %v1700_v15 = vld [vmem:[#allocation2 + $0xb8] sm:$0xff]  ;;  %v1725_v50 = vld [vmem:[%s19838_s7 + $0x80] sm:$0xff]  ;;  %v1703_v3 = vld [vmem:[#allocation2 + $0xd0] sm:$0xff] }
 0x2be   :  { %1324 = vst.msk [vmem:[#allocation2 + $0xf0] sm:$0xff] %vm327_vm4, %v1292_v22  ;;  %v1174_v1 = vpop.permute.xlu0 %1173  ;;  %v1755_v22 = vmul.f32 %v1723_v34, %v1691_v21  ;;  %v1737_v20 = vld [vmem:[%s19838_s7 + $0xe0] sm:$0xff] }
 0x2bf   :  { %1209 = vst.msk [vmem:[#allocation2 + $0xc0] sm:$0xff] %vm213_vm3, %v1174_v1  ;;  %v1694_v1 = vld [vmem:[#allocation2 + $0x88] sm:$0xff] }
 0x2c0   :  { %v1758_v17 = vmul.f32 %v1726_v8, %v1694_v1 }
 0x2c1   :  { %v1372_v4 = vpop.permute.xlu1 %1371 }
 0x2c2   :  { %1404 = vst.msk [vmem:[#allocation2 + $0xf0] sm:$0xff] %vm408_vm5, %v1372_v4  ;;  %v1286_v19 = vpop.permute.xlu0 %1285  ;;  %v1782_v18 = vpack.c.bf16 %v1760_v51, %v1758_v17 }
 0x2c3   :  { %v1677_v41 = vld [vmem:[#allocation2] sm:$0xff]  ;;  %1321 = vst.msk [vmem:[#allocation2 + $0xc0] sm:$0xff] %vm327_vm4, %v1286_v19  ;;  %v1695_v19 = vld [vmem:[#allocation2 + $0x90] sm:$0xff] }
 0x2c4   :  { %v1741_v36 = vmul.f32 %v1709_v6, %v1677_v41  ;;  %v1753_v6 = vmul.f32 %v1721_v33, %v1689_v58  ;;  %v1727_v41 = vld [vmem:[%s19838_s7 + $0x90] sm:$0xff] }
 0x2c5   :  { %v1436_v40 = vpop.permute.xlu1 %1435  ;;  %v1739_v58 = vld [vmem:[%s19838_s7 + $0xf0] sm:$0xff] }
 0x2c6   :  { %v1773_v48 = vpack.c.bf16 %v1743_v32, %v1741_v36  ;;  %1468 = vst.msk [vmem:[#allocation2 + $0xf0] sm:$0xff] %vm473_vm6, %v1436_v40  ;;  %v1366_v56 = vpop.permute.xlu0 %1365  ;;  %v1779_v4 = vpack.c.bf16 %v1755_v22, %v1753_v6  ;;  %v1732_v36 = vld [vmem:[%s19838_s7 + $0xb8] sm:$0xff]  ;;  %v1693_v32 = vld [vmem:[#allocation2 + $0x80] sm:$0xff]  ;;  %v1759_v40 = vmul.f32 %v1727_v41, %v1695_v19 }
 0x2c7   :  { %1401 = vst.msk [vmem:[#allocation2 + $0xc0] sm:$0xff] %vm408_vm5, %v1366_v56  ;;  %v1730_v56 = vld [vmem:[%s19838_s7 + $0xa8] sm:$0xff]  ;;  %v1764_v24 = vmul.f32 %v1732_v36, %v1700_v15  ;;  %v1757_v42 = vmul.f32 %v1725_v50, %v1693_v32  ;;  %v14350_v6 = vld [vmem:[%s19723_s8 + $0x1] ss:$0 sm:$0xff] }
 0x2c8   :  { %1918 = vmatmul.mubr.bf16.vlgmr.msra.gmra.mxu1 %v1773_v48  ;;  %v1698_v48 = vld [vmem:[#allocation2 + $0xa8] sm:$0xff] }
 0x2c9   :  { %11324 = vmatprep.mubr.msk.bf16.mxu1 %vm132_vm0, %v1776_v30  ;;  %v1500_v55 = vpop.permute.xlu1 %1499  ;;  %v1762_v38 = vmul.f32 %v1730_v56, %v1698_v48  ;;  %v1781_v43 = vpack.c.bf16 %v1759_v40, %v1757_v42 }
 0x2ca   :  { %1532 = vst.msk [vmem:[#allocation2 + $0xf0] sm:$0xff] %vm538_vm7, %v1500_v55  ;;  %v1430_v28 = vpop.permute.xlu0 %1429  ;;  %v1697_v55 = vld [vmem:[#allocation2 + $0xa0] sm:$0xff] }
 0x2cb   :  { %1465 = vst.msk [vmem:[#allocation2 + $0xc0] sm:$0xff] %vm473_vm6, %v1430_v28  ;;  %v1784_v26 = vpack.c.bf16 %v1764_v24, %v1762_v38  ;;  %v1699_v28 = vld [vmem:[#allocation2 + $0xb0] sm:$0xff]  ;;  %v1761_v29 = vmul.f32 %v1729_v44, %v1697_v55 }
 0x2cd   :  { %v1564_v23 = vpop.permute.xlu1 %1563 }
 0x2ce   :  { %1596 = vst.msk [vmem:[#allocation2 + $0xf0] sm:$0xff] %vm603_vm8, %v1564_v23  ;;  %v1494_v53 = vpop.permute.xlu0 %1493  ;;  %v1734_v23 = vld [vmem:[%s19838_s7 + $0xc8] sm:$0xff] }
 0x2cf   :  { %1529 = vst.msk [vmem:[#allocation2 + $0xc0] sm:$0xff] %vm538_vm7, %v1494_v53  ;;  %v1768_v53 = vmul.f32 %v1736_v45, %v1704_v12  ;;  %v1766_v54 = vmul.f32 %v1734_v23, %v1702_v47 }
 0x2d0   :  { %1926 = vmatmul.mubr.bf16.gmra.mxu1 %v1775_v52 }
 0x2d1   :  { %11325 = vmatprep.mubr.msk.bf16.mxu1 %vm132_vm0, %v1778_v57  ;;  %v1628_v0 = vpop.permute.xlu1 %1627  ;;  %v1763_v57 = vmul.f32 %v1731_v46, %v1699_v28  ;;  %v1786_v62 = vpack.c.bf16 %v1768_v53, %v1766_v54 }
 0x2d2   :  { %1660 = vst.msk [vmem:[#allocation2 + $0xf0] sm:$0xff] %vm668_vm9, %v1628_v0  ;;  %v1558_v35 = vpop.permute.xlu0 %1557  ;;  %v1706_v0 = vld [vmem:[#allocation2 + $0xe8] sm:$0xff] }
 0x2d3   :  { %1593 = vst.msk [vmem:[#allocation2 + $0xc0] sm:$0xff] %vm603_vm8, %v1558_v35  ;;  %v1783_v60 = vpack.c.bf16 %v1763_v57, %v1761_v29 }
 0x2d6   :  { %v1622_v16 = vpop.permute.xlu0 %1621 }
 0x2d7   :  { %1657 = vst.msk [vmem:[#allocation2 + $0xc0] sm:$0xff] %vm668_vm9, %v1622_v16  ;;  %v1767_v16 = vmul.f32 %v1735_v7, %v1703_v3 }
 0x2d8   :  { %1934 = vmatmul.mubr.bf16.gmra.mxu1 %v1777_v14  ;;  %v1770_v14 = vmul.f32 %v1738_v2, %v1706_v0 }
 0x2d9   :  { %11326 = vmatprep.mubr.msk.bf16.mxu1 %vm132_vm0, %v1780_v5  ;;  %v1772_v5 = vmul.f32 %v1740_v10, %v1708_v37  ;;  %v1707_v31 = vld [vmem:[#allocation2 + $0xf0] sm:$0xff] }
 0x2da   :  { %v1178_v11 = vpop.permute.xlu0 %1177  ;;  %v1771_v1 = vmul.f32 %v1739_v58, %v1707_v31 }
 0x2db   :  { %1211 = vst.msk [vmem:[#allocation2 + $0xe0] sm:$0xff] %vm213_vm3, %v1178_v11  ;;  %v1788_v34 = vpack.c.bf16 %v1772_v5, %v1770_v14  ;;  %v14345_v11 = vld [vmem:[%s19841_s3 + $0x1] ss:$0 sm:$0xff] }
 0x2de   :  { %v1290_v25 = vpop.permute.xlu0 %1289  ;;  %v1701_v63 = vld [vmem:[#allocation2 + $0xc0] sm:$0xff] }
 0x2df   :  { %1323 = vst.msk [vmem:[#allocation2 + $0xe0] sm:$0xff] %vm327_vm4, %v1290_v25  ;;  %v1765_v35 = vmul.f32 %v1733_v27, %v1701_v63 }
 0x2e0   :  { %1942 = vmatmul.mubr.bf16.gmra.mxu1 %v1779_v4 }
 0x2e1   :  { %11327 = vmatprep.mubr.msk.bf16.mxu1 %vm132_vm0, %v1782_v18  ;;  %v1785_v21 = vpack.c.bf16 %v1767_v16, %v1765_v35 }
 0x2e2   :  { %v1370_v30 = vpop.permute.xlu0 %1369 }
 0x2e3   :  { %1403 = vst.msk [vmem:[#allocation2 + $0xe0] sm:$0xff] %vm408_vm5, %v1370_v30 }
 0x2e6   :  { %v1434_v39 = vpop.permute.xlu0 %1433 }
 0x2e7   :  { %1467 = vst.msk [vmem:[#allocation2 + $0xe0] sm:$0xff] %vm473_vm6, %v1434_v39 }
 0x2e8   :  { %1950 = vmatmul.mubr.bf16.gmra.mxu1 %v1781_v43 }
 0x2e9   :  { %11328 = vmatprep.mubr.msk.bf16.mxu1 %vm132_vm0, %v1784_v26 }
 0x2ea   :  { %v1498_v52 = vpop.permute.xlu0 %1497 }
 0x2eb   :  { %1531 = vst.msk [vmem:[#allocation2 + $0xe0] sm:$0xff] %vm538_vm7, %v1498_v52 }
 0x2ee   :  { %v1562_v61 = vpop.permute.xlu0 %1561 }
 0x2ef   :  { %1595 = vst.msk [vmem:[#allocation2 + $0xe0] sm:$0xff] %vm603_vm8, %v1562_v61 }
 0x2f0   :  { %1958 = vmatmul.mubr.bf16.gmra.mxu1 %v1783_v60 }
 0x2f1   :  { %11329 = vmatprep.mubr.msk.bf16.mxu1 %vm132_vm0, %v1786_v62 }
 0x2f2   :  { %v1626_v13 = vpop.permute.xlu0 %1625 }
 0x2f3   :  { %1659 = vst.msk [vmem:[#allocation2 + $0xe0] sm:$0xff] %vm668_vm9, %v1626_v13 }
 0x2f8   :  { %1966 = vmatmul.mubr.bf16.gmra.mxu1 %v1785_v21 }
 0x2f9   :  { %11330 = vmatprep.mubr.msk.bf16.mxu1 %vm132_vm0, %v1788_v34 }
 0x2fa   :  { %v1705_v33 = vld [vmem:[#allocation2 + $0xe0] sm:$0xff] }
 0x2fb   :  { %v1769_v22 = vmul.f32 %v1737_v20, %v1705_v33 }
 0x2fd   :  { %v1787_v8 = vpack.c.bf16 %v1771_v1, %v1769_v22 }
 0x300   :  { %1974 = vmatmul.mubr.bf16.gmra.mxu1 %v1787_v8 }
 0x388   :  { %v1919_v51 = vpop.f32.mrf.mxu1 }
 0x389   :  { %v1990_v17 = vmul.f32 %v14345_v11, %v1919_v51 }
 0x38a   :  { %v1921_v4 = vpop.f32.mrf.mxu1 }
 0x38b   :  { %v2014_v25 = vadd.f32 %v14350_v6, %v1990_v17 }
 0x38c   :  { %v1922_v18 = vpop.f32.mrf.mxu1 }
 0x38d   :  { %v2030_v19 = vmax.f32 %v2014_v25, 0.0  ;;  %v1991_v41 = vmul.f32 %v14345_v11, %v1922_v18  ;;  %v2687_v25 = vld [vmem:[%s19838_s7 + $0x8] sm:$0xff]  ;;  %v2689_v18 = vld [vmem:[%s19838_s7 + $0x18] sm:$0xff] }
 0x38e   :  { %v1924_v15 = vpop.f32.mrf.mxu1 }
 0x38f   :  { %v14356_v36 = vmul.f32 %v2030_v19, %v13698_v49  ;;  %v2015_v32 = vadd.f32 %v14350_v6, %v1991_v41 }
 0x390   :  { %v1927_v50 = vpop.f32.mrf.mxu1 }
 0x391   :  { %v2031_v40 = vmax.f32 %v2015_v32, 0.0  ;;  %v1992_v48 = vmul.f32 %v14345_v11, %v1927_v50  ;;  %2382 = vrot.lane.b32.xlu0 %v14356_v36, %s19848_s21  ;;  %2128 = vrot.lane.b32.xlu1 %v14356_v36, %s19842_s27  ;;  %v2190_v38 = vrot.slane %v14356_v36, 1  ;;  %v2062_v43 = vrot.slane %v14356_v36, 7 }
 0x392   :  { %v1929_v56 = vpop.f32.mrf.mxu1 }
 0x393   :  { %v2047_v30 = vmul.f32 %v2031_v40, %v13698_v49  ;;  %v2016_v24 = vadd.f32 %v14350_v6, %v1992_v48 }
 0x394   :  { %v1930_v42 = vpop.f32.mrf.mxu1 }
 0x395   :  { %v2032_v39 = vmax.f32 %v2016_v24, 0.0  ;;  %v1993_v26 = vmul.f32 %v14345_v11, %v1930_v42  ;;  %2574 = vrot.lane.b32.xlu0 %v2047_v30, %s19839_s30  ;;  %2384 = vrot.lane.b32.xlu1 %v2047_v30, %s19848_s21  ;;  %v2191_v55 = vrot.slane %v2047_v30, 1  ;;  %v2063_v44 = vrot.slane %v2047_v30, 7 }
 0x396   :  { %v1932_v12 = vpop.f32.mrf.mxu1 }
 0x397   :  { %v2048_v45 = vmul.f32 %v2032_v39, %v13698_v49  ;;  %v2017_v28 = vadd.f32 %v14350_v6, %v1993_v26  ;;  %v2220_v46 = vsel %vm246_vm1, %v2190_v38, %v2191_v55  ;;  %v2092_v29 = vsel %vm115_vm2, %v2062_v43, %v2063_v44 }
 0x398   :  { %v1935_v47 = vpop.f32.mrf.mxu1  ;;  %2653 = vst.msk [vmem:[#allocation2 + $0xf8] sm:$0xff] %vm132_vm0, %v2220_v46  ;;  %2096 = vst.msk [vmem:[#allocation2 + $0x20] sm:$0xff] %vm132_vm0, %v2092_v29 }
 0x399   :  { %v2033_v23 = vmax.f32 %v2017_v28, 0.0  ;;  %v1994_v52 = vmul.f32 %v14345_v11, %v1935_v47  ;;  %2130 = vrot.lane.b32.xlu0 %v2047_v30, %s19842_s27  ;;  %2240 = vrot.lane.b32.xlu1 %v2220_v46, %s19843_s2  ;;  %v2192_v53 = vrot.slane %v2048_v45, 1  ;;  %v2064_v57 = vrot.slane %v2048_v45, 7 }
 0x39a   :  { %v1937_v54 = vpop.f32.mrf.mxu1 }
 0x39b   :  { %v14387_v60 = vmul.f32 %v2033_v23, %v13698_v49  ;;  %v2018_v61 = vadd.f32 %v14350_v6, %v1994_v52  ;;  %v2219_v62 = vsel %vm246_vm1, %v2191_v55, %v2192_v53  ;;  %v14394_v63 = vsel %vm115_vm2, %v2063_v44, %v2064_v57 }
 0x39c   :  { %v1938_v27 = vpop.f32.mrf.mxu1  ;;  %2638 = vst.msk [vmem:[#allocation2 + $0x8] sm:$0xff] %vm132_vm0, %v2219_v62  ;;  %2097 = vst.msk [vmem:[#allocation2 + $0x30] sm:$0xff] %vm132_vm0, %v14394_v63 }
 0x39d   :  { %v2034_v0 = vmax.f32 %v2018_v61, 0.0  ;;  %v1995_v2 = vmul.f32 %v14345_v11, %v1938_v27  ;;  %2446 = vrot.lane.b32.xlu0 %v2220_v46, %s19844_s29  ;;  %2320 = vrot.lane.b32.xlu1 %v2092_v29, %s19845_s1  ;;  %v2193_v3 = vrot.slane %v14387_v60, 1  ;;  %v2065_v7 = vrot.slane %v14387_v60, 7 }
 0x39e   :  { %v1940_v35 = vpop.f32.mrf.mxu1 }
 0x39f   :  { %v14405_v37 = vmul.f32 %v2034_v0, %v13698_v49  ;;  %v2019_v10 = vadd.f32 %v14350_v6, %v1995_v2  ;;  %v14410_v13 = vsel %vm246_vm1, %v2192_v53, %v2193_v3  ;;  %v14414_v14 = vsel %vm115_vm2, %v2064_v57, %v2065_v7 }
 0x3a0   :  { %v1943_v16 = vpop.f32.mrf.mxu1  ;;  %2639 = vst.msk [vmem:[#allocation2 + $0x18] sm:$0xff] %vm132_vm0, %v14410_v13  ;;  %2098 = vst.msk [vmem:[#allocation2 + $0x40] sm:$0xff] %vm132_vm0, %v14414_v14 }
 0x3a1   :  { %v2035_v5 = vmax.f32 %v2019_v10, 0.0  ;;  %v1996_v21 = vmul.f32 %v14345_v11, %v1943_v16  ;;  %2510 = vrot.lane.b32.xlu0 %v2092_v29, %s19846_s28  ;;  %2576 = vrot.lane.b32.xlu1 %v2048_v45, %s19839_s30  ;;  %v2194_v34 = vrot.slane %v14405_v37, 1  ;;  %v2066_v31 = vrot.slane %v14405_v37, 7 }
 0x3a2   :  { %v1945_v20 = vpop.f32.mrf.mxu1 }
 0x3a3   :  { %v14426_v58 = vmul.f32 %v2035_v5, %v13698_v49  ;;  %v2020_v33 = vadd.f32 %v14350_v6, %v1996_v21  ;;  %v14431_v22 = vsel %vm246_vm1, %v2193_v3, %v2194_v34  ;;  %v14435_v1 = vsel %vm115_vm2, %v2065_v7, %v2066_v31  ;;  %v2655_v4 = vld [vmem:[#allocation2 + $0x8] sm:$0xff] }
 0x3a4   :  { %v1946_v8 = vpop.f32.mrf.mxu1  ;;  %2640 = vst.msk [vmem:[#allocation2 + $0x28] sm:$0xff] %vm132_vm0, %v14431_v22  ;;  %2099 = vst.msk [vmem:[#allocation2 + $0x50] sm:$0xff] %vm132_vm0, %v14435_v1  ;;  %v2719_v24 = vmul.f32 %v2687_v25, %v2655_v4 }
 0x3a5   :  { %v2036_v51 = vmax.f32 %v2020_v33, 0.0  ;;  %v1997_v17 = vmul.f32 %v14345_v11, %v1946_v8  ;;  %2386 = vrot.lane.b32.xlu0 %v2048_v45, %s19848_s21  ;;  %2132 = vrot.lane.b32.xlu1 %v2048_v45, %s19842_s27  ;;  %v2195_v19 = vrot.slane %v14426_v58, 1  ;;  %v2067_v41 = vrot.slane %v14426_v58, 7 }
 0x3a6   :  { %v1948_v15 = vpop.f32.mrf.mxu1 }
 0x3a7   :  { %v14453_v32 = vmul.f32 %v2036_v51, %v13698_v49  ;;  %v2021_v50 = vadd.f32 %v14350_v6, %v1997_v17  ;;  %v2657_v40 = vld [vmem:[#allocation2 + $0x18] sm:$0xff]  ;;  %v14458_v48 = vsel %vm246_vm1, %v2194_v34, %v2195_v19  ;;  %v14462_v56 = vsel %vm115_vm2, %v2066_v31, %v2067_v41 }
 0x3a8   :  { %v1951_v30 = vpop.f32.mrf.mxu1  ;;  %v2721_v42 = vmul.f32 %v2689_v18, %v2657_v40  ;;  %2641 = vst.msk [vmem:[#allocation2 + $0x38] sm:$0xff] %vm132_vm0, %v14458_v48  ;;  %2100 = vst.msk [vmem:[#allocation2 + $0x60] sm:$0xff] %vm132_vm0, %v14462_v56 }
 0x3a9   :  { %v2037_v39 = vmax.f32 %v2021_v50, 0.0  ;;  %v1998_v26 = vmul.f32 %v14345_v11, %v1951_v30  ;;  %2242 = vrot.lane.b32.xlu0 %v2219_v62, %s19843_s2  ;;  %2448 = vrot.lane.b32.xlu1 %v2219_v62, %s19844_s29  ;;  %v2196_v55 = vrot.slane %v14453_v32, 1  ;;  %v2068_v44 = vrot.slane %v14453_v32, 7 }
 0x3aa   :  { %v1953_v12 = vpop.f32.mrf.mxu1  ;;  %v2751_v45 = vpack.c.bf16 %v2721_v42, %v2719_v24 }
 0x3ab   :  { %v14474_v28 = vmul.f32 %v2037_v39, %v13698_v49  ;;  %v2022_v46 = vadd.f32 %v14350_v6, %v1998_v26  ;;  %v14479_v29 = vsel %vm246_vm1, %v2195_v19, %v2196_v55  ;;  %v14483_v47 = vsel %vm115_vm2, %v2067_v41, %v2068_v44 }
 0x3ac   :  { %v1954_v23 = vpop.f32.mrf.mxu1  ;;  %11344 = vmatprep.mubr.msk.bf16.mxu0 %vm132_vm0, %v2751_v45  ;;  %2642 = vst.msk [vmem:[#allocation2 + $0x48] sm:$0xff] %vm132_vm0, %v14479_v29  ;;  %2101 = vst.msk [vmem:[#allocation2 + $0x70] sm:$0xff] %vm132_vm0, %v14483_v47 }
 0x3ad   :  { %v2038_v52 = vmax.f32 %v2022_v46, 0.0  ;;  %v1999_v53 = vmul.f32 %v14345_v11, %v1954_v23  ;;  %2322 = vrot.lane.b32.xlu0 %v14394_v63, %s19845_s1  ;;  %2512 = vrot.lane.b32.xlu1 %v14394_v63, %s19846_s28  ;;  %v2197_v57 = vrot.slane %v14474_v28, 1  ;;  %v2069_v54 = vrot.slane %v14474_v28, 7 }
 0x3ae   :  { %v1956_v61 = vpop.f32.mrf.mxu1 }
 0x3af   :  { %v14498_v62 = vmul.f32 %v2038_v52, %v13698_v49  ;;  %v2023_v27 = vadd.f32 %v14350_v6, %v1999_v53  ;;  %v14503_v0 = vsel %vm246_vm1, %v2196_v55, %v2197_v57  ;;  %v14507_v2 = vsel %vm115_vm2, %v2068_v44, %v2069_v54 }
 0x3b0   :  { %v1959_v3 = vpop.f32.mrf.mxu1  ;;  %2643 = vst.msk [vmem:[#allocation2 + $0x58] sm:$0xff] %vm132_vm0, %v14503_v0  ;;  %2102 = vst.msk [vmem:[#allocation2 + $0x80] sm:$0xff] %vm132_vm0, %v14507_v2 }
 0x3b1   :  { %v2039_v63 = vmax.f32 %v2023_v27, 0.0  ;;  %v2000_v7 = vmul.f32 %v14345_v11, %v1959_v3  ;;  %2578 = vrot.lane.b32.xlu0 %v14387_v60, %s19839_s30  ;;  %2388 = vrot.lane.b32.xlu1 %v14387_v60, %s19848_s21  ;;  %v2198_v35 = vrot.slane %v14498_v62, 1  ;;  %v2070_v10 = vrot.slane %v14498_v62, 7 }
 0x3b2   :  { %v1961_v16 = vpop.f32.mrf.mxu1 }
 0x3b3   :  { %v14521_v5 = vmul.f32 %v2039_v63, %v13698_v49  ;;  %v2024_v21 = vadd.f32 %v14350_v6, %v2000_v7  ;;  %v14526_v34 = vsel %vm246_vm1, %v2197_v57, %v2198_v35  ;;  %v14530_v31 = vsel %vm115_vm2, %v2069_v54, %v2070_v10 }
 0x3b4   :  { %v1962_v20 = vpop.f32.mrf.mxu1  ;;  %2644 = vst.msk [vmem:[#allocation2 + $0x68] sm:$0xff] %vm132_vm0, %v14526_v34  ;;  %2103 = vst.msk [vmem:[#allocation2 + $0x90] sm:$0xff] %vm132_vm0, %v14530_v31 }
 0x3b5   :  { %v2040_v33 = vmax.f32 %v2024_v21, 0.0  ;;  %v2001_v8 = vmul.f32 %v14345_v11, %v1962_v20  ;;  %2134 = vrot.lane.b32.xlu0 %v14387_v60, %s19842_s27  ;;  %2244 = vrot.lane.b32.xlu1 %v14410_v13, %s19843_s2  ;;  %v2199_v51 = vrot.slane %v14521_v5, 1  ;;  %v2071_v17 = vrot.slane %v14521_v5, 7 }
 0x3b6   :  { %v1964_v4 = vpop.f32.mrf.mxu1 }
 0x3b7   :  { %v14544_v25 = vmul.f32 %v2040_v33, %v13698_v49  ;;  %v2025_v18 = vadd.f32 %v14350_v6, %v2001_v8  ;;  %v14549_v19 = vsel %vm246_vm1, %v2198_v35, %v2199_v51  ;;  %v14553_v60 = vsel %vm115_vm2, %v2070_v10, %v2071_v17 }
 0x3b8   :  { %v1967_v41 = vpop.f32.mrf.mxu1  ;;  %2645 = vst.msk [vmem:[#allocation2 + $0x78] sm:$0xff] %vm132_vm0, %v14549_v19  ;;  %2104 = vst.msk [vmem:[#allocation2 + $0xa0] sm:$0xff] %vm132_vm0, %v14553_v60 }
 0x3b9   :  { %v2041_v15 = vmax.f32 %v2025_v18, 0.0  ;;  %v2002_v50 = vmul.f32 %v14345_v11, %v1967_v41  ;;  %2450 = vrot.lane.b32.xlu0 %v14410_v13, %s19844_s29  ;;  %2324 = vrot.lane.b32.xlu1 %v14414_v14, %s19845_s1  ;;  %v2200_v40 = vrot.slane %v14544_v25, 1  ;;  %v2072_v30 = vrot.slane %v14544_v25, 7 }
 0x3ba   :  { %v1969_v24 = vpop.f32.mrf.mxu1 }
 0x3bb   :  { %v14567_v42 = vmul.f32 %v2041_v15, %v13698_v49  ;;  %v2026_v39 = vadd.f32 %v14350_v6, %v2002_v50  ;;  %v14572_v26 = vsel %vm246_vm1, %v2199_v51, %v2200_v40  ;;  %v14576_v13 = vsel %vm115_vm2, %v2071_v17, %v2072_v30 }
 0x3bc   :  { %v1970_v55 = vpop.f32.mrf.mxu1  ;;  %2646 = vst.msk [vmem:[#allocation2 + $0x88] sm:$0xff] %vm132_vm0, %v14572_v26  ;;  %2105 = vst.msk [vmem:[#allocation2 + $0xb0] sm:$0xff] %vm132_vm0, %v14576_v13 }
 0x3bd   :  { %v2042_v44 = vmax.f32 %v2026_v39, 0.0  ;;  %v2003_v12 = vmul.f32 %v14345_v11, %v1970_v55  ;;  %2514 = vrot.lane.b32.xlu0 %v14414_v14, %s19846_s28  ;;  %2580 = vrot.lane.b32.xlu1 %v14405_v37, %s19839_s30  ;;  %v2201_v45 = vrot.slane %v14567_v42, 1  ;;  %v2073_v46 = vrot.slane %v14567_v42, 7 }
 0x3be   :  { %v1972_v23 = vpop.f32.mrf.mxu1 }
 0x3bf   :  { %v14590_v52 = vmul.f32 %v2042_v44, %v13698_v49  ;;  %v2027_v53 = vadd.f32 %v14350_v6, %v2003_v12  ;;  %v14595_v57 = vsel %vm246_vm1, %v2200_v40, %v2201_v45  ;;  %v14599_v14 = vsel %vm115_vm2, %v2072_v30, %v2073_v46 }
 0x3c0   :  { %v1975_v54 = vpop.f32.mrf.mxu1  ;;  %2647 = vst.msk [vmem:[#allocation2 + $0x98] sm:$0xff] %vm132_vm0, %v14595_v57  ;;  %2106 = vst.msk [vmem:[#allocation2 + $0xc0] sm:$0xff] %vm132_vm0, %v14599_v14 }
 0x3c1   :  { %v2043_v61 = vmax.f32 %v2027_v53, 0.0  ;;  %v2004_v27 = vmul.f32 %v14345_v11, %v1975_v54  ;;  %2390 = vrot.lane.b32.xlu0 %v14405_v37, %s19848_s21  ;;  %2136 = vrot.lane.b32.xlu1 %v14405_v37, %s19842_s27  ;;  %v2202_v3 = vrot.slane %v14590_v52, 1  ;;  %v2074_v63 = vrot.slane %v14590_v52, 7  ;;  %v12295_v53 = vld [vmem:[%s19849_s25 + $0x10] sm:$0xff]  }
 0x3c2   :  { %v1977_v7 = vpop.f32.mrf.mxu1 }
 0x3c3   :  { %v14613_v35 = vmul.f32 %v2043_v61, %v13698_v49  ;;  %v2028_v10 = vadd.f32 %v14350_v6, %v2004_v27  ;;  %v14618_v16 = vsel %vm246_vm1, %v2201_v45, %v2202_v3  ;;  %v14622_v21 = vsel %vm115_vm2, %v2073_v46, %v2074_v63  ;;  %v12294_v46 = vld [vmem:[%s19849_s25 + $0x18] sm:$0xff]   ;;  %v12296_v27 = vld [vmem:[%s19849_s25 + $0x8] sm:$0xff]  }
 0x3c4   :  { %v1978_v20 = vpop.f32.mrf.mxu1  ;;  %2648 = vst.msk [vmem:[#allocation2 + $0xa8] sm:$0xff] %vm132_vm0, %v14618_v16  ;;  %2107 = vst.msk [vmem:[#allocation2 + $0xd0] sm:$0xff] %vm132_vm0, %v14622_v21 }
 0x3c5   :  { %v2044_v37 = vmax.f32 %v2028_v10, 0.0  ;;  %v2005_v33 = vmul.f32 %v14345_v11, %v1978_v20  ;;  %2246 = vrot.lane.b32.xlu0 %v14431_v22, %s19843_s2  ;;  %2452 = vrot.lane.b32.xlu1 %v14431_v22, %s19844_s29  ;;  %v2203_v8 = vrot.slane %v14613_v35, 1  ;;  %v2075_v51 = vrot.slane %v14613_v35, 7  ;;  %v12298_v10 = vld [vmem:[%s19849_s25 + $0x40] sm:$0xff]  }
 0x3c6   :  { %v1980_v17 = vpop.f32.mrf.mxu1 }
 0x3c7   :  { %v14636_v4 = vmul.f32 %v2044_v37, %v13698_v49  ;;  %v2029_v18 = vadd.f32 %v14350_v6, %v2005_v33  ;;  %v14641_v41 = vsel %vm246_vm1, %v2202_v3, %v2203_v8  ;;  %v14645_v11 = vsel %vm115_vm2, %v2074_v63, %v2075_v51  ;;  %v12297_v63 = vld [vmem:[%s19849_s25] sm:$0xff]  }
 0x3c8   :  { %2649 = vst.msk [vmem:[#allocation2 + $0xb8] sm:$0xff] %vm132_vm0, %v14641_v41  ;;  %2108 = vst.msk [vmem:[#allocation2 + $0xe0] sm:$0xff] %vm132_vm0, %v14645_v11 }
 0x3c9   :  { %v2045_v22 = vmax.f32 %v2029_v18, 0.0  ;;  %2326 = vrot.lane.b32.xlu0 %v14435_v1, %s19845_s1  ;;  %2516 = vrot.lane.b32.xlu1 %v14435_v1, %s19846_s28  ;;  %v2204_v6 = vrot.slane %v14636_v4, 1  ;;  %v2076_v15 = vrot.slane %v14636_v4, 7 }
 0x3cb   :  { %v14658_v50 = vmul.f32 %v2045_v22, %v13698_v49  ;;  %v14662_v40 = vsel %vm246_vm1, %v2203_v8, %v2204_v6  ;;  %v14666_v30 = vsel %vm115_vm2, %v2075_v51, %v2076_v15 }
 0x3cc   :  { %2650 = vst.msk [vmem:[#allocation2 + $0xc8] sm:$0xff] %vm132_vm0, %v14662_v40  ;;  %2109 = vst.msk [vmem:[#allocation2 + $0xf0] sm:$0xff] %vm132_vm0, %v14666_v30 }
 0x3cd   :  { %2582 = vrot.lane.b32.xlu0 %v14426_v58, %s19839_s30  ;;  %2392 = vrot.lane.b32.xlu1 %v14426_v58, %s19848_s21  ;;  %v2077_v1 = vrot.slane %v14658_v50, 7  ;;  %v2205_v24 = vrot.slane %v14658_v50, 1 }
 0x3cf   :  { %v14682_v39 = vsel %vm115_vm2, %v2077_v1, %v2062_v43  ;;  %v14688_v55 = vsel %vm246_vm1, %v2205_v24, %v2190_v38  ;;  %v14692_v44 = vsel %vm246_vm1, %v2204_v6, %v2205_v24  ;;  %v14696_v12 = vsel %vm115_vm2, %v2076_v15, %v2077_v1 }
 0x3d0   :  { %2095 = vst.msk [vmem:[#allocation2 + $0x10] sm:$0xff] %vm132_vm0, %v14682_v39  ;;  %2652 = vst.msk [vmem:[#allocation2 + $0xe8] sm:$0xff] %vm132_vm0, %v14688_v55 }
 0x3d1   :  { %2651 = vst.msk [vmem:[#allocation2 + $0xd8] sm:$0xff] %vm132_vm0, %v14692_v44  ;;  %2094 = vst.msk [vmem:[#allocation2] sm:$0xff] %vm132_vm0, %v14696_v12  ;;  %2138 = vrot.lane.b32.xlu0 %v14426_v58, %s19842_s27  ;;  %2248 = vrot.lane.b32.xlu1 %v14458_v48, %s19843_s2 }
 0x3d5   :  { %2454 = vrot.lane.b32.xlu0 %v14458_v48, %s19844_s29  ;;  %2328 = vrot.lane.b32.xlu1 %v14462_v56, %s19845_s1 }
 0x3d9   :  { %2518 = vrot.lane.b32.xlu0 %v14462_v56, %s19846_s28  ;;  %2584 = vrot.lane.b32.xlu1 %v14453_v32, %s19839_s30 }
 0x3dd   :  { %2394 = vrot.lane.b32.xlu0 %v14453_v32, %s19848_s21  ;;  %2140 = vrot.lane.b32.xlu1 %v14453_v32, %s19842_s27 }
 0x3e1   :  { %2250 = vrot.lane.b32.xlu0 %v14479_v29, %s19843_s2  ;;  %2456 = vrot.lane.b32.xlu1 %v14479_v29, %s19844_s29 }
 0x3e5   :  { %2330 = vrot.lane.b32.xlu0 %v14483_v47, %s19845_s1  ;;  %2520 = vrot.lane.b32.xlu1 %v14483_v47, %s19846_s28  ;;  %v12290_v47 = vld [vmem:[%s19849_s25 + $0x38] sm:$0xff]  }
 0x3e6   :  { %2863 = vmatpush1.bf16.msra.mxu0 %v12290_v47 }
 0x3e7   :  { %2864 = vmatprep.subr.bf16.mxu0 %v19760_v59 }
 0x3e9   :  { %2586 = vrot.lane.b32.xlu0 %v14474_v28, %s19839_s30  ;;  %2396 = vrot.lane.b32.xlu1 %v14474_v28, %s19848_s21 }
 0x3ed   :  { %2142 = vrot.lane.b32.xlu0 %v14474_v28, %s19842_s27  ;;  %2252 = vrot.lane.b32.xlu1 %v14503_v0, %s19843_s2 }
 0x3f1   :  { %2458 = vrot.lane.b32.xlu0 %v14503_v0, %s19844_s29  ;;  %2332 = vrot.lane.b32.xlu1 %v14507_v2, %s19845_s1 }
 0x3f5   :  { %2522 = vrot.lane.b32.xlu0 %v14507_v2, %s19846_s28  ;;  %2588 = vrot.lane.b32.xlu1 %v14498_v62, %s19839_s30  ;;  %v12291_v2 = vld [vmem:[%s19849_s25 + $0x30] sm:$0xff]  }
 0x3f6   :  { %2865 = vmatpush1.bf16.msra.mxu0 %v12291_v2 }
 0x3f7   :  { %2866 = vmatprep.subr.bf16.mxu0 %v19760_v59 }
 0x3f9   :  { %2398 = vrot.lane.b32.xlu0 %v14498_v62, %s19848_s21  ;;  %2144 = vrot.lane.b32.xlu1 %v14498_v62, %s19842_s27 }
 0x3fd   :  { %2254 = vrot.lane.b32.xlu0 %v14526_v34, %s19843_s2  ;;  %2460 = vrot.lane.b32.xlu1 %v14526_v34, %s19844_s29 }
 0x401   :  { %2334 = vrot.lane.b32.xlu0 %v14530_v31, %s19845_s1  ;;  %2524 = vrot.lane.b32.xlu1 %v14530_v31, %s19846_s28  ;;  %v12292_v31 = vld [vmem:[%s19849_s25 + $0x28] sm:$0xff]  }
 0x402   :  { %2867 = vmatpush1.bf16.msra.mxu0 %v12292_v31 }
 0x403   :  { %v14758_v38 = vpop.permute.xlu0 %2382  ;;  %v2129_v43 = vpop.permute.xlu1 %2128  ;;  %2868 = vmatprep.subr.bf16.mxu0 %v19760_v59 }
 0x404   :  { %2175 = vst.msk [vmem:[#allocation2 + $0x10] sm:$0xff] %vm213_vm3, %v2129_v43 }
 0x405   :  { %2590 = vrot.lane.b32.xlu0 %v14521_v5, %s19839_s30  ;;  %2400 = vrot.lane.b32.xlu1 %v14521_v5, %s19848_s21 }
 0x407   :  { %v14765_v58 = vpop.permute.xlu0 %2574  ;;  %v2385_v32 = vpop.permute.xlu1 %2384 }
 0x409   :  { %2146 = vrot.lane.b32.xlu0 %v14521_v5, %s19842_s27  ;;  %2256 = vrot.lane.b32.xlu1 %v14549_v19, %s19843_s2 }
 0x40b   :  { %v2131_v48 = vpop.permute.xlu0 %2130  ;;  %v2241_v56 = vpop.permute.xlu1 %2240 }
 0x40c   :  { %2176 = vst.msk [vmem:[#allocation2 + $0x20] sm:$0xff] %vm213_vm3, %v2131_v48 }
 0x40d   :  { %2287 = vst.msk [vmem:[#allocation2 + $0x10] sm:$0xff] %vm327_vm4, %v2241_v56  ;;  %2462 = vrot.lane.b32.xlu0 %v14549_v19, %s19844_s29  ;;  %2336 = vrot.lane.b32.xlu1 %v14553_v60, %s19845_s1 }
 0x40f   :  { %v14777_v28 = vpop.permute.xlu0 %2446  ;;  %v2321_v29 = vpop.permute.xlu1 %2320 }
 0x410   :  { %2367 = vst.msk [vmem:[#allocation2 + $0x10] sm:$0xff] %vm408_vm5, %v2321_v29 }
 0x411   :  { %2431 = vst.msk [vmem:[#allocation2 + $0x10] sm:$0xff] %vm473_vm6, %v2385_v32  ;;  %2526 = vrot.lane.b32.xlu0 %v14553_v60, %s19846_s28  ;;  %2592 = vrot.lane.b32.xlu1 %v14544_v25, %s19839_s30  ;;  %v12293_v60 = vld [vmem:[%s19849_s25 + $0x20] sm:$0xff]  }
 0x412   :  { %2869 = vmatpush1.bf16.msra.mxu0 %v12293_v60 }
 0x413   :  { %v14788_v62 = vpop.permute.xlu0 %2510  ;;  %v2577_v0 = vpop.permute.xlu1 %2576  ;;  %2870 = vmatprep.subr.bf16.mxu0 %v19760_v59 }
 0x415   :  { %2402 = vrot.lane.b32.xlu0 %v14544_v25, %s19848_s21  ;;  %2148 = vrot.lane.b32.xlu1 %v14544_v25, %s19842_s27 }
 0x416   :  { %2871 = vmatpush1.bf16.msra.mxu0 %v12294_v46 }
 0x417   :  { %v2387_v5 = vpop.permute.xlu0 %2386  ;;  %v2133_v34 = vpop.permute.xlu1 %2132  ;;  %2872 = vmatprep.subr.bf16.mxu0 %v19760_v59 }
 0x418   :  { %2177 = vst.msk [vmem:[#allocation2 + $0x30] sm:$0xff] %vm213_vm3, %v2133_v34 }
 0x419   :  { %2258 = vrot.lane.b32.xlu0 %v14572_v26, %s19843_s2  ;;  %2464 = vrot.lane.b32.xlu1 %v14572_v26, %s19844_s29 }
 0x41a   :  { %2873 = vmatpush1.bf16.msra.mxu0 %v12295_v53 }
 0x41b   :  { %v2243_v19 = vpop.permute.xlu0 %2242  ;;  %v2449_v25 = vpop.permute.xlu1 %2448  ;;  %2874 = vmatprep.subr.bf16.mxu0 %v19760_v59 }
 0x41c   :  { %2288 = vst.msk [vmem:[#allocation2 + $0x20] sm:$0xff] %vm327_vm4, %v2243_v19 }
 0x41d   :  { %2495 = vst.msk [vmem:[#allocation2 + $0x10] sm:$0xff] %vm538_vm7, %v2449_v25  ;;  %2338 = vrot.lane.b32.xlu0 %v14576_v13, %s19845_s1  ;;  %2528 = vrot.lane.b32.xlu1 %v14576_v13, %s19846_s28 }
 0x41e   :  { %2875 = vmatpush1.bf16.msra.mxu0 %v12296_v27 }
 0x41f   :  { %v2323_v26 = vpop.permute.xlu0 %2322  ;;  %v2513_v45 = vpop.permute.xlu1 %2512  ;;  %2876 = vmatprep.subr.bf16.mxu0 %v19760_v59 }
 0x420   :  { %2368 = vst.msk [vmem:[#allocation2 + $0x20] sm:$0xff] %vm408_vm5, %v2323_v26 }
 0x421   :  { %2559 = vst.msk [vmem:[#allocation2 + $0x10] sm:$0xff] %vm603_vm8, %v2513_v45  ;;  %2404 = vrot.lane.b32.xlu1 %v14567_v42, %s19848_s21  ;;  %2466 = vrot.lane.b32.xlu0 %v14595_v57, %s19844_s29 }
 0x422   :  { %2432 = vst.msk [vmem:[#allocation2 + $0x20] sm:$0xff] %vm473_vm6, %v2387_v5  ;;  %2877 = vmatpush1.bf16.msra.mxu0 %v12297_v63 }
 0x423   :  { %2623 = vst.msk [vmem:[#allocation2 + $0x10] sm:$0xff] %vm668_vm9, %v2577_v0  ;;  %v2579_v13 = vpop.permute.xlu0 %2578  ;;  %v2389_v23 = vpop.permute.xlu1 %2388  ;;  %2892 = vmatprep.subr.bf16.mxu0 %v19760_v59 }
 0x425   :  { %2260 = vrot.lane.b32.xlu1 %v14595_v57, %s19843_s2  ;;  %2530 = vrot.lane.b32.xlu0 %v14599_v14, %s19846_s28 }
 0x426   :  { %2893 = vmatpush2.bf16.msra.mxu0 %v12298_v10 }
 0x427   :  { %v2135_v54 = vpop.permute.xlu0 %2134  ;;  %v2245_v61 = vpop.permute.xlu1 %2244 }
 0x428   :  { %2178 = vst.msk [vmem:[#allocation2 + $0x40] sm:$0xff] %vm213_vm3, %v2135_v54 }
 0x429   :  { %2289 = vst.msk [vmem:[#allocation2 + $0x30] sm:$0xff] %vm327_vm4, %v2245_v61  ;;  %2340 = vrot.lane.b32.xlu1 %v14599_v14, %s19845_s1  ;;  %2126 = vrot.lane.b32.xlu0 %v14658_v50, %s19842_s27 }
 0x42b   :  { %v2451_v57 = vpop.permute.xlu0 %2450  ;;  %v2325_v3 = vpop.permute.xlu1 %2324 }
 0x42c   :  { %2496 = vst.msk [vmem:[#allocation2 + $0x20] sm:$0xff] %vm538_vm7, %v2451_v57 }
 0x42d   :  { %2369 = vst.msk [vmem:[#allocation2 + $0x30] sm:$0xff] %vm408_vm5, %v2325_v3  ;;  %2468 = vrot.lane.b32.xlu1 %v14618_v16, %s19844_s29  ;;  %2238 = vrot.lane.b32.xlu0 %v14688_v55, %s19843_s2 }
 0x42e   :  { %2433 = vst.msk [vmem:[#allocation2 + $0x30] sm:$0xff] %vm473_vm6, %v2389_v23 }
 0x42f   :  { %v2515_v14 = vpop.permute.xlu0 %2514  ;;  %v2581_v7 = vpop.permute.xlu1 %2580 }
 0x430   :  { %2560 = vst.msk [vmem:[#allocation2 + $0x20] sm:$0xff] %vm603_vm8, %v2515_v14 }
 0x431   :  { %2624 = vst.msk [vmem:[#allocation2 + $0x20] sm:$0xff] %vm668_vm9, %v2579_v13  ;;  %2532 = vrot.lane.b32.xlu1 %v14622_v21, %s19846_s28  ;;  %2318 = vrot.lane.b32.xlu0 %v14682_v39, %s19845_s1 }
 0x433   :  { %v2391_v20 = vpop.permute.xlu0 %2390  ;;  %v2137_v37 = vpop.permute.xlu1 %2136 }
 0x434   :  { %2179 = vst.msk [vmem:[#allocation2 + $0x50] sm:$0xff] %vm213_vm3, %v2137_v37 }
 0x435   :  { %2596 = vrot.lane.b32.xlu1 %v14590_v52, %s19839_s30  ;;  %2594 = vrot.lane.b32.xlu0 %v14567_v42, %s19839_s30 }
 0x437   :  { %v2247_v33 = vpop.permute.xlu0 %2246  ;;  %v2453_v8 = vpop.permute.xlu1 %2452 }
 0x438   :  { %2290 = vst.msk [vmem:[#allocation2 + $0x40] sm:$0xff] %vm327_vm4, %v2247_v33 }
 0x439   :  { %2497 = vst.msk [vmem:[#allocation2 + $0x30] sm:$0xff] %vm538_vm7, %v2453_v8  ;;  %2152 = vrot.lane.b32.xlu1 %v14590_v52, %s19842_s27  ;;  %2150 = vrot.lane.b32.xlu0 %v14567_v42, %s19842_s27 }
 0x43b   :  { %v2327_v51 = vpop.permute.xlu0 %2326  ;;  %v2517_v17 = vpop.permute.xlu1 %2516 }
 0x43c   :  { %2370 = vst.msk [vmem:[#allocation2 + $0x40] sm:$0xff] %vm408_vm5, %v2327_v51 }
 0x43d   :  { %2561 = vst.msk [vmem:[#allocation2 + $0x30] sm:$0xff] %vm603_vm8, %v2517_v17  ;;  %2264 = vrot.lane.b32.xlu1 %v14641_v41, %s19843_s2  ;;  %2262 = vrot.lane.b32.xlu0 %v14618_v16, %s19843_s2  ;;  %v2688_v17 = vld [vmem:[%s19838_s7 + $0x10] sm:$0xff] }
 0x43e   :  { %2434 = vst.msk [vmem:[#allocation2 + $0x40] sm:$0xff] %vm473_vm6, %v2391_v20 }
 0x43f   :  { %2625 = vst.msk [vmem:[#allocation2 + $0x30] sm:$0xff] %vm668_vm9, %v2581_v7  ;;  %v2583_v18 = vpop.permute.xlu0 %2582  ;;  %v2393_v22 = vpop.permute.xlu1 %2392 }
 0x441   :  { %2344 = vrot.lane.b32.xlu1 %v14645_v11, %s19845_s1  ;;  %2342 = vrot.lane.b32.xlu0 %v14622_v21, %s19845_s1 }
 0x443   :  { %v2139_v42 = vpop.permute.xlu0 %2138  ;;  %v2249_v6 = vpop.permute.xlu1 %2248 }
 0x444   :  { %2180 = vst.msk [vmem:[#allocation2 + $0x60] sm:$0xff] %vm213_vm3, %v2139_v42 }
 0x445   :  { %2291 = vst.msk [vmem:[#allocation2 + $0x50] sm:$0xff] %vm327_vm4, %v2249_v6  ;;  %2408 = vrot.lane.b32.xlu1 %v14613_v35, %s19848_s21  ;;  %2406 = vrot.lane.b32.xlu0 %v14590_v52, %s19848_s21 }
 0x447   :  { %v2455_v16 = vpop.permute.xlu0 %2454  ;;  %v2329_v15 = vpop.permute.xlu1 %2328 }
 0x448   :  { %2498 = vst.msk [vmem:[#allocation2 + $0x40] sm:$0xff] %vm538_vm7, %v2455_v16 }
 0x449   :  { %2371 = vst.msk [vmem:[#allocation2 + $0x50] sm:$0xff] %vm408_vm5, %v2329_v15  ;;  %2472 = vrot.lane.b32.xlu1 %v14662_v40, %s19844_s29  ;;  %2470 = vrot.lane.b32.xlu0 %v14641_v41, %s19844_s29 }
 0x44a   :  { %2435 = vst.msk [vmem:[#allocation2 + $0x50] sm:$0xff] %vm473_vm6, %v2393_v22  ;;  %v2691_v22 = vld [vmem:[%s19838_s7 + $0x28] sm:$0xff] }
 0x44b   :  { %v2519_v21 = vpop.permute.xlu0 %2518  ;;  %v2585_v1 = vpop.permute.xlu1 %2584 }
 0x44c   :  { %2562 = vst.msk [vmem:[#allocation2 + $0x40] sm:$0xff] %vm603_vm8, %v2519_v21 }
 0x44d   :  { %2626 = vst.msk [vmem:[#allocation2 + $0x40] sm:$0xff] %vm668_vm9, %v2583_v18  ;;  %2536 = vrot.lane.b32.xlu1 %v14666_v30, %s19846_s28  ;;  %2534 = vrot.lane.b32.xlu0 %v14645_v11, %s19846_s28  ;;  %v2659_v18 = vld [vmem:[#allocation2 + $0x28] sm:$0xff] }
 0x44f   :  { %v2395_v52 = vpop.permute.xlu0 %2394  ;;  %v2141_v24 = vpop.permute.xlu1 %2140 }
 0x450   :  { %2181 = vst.msk [vmem:[#allocation2 + $0x70] sm:$0xff] %vm213_vm3, %v2141_v24 }
 0x451   :  { %2600 = vrot.lane.b32.xlu1 %v14636_v4, %s19839_s30  ;;  %2598 = vrot.lane.b32.xlu0 %v14613_v35, %s19839_s30 }
 0x453   :  { %v2251_v41 = vpop.permute.xlu0 %2250  ;;  %v2457_v43 = vpop.permute.xlu1 %2456 }
 0x454   :  { %2292 = vst.msk [vmem:[#allocation2 + $0x60] sm:$0xff] %vm327_vm4, %v2251_v41 }
 0x455   :  { %2499 = vst.msk [vmem:[#allocation2 + $0x50] sm:$0xff] %vm538_vm7, %v2457_v43  ;;  %2156 = vrot.lane.b32.xlu1 %v14636_v4, %s19842_s27  ;;  %2154 = vrot.lane.b32.xlu0 %v14613_v35, %s19842_s27 }
 0x457   :  { %v2331_v11 = vpop.permute.xlu0 %2330  ;;  %v2521_v32 = vpop.permute.xlu1 %2520 }
 0x458   :  { %2372 = vst.msk [vmem:[#allocation2 + $0x60] sm:$0xff] %vm408_vm5, %v2331_v11 }
 0x459   :  { %2563 = vst.msk [vmem:[#allocation2 + $0x50] sm:$0xff] %vm603_vm8, %v2521_v32  ;;  %2412 = vrot.lane.b32.xlu1 %v14658_v50, %s19848_s21  ;;  %2266 = vrot.lane.b32.xlu0 %v14662_v40, %s19843_s2  ;;  %v2660_v32 = vld [vmem:[#allocation2 + $0x30] sm:$0xff] }
 0x45a   :  { %2436 = vst.msk [vmem:[#allocation2 + $0x60] sm:$0xff] %vm473_vm6, %v2395_v52  ;;  %v2723_v52 = vmul.f32 %v2691_v22, %v2659_v18 }
 0x45b   :  { %2627 = vst.msk [vmem:[#allocation2 + $0x50] sm:$0xff] %vm668_vm9, %v2585_v1  ;;  %v2587_v48 = vpop.permute.xlu0 %2586  ;;  %v2397_v56 = vpop.permute.xlu1 %2396 }
 0x45d   :  { %2268 = vrot.lane.b32.xlu1 %v14692_v44, %s19843_s2  ;;  %2346 = vrot.lane.b32.xlu0 %v14666_v30, %s19845_s1 }
 0x45f   :  { %v2143_v35 = vpop.permute.xlu0 %2142  ;;  %v2253_v29 = vpop.permute.xlu1 %2252 }
 0x460   :  { %2182 = vst.msk [vmem:[#allocation2 + $0x80] sm:$0xff] %vm213_vm3, %v2143_v35  ;;  %v2697_v35 = vld [vmem:[%s19838_s7 + $0x58] sm:$0xff] }
 0x461   :  { %2293 = vst.msk [vmem:[#allocation2 + $0x70] sm:$0xff] %vm327_vm4, %v2253_v29  ;;  %2410 = vrot.lane.b32.xlu0 %v14636_v4, %s19848_s21  ;;  %2348 = vrot.lane.b32.xlu1 %v14696_v12, %s19845_s1  ;;  %v2658_v29 = vld [vmem:[#allocation2 + $0x20] sm:$0xff] }
 0x463   :  { %v2459_v40 = vpop.permute.xlu0 %2458  ;;  %v2333_v47 = vpop.permute.xlu1 %2332 }
 0x464   :  { %2500 = vst.msk [vmem:[#allocation2 + $0x60] sm:$0xff] %vm538_vm7, %v2459_v40  ;;  %v2690_v40 = vld [vmem:[%s19838_s7 + $0x20] sm:$0xff] }
 0x465   :  { %2373 = vst.msk [vmem:[#allocation2 + $0x70] sm:$0xff] %vm408_vm5, %v2333_v47  ;;  %2474 = vrot.lane.b32.xlu0 %v14692_v44, %s19844_s29  ;;  %2476 = vrot.lane.b32.xlu1 %v14688_v55, %s19844_s29 }
 0x466   :  { %2437 = vst.msk [vmem:[#allocation2 + $0x70] sm:$0xff] %vm473_vm6, %v2397_v56  ;;  %v2665_v56 = vld [vmem:[#allocation2 + $0x58] sm:$0xff] }
 0x467   :  { %v2523_v30 = vpop.permute.xlu0 %2522  ;;  %v2589_v0 = vpop.permute.xlu1 %2588 }
 0x468   :  { %2564 = vst.msk [vmem:[#allocation2 + $0x60] sm:$0xff] %vm603_vm8, %v2523_v30  ;;  %v2663_v30 = vld [vmem:[#allocation2 + $0x48] sm:$0xff] }
 0x469   :  { %2628 = vst.msk [vmem:[#allocation2 + $0x60] sm:$0xff] %vm668_vm9, %v2587_v48  ;;  %2538 = vrot.lane.b32.xlu0 %v14696_v12, %s19846_s28  ;;  %2540 = vrot.lane.b32.xlu1 %v14682_v39, %s19846_s28  ;;  %v2692_v48 = vld [vmem:[%s19838_s7 + $0x30] sm:$0xff] }
 0x46a   :  { %v2724_v47 = vmul.f32 %v2692_v48, %v2660_v32  ;;  %v2675_v32 = vld [vmem:[#allocation2 + $0xa8] sm:$0xff] }
 0x46b   :  { %v2399_v4 = vpop.permute.xlu0 %2398  ;;  %v2145_v2 = vpop.permute.xlu1 %2144  ;;  %v2707_v48 = vld [vmem:[%s19838_s7 + $0xa8] sm:$0xff] }
 0x46c   :  { %2183 = vst.msk [vmem:[#allocation2 + $0x90] sm:$0xff] %vm213_vm3, %v2145_v2 }
 0x46d   :  { %2602 = vrot.lane.b32.xlu0 %v14658_v50, %s19839_s30  ;;  %2604 = vrot.lane.b32.xlu1 %v14356_v36, %s19839_s30 }
 0x46f   :  { %v2255_v55 = vpop.permute.xlu0 %2254  ;;  %v2461_v44 = vpop.permute.xlu1 %2460 }
 0x470   :  { %2294 = vst.msk [vmem:[#allocation2 + $0x80] sm:$0xff] %vm327_vm4, %v2255_v55  ;;  %v2729_v55 = vmul.f32 %v2697_v35, %v2665_v56 }
 0x471   :  { %2501 = vst.msk [vmem:[#allocation2 + $0x70] sm:$0xff] %vm538_vm7, %v2461_v44  ;;  %v2722_v44 = vmul.f32 %v2690_v40, %v2658_v29 }
 0x473   :  { %v2335_v12 = vpop.permute.xlu0 %2334  ;;  %v2525_v5 = vpop.permute.xlu1 %2524 }
 0x474   :  { %2374 = vst.msk [vmem:[#allocation2 + $0x80] sm:$0xff] %vm408_vm5, %v2335_v12 }
 0x475   :  { %2565 = vst.msk [vmem:[#allocation2 + $0x70] sm:$0xff] %vm603_vm8, %v2525_v5  ;;  %v2752_v5 = vpack.c.bf16 %v2724_v47, %v2722_v44  ;;  %v2739_v47 = vmul.f32 %v2707_v48, %v2675_v32 }
 0x476   :  { %2438 = vst.msk [vmem:[#allocation2 + $0x80] sm:$0xff] %vm473_vm6, %v2399_v4 }
 0x477   :  { %2629 = vst.msk [vmem:[#allocation2 + $0x70] sm:$0xff] %vm668_vm9, %v2589_v0  ;;  %v2591_v50 = vpop.permute.xlu0 %2590  ;;  %v2401_v39 = vpop.permute.xlu1 %2400  ;;  %v2695_v0 = vld [vmem:[%s19838_s7 + $0x48] sm:$0xff] }
 0x478   :  { %v2727_v12 = vmul.f32 %v2695_v0, %v2663_v30  ;;  %v2706_v0 = vld [vmem:[%s19838_s7 + $0xa0] sm:$0xff] }
 0x47b   :  { %v2147_v34 = vpop.permute.xlu0 %2146  ;;  %v2257_v36 = vpop.permute.xlu1 %2256 }
 0x47c   :  { %2184 = vst.msk [vmem:[#allocation2 + $0xa0] sm:$0xff] %vm213_vm3, %v2147_v34  ;;  %v2755_v34 = vpack.c.bf16 %v2729_v55, %v2727_v12 }
 0x47d   :  { %2295 = vst.msk [vmem:[#allocation2 + $0x90] sm:$0xff] %vm327_vm4, %v2257_v36  ;;  %v2664_v36 = vld [vmem:[#allocation2 + $0x50] sm:$0xff] }
 0x47f   :  { %v2463_v31 = vpop.permute.xlu0 %2462  ;;  %v2337_v19 = vpop.permute.xlu1 %2336 }
 0x480   :  { %2502 = vst.msk [vmem:[#allocation2 + $0x80] sm:$0xff] %vm538_vm7, %v2463_v31  ;;  %v2696_v31 = vld [vmem:[%s19838_s7 + $0x50] sm:$0xff] }
 0x481   :  { %2375 = vst.msk [vmem:[#allocation2 + $0x90] sm:$0xff] %vm408_vm5, %v2337_v19  ;;  %v2669_v19 = vld [vmem:[#allocation2 + $0x78] sm:$0xff] }
 0x482   :  { %2439 = vst.msk [vmem:[#allocation2 + $0x90] sm:$0xff] %vm473_vm6, %v2401_v39 }
 0x483   :  { %v2527_v25 = vpop.permute.xlu0 %2526  ;;  %v2593_v60 = vpop.permute.xlu1 %2592 }
 0x484   :  { %2566 = vst.msk [vmem:[#allocation2 + $0x80] sm:$0xff] %vm603_vm8, %v2527_v25  ;;  %v2701_v25 = vld [vmem:[%s19838_s7 + $0x78] sm:$0xff] }
 0x485   :  { %2630 = vst.msk [vmem:[#allocation2 + $0x80] sm:$0xff] %vm668_vm9, %v2591_v50 }
 0x487   :  { %v2403_v26 = vpop.permute.xlu0 %2402  ;;  %v2149_v45 = vpop.permute.xlu1 %2148 }
 0x488   :  { %2185 = vst.msk [vmem:[#allocation2 + $0xb0] sm:$0xff] %vm213_vm3, %v2149_v45  ;;  %v2728_v45 = vmul.f32 %v2696_v31, %v2664_v36  ;;  %v2679_v31 = vld [vmem:[#allocation2 + $0xc8] sm:$0xff] }
 0x48b   :  { %v2259_v46 = vpop.permute.xlu0 %2258  ;;  %v2465_v13 = vpop.permute.xlu1 %2464 }
 0x48c   :  { %2296 = vst.msk [vmem:[#allocation2 + $0xa0] sm:$0xff] %vm327_vm4, %v2259_v46  ;;  %v2667_v46 = vld [vmem:[#allocation2 + $0x68] sm:$0xff] }
 0x48d   :  { %2503 = vst.msk [vmem:[#allocation2 + $0x90] sm:$0xff] %vm538_vm7, %v2465_v13  ;;  %v2699_v13 = vld [vmem:[%s19838_s7 + $0x68] sm:$0xff] }
 0x48f   :  { %v2339_v23 = vpop.permute.xlu0 %2338  ;;  %v2529_v53 = vpop.permute.xlu1 %2528 }
 0x490   :  { %2376 = vst.msk [vmem:[#allocation2 + $0xa0] sm:$0xff] %vm408_vm5, %v2339_v23 }
 0x491   :  { %2567 = vst.msk [vmem:[#allocation2 + $0x90] sm:$0xff] %vm603_vm8, %v2529_v53 }
 0x492   :  { %2440 = vst.msk [vmem:[#allocation2 + $0xa0] sm:$0xff] %vm473_vm6, %v2403_v26  ;;  %v2694_v26 = vld [vmem:[%s19838_s7 + $0x40] sm:$0xff] }
 0x493   :  { %2631 = vst.msk [vmem:[#allocation2 + $0x90] sm:$0xff] %vm668_vm9, %v2593_v60  ;;  %v2405_v54 = vpop.permute.xlu1 %2404  ;;  %v2467_v61 = vpop.permute.xlu0 %2466  ;;  %v2662_v60 = vld [vmem:[#allocation2 + $0x40] sm:$0xff] }
 0x494   :  { %2504 = vst.msk [vmem:[#allocation2 + $0xa0] sm:$0xff] %vm538_vm7, %v2467_v61  ;;  %v2726_v61 = vmul.f32 %v2694_v26, %v2662_v60 }
 0x497   :  { %v2261_v27 = vpop.permute.xlu1 %2260  ;;  %v2531_v57 = vpop.permute.xlu0 %2530 }
 0x498   :  { %2297 = vst.msk [vmem:[#allocation2 + $0xb0] sm:$0xff] %vm327_vm4, %v2261_v27  ;;  %v2731_v27 = vmul.f32 %v2699_v13, %v2667_v46  ;;  %v2710_v13 = vld [vmem:[%s19838_s7 + $0xc0] sm:$0xff] }
 0x499   :  { %2568 = vst.msk [vmem:[#allocation2 + $0xa0] sm:$0xff] %vm603_vm8, %v2531_v57  ;;  %v2754_v57 = vpack.c.bf16 %v2728_v45, %v2726_v61 }
 0x49b   :  { %v2341_v3 = vpop.permute.xlu1 %2340  ;;  %v2127_v63 = vpop.permute.xlu0 %2126 }
 0x49c   :  { %2377 = vst.msk [vmem:[#allocation2 + $0xb0] sm:$0xff] %vm408_vm5, %v2341_v3 }
 0x49d   :  { %2174 = vst.msk [vmem:[#allocation2] sm:$0xff] %vm213_vm3, %v2127_v63 }
 0x49e   :  { %2441 = vst.msk [vmem:[#allocation2 + $0xb0] sm:$0xff] %vm473_vm6, %v2405_v54  ;;  %v2733_v54 = vmul.f32 %v2701_v25, %v2669_v19  ;;  %v2711_v19 = vld [vmem:[%s19838_s7 + $0xc8] sm:$0xff] }
 0x49f   :  { %v2469_v14 = vpop.permute.xlu1 %2468  ;;  %v2239_v7 = vpop.permute.xlu0 %2238  ;;  %v2743_v45 = vmul.f32 %v2711_v19, %v2679_v31 }
 0x4a0   :  { %2505 = vst.msk [vmem:[#allocation2 + $0xb0] sm:$0xff] %vm538_vm7, %v2469_v14  ;;  %v2757_v14 = vpack.c.bf16 %v2733_v54, %v2731_v27 }
 0x4a1   :  { %2286 = vst.msk [vmem:[#allocation2] sm:$0xff] %vm327_vm4, %v2239_v7  ;;  %v2668_v7 = vld [vmem:[#allocation2 + $0x70] sm:$0xff] }
 0x4a3   :  { %v2533_v10 = vpop.permute.xlu1 %2532  ;;  %v2319_v20 = vpop.permute.xlu0 %2318 }
 0x4a4   :  { %2569 = vst.msk [vmem:[#allocation2 + $0xb0] sm:$0xff] %vm603_vm8, %v2533_v10  ;;  %v2700_v10 = vld [vmem:[%s19838_s7 + $0x70] sm:$0xff] }
 0x4a5   :  { %2366 = vst.msk [vmem:[#allocation2] sm:$0xff] %vm408_vm5, %v2319_v20  ;;  %v2673_v20 = vld [vmem:[#allocation2 + $0x98] sm:$0xff] }
 0x4a6   :  { %2430 = vst.msk [vmem:[#allocation2] sm:$0xff] %vm473_vm6, %v14758_v38  ;;  %v2661_v38 = vld [vmem:[#allocation2 + $0x38] sm:$0xff] }
 0x4a7   :  { %2494 = vst.msk [vmem:[#allocation2] sm:$0xff] %vm538_vm7, %v14777_v28  ;;  %v2597_v37 = vpop.permute.xlu1 %2596  ;;  %v2595_v33 = vpop.permute.xlu0 %2594  ;;  %v2693_v28 = vld [vmem:[%s19838_s7 + $0x38] sm:$0xff] }
 0x4a8   :  { %2558 = vst.msk [vmem:[#allocation2] sm:$0xff] %vm603_vm8, %v14788_v62  ;;  %v2656_v62 = vld [vmem:[#allocation2 + $0x10] sm:$0xff]  ;;  %v2725_v15 = vmul.f32 %v2693_v28, %v2661_v38  ;;  %v2671_v38 = vld [vmem:[#allocation2 + $0x88] sm:$0xff] }
 0x4a9   :  { %2622 = vst.msk [vmem:[#allocation2] sm:$0xff] %vm668_vm9, %v14765_v58  ;;  %2633 = vst.msk [vmem:[#allocation2 + $0xb0] sm:$0xff] %vm668_vm9, %v2597_v37  ;;  %v2686_v58 = vld [vmem:[%s19838_s7] sm:$0xff]  ;;  %v2720_v1 = vmul.f32 %v2688_v17, %v2656_v62  ;;  %v2705_v37 = vld [vmem:[%s19838_s7 + $0x98] sm:$0xff] }
 0x4aa   :  { %2632 = vst.msk [vmem:[#allocation2 + $0xa0] sm:$0xff] %vm668_vm9, %v2595_v33  ;;  %v2753_v11 = vpack.c.bf16 %v2725_v15, %v2723_v52  ;;  %v2666_v33 = vld [vmem:[#allocation2 + $0x60] sm:$0xff]  ;;  %v2703_v28 = vld [vmem:[%s19838_s7 + $0x88] sm:$0xff]  ;;  %v2737_v17 = vmul.f32 %v2705_v37, %v2673_v20  ;;  %v2677_v52 = vld [vmem:[#allocation2 + $0xb8] sm:$0xff] }
 0x4ab   :  { %v2153_v8 = vpop.permute.xlu1 %2152  ;;  %v2151_v51 = vpop.permute.xlu0 %2150  ;;  %v2735_v22 = vmul.f32 %v2703_v28, %v2671_v38  ;;  %v2717_v20 = vld [vmem:[%s19838_s7 + $0xf8] sm:$0xff] }
 0x4ac   :  { %2187 = vst.msk [vmem:[#allocation2 + $0xd0] sm:$0xff] %vm213_vm3, %v2153_v8  ;;  %2186 = vst.msk [vmem:[#allocation2 + $0xc0] sm:$0xff] %vm213_vm3, %v2151_v51  ;;  %v2698_v8 = vld [vmem:[%s19838_s7 + $0x60] sm:$0xff]  ;;  %v2732_v51 = vmul.f32 %v2700_v10, %v2668_v7  ;;  %v2685_v10 = vld [vmem:[#allocation2 + $0xf8] sm:$0xff] }
 0x4ad   :  { %v2730_v18 = vmul.f32 %v2698_v8, %v2666_v33  ;;  %v2759_v15 = vpack.c.bf16 %v2737_v17, %v2735_v22 }
 0x4af   :  { %v2265_v42 = vpop.permute.xlu1 %2264  ;;  %v2263_v6 = vpop.permute.xlu0 %2262 }
 0x4b0   :  { %v2654_v16 = vld [vmem:[#allocation2] sm:$0xff]  ;;  %2299 = vst.msk [vmem:[#allocation2 + $0xd0] sm:$0xff] %vm327_vm4, %v2265_v42  ;;  %2298 = vst.msk [vmem:[#allocation2 + $0xc0] sm:$0xff] %vm327_vm4, %v2263_v6  ;;  %v2756_v42 = vpack.c.bf16 %v2732_v51, %v2730_v18  ;;  %v2676_v12 = vld [vmem:[#allocation2 + $0xb0] sm:$0xff]  ;;  %v2749_v51 = vmul.f32 %v2717_v20, %v2685_v10 }
 0x4b1   :  { %v2718_v21 = vmul.f32 %v2686_v58, %v2654_v16  ;;  %v2674_v44 = vld [vmem:[#allocation2 + $0xa0] sm:$0xff] }
 0x4b3   :  { %v2750_v24 = vpack.c.bf16 %v2720_v1, %v2718_v21  ;;  %v2345_v41 = vpop.permute.xlu1 %2344  ;;  %v2343_v43 = vpop.permute.xlu0 %2342  ;;  %v2672_v21 = vld [vmem:[#allocation2 + $0x90] sm:$0xff] }
 0x4b4   :  { %2379 = vst.msk [vmem:[#allocation2 + $0xd0] sm:$0xff] %vm408_vm5, %v2345_v41  ;;  %2378 = vst.msk [vmem:[#allocation2 + $0xc0] sm:$0xff] %vm408_vm5, %v2343_v43  ;;  %v2704_v1 = vld [vmem:[%s19838_s7 + $0x90] sm:$0xff]  ;;  %v2670_v41 = vld [vmem:[#allocation2 + $0x80] sm:$0xff] }
 0x4b5   :  { %2895 = vmatmul.mubr.bf16.vlgmr.msra.gmra.mxu0 %v2750_v24  ;;  %v2709_v24 = vld [vmem:[%s19838_s7 + $0xb8] sm:$0xff]  ;;  %v2702_v43 = vld [vmem:[%s19838_s7 + $0x80] sm:$0xff] }
 0x4b6   :  { %11345 = vmatprep.mubr.msk.bf16.mxu0 %vm132_vm0, %v2753_v11  ;;  %v2736_v11 = vmul.f32 %v2704_v1, %v2672_v21  ;;  %v2741_v29 = vmul.f32 %v2709_v24, %v2677_v52  ;;  %v2734_v40 = vmul.f32 %v2702_v43, %v2670_v41  ;;  %v15131_v21 = vld [vmem:[%s19723_s8 + $0x2] ss:$0 sm:$0xff] }
 0x4b7   :  { %v2409_v4 = vpop.permute.xlu1 %2408  ;;  %v2407_v2 = vpop.permute.xlu0 %2406 }
 0x4b8   :  { %2443 = vst.msk [vmem:[#allocation2 + $0xd0] sm:$0xff] %vm473_vm6, %v2409_v4  ;;  %2442 = vst.msk [vmem:[#allocation2 + $0xc0] sm:$0xff] %vm473_vm6, %v2407_v2  ;;  %v2758_v30 = vpack.c.bf16 %v2736_v11, %v2734_v40  ;;  %v2761_v55 = vpack.c.bf16 %v2741_v29, %v2739_v47 }
 0x4bb   :  { %v2473_v50 = vpop.permute.xlu1 %2472  ;;  %v2471_v39 = vpop.permute.xlu0 %2470 }
 0x4bc   :  { %2507 = vst.msk [vmem:[#allocation2 + $0xd0] sm:$0xff] %vm538_vm7, %v2473_v50  ;;  %2506 = vst.msk [vmem:[#allocation2 + $0xc0] sm:$0xff] %vm538_vm7, %v2471_v39  ;;  %v2681_v50 = vld [vmem:[#allocation2 + $0xd8] sm:$0xff] }
 0x4bd   :  { %2903 = vmatmul.mubr.bf16.gmra.mxu0 %v2752_v5  ;;  %v2708_v5 = vld [vmem:[%s19838_s7 + $0xb0] sm:$0xff]  ;;  %v2713_v39 = vld [vmem:[%s19838_s7 + $0xd8] sm:$0xff] }
 0x4be   :  { %11346 = vmatprep.mubr.msk.bf16.mxu0 %vm132_vm0, %v2755_v34  ;;  %v2738_v34 = vmul.f32 %v2706_v0, %v2674_v44  ;;  %v2740_v36 = vmul.f32 %v2708_v5, %v2676_v12  ;;  %v2745_v26 = vmul.f32 %v2713_v39, %v2681_v50 }
 0x4bf   :  { %v2537_v23 = vpop.permute.xlu1 %2536  ;;  %v2535_v53 = vpop.permute.xlu0 %2534 }
 0x4c0   :  { %2571 = vst.msk [vmem:[#allocation2 + $0xd0] sm:$0xff] %vm603_vm8, %v2537_v23  ;;  %2570 = vst.msk [vmem:[#allocation2 + $0xc0] sm:$0xff] %vm603_vm8, %v2535_v53  ;;  %v2760_v46 = vpack.c.bf16 %v2740_v36, %v2738_v34  ;;  %v2763_v54 = vpack.c.bf16 %v2745_v26, %v2743_v45 }
 0x4c3   :  { %v2601_v3 = vpop.permute.xlu1 %2600  ;;  %v2599_v63 = vpop.permute.xlu0 %2598 }
 0x4c4   :  { %2635 = vst.msk [vmem:[#allocation2 + $0xd0] sm:$0xff] %vm668_vm9, %v2601_v3  ;;  %2634 = vst.msk [vmem:[#allocation2 + $0xc0] sm:$0xff] %vm668_vm9, %v2599_v63  ;;  %v2683_v3 = vld [vmem:[#allocation2 + $0xe8] sm:$0xff] }
 0x4c5   :  { %2911 = vmatmul.mubr.bf16.gmra.mxu0 %v2754_v57  ;;  %v2712_v57 = vld [vmem:[%s19838_s7 + $0xd0] sm:$0xff]  ;;  %v2715_v63 = vld [vmem:[%s19838_s7 + $0xe8] sm:$0xff] }
 0x4c6   :  { %11347 = vmatprep.mubr.msk.bf16.mxu0 %vm132_vm0, %v2757_v14  ;;  %v2747_v8 = vmul.f32 %v2715_v63, %v2683_v3 }
 0x4c7   :  { %v2157_v62 = vpop.permute.xlu1 %2156  ;;  %v2155_v58 = vpop.permute.xlu0 %2154 }
 0x4c8   :  { %2189 = vst.msk [vmem:[#allocation2 + $0xf0] sm:$0xff] %vm213_vm3, %v2157_v62  ;;  %2188 = vst.msk [vmem:[#allocation2 + $0xe0] sm:$0xff] %vm213_vm3, %v2155_v58  ;;  %v2765_v28 = vpack.c.bf16 %v2749_v51, %v2747_v8  ;;  %v2714_v62 = vld [vmem:[%s19838_s7 + $0xe0] sm:$0xff]  ;;  %v2716_v58 = vld [vmem:[%s19838_s7 + $0xf0] sm:$0xff] }
 0x4cb   :  { %v2413_v6 = vpop.permute.xlu1 %2412  ;;  %v2267_v16 = vpop.permute.xlu0 %2266  ;;  %v2678_v61 = vld [vmem:[#allocation2 + $0xc0] sm:$0xff]  ;;  %v2680_v27 = vld [vmem:[#allocation2 + $0xd0] sm:$0xff] }
 0x4cc   :  { %2300 = vst.msk [vmem:[#allocation2 + $0xe0] sm:$0xff] %vm327_vm4, %v2267_v16  ;;  %v2742_v14 = vmul.f32 %v2710_v13, %v2678_v61  ;;  %v2744_v7 = vmul.f32 %v2712_v57, %v2680_v27  ;;  %v15126_v16 = vld [vmem:[%s19841_s3 + $0x2] ss:$0 sm:$0xff] }
 0x4cd   :  { %2919 = vmatmul.mubr.bf16.gmra.mxu0 %v2756_v42 }
 0x4ce   :  { %11348 = vmatprep.mubr.msk.bf16.mxu0 %vm132_vm0, %v2759_v15  ;;  %v2762_v38 = vpack.c.bf16 %v2744_v7, %v2742_v14 }
 0x4cf   :  { %v2269_v56 = vpop.permute.xlu1 %2268  ;;  %v2347_v35 = vpop.permute.xlu0 %2346 }
 0x4d0   :  { %2301 = vst.msk [vmem:[#allocation2 + $0xf0] sm:$0xff] %vm327_vm4, %v2269_v56 }
 0x4d1   :  { %2380 = vst.msk [vmem:[#allocation2 + $0xe0] sm:$0xff] %vm408_vm5, %v2347_v35 }
 0x4d3   :  { %v2411_v4 = vpop.permute.xlu0 %2410  ;;  %v2349_v2 = vpop.permute.xlu1 %2348 }
 0x4d4   :  { %2444 = vst.msk [vmem:[#allocation2 + $0xe0] sm:$0xff] %vm473_vm6, %v2411_v4 }
 0x4d5   :  { %2381 = vst.msk [vmem:[#allocation2 + $0xf0] sm:$0xff] %vm408_vm5, %v2349_v2  ;;  %2927 = vmatmul.mubr.bf16.gmra.mxu0 %v2758_v30 }
 0x4d6   :  { %2445 = vst.msk [vmem:[#allocation2 + $0xf0] sm:$0xff] %vm473_vm6, %v2413_v6  ;;  %11349 = vmatprep.mubr.msk.bf16.mxu0 %vm132_vm0, %v2761_v55 }
 0x4d7   :  { %v2475_v25 = vpop.permute.xlu0 %2474  ;;  %v2477_v60 = vpop.permute.xlu1 %2476 }
 0x4d8   :  { %2508 = vst.msk [vmem:[#allocation2 + $0xe0] sm:$0xff] %vm538_vm7, %v2475_v25  ;;  %2509 = vst.msk [vmem:[#allocation2 + $0xf0] sm:$0xff] %vm538_vm7, %v2477_v60 }
 0x4db   :  { %v2539_v23 = vpop.permute.xlu0 %2538  ;;  %v2541_v53 = vpop.permute.xlu1 %2540 }
 0x4dc   :  { %2572 = vst.msk [vmem:[#allocation2 + $0xe0] sm:$0xff] %vm603_vm8, %v2539_v23  ;;  %2573 = vst.msk [vmem:[#allocation2 + $0xf0] sm:$0xff] %vm603_vm8, %v2541_v53 }
 0x4dd   :  { %2935 = vmatmul.mubr.bf16.gmra.mxu0 %v2760_v46 }
 0x4de   :  { %11350 = vmatprep.mubr.msk.bf16.mxu0 %vm132_vm0, %v2763_v54 }
 0x4df   :  { %v2603_v37 = vpop.permute.xlu0 %2602  ;;  %v2605_v33 = vpop.permute.xlu1 %2604 }
 0x4e0   :  { %2636 = vst.msk [vmem:[#allocation2 + $0xe0] sm:$0xff] %vm668_vm9, %v2603_v37  ;;  %2637 = vst.msk [vmem:[#allocation2 + $0xf0] sm:$0xff] %vm668_vm9, %v2605_v33 }
 0x4e5   :  { %2943 = vmatmul.mubr.bf16.gmra.mxu0 %v2762_v38 }
 0x4e6   :  { %11351 = vmatprep.mubr.msk.bf16.mxu0 %vm132_vm0, %v2765_v28 }
 0x4e7   :  { %v2682_v17 = vld [vmem:[#allocation2 + $0xe0] sm:$0xff]  ;;  %v2684_v18 = vld [vmem:[#allocation2 + $0xf0] sm:$0xff] }
 0x4e8   :  { %v2746_v22 = vmul.f32 %v2714_v62, %v2682_v17  ;;  %v2748_v42 = vmul.f32 %v2716_v58, %v2684_v18 }
 0x4ea   :  { %v2764_v6 = vpack.c.bf16 %v2748_v42, %v2746_v22 }
 0x4ed   :  { %2951 = vmatmul.mubr.bf16.gmra.mxu0 %v2764_v6 }
 0x4ee   :  { %4128 = vmatprep.mubr.bf16.mxu0 %v19760_v59 }
 0x575   :  { %v2896_v15 = vpop.f32.mrf.mxu0 }
 0x576   :  { %v2967_v1 = vmul.f32 %v15126_v16, %v2896_v15 }
 0x577   :  { %v2898_v52 = vpop.f32.mrf.mxu0 }
 0x578   :  { %v2991_v24 = vadd.f32 %v15131_v21, %v2967_v1 }
 0x579   :  { %v2899_v41 = vpop.f32.mrf.mxu0 }
 0x57a   :  { %v3007_v43 = vmax.f32 %v2991_v24, 0.0  ;;  %v2968_v11 = vmul.f32 %v15126_v16, %v2899_v41  ;;  %v3664_v24 = vld [vmem:[%s19838_s7 + $0x8] sm:$0xff]  ;;  %v3666_v41 = vld [vmem:[%s19838_s7 + $0x18] sm:$0xff] }
 0x57b   :  { %v2901_v32 = vpop.f32.mrf.mxu0 }
 0x57c   :  { %v15137_v48 = vmul.f32 %v3007_v43, %v13698_v49  ;;  %v2992_v56 = vadd.f32 %v15131_v21, %v2968_v11 }
 0x57d   :  { %v2904_v35 = vpop.f32.mrf.mxu0 }
 0x57e   :  { %v3008_v29 = vmax.f32 %v2992_v56, 0.0  ;;  %v2969_v40 = vmul.f32 %v15126_v16, %v2904_v35  ;;  %3359 = vrot.lane.b32.xlu0 %v15137_v48, %s19848_s21  ;;  %3105 = vrot.lane.b32.xlu1 %v15137_v48, %s19842_s27  ;;  %v3167_v2 = vrot.slane %v15137_v48, 1  ;;  %v3039_v55 = vrot.slane %v15137_v48, 7 }
 0x57f   :  { %v2906_v47 = vpop.f32.mrf.mxu0 }
 0x580   :  { %v3024_v30 = vmul.f32 %v3008_v29, %v13698_v49  ;;  %v2993_v0 = vadd.f32 %v15131_v21, %v2969_v40 }
 0x581   :  { %v2907_v4 = vpop.f32.mrf.mxu0 }
 0x582   :  { %v3009_v44 = vmax.f32 %v2993_v0, 0.0  ;;  %v2970_v12 = vmul.f32 %v15126_v16, %v2907_v4  ;;  %3551 = vrot.lane.b32.xlu0 %v3024_v30, %s19839_s30  ;;  %3361 = vrot.lane.b32.xlu1 %v3024_v30, %s19848_s21  ;;  %v3168_v5 = vrot.slane %v3024_v30, 1  ;;  %v3040_v50 = vrot.slane %v3024_v30, 7 }
 0x583   :  { %v2909_v39 = vpop.f32.mrf.mxu0 }
 0x584   :  { %v3025_v34 = vmul.f32 %v3009_v44, %v13698_v49  ;;  %v2994_v36 = vadd.f32 %v15131_v21, %v2970_v12  ;;  %v3197_v31 = vsel %vm246_vm1, %v3167_v2, %v3168_v5  ;;  %v3069_v19 = vsel %vm115_vm2, %v3039_v55, %v3040_v50 }
 0x585   :  { %v2912_v25 = vpop.f32.mrf.mxu0  ;;  %3630 = vst.msk [vmem:[#allocation2 + $0xf8] sm:$0xff] %vm132_vm0, %v3197_v31  ;;  %3073 = vst.msk [vmem:[#allocation2 + $0x20] sm:$0xff] %vm132_vm0, %v3069_v19 }
 0x586   :  { %v3010_v60 = vmax.f32 %v2994_v36, 0.0  ;;  %v2971_v26 = vmul.f32 %v15126_v16, %v2912_v25  ;;  %3107 = vrot.lane.b32.xlu0 %v3024_v30, %s19842_s27  ;;  %3217 = vrot.lane.b32.xlu1 %v3197_v31, %s19843_s2  ;;  %v3169_v45 = vrot.slane %v3025_v34, 1  ;;  %v3041_v46 = vrot.slane %v3025_v34, 7 }
 0x587   :  { %v2914_v13 = vpop.f32.mrf.mxu0 }
 0x588   :  { %v15168_v23 = vmul.f32 %v3010_v60, %v13698_v49  ;;  %v2995_v53 = vadd.f32 %v15131_v21, %v2971_v26  ;;  %v3196_v54 = vsel %vm246_vm1, %v3168_v5, %v3169_v45  ;;  %v15175_v61 = vsel %vm115_vm2, %v3040_v50, %v3041_v46 }
 0x589   :  { %v2915_v27 = vpop.f32.mrf.mxu0  ;;  %3615 = vst.msk [vmem:[#allocation2 + $0x8] sm:$0xff] %vm132_vm0, %v3196_v54  ;;  %3074 = vst.msk [vmem:[#allocation2 + $0x30] sm:$0xff] %vm132_vm0, %v15175_v61 }
 0x58a   :  { %v3011_v57 = vmax.f32 %v2995_v53, 0.0  ;;  %v2972_v3 = vmul.f32 %v15126_v16, %v2915_v27  ;;  %3423 = vrot.lane.b32.xlu0 %v3197_v31, %s19844_s29  ;;  %3297 = vrot.lane.b32.xlu1 %v3069_v19, %s19845_s1  ;;  %v3170_v63 = vrot.slane %v15168_v23, 1  ;;  %v3042_v14 = vrot.slane %v15168_v23, 7 }
 0x58b   :  { %v2917_v7 = vpop.f32.mrf.mxu0 }
 0x58c   :  { %v15186_v10 = vmul.f32 %v3011_v57, %v13698_v49  ;;  %v2996_v20 = vadd.f32 %v15131_v21, %v2972_v3  ;;  %v15191_v37 = vsel %vm246_vm1, %v3169_v45, %v3170_v63  ;;  %v15195_v33 = vsel %vm115_vm2, %v3041_v46, %v3042_v14 }
 0x58d   :  { %v2920_v8 = vpop.f32.mrf.mxu0  ;;  %3616 = vst.msk [vmem:[#allocation2 + $0x18] sm:$0xff] %vm132_vm0, %v15191_v37  ;;  %3075 = vst.msk [vmem:[#allocation2 + $0x40] sm:$0xff] %vm132_vm0, %v15195_v33 }
 0x58e   :  { %v3012_v51 = vmax.f32 %v2996_v20, 0.0  ;;  %v2973_v38 = vmul.f32 %v15126_v16, %v2920_v8  ;;  %3487 = vrot.lane.b32.xlu0 %v3069_v19, %s19846_s28  ;;  %3553 = vrot.lane.b32.xlu1 %v3025_v34, %s19839_s30  ;;  %v3171_v28 = vrot.slane %v15186_v10, 1  ;;  %v3043_v62 = vrot.slane %v15186_v10, 7 }
 0x58f   :  { %v2922_v58 = vpop.f32.mrf.mxu0 }
 0x590   :  { %v15207_v17 = vmul.f32 %v3012_v51, %v13698_v49  ;;  %v2997_v18 = vadd.f32 %v15131_v21, %v2973_v38  ;;  %v15212_v22 = vsel %vm246_vm1, %v3170_v63, %v3171_v28  ;;  %v15216_v42 = vsel %vm115_vm2, %v3042_v14, %v3043_v62  ;;  %v3632_v52 = vld [vmem:[#allocation2 + $0x8] sm:$0xff] }
 0x591   :  { %v2923_v6 = vpop.f32.mrf.mxu0  ;;  %3617 = vst.msk [vmem:[#allocation2 + $0x28] sm:$0xff] %vm132_vm0, %v15212_v22  ;;  %3076 = vst.msk [vmem:[#allocation2 + $0x50] sm:$0xff] %vm132_vm0, %v15216_v42  ;;  %v3696_v0 = vmul.f32 %v3664_v24, %v3632_v52 }
 0x592   :  { %v3013_v15 = vmax.f32 %v2997_v18, 0.0  ;;  %v2974_v1 = vmul.f32 %v15126_v16, %v2923_v6  ;;  %3363 = vrot.lane.b32.xlu0 %v3025_v34, %s19848_s21  ;;  %3109 = vrot.lane.b32.xlu1 %v3025_v34, %s19842_s27  ;;  %v3172_v43 = vrot.slane %v15207_v17, 1  ;;  %v3044_v11 = vrot.slane %v15207_v17, 7 }
 0x593   :  { %v2925_v32 = vpop.f32.mrf.mxu0 }
 0x594   :  { %v15234_v56 = vmul.f32 %v3013_v15, %v13698_v49  ;;  %v2998_v35 = vadd.f32 %v15131_v21, %v2974_v1  ;;  %v3634_v29 = vld [vmem:[#allocation2 + $0x18] sm:$0xff]  ;;  %v15239_v40 = vsel %vm246_vm1, %v3171_v28, %v3172_v43  ;;  %v15243_v47 = vsel %vm115_vm2, %v3043_v62, %v3044_v11 }
 0x595   :  { %v2928_v30 = vpop.f32.mrf.mxu0  ;;  %v3698_v4 = vmul.f32 %v3666_v41, %v3634_v29  ;;  %3618 = vst.msk [vmem:[#allocation2 + $0x38] sm:$0xff] %vm132_vm0, %v15239_v40  ;;  %3077 = vst.msk [vmem:[#allocation2 + $0x60] sm:$0xff] %vm132_vm0, %v15243_v47 }
 0x596   :  { %v3014_v44 = vmax.f32 %v2998_v35, 0.0  ;;  %v2975_v12 = vmul.f32 %v15126_v16, %v2928_v30  ;;  %3219 = vrot.lane.b32.xlu0 %v3196_v54, %s19843_s2  ;;  %3425 = vrot.lane.b32.xlu1 %v3196_v54, %s19844_s29  ;;  %v3173_v5 = vrot.slane %v15234_v56, 1  ;;  %v3045_v50 = vrot.slane %v15234_v56, 7 }
 0x597   :  { %v2930_v39 = vpop.f32.mrf.mxu0  ;;  %v3728_v34 = vpack.c.bf16 %v3698_v4, %v3696_v0 }
 0x598   :  { %v15255_v36 = vmul.f32 %v3014_v44, %v13698_v49  ;;  %v2999_v31 = vadd.f32 %v15131_v21, %v2975_v12  ;;  %v15260_v19 = vsel %vm246_vm1, %v3172_v43, %v3173_v5  ;;  %v15264_v25 = vsel %vm115_vm2, %v3044_v11, %v3045_v50 }
 0x599   :  { %v2931_v60 = vpop.f32.mrf.mxu0  ;;  %11365 = vmatprep.mubr.msk.bf16.mxu1 %vm132_vm0, %v3728_v34  ;;  %3619 = vst.msk [vmem:[#allocation2 + $0x48] sm:$0xff] %vm132_vm0, %v15260_v19  ;;  %3078 = vst.msk [vmem:[#allocation2 + $0x70] sm:$0xff] %vm132_vm0, %v15264_v25 }
 0x59a   :  { %v3015_v26 = vmax.f32 %v2999_v31, 0.0  ;;  %v2976_v45 = vmul.f32 %v15126_v16, %v2931_v60  ;;  %3299 = vrot.lane.b32.xlu0 %v15175_v61, %s19845_s1  ;;  %3489 = vrot.lane.b32.xlu1 %v15175_v61, %s19846_s28  ;;  %v3174_v46 = vrot.slane %v15255_v36, 1  ;;  %v3046_v13 = vrot.slane %v15255_v36, 7 }
 0x59b   :  { %v2933_v53 = vpop.f32.mrf.mxu0 }
 0x59c   :  { %v15279_v54 = vmul.f32 %v3015_v26, %v13698_v49  ;;  %v3000_v27 = vadd.f32 %v15131_v21, %v2976_v45  ;;  %v15284_v57 = vsel %vm246_vm1, %v3173_v5, %v3174_v46  ;;  %v15288_v3 = vsel %vm115_vm2, %v3045_v50, %v3046_v13 }
 0x59d   :  { %v2936_v63 = vpop.f32.mrf.mxu0  ;;  %3620 = vst.msk [vmem:[#allocation2 + $0x58] sm:$0xff] %vm132_vm0, %v15284_v57  ;;  %3079 = vst.msk [vmem:[#allocation2 + $0x80] sm:$0xff] %vm132_vm0, %v15288_v3 }
 0x59e   :  { %v3016_v61 = vmax.f32 %v3000_v27, 0.0  ;;  %v2977_v14 = vmul.f32 %v15126_v16, %v2936_v63  ;;  %3555 = vrot.lane.b32.xlu0 %v15168_v23, %s19839_s30  ;;  %3365 = vrot.lane.b32.xlu1 %v15168_v23, %s19848_s21  ;;  %v3175_v7 = vrot.slane %v15279_v54, 1  ;;  %v3047_v20 = vrot.slane %v15279_v54, 7 }
 0x59f   :  { %v2938_v8 = vpop.f32.mrf.mxu0 }
 0x5a0   :  { %v15302_v51 = vmul.f32 %v3016_v61, %v13698_v49  ;;  %v3001_v38 = vadd.f32 %v15131_v21, %v2977_v14  ;;  %v15307_v28 = vsel %vm246_vm1, %v3174_v46, %v3175_v7  ;;  %v15311_v62 = vsel %vm115_vm2, %v3046_v13, %v3047_v20 }
 0x5a1   :  { %v2939_v58 = vpop.f32.mrf.mxu0  ;;  %3621 = vst.msk [vmem:[#allocation2 + $0x68] sm:$0xff] %vm132_vm0, %v15307_v28  ;;  %3080 = vst.msk [vmem:[#allocation2 + $0x90] sm:$0xff] %vm132_vm0, %v15311_v62 }
 0x5a2   :  { %v3017_v18 = vmax.f32 %v3001_v38, 0.0  ;;  %v2978_v6 = vmul.f32 %v15126_v16, %v2939_v58  ;;  %3111 = vrot.lane.b32.xlu0 %v15168_v23, %s19842_s27  ;;  %3221 = vrot.lane.b32.xlu1 %v15191_v37, %s19843_s2  ;;  %v3176_v15 = vrot.slane %v15302_v51, 1  ;;  %v3048_v1 = vrot.slane %v15302_v51, 7 }
 0x5a3   :  { %v2941_v52 = vpop.f32.mrf.mxu0 }
 0x5a4   :  { %v15325_v24 = vmul.f32 %v3017_v18, %v13698_v49  ;;  %v3002_v41 = vadd.f32 %v15131_v21, %v2978_v6  ;;  %v15330_v43 = vsel %vm246_vm1, %v3175_v7, %v3176_v15  ;;  %v15334_v23 = vsel %vm115_vm2, %v3047_v20, %v3048_v1 }
 0x5a5   :  { %v2944_v11 = vpop.f32.mrf.mxu0  ;;  %3622 = vst.msk [vmem:[#allocation2 + $0x78] sm:$0xff] %vm132_vm0, %v15330_v43  ;;  %3081 = vst.msk [vmem:[#allocation2 + $0xa0] sm:$0xff] %vm132_vm0, %v15334_v23 }
 0x5a6   :  { %v3018_v32 = vmax.f32 %v3002_v41, 0.0  ;;  %v2979_v35 = vmul.f32 %v15126_v16, %v2944_v11  ;;  %3427 = vrot.lane.b32.xlu0 %v15191_v37, %s19844_s29  ;;  %3301 = vrot.lane.b32.xlu1 %v15195_v33, %s19845_s1  ;;  %v3177_v29 = vrot.slane %v15325_v24, 1  ;;  %v3049_v30 = vrot.slane %v15325_v24, 7 }
 0x5a7   :  { %v2946_v0 = vpop.f32.mrf.mxu0 }
 0x5a8   :  { %v15348_v4 = vmul.f32 %v3018_v32, %v13698_v49  ;;  %v3003_v44 = vadd.f32 %v15131_v21, %v2979_v35  ;;  %v15353_v12 = vsel %vm246_vm1, %v3176_v15, %v3177_v29  ;;  %v15357_v37 = vsel %vm115_vm2, %v3048_v1, %v3049_v30 }
 0x5a9   :  { %v2947_v5 = vpop.f32.mrf.mxu0  ;;  %3623 = vst.msk [vmem:[#allocation2 + $0x88] sm:$0xff] %vm132_vm0, %v15353_v12  ;;  %3082 = vst.msk [vmem:[#allocation2 + $0xb0] sm:$0xff] %vm132_vm0, %v15357_v37 }
 0x5aa   :  { %v3019_v50 = vmax.f32 %v3003_v44, 0.0  ;;  %v2980_v39 = vmul.f32 %v15126_v16, %v2947_v5  ;;  %3491 = vrot.lane.b32.xlu0 %v15195_v33, %s19846_s28  ;;  %3557 = vrot.lane.b32.xlu1 %v15186_v10, %s19839_s30  ;;  %v3178_v34 = vrot.slane %v15348_v4, 1  ;;  %v3050_v31 = vrot.slane %v15348_v4, 7 }
 0x5ab   :  { %v2949_v60 = vpop.f32.mrf.mxu0 }
 0x5ac   :  { %v15371_v26 = vmul.f32 %v3019_v50, %v13698_v49  ;;  %v3004_v45 = vadd.f32 %v15131_v21, %v2980_v39  ;;  %v15376_v46 = vsel %vm246_vm1, %v3177_v29, %v3178_v34  ;;  %v15380_v33 = vsel %vm115_vm2, %v3049_v30, %v3050_v31 }
 0x5ad   :  { %v2952_v13 = vpop.f32.mrf.mxu0  ;;  %3624 = vst.msk [vmem:[#allocation2 + $0x98] sm:$0xff] %vm132_vm0, %v15376_v46  ;;  %3083 = vst.msk [vmem:[#allocation2 + $0xc0] sm:$0xff] %vm132_vm0, %v15380_v33 }
 0x5ae   :  { %v3020_v53 = vmax.f32 %v3004_v45, 0.0  ;;  %v2981_v27 = vmul.f32 %v15126_v16, %v2952_v13  ;;  %3367 = vrot.lane.b32.xlu0 %v15186_v10, %s19848_s21  ;;  %3113 = vrot.lane.b32.xlu1 %v15186_v10, %s19842_s27  ;;  %v3179_v63 = vrot.slane %v15371_v26, 1  ;;  %v3051_v61 = vrot.slane %v15371_v26, 7  ;;  %v12304_v45 = vld [vmem:[%s19850_s6 + $0x10] sm:$0xff]  }
 0x5af   :  { %v2954_v14 = vpop.f32.mrf.mxu0 }
 0x5b0   :  { %v15394_v7 = vmul.f32 %v3020_v53, %v13698_v49  ;;  %v3005_v20 = vadd.f32 %v15131_v21, %v2981_v27  ;;  %v15399_v8 = vsel %vm246_vm1, %v3178_v34, %v3179_v63  ;;  %v15403_v38 = vsel %vm115_vm2, %v3050_v31, %v3051_v61  ;;  %v12303_v31 = vld [vmem:[%s19850_s6 + $0x18] sm:$0xff]   ;;  %v12305_v27 = vld [vmem:[%s19850_s6 + $0x8] sm:$0xff]  }
 0x5b1   :  { %v2955_v58 = vpop.f32.mrf.mxu0  ;;  %3625 = vst.msk [vmem:[#allocation2 + $0xa8] sm:$0xff] %vm132_vm0, %v15399_v8  ;;  %3084 = vst.msk [vmem:[#allocation2 + $0xd0] sm:$0xff] %vm132_vm0, %v15403_v38 }
 0x5b2   :  { %v3021_v10 = vmax.f32 %v3005_v20, 0.0  ;;  %v2982_v18 = vmul.f32 %v15126_v16, %v2955_v58  ;;  %3223 = vrot.lane.b32.xlu0 %v15212_v22, %s19843_s2  ;;  %3429 = vrot.lane.b32.xlu1 %v15212_v22, %s19844_s29  ;;  %v3180_v6 = vrot.slane %v15394_v7, 1  ;;  %v3052_v15 = vrot.slane %v15394_v7, 7  ;;  %v12307_v20 = vld [vmem:[%s19850_s6 + $0x40] sm:$0xff]  }
 0x5b3   :  { %v2957_v1 = vpop.f32.mrf.mxu0 }
 0x5b4   :  { %v15417_v52 = vmul.f32 %v3021_v10, %v13698_v49  ;;  %v3006_v41 = vadd.f32 %v15131_v21, %v2982_v18  ;;  %v15422_v11 = vsel %vm246_vm1, %v3179_v63, %v3180_v6  ;;  %v15426_v16 = vsel %vm115_vm2, %v3051_v61, %v3052_v15  ;;  %v12306_v61 = vld [vmem:[%s19850_s6] sm:$0xff]  }
 0x5b5   :  { %3626 = vst.msk [vmem:[#allocation2 + $0xb8] sm:$0xff] %vm132_vm0, %v15422_v11  ;;  %3085 = vst.msk [vmem:[#allocation2 + $0xe0] sm:$0xff] %vm132_vm0, %v15426_v16 }
 0x5b6   :  { %v3022_v22 = vmax.f32 %v3006_v41, 0.0  ;;  %3303 = vrot.lane.b32.xlu0 %v15216_v42, %s19845_s1  ;;  %3493 = vrot.lane.b32.xlu1 %v15216_v42, %s19846_s28  ;;  %v3181_v21 = vrot.slane %v15417_v52, 1  ;;  %v3053_v32 = vrot.slane %v15417_v52, 7 }
 0x5b8   :  { %v15439_v35 = vmul.f32 %v3022_v22, %v13698_v49  ;;  %v15443_v29 = vsel %vm246_vm1, %v3180_v6, %v3181_v21  ;;  %v15447_v30 = vsel %vm115_vm2, %v3052_v15, %v3053_v32 }
 0x5b9   :  { %3627 = vst.msk [vmem:[#allocation2 + $0xc8] sm:$0xff] %vm132_vm0, %v15443_v29  ;;  %3086 = vst.msk [vmem:[#allocation2 + $0xf0] sm:$0xff] %vm132_vm0, %v15447_v30 }
 0x5ba   :  { %3559 = vrot.lane.b32.xlu0 %v15207_v17, %s19839_s30  ;;  %3369 = vrot.lane.b32.xlu1 %v15207_v17, %s19848_s21  ;;  %v3054_v42 = vrot.slane %v15439_v35, 7  ;;  %v3182_v0 = vrot.slane %v15439_v35, 1 }
 0x5bc   :  { %v15463_v44 = vsel %vm115_vm2, %v3054_v42, %v3039_v55  ;;  %v15469_v5 = vsel %vm246_vm1, %v3182_v0, %v3167_v2  ;;  %v15473_v50 = vsel %vm246_vm1, %v3181_v21, %v3182_v0  ;;  %v15477_v39 = vsel %vm115_vm2, %v3053_v32, %v3054_v42 }
 0x5bd   :  { %3072 = vst.msk [vmem:[#allocation2 + $0x10] sm:$0xff] %vm132_vm0, %v15463_v44  ;;  %3629 = vst.msk [vmem:[#allocation2 + $0xe8] sm:$0xff] %vm132_vm0, %v15469_v5 }
 0x5be   :  { %3628 = vst.msk [vmem:[#allocation2 + $0xd8] sm:$0xff] %vm132_vm0, %v15473_v50  ;;  %3071 = vst.msk [vmem:[#allocation2] sm:$0xff] %vm132_vm0, %v15477_v39  ;;  %3115 = vrot.lane.b32.xlu0 %v15207_v17, %s19842_s27  ;;  %3225 = vrot.lane.b32.xlu1 %v15239_v40, %s19843_s2 }
 0x5c2   :  { %3431 = vrot.lane.b32.xlu0 %v15239_v40, %s19844_s29  ;;  %3305 = vrot.lane.b32.xlu1 %v15243_v47, %s19845_s1 }
 0x5c6   :  { %3495 = vrot.lane.b32.xlu0 %v15243_v47, %s19846_s28  ;;  %3561 = vrot.lane.b32.xlu1 %v15234_v56, %s19839_s30 }
 0x5ca   :  { %3371 = vrot.lane.b32.xlu0 %v15234_v56, %s19848_s21  ;;  %3117 = vrot.lane.b32.xlu1 %v15234_v56, %s19842_s27 }
 0x5ce   :  { %3227 = vrot.lane.b32.xlu0 %v15260_v19, %s19843_s2  ;;  %3433 = vrot.lane.b32.xlu1 %v15260_v19, %s19844_s29 }
 0x5d2   :  { %3307 = vrot.lane.b32.xlu0 %v15264_v25, %s19845_s1  ;;  %3497 = vrot.lane.b32.xlu1 %v15264_v25, %s19846_s28  ;;  %v12299_v25 = vld [vmem:[%s19850_s6 + $0x38] sm:$0xff]  }
 0x5d3   :  { %3840 = vmatpush1.bf16.msra.mxu1 %v12299_v25 }
 0x5d4   :  { %3841 = vmatprep.subr.bf16.mxu1 %v19760_v59 }
 0x5d6   :  { %3563 = vrot.lane.b32.xlu0 %v15255_v36, %s19839_s30  ;;  %3373 = vrot.lane.b32.xlu1 %v15255_v36, %s19848_s21 }
 0x5da   :  { %3119 = vrot.lane.b32.xlu0 %v15255_v36, %s19842_s27  ;;  %3229 = vrot.lane.b32.xlu1 %v15284_v57, %s19843_s2 }
 0x5de   :  { %3435 = vrot.lane.b32.xlu0 %v15284_v57, %s19844_s29  ;;  %3309 = vrot.lane.b32.xlu1 %v15288_v3, %s19845_s1 }
 0x5e2   :  { %3499 = vrot.lane.b32.xlu0 %v15288_v3, %s19846_s28  ;;  %3565 = vrot.lane.b32.xlu1 %v15279_v54, %s19839_s30  ;;  %v12300_v3 = vld [vmem:[%s19850_s6 + $0x30] sm:$0xff]  }
 0x5e3   :  { %3842 = vmatpush1.bf16.msra.mxu1 %v12300_v3 }
 0x5e4   :  { %3843 = vmatprep.subr.bf16.mxu1 %v19760_v59 }
 0x5e6   :  { %3375 = vrot.lane.b32.xlu0 %v15279_v54, %s19848_s21  ;;  %3121 = vrot.lane.b32.xlu1 %v15279_v54, %s19842_s27 }
 0x5ea   :  { %3231 = vrot.lane.b32.xlu0 %v15307_v28, %s19843_s2  ;;  %3437 = vrot.lane.b32.xlu1 %v15307_v28, %s19844_s29 }
 0x5ee   :  { %3311 = vrot.lane.b32.xlu0 %v15311_v62, %s19845_s1  ;;  %3501 = vrot.lane.b32.xlu1 %v15311_v62, %s19846_s28  ;;  %v12301_v62 = vld [vmem:[%s19850_s6 + $0x28] sm:$0xff]  }
 0x5ef   :  { %3844 = vmatpush1.bf16.msra.mxu1 %v12301_v62 }
 0x5f0   :  { %v15539_v2 = vpop.permute.xlu0 %3359  ;;  %v3106_v55 = vpop.permute.xlu1 %3105  ;;  %3845 = vmatprep.subr.bf16.mxu1 %v19760_v59 }
 0x5f1   :  { %3152 = vst.msk [vmem:[#allocation2 + $0x10] sm:$0xff] %vm213_vm3, %v3106_v55 }
 0x5f2   :  { %3567 = vrot.lane.b32.xlu0 %v15302_v51, %s19839_s30  ;;  %3377 = vrot.lane.b32.xlu1 %v15302_v51, %s19848_s21 }
 0x5f4   :  { %v15546_v17 = vpop.permute.xlu0 %3551  ;;  %v3362_v56 = vpop.permute.xlu1 %3361 }
 0x5f6   :  { %3123 = vrot.lane.b32.xlu0 %v15302_v51, %s19842_s27  ;;  %3233 = vrot.lane.b32.xlu1 %v15330_v43, %s19843_s2 }
 0x5f8   :  { %v3108_v40 = vpop.permute.xlu0 %3107  ;;  %v3218_v47 = vpop.permute.xlu1 %3217 }
 0x5f9   :  { %3153 = vst.msk [vmem:[#allocation2 + $0x20] sm:$0xff] %vm213_vm3, %v3108_v40 }
 0x5fa   :  { %3264 = vst.msk [vmem:[#allocation2 + $0x10] sm:$0xff] %vm327_vm4, %v3218_v47  ;;  %3439 = vrot.lane.b32.xlu0 %v15330_v43, %s19844_s29  ;;  %3313 = vrot.lane.b32.xlu1 %v15334_v23, %s19845_s1 }
 0x5fc   :  { %v15558_v36 = vpop.permute.xlu0 %3423  ;;  %v3298_v19 = vpop.permute.xlu1 %3297 }
 0x5fd   :  { %3344 = vst.msk [vmem:[#allocation2 + $0x10] sm:$0xff] %vm408_vm5, %v3298_v19 }
 0x5fe   :  { %3408 = vst.msk [vmem:[#allocation2 + $0x10] sm:$0xff] %vm473_vm6, %v3362_v56  ;;  %3503 = vrot.lane.b32.xlu0 %v15334_v23, %s19846_s28  ;;  %3569 = vrot.lane.b32.xlu1 %v15325_v24, %s19839_s30  ;;  %v12302_v23 = vld [vmem:[%s19850_s6 + $0x20] sm:$0xff]  }
 0x5ff   :  { %3846 = vmatpush1.bf16.msra.mxu1 %v12302_v23 }
 0x600   :  { %v15569_v54 = vpop.permute.xlu0 %3487  ;;  %v3554_v57 = vpop.permute.xlu1 %3553  ;;  %3847 = vmatprep.subr.bf16.mxu1 %v19760_v59 }
 0x602   :  { %3379 = vrot.lane.b32.xlu0 %v15325_v24, %s19848_s21  ;;  %3125 = vrot.lane.b32.xlu1 %v15325_v24, %s19842_s27 }
 0x603   :  { %3848 = vmatpush1.bf16.msra.mxu1 %v12303_v31 }
 0x604   :  { %v3364_v51 = vpop.permute.xlu0 %3363  ;;  %v3110_v28 = vpop.permute.xlu1 %3109  ;;  %3849 = vmatprep.subr.bf16.mxu1 %v19760_v59 }
 0x605   :  { %3154 = vst.msk [vmem:[#allocation2 + $0x30] sm:$0xff] %vm213_vm3, %v3110_v28  ;;  %v15752_v28 = vld [vmem:[%s19724_s9 + $0x28] sm:$0xff] }
 0x606   :  { %3235 = vrot.lane.b32.xlu0 %v15353_v12, %s19843_s2  ;;  %3441 = vrot.lane.b32.xlu1 %v15353_v12, %s19844_s29 }
 0x607   :  { %3850 = vmatpush1.bf16.msra.mxu1 %v12304_v45 }
 0x608   :  { %v3220_v43 = vpop.permute.xlu0 %3219  ;;  %v3426_v24 = vpop.permute.xlu1 %3425  ;;  %3851 = vmatprep.subr.bf16.mxu1 %v19760_v59 }
 0x609   :  { %3265 = vst.msk [vmem:[#allocation2 + $0x20] sm:$0xff] %vm327_vm4, %v3220_v43 }
 0x60a   :  { %3472 = vst.msk [vmem:[#allocation2 + $0x10] sm:$0xff] %vm538_vm7, %v3426_v24  ;;  %3315 = vrot.lane.b32.xlu0 %v15357_v37, %s19845_s1  ;;  %3505 = vrot.lane.b32.xlu1 %v15357_v37, %s19846_s28 }
 0x60b   :  { %3852 = vmatpush1.bf16.msra.mxu1 %v12305_v27 }
 0x60c   :  { %v3300_v12 = vpop.permute.xlu0 %3299  ;;  %v3490_v34 = vpop.permute.xlu1 %3489  ;;  %3853 = vmatprep.subr.bf16.mxu1 %v19760_v59 }
 0x60d   :  { %3345 = vst.msk [vmem:[#allocation2 + $0x20] sm:$0xff] %vm408_vm5, %v3300_v12 }
 0x60e   :  { %3536 = vst.msk [vmem:[#allocation2 + $0x10] sm:$0xff] %vm603_vm8, %v3490_v34  ;;  %3381 = vrot.lane.b32.xlu1 %v15348_v4, %s19848_s21  ;;  %3443 = vrot.lane.b32.xlu0 %v15376_v46, %s19844_s29 }
 0x60f   :  { %3409 = vst.msk [vmem:[#allocation2 + $0x20] sm:$0xff] %vm473_vm6, %v3364_v51  ;;  %3854 = vmatpush1.bf16.msra.mxu1 %v12306_v61  ;;  %v15743_v51 = vld [vmem:[%s19724_s9 + $0x8] sm:$0xff] }
 0x610   :  { %3600 = vst.msk [vmem:[#allocation2 + $0x10] sm:$0xff] %vm668_vm9, %v3554_v57  ;;  %v3556_v37 = vpop.permute.xlu0 %3555  ;;  %v3366_v60 = vpop.permute.xlu1 %3365  ;;  %3869 = vmatprep.subr.bf16.mxu1 %v19760_v59  ;;  %v11379_v62 = vcombine.low %v15743_v51, %v15752_v28  ;;  %v11380_v43 = vcombine.high %v15743_v51, %v15752_v28 }
 0x612   :  { %3237 = vrot.lane.b32.xlu1 %v15376_v46, %s19843_s2  ;;  %3507 = vrot.lane.b32.xlu0 %v15380_v33, %s19846_s28 }
 0x613   :  { %3870 = vmatpush2.bf16.msra.mxu1 %v12307_v20 }
 0x614   :  { %v3112_v13 = vpop.permute.xlu0 %3111  ;;  %v3222_v53 = vpop.permute.xlu1 %3221  ;;  %4223 = vmatprep.subr.bf16.mxu1 %v11380_v43  ;;  %v3640_v43 = vld [vmem:[#allocation2 + $0x48] sm:$0xff] }
 0x615   :  { %3155 = vst.msk [vmem:[#allocation2 + $0x40] sm:$0xff] %vm213_vm3, %v3112_v13 }
 0x616   :  { %3266 = vst.msk [vmem:[#allocation2 + $0x30] sm:$0xff] %vm327_vm4, %v3222_v53  ;;  %3317 = vrot.lane.b32.xlu1 %v15380_v33, %s19845_s1  ;;  %3103 = vrot.lane.b32.xlu0 %v15439_v35, %s19842_s27 }
 0x618   :  { %v3428_v46 = vpop.permute.xlu0 %3427  ;;  %v3302_v63 = vpop.permute.xlu1 %3301 }
 0x619   :  { %3473 = vst.msk [vmem:[#allocation2 + $0x20] sm:$0xff] %vm538_vm7, %v3428_v46 }
 0x61a   :  { %3346 = vst.msk [vmem:[#allocation2 + $0x30] sm:$0xff] %vm408_vm5, %v3302_v63  ;;  %3445 = vrot.lane.b32.xlu1 %v15399_v8, %s19844_s29  ;;  %3215 = vrot.lane.b32.xlu0 %v15469_v5, %s19843_s2 }
 0x61b   :  { %3410 = vst.msk [vmem:[#allocation2 + $0x30] sm:$0xff] %vm473_vm6, %v3366_v60 }
 0x61c   :  { %v3492_v33 = vpop.permute.xlu0 %3491  ;;  %v3558_v14 = vpop.permute.xlu1 %3557 }
 0x61d   :  { %3537 = vst.msk [vmem:[#allocation2 + $0x20] sm:$0xff] %vm603_vm8, %v3492_v33 }
 0x61e   :  { %3601 = vst.msk [vmem:[#allocation2 + $0x20] sm:$0xff] %vm668_vm9, %v3556_v37  ;;  %3509 = vrot.lane.b32.xlu1 %v15403_v38, %s19846_s28  ;;  %3295 = vrot.lane.b32.xlu0 %v15463_v44, %s19845_s1 }
 0x620   :  { %v3368_v58 = vpop.permute.xlu0 %3367  ;;  %v3114_v10 = vpop.permute.xlu1 %3113 }
 0x621   :  { %3156 = vst.msk [vmem:[#allocation2 + $0x50] sm:$0xff] %vm213_vm3, %v3114_v10 }
 0x622   :  { %3573 = vrot.lane.b32.xlu1 %v15371_v26, %s19839_s30  ;;  %3571 = vrot.lane.b32.xlu0 %v15348_v4, %s19839_s30 }
 0x624   :  { %v3224_v18 = vpop.permute.xlu0 %3223  ;;  %v3430_v6 = vpop.permute.xlu1 %3429 }
 0x625   :  { %3267 = vst.msk [vmem:[#allocation2 + $0x40] sm:$0xff] %vm327_vm4, %v3224_v18 }
 0x626   :  { %3474 = vst.msk [vmem:[#allocation2 + $0x30] sm:$0xff] %vm538_vm7, %v3430_v6  ;;  %3129 = vrot.lane.b32.xlu1 %v15371_v26, %s19842_s27  ;;  %3127 = vrot.lane.b32.xlu0 %v15348_v4, %s19842_s27 }
 0x628   :  { %v3304_v15 = vpop.permute.xlu0 %3303  ;;  %v3494_v1 = vpop.permute.xlu1 %3493 }
 0x629   :  { %3347 = vst.msk [vmem:[#allocation2 + $0x40] sm:$0xff] %vm408_vm5, %v3304_v15 }
 0x62a   :  { %3538 = vst.msk [vmem:[#allocation2 + $0x30] sm:$0xff] %vm603_vm8, %v3494_v1  ;;  %3241 = vrot.lane.b32.xlu1 %v15422_v11, %s19843_s2  ;;  %3239 = vrot.lane.b32.xlu0 %v15399_v8, %s19843_s2 }
 0x62b   :  { %3411 = vst.msk [vmem:[#allocation2 + $0x40] sm:$0xff] %vm473_vm6, %v3368_v58 }
 0x62c   :  { %3602 = vst.msk [vmem:[#allocation2 + $0x30] sm:$0xff] %vm668_vm9, %v3558_v14  ;;  %v3560_v41 = vpop.permute.xlu0 %3559  ;;  %v3370_v22 = vpop.permute.xlu1 %3369 }
 0x62e   :  { %3321 = vrot.lane.b32.xlu1 %v15426_v16, %s19845_s1  ;;  %3319 = vrot.lane.b32.xlu0 %v15403_v38, %s19845_s1 }
 0x630   :  { %v3116_v4 = vpop.permute.xlu0 %3115  ;;  %v3226_v21 = vpop.permute.xlu1 %3225 }
 0x631   :  { %3157 = vst.msk [vmem:[#allocation2 + $0x60] sm:$0xff] %vm213_vm3, %v3116_v4 }
 0x632   :  { %3268 = vst.msk [vmem:[#allocation2 + $0x50] sm:$0xff] %vm327_vm4, %v3226_v21  ;;  %3385 = vrot.lane.b32.xlu1 %v15394_v7, %s19848_s21  ;;  %3383 = vrot.lane.b32.xlu0 %v15371_v26, %s19848_s21 }
 0x634   :  { %v3432_v8 = vpop.permute.xlu0 %3431  ;;  %v3306_v32 = vpop.permute.xlu1 %3305 }
 0x635   :  { %3475 = vst.msk [vmem:[#allocation2 + $0x40] sm:$0xff] %vm538_vm7, %v3432_v8 }
 0x636   :  { %3348 = vst.msk [vmem:[#allocation2 + $0x50] sm:$0xff] %vm408_vm5, %v3306_v32  ;;  %3449 = vrot.lane.b32.xlu1 %v15443_v29, %s19844_s29  ;;  %3447 = vrot.lane.b32.xlu0 %v15422_v11, %s19844_s29 }
 0x637   :  { %3412 = vst.msk [vmem:[#allocation2 + $0x50] sm:$0xff] %vm473_vm6, %v3370_v22 }
 0x638   :  { %v3496_v38 = vpop.permute.xlu0 %3495  ;;  %v3562_v42 = vpop.permute.xlu1 %3561 }
 0x639   :  { %3539 = vst.msk [vmem:[#allocation2 + $0x40] sm:$0xff] %vm603_vm8, %v3496_v38 }
 0x63a   :  { %3603 = vst.msk [vmem:[#allocation2 + $0x40] sm:$0xff] %vm668_vm9, %v3560_v41  ;;  %3513 = vrot.lane.b32.xlu1 %v15447_v30, %s19846_s28  ;;  %3511 = vrot.lane.b32.xlu0 %v15426_v16, %s19846_s28 }
 0x63c   :  { %v3372_v26 = vpop.permute.xlu0 %3371  ;;  %v3118_v0 = vpop.permute.xlu1 %3117 }
 0x63d   :  { %3158 = vst.msk [vmem:[#allocation2 + $0x70] sm:$0xff] %vm213_vm3, %v3118_v0  ;;  %v3668_v0 = vld [vmem:[%s19838_s7 + $0x28] sm:$0xff] }
 0x63e   :  { %3577 = vrot.lane.b32.xlu1 %v15417_v52, %s19839_s30  ;;  %3575 = vrot.lane.b32.xlu0 %v15394_v7, %s19839_s30 }
 0x640   :  { %v3228_v11 = vpop.permute.xlu0 %3227  ;;  %v3434_v55 = vpop.permute.xlu1 %3433 }
 0x641   :  { %3269 = vst.msk [vmem:[#allocation2 + $0x60] sm:$0xff] %vm327_vm4, %v3228_v11 }
 0x642   :  { %3476 = vst.msk [vmem:[#allocation2 + $0x50] sm:$0xff] %vm538_vm7, %v3434_v55  ;;  %3133 = vrot.lane.b32.xlu1 %v15417_v52, %s19842_s27  ;;  %3131 = vrot.lane.b32.xlu0 %v15394_v7, %s19842_s27 }
 0x644   :  { %v3308_v16 = vpop.permute.xlu0 %3307  ;;  %v3498_v56 = vpop.permute.xlu1 %3497 }
 0x645   :  { %3349 = vst.msk [vmem:[#allocation2 + $0x60] sm:$0xff] %vm408_vm5, %v3308_v16 }
 0x646   :  { %3540 = vst.msk [vmem:[#allocation2 + $0x50] sm:$0xff] %vm603_vm8, %v3498_v56  ;;  %3389 = vrot.lane.b32.xlu1 %v15439_v35, %s19848_s21  ;;  %3243 = vrot.lane.b32.xlu0 %v15443_v29, %s19843_s2 }
 0x647   :  { %3413 = vst.msk [vmem:[#allocation2 + $0x60] sm:$0xff] %vm473_vm6, %v3372_v26  ;;  %v3636_v26 = vld [vmem:[#allocation2 + $0x28] sm:$0xff] }
 0x648   :  { %3604 = vst.msk [vmem:[#allocation2 + $0x50] sm:$0xff] %vm668_vm9, %v3562_v42  ;;  %v3564_v40 = vpop.permute.xlu0 %3563  ;;  %v3374_v47 = vpop.permute.xlu1 %3373  ;;  %v3665_v42 = vld [vmem:[%s19838_s7 + $0x10] sm:$0xff] }
 0x64a   :  { %3245 = vrot.lane.b32.xlu1 %v15473_v50, %s19843_s2  ;;  %3323 = vrot.lane.b32.xlu0 %v15447_v30, %s19845_s1 }
 0x64c   :  { %v3120_v7 = vpop.permute.xlu0 %3119  ;;  %v3230_v19 = vpop.permute.xlu1 %3229 }
 0x64d   :  { %3159 = vst.msk [vmem:[#allocation2 + $0x80] sm:$0xff] %vm213_vm3, %v3120_v7  ;;  %v3700_v7 = vmul.f32 %v3668_v0, %v3636_v26 }
 0x64e   :  { %3270 = vst.msk [vmem:[#allocation2 + $0x70] sm:$0xff] %vm327_vm4, %v3230_v19  ;;  %3387 = vrot.lane.b32.xlu0 %v15417_v52, %s19848_s21  ;;  %3325 = vrot.lane.b32.xlu1 %v15477_v39, %s19845_s1 }
 0x64f   :  { %v3641_v28 = vld [vmem:[#allocation2 + $0x50] sm:$0xff] }
 0x650   :  { %v3436_v29 = vpop.permute.xlu0 %3435  ;;  %v3310_v25 = vpop.permute.xlu1 %3309 }
 0x651   :  { %3477 = vst.msk [vmem:[#allocation2 + $0x60] sm:$0xff] %vm538_vm7, %v3436_v29 }
 0x652   :  { %3350 = vst.msk [vmem:[#allocation2 + $0x70] sm:$0xff] %vm408_vm5, %v3310_v25  ;;  %3451 = vrot.lane.b32.xlu0 %v15473_v50, %s19844_s29  ;;  %3453 = vrot.lane.b32.xlu1 %v15469_v5, %s19844_s29  ;;  %v4024_v5 = vld [vmem:[%s19724_s9] sm:$0xff] }
 0x653   :  { %3414 = vst.msk [vmem:[#allocation2 + $0x70] sm:$0xff] %vm473_vm6, %v3374_v47  ;;  %v4028_v50 = vld [vmem:[%s19724_s9 + $0x20] sm:$0xff] }
 0x654   :  { %v3500_v30 = vpop.permute.xlu0 %3499  ;;  %v3566_v57 = vpop.permute.xlu1 %3565 }
 0x655   :  { %3541 = vst.msk [vmem:[#allocation2 + $0x60] sm:$0xff] %vm603_vm8, %v3500_v30 }
 0x656   :  { %3605 = vst.msk [vmem:[#allocation2 + $0x60] sm:$0xff] %vm668_vm9, %v3564_v40  ;;  %3515 = vrot.lane.b32.xlu0 %v15477_v39, %s19846_s28  ;;  %3517 = vrot.lane.b32.xlu1 %v15463_v44, %s19846_s28  ;;  %v11377_v44 = vcombine.low %v4024_v5, %v4028_v50  ;;  %v11378_v39 = vcombine.high %v4024_v5, %v4028_v50  ;;  %v3674_v5 = vld [vmem:[%s19838_s7 + $0x58] sm:$0xff]  ;;  %v3635_v50 = vld [vmem:[#allocation2 + $0x20] sm:$0xff] }
 0x658   :  { %v3376_v52 = vpop.permute.xlu0 %3375  ;;  %v3122_v3 = vpop.permute.xlu1 %3121  ;;  %4110 = vmatprep.subr.bf16.mxu0 %v11378_v39 }
 0x659   :  { %3160 = vst.msk [vmem:[#allocation2 + $0x90] sm:$0xff] %vm213_vm3, %v3122_v3  ;;  %4111 = vmatpush1.bf16.msra.mxu0 %v11377_v44  ;;  %v3642_v3 = vld [vmem:[#allocation2 + $0x58] sm:$0xff]  ;;  %v3667_v44 = vld [vmem:[%s19838_s7 + $0x20] sm:$0xff] }
 0x65a   :  { %3579 = vrot.lane.b32.xlu0 %v15439_v35, %s19839_s30  ;;  %3581 = vrot.lane.b32.xlu1 %v15137_v48, %s19839_s30 }
 0x65c   :  { %v3232_v24 = vpop.permute.xlu0 %3231  ;;  %v3438_v23 = vpop.permute.xlu1 %3437 }
 0x65d   :  { %3271 = vst.msk [vmem:[#allocation2 + $0x80] sm:$0xff] %vm327_vm4, %v3232_v24  ;;  %v3672_v24 = vld [vmem:[%s19838_s7 + $0x48] sm:$0xff] }
 0x65e   :  { %3478 = vst.msk [vmem:[#allocation2 + $0x70] sm:$0xff] %vm538_vm7, %v3438_v23 }
 0x660   :  { %v3312_v48 = vpop.permute.xlu0 %3311  ;;  %v3502_v35 = vpop.permute.xlu1 %3501 }
 0x661   :  { %3351 = vst.msk [vmem:[#allocation2 + $0x80] sm:$0xff] %vm408_vm5, %v3312_v48 }
 0x662   :  { %3542 = vst.msk [vmem:[#allocation2 + $0x70] sm:$0xff] %vm603_vm8, %v3502_v35  ;;  %v3706_v35 = vmul.f32 %v3674_v5, %v3642_v3 }
 0x663   :  { %3415 = vst.msk [vmem:[#allocation2 + $0x80] sm:$0xff] %vm473_vm6, %v3376_v52  ;;  %v3669_v52 = vld [vmem:[%s19838_s7 + $0x30] sm:$0xff] }
 0x664   :  { %3606 = vst.msk [vmem:[#allocation2 + $0x70] sm:$0xff] %vm668_vm9, %v3566_v57  ;;  %v3568_v12 = vpop.permute.xlu0 %3567  ;;  %v3378_v34 = vpop.permute.xlu1 %3377  ;;  %v3637_v57 = vld [vmem:[#allocation2 + $0x30] sm:$0xff] }
 0x665   :  { %v3701_v39 = vmul.f32 %v3669_v52, %v3637_v57  ;;  %v3652_v57 = vld [vmem:[#allocation2 + $0xa8] sm:$0xff] }
 0x666   :  { %v3684_v52 = vld [vmem:[%s19838_s7 + $0xa8] sm:$0xff] }
 0x668   :  { %v3124_v31 = vpop.permute.xlu0 %3123  ;;  %v3234_v37 = vpop.permute.xlu1 %3233 }
 0x669   :  { %3161 = vst.msk [vmem:[#allocation2 + $0xa0] sm:$0xff] %vm213_vm3, %v3124_v31 }
 0x66a   :  { %3272 = vst.msk [vmem:[#allocation2 + $0x90] sm:$0xff] %vm327_vm4, %v3234_v37 }
 0x66c   :  { %v3440_v60 = vpop.permute.xlu0 %3439  ;;  %v3314_v45 = vpop.permute.xlu1 %3313 }
 0x66d   :  { %3479 = vst.msk [vmem:[#allocation2 + $0x80] sm:$0xff] %vm538_vm7, %v3440_v60 }
 0x66e   :  { %3352 = vst.msk [vmem:[#allocation2 + $0x90] sm:$0xff] %vm408_vm5, %v3314_v45  ;;  %v3646_v45 = vld [vmem:[#allocation2 + $0x78] sm:$0xff] }
 0x66f   :  { %3416 = vst.msk [vmem:[#allocation2 + $0x90] sm:$0xff] %vm473_vm6, %v3378_v34  ;;  %v3704_v34 = vmul.f32 %v3672_v24, %v3640_v43  ;;  %v3683_v24 = vld [vmem:[%s19838_s7 + $0xa0] sm:$0xff] }
 0x670   :  { %v3504_v13 = vpop.permute.xlu0 %3503  ;;  %v3570_v53 = vpop.permute.xlu1 %3569 }
 0x671   :  { %3543 = vst.msk [vmem:[#allocation2 + $0x80] sm:$0xff] %vm603_vm8, %v3504_v13  ;;  %v3732_v51 = vpack.c.bf16 %v3706_v35, %v3704_v34  ;;  %v3678_v13 = vld [vmem:[%s19838_s7 + $0x78] sm:$0xff] }
 0x672   :  { %3607 = vst.msk [vmem:[#allocation2 + $0x80] sm:$0xff] %vm668_vm9, %v3568_v12  ;;  %v3699_v12 = vmul.f32 %v3667_v44, %v3635_v50 }
 0x674   :  { %v3380_v27 = vpop.permute.xlu0 %3379  ;;  %v3126_v46 = vpop.permute.xlu1 %3125  ;;  %v3729_v31 = vpack.c.bf16 %v3701_v39, %v3699_v12  ;;  %v3716_v39 = vmul.f32 %v3684_v52, %v3652_v57  ;;  %v15947_v52 = vld [vmem:[%s19723_s8 + $0x3] ss:$0 sm:$0xff] }
 0x675   :  { %3162 = vst.msk [vmem:[#allocation2 + $0xb0] sm:$0xff] %vm213_vm3, %v3126_v46 }
 0x678   :  { %v3236_v63 = vpop.permute.xlu0 %3235  ;;  %v3442_v61 = vpop.permute.xlu1 %3441 }
 0x679   :  { %3273 = vst.msk [vmem:[#allocation2 + $0xa0] sm:$0xff] %vm327_vm4, %v3236_v63  ;;  %v3644_v63 = vld [vmem:[#allocation2 + $0x68] sm:$0xff] }
 0x67a   :  { %3480 = vst.msk [vmem:[#allocation2 + $0x90] sm:$0xff] %vm538_vm7, %v3442_v61  ;;  %v3676_v61 = vld [vmem:[%s19838_s7 + $0x68] sm:$0xff] }
 0x67c   :  { %v3316_v33 = vpop.permute.xlu0 %3315  ;;  %v3506_v14 = vpop.permute.xlu1 %3505 }
 0x67d   :  { %3353 = vst.msk [vmem:[#allocation2 + $0xa0] sm:$0xff] %vm408_vm5, %v3316_v33 }
 0x67e   :  { %3544 = vst.msk [vmem:[#allocation2 + $0x90] sm:$0xff] %vm603_vm8, %v3506_v14 }
 0x67f   :  { %3417 = vst.msk [vmem:[#allocation2 + $0xa0] sm:$0xff] %vm473_vm6, %v3380_v27  ;;  %v3671_v27 = vld [vmem:[%s19838_s7 + $0x40] sm:$0xff] }
 0x680   :  { %3608 = vst.msk [vmem:[#allocation2 + $0x90] sm:$0xff] %vm668_vm9, %v3570_v53  ;;  %v3382_v20 = vpop.permute.xlu1 %3381  ;;  %v3444_v58 = vpop.permute.xlu0 %3443  ;;  %v3639_v53 = vld [vmem:[#allocation2 + $0x40] sm:$0xff] }
 0x681   :  { %3481 = vst.msk [vmem:[#allocation2 + $0xa0] sm:$0xff] %vm538_vm7, %v3444_v58  ;;  %v3703_v58 = vmul.f32 %v3671_v27, %v3639_v53 }
 0x684   :  { %v3238_v10 = vpop.permute.xlu1 %3237  ;;  %v3508_v18 = vpop.permute.xlu0 %3507 }
 0x685   :  { %3274 = vst.msk [vmem:[#allocation2 + $0xb0] sm:$0xff] %vm327_vm4, %v3238_v10  ;;  %v3708_v10 = vmul.f32 %v3676_v61, %v3644_v63  ;;  %v3687_v61 = vld [vmem:[%s19838_s7 + $0xc0] sm:$0xff] }
 0x686   :  { %3545 = vst.msk [vmem:[#allocation2 + $0xa0] sm:$0xff] %vm603_vm8, %v3508_v18 }
 0x688   :  { %v3318_v6 = vpop.permute.xlu1 %3317  ;;  %v3104_v15 = vpop.permute.xlu0 %3103 }
 0x689   :  { %3354 = vst.msk [vmem:[#allocation2 + $0xb0] sm:$0xff] %vm408_vm5, %v3318_v6 }
 0x68a   :  { %3151 = vst.msk [vmem:[#allocation2] sm:$0xff] %vm213_vm3, %v3104_v15 }
 0x68b   :  { %3418 = vst.msk [vmem:[#allocation2 + $0xb0] sm:$0xff] %vm473_vm6, %v3382_v20  ;;  %v3710_v20 = vmul.f32 %v3678_v13, %v3646_v45  ;;  %v3688_v45 = vld [vmem:[%s19838_s7 + $0xc8] sm:$0xff] }
 0x68c   :  { %v3446_v1 = vpop.permute.xlu1 %3445  ;;  %v3216_v41 = vpop.permute.xlu0 %3215 }
 0x68d   :  { %3482 = vst.msk [vmem:[#allocation2 + $0xb0] sm:$0xff] %vm538_vm7, %v3446_v1  ;;  %v3734_v1 = vpack.c.bf16 %v3710_v20, %v3708_v10 }
 0x68e   :  { %3263 = vst.msk [vmem:[#allocation2] sm:$0xff] %vm327_vm4, %v3216_v41  ;;  %v3645_v41 = vld [vmem:[#allocation2 + $0x70] sm:$0xff] }
 0x690   :  { %v3510_v22 = vpop.permute.xlu1 %3509  ;;  %v3296_v4 = vpop.permute.xlu0 %3295 }
 0x691   :  { %3546 = vst.msk [vmem:[#allocation2 + $0xb0] sm:$0xff] %vm603_vm8, %v3510_v22  ;;  %v3677_v22 = vld [vmem:[%s19838_s7 + $0x70] sm:$0xff] }
 0x692   :  { %3343 = vst.msk [vmem:[#allocation2] sm:$0xff] %vm408_vm5, %v3296_v4  ;;  %v3650_v4 = vld [vmem:[#allocation2 + $0x98] sm:$0xff] }
 0x693   :  { %3407 = vst.msk [vmem:[#allocation2] sm:$0xff] %vm473_vm6, %v15539_v2  ;;  %v3638_v2 = vld [vmem:[#allocation2 + $0x38] sm:$0xff] }
 0x694   :  { %3471 = vst.msk [vmem:[#allocation2] sm:$0xff] %vm538_vm7, %v15558_v36  ;;  %v3574_v21 = vpop.permute.xlu1 %3573  ;;  %v3572_v8 = vpop.permute.xlu0 %3571  ;;  %v3670_v36 = vld [vmem:[%s19838_s7 + $0x38] sm:$0xff] }
 0x695   :  { %3535 = vst.msk [vmem:[#allocation2] sm:$0xff] %vm603_vm8, %v15569_v54  ;;  %v3633_v54 = vld [vmem:[#allocation2 + $0x10] sm:$0xff]  ;;  %v3702_v56 = vmul.f32 %v3670_v36, %v3638_v2  ;;  %v3648_v2 = vld [vmem:[#allocation2 + $0x88] sm:$0xff] }
 0x696   :  { %3599 = vst.msk [vmem:[#allocation2] sm:$0xff] %vm668_vm9, %v15546_v17  ;;  %3610 = vst.msk [vmem:[#allocation2 + $0xb0] sm:$0xff] %vm668_vm9, %v3574_v21  ;;  %v3663_v17 = vld [vmem:[%s19838_s7] sm:$0xff]  ;;  %v3697_v47 = vmul.f32 %v3665_v42, %v3633_v54  ;;  %v3682_v21 = vld [vmem:[%s19838_s7 + $0x98] sm:$0xff] }
 0x697   :  { %3609 = vst.msk [vmem:[#allocation2 + $0xa0] sm:$0xff] %vm668_vm9, %v3572_v8  ;;  %v3730_v30 = vpack.c.bf16 %v3702_v56, %v3700_v7  ;;  %v3643_v8 = vld [vmem:[#allocation2 + $0x60] sm:$0xff]  ;;  %v3680_v36 = vld [vmem:[%s19838_s7 + $0x88] sm:$0xff]  ;;  %v3714_v42 = vmul.f32 %v3682_v21, %v3650_v4  ;;  %v3654_v7 = vld [vmem:[#allocation2 + $0xb8] sm:$0xff] }
 0x698   :  { %v3130_v32 = vpop.permute.xlu1 %3129  ;;  %v3128_v38 = vpop.permute.xlu0 %3127  ;;  %v3712_v0 = vmul.f32 %v3680_v36, %v3648_v2  ;;  %v3694_v4 = vld [vmem:[%s19838_s7 + $0xf8] sm:$0xff] }
 0x699   :  { %3164 = vst.msk [vmem:[#allocation2 + $0xd0] sm:$0xff] %vm213_vm3, %v3130_v32  ;;  %3163 = vst.msk [vmem:[#allocation2 + $0xc0] sm:$0xff] %vm213_vm3, %v3128_v38  ;;  %v3675_v32 = vld [vmem:[%s19838_s7 + $0x60] sm:$0xff]  ;;  %v3709_v38 = vmul.f32 %v3677_v22, %v3645_v41  ;;  %v3662_v22 = vld [vmem:[#allocation2 + $0xf8] sm:$0xff] }
 0x69a   :  { %v3707_v26 = vmul.f32 %v3675_v32, %v3643_v8  ;;  %v3736_v56 = vpack.c.bf16 %v3714_v42, %v3712_v0 }
 0x69c   :  { %v3242_v11 = vpop.permute.xlu1 %3241  ;;  %v3240_v55 = vpop.permute.xlu0 %3239 }
 0x69d   :  { %v3631_v16 = vld [vmem:[#allocation2] sm:$0xff]  ;;  %3276 = vst.msk [vmem:[#allocation2 + $0xd0] sm:$0xff] %vm327_vm4, %v3242_v11  ;;  %3275 = vst.msk [vmem:[#allocation2 + $0xc0] sm:$0xff] %vm327_vm4, %v3240_v55  ;;  %v3733_v11 = vpack.c.bf16 %v3709_v38, %v3707_v26  ;;  %v3653_v34 = vld [vmem:[#allocation2 + $0xb0] sm:$0xff]  ;;  %v3726_v38 = vmul.f32 %v3694_v4, %v3662_v22 }
 0x69e   :  { %v3695_v40 = vmul.f32 %v3663_v17, %v3631_v16  ;;  %v3651_v12 = vld [vmem:[#allocation2 + $0xa0] sm:$0xff] }
 0x6a0   :  { %v3727_v19 = vpack.c.bf16 %v3697_v47, %v3695_v40  ;;  %v3322_v29 = vpop.permute.xlu1 %3321  ;;  %v3320_v25 = vpop.permute.xlu0 %3319  ;;  %v3649_v40 = vld [vmem:[#allocation2 + $0x90] sm:$0xff] }
 0x6a1   :  { %3356 = vst.msk [vmem:[#allocation2 + $0xd0] sm:$0xff] %vm408_vm5, %v3322_v29  ;;  %3355 = vst.msk [vmem:[#allocation2 + $0xc0] sm:$0xff] %vm408_vm5, %v3320_v25  ;;  %v3681_v47 = vld [vmem:[%s19838_s7 + $0x90] sm:$0xff]  ;;  %v3647_v29 = vld [vmem:[#allocation2 + $0x80] sm:$0xff] }
 0x6a2   :  { %3872 = vmatmul.mubr.bf16.vlgmr.msra.gmra.mxu1 %v3727_v19  ;;  %v3686_v19 = vld [vmem:[%s19838_s7 + $0xb8] sm:$0xff]  ;;  %v3679_v25 = vld [vmem:[%s19838_s7 + $0x80] sm:$0xff] }
 0x6a3   :  { %11366 = vmatprep.mubr.msk.bf16.mxu1 %vm132_vm0, %v3730_v30  ;;  %4224 = vmatpush1.bf16.msra.mxu1 %v11379_v62  ;;  %v3673_v62 = vld [vmem:[%s19838_s7 + $0x50] sm:$0xff]  ;;  %v3713_v30 = vmul.f32 %v3681_v47, %v3649_v40  ;;  %v3718_v50 = vmul.f32 %v3686_v19, %v3654_v7  ;;  %v3711_v44 = vmul.f32 %v3679_v25, %v3647_v29  ;;  %v4027_v7 = vld [vmem:[%s19724_s9 + $0x18] sm:$0xff] }
 0x6a4   :  { %v3386_v23 = vpop.permute.xlu1 %3385  ;;  %v3384_v48 = vpop.permute.xlu0 %3383  ;;  %v3705_v46 = vmul.f32 %v3673_v62, %v3641_v28  ;;  %v3656_v62 = vld [vmem:[#allocation2 + $0xc8] sm:$0xff]  ;;  %v4031_v19 = vld [vmem:[%s19724_s9 + $0x38] sm:$0xff] }
 0x6a5   :  { %3420 = vst.msk [vmem:[#allocation2 + $0xd0] sm:$0xff] %vm473_vm6, %v3386_v23  ;;  %3419 = vst.msk [vmem:[#allocation2 + $0xc0] sm:$0xff] %vm473_vm6, %v3384_v48  ;;  %v3735_v43 = vpack.c.bf16 %v3713_v30, %v3711_v44  ;;  %v3738_v35 = vpack.c.bf16 %v3718_v50, %v3716_v39  ;;  %v11383_v29 = vcombine.low %v4027_v7, %v4031_v19  ;;  %v15942_v30 = vld [vmem:[%s19841_s3 + $0x3] ss:$0 sm:$0xff] }
 0x6a6   :  { %v3731_v18 = vpack.c.bf16 %v3705_v46, %v3703_v58  ;;  %v3720_v46 = vmul.f32 %v3688_v45, %v3656_v62  ;;  %v11384_v25 = vcombine.high %v4027_v7, %v4031_v19 }
 0x6a8   :  { %v3450_v37 = vpop.permute.xlu1 %3449  ;;  %v3448_v60 = vpop.permute.xlu0 %3447  ;;  %4449 = vmatprep.subr.bf16.mxu1 %v11384_v25 }
 0x6a9   :  { %3484 = vst.msk [vmem:[#allocation2 + $0xd0] sm:$0xff] %vm538_vm7, %v3450_v37  ;;  %3483 = vst.msk [vmem:[#allocation2 + $0xc0] sm:$0xff] %vm538_vm7, %v3448_v60  ;;  %v3658_v37 = vld [vmem:[#allocation2 + $0xd8] sm:$0xff] }
 0x6aa   :  { %3880 = vmatmul.mubr.bf16.gmra.mxu1 %v3729_v31  ;;  %v3685_v31 = vld [vmem:[%s19838_s7 + $0xb0] sm:$0xff]  ;;  %v3690_v60 = vld [vmem:[%s19838_s7 + $0xd8] sm:$0xff] }
 0x6ab   :  { %11367 = vmatprep.mubr.msk.bf16.mxu1 %vm132_vm0, %v3732_v51  ;;  %v3715_v51 = vmul.f32 %v3683_v24, %v3651_v12  ;;  %v3717_v28 = vmul.f32 %v3685_v31, %v3653_v34  ;;  %v3722_v27 = vmul.f32 %v3690_v60, %v3658_v37 }
 0x6ac   :  { %v3514_v33 = vpop.permute.xlu1 %3513  ;;  %v3512_v14 = vpop.permute.xlu0 %3511 }
 0x6ad   :  { %3548 = vst.msk [vmem:[#allocation2 + $0xd0] sm:$0xff] %vm603_vm8, %v3514_v33  ;;  %3547 = vst.msk [vmem:[#allocation2 + $0xc0] sm:$0xff] %vm603_vm8, %v3512_v14  ;;  %v3737_v63 = vpack.c.bf16 %v3717_v28, %v3715_v51  ;;  %v3740_v20 = vpack.c.bf16 %v3722_v27, %v3720_v46 }
 0x6b0   :  { %v3578_v6 = vpop.permute.xlu1 %3577  ;;  %v3576_v15 = vpop.permute.xlu0 %3575 }
 0x6b1   :  { %3612 = vst.msk [vmem:[#allocation2 + $0xd0] sm:$0xff] %vm668_vm9, %v3578_v6  ;;  %3611 = vst.msk [vmem:[#allocation2 + $0xc0] sm:$0xff] %vm668_vm9, %v3576_v15  ;;  %v3660_v6 = vld [vmem:[#allocation2 + $0xe8] sm:$0xff] }
 0x6b2   :  { %3888 = vmatmul.mubr.bf16.gmra.mxu1 %v3731_v18  ;;  %v3689_v18 = vld [vmem:[%s19838_s7 + $0xd0] sm:$0xff]  ;;  %v3692_v15 = vld [vmem:[%s19838_s7 + $0xe8] sm:$0xff] }
 0x6b3   :  { %11368 = vmatprep.mubr.msk.bf16.mxu1 %vm132_vm0, %v3734_v1  ;;  %v3724_v32 = vmul.f32 %v3692_v15, %v3660_v6 }
 0x6b4   :  { %v3134_v54 = vpop.permute.xlu1 %3133  ;;  %v3132_v17 = vpop.permute.xlu0 %3131 }
 0x6b5   :  { %3166 = vst.msk [vmem:[#allocation2 + $0xf0] sm:$0xff] %vm213_vm3, %v3134_v54  ;;  %3165 = vst.msk [vmem:[#allocation2 + $0xe0] sm:$0xff] %vm213_vm3, %v3132_v17  ;;  %v3742_v36 = vpack.c.bf16 %v3726_v38, %v3724_v32  ;;  %v3691_v54 = vld [vmem:[%s19838_s7 + $0xe0] sm:$0xff]  ;;  %v3693_v17 = vld [vmem:[%s19838_s7 + $0xf0] sm:$0xff]  ;;  %s12769_s7 = smov [#allocation5]  }
 0x6b8   :  { %v3390_v55 = vpop.permute.xlu1 %3389  ;;  %v3244_v16 = vpop.permute.xlu0 %3243  ;;  %v3655_v58 = vld [vmem:[#allocation2 + $0xc0] sm:$0xff]  ;;  %v3657_v10 = vld [vmem:[#allocation2 + $0xd0] sm:$0xff] }
 0x6b9   :  { %3277 = vst.msk [vmem:[#allocation2 + $0xe0] sm:$0xff] %vm327_vm4, %v3244_v16  ;;  %v3719_v1 = vmul.f32 %v3687_v61, %v3655_v58  ;;  %v3721_v41 = vmul.f32 %v3689_v18, %v3657_v10  ;;  %v4026_v16 = vld [vmem:[%s19724_s9 + $0x10] sm:$0xff] }
 0x6ba   :  { %3896 = vmatmul.mubr.bf16.gmra.mxu1 %v3733_v11 }
 0x6bb   :  { %11369 = vmatprep.mubr.msk.bf16.mxu1 %vm132_vm0, %v3736_v56  ;;  %v3739_v2 = vpack.c.bf16 %v3721_v41, %v3719_v1  ;;  %v4030_v56 = vld [vmem:[%s19724_s9 + $0x30] sm:$0xff] }
 0x6bc   :  { %v3246_v3 = vpop.permute.xlu1 %3245  ;;  %v3324_v5 = vpop.permute.xlu0 %3323  ;;  %v11381_v40 = vcombine.low %v4026_v16, %v4030_v56  ;;  %v11382_v47 = vcombine.high %v4026_v16, %v4030_v56 }
 0x6bd   :  { %3278 = vst.msk [vmem:[#allocation2 + $0xf0] sm:$0xff] %vm327_vm4, %v3246_v3 }
 0x6be   :  { %3357 = vst.msk [vmem:[#allocation2 + $0xe0] sm:$0xff] %vm408_vm5, %v3324_v5  ;;  %4336 = vmatprep.subr.bf16.mxu0 %v11382_v47 }
 0x6c0   :  { %v3388_v23 = vpop.permute.xlu0 %3387  ;;  %v3326_v48 = vpop.permute.xlu1 %3325 }
 0x6c1   :  { %3421 = vst.msk [vmem:[#allocation2 + $0xe0] sm:$0xff] %vm473_vm6, %v3388_v23 }
 0x6c2   :  { %3358 = vst.msk [vmem:[#allocation2 + $0xf0] sm:$0xff] %vm408_vm5, %v3326_v48  ;;  %3904 = vmatmul.mubr.bf16.gmra.mxu1 %v3735_v43 }
 0x6c3   :  { %3422 = vst.msk [vmem:[#allocation2 + $0xf0] sm:$0xff] %vm473_vm6, %v3390_v55  ;;  %11370 = vmatprep.mubr.msk.bf16.mxu1 %vm132_vm0, %v3738_v35 }
 0x6c4   :  { %v3452_v13 = vpop.permute.xlu0 %3451  ;;  %v3454_v53 = vpop.permute.xlu1 %3453 }
 0x6c5   :  { %3485 = vst.msk [vmem:[#allocation2 + $0xe0] sm:$0xff] %vm538_vm7, %v3452_v13  ;;  %3486 = vst.msk [vmem:[#allocation2 + $0xf0] sm:$0xff] %vm538_vm7, %v3454_v53 }
 0x6c8   :  { %v3516_v33 = vpop.permute.xlu0 %3515  ;;  %v3518_v14 = vpop.permute.xlu1 %3517 }
 0x6c9   :  { %3549 = vst.msk [vmem:[#allocation2 + $0xe0] sm:$0xff] %vm603_vm8, %v3516_v33  ;;  %3550 = vst.msk [vmem:[#allocation2 + $0xf0] sm:$0xff] %vm603_vm8, %v3518_v14 }
 0x6ca   :  { %3912 = vmatmul.mubr.bf16.gmra.mxu1 %v3737_v63 }
 0x6cb   :  { %11371 = vmatprep.mubr.msk.bf16.mxu1 %vm132_vm0, %v3740_v20 }
 0x6cc   :  { %v3580_v21 = vpop.permute.xlu0 %3579  ;;  %v3582_v8 = vpop.permute.xlu1 %3581 }
 0x6cd   :  { %3613 = vst.msk [vmem:[#allocation2 + $0xe0] sm:$0xff] %vm668_vm9, %v3580_v21  ;;  %3614 = vst.msk [vmem:[#allocation2 + $0xf0] sm:$0xff] %vm668_vm9, %v3582_v8 }
 0x6d2   :  { %3920 = vmatmul.mubr.bf16.gmra.mxu1 %v3739_v2 }
 0x6d3   :  { %11372 = vmatprep.mubr.msk.bf16.mxu1 %vm132_vm0, %v3742_v36 }
 0x6d4   :  { %v3659_v42 = vld [vmem:[#allocation2 + $0xe0] sm:$0xff]  ;;  %v3661_v26 = vld [vmem:[#allocation2 + $0xf0] sm:$0xff] }
 0x6d5   :  { %v3723_v0 = vmul.f32 %v3691_v54, %v3659_v42  ;;  %v3725_v11 = vmul.f32 %v3693_v17, %v3661_v26 }
 0x6d7   :  { %v3741_v55 = vpack.c.bf16 %v3725_v11, %v3723_v0 }
 0x6da   :  { %3928 = vmatmul.mubr.bf16.gmra.mxu1 %v3741_v55 }
 0x6db   :  { %4241 = vmatprep.mubr.bf16.mxu1 %v19760_v59 }
 0x762   :  { %v3873_v57 = vpop.f32.mrf.mxu1 }
 0x763   :  { %v3944_v3 = vmul.f32 %v15942_v30, %v3873_v57 }
 0x764   :  { %v3875_v5 = vpop.f32.mrf.mxu1 }
 0x765   :  { %v3968_v50 = vadd.f32 %v15947_v52, %v3944_v3 }
 0x766   :  { %v3876_v44 = vpop.f32.mrf.mxu1 }
 0x767   :  { %v3945_v39 = vmul.f32 %v15942_v30, %v3876_v44  ;;  %v3984_v24 = vmax.f32 %v3968_v50, 0.0 }
 0x768   :  { %v3878_v43 = vpop.f32.mrf.mxu1 }
 0x769   :  { %v3969_v23 = vadd.f32 %v15947_v52, %v3945_v39  ;;  %v4000_v31 = vmul.f32 %v3984_v24, %v13698_v49 }
 0x76a   :  { %v3881_v48 = vpop.f32.mrf.mxu1 }
 0x76b   :  { %v3985_v35 = vmax.f32 %v3969_v23, 0.0  ;;  %v3946_v12 = vmul.f32 %v15942_v30, %v3881_v48 }
 0x76c   :  { %v3883_v34 = vpop.f32.mrf.mxu1 }
 0x76d   :  { %v4001_v37 = vmul.f32 %v3985_v35, %v13698_v49  ;;  %v3970_v60 = vadd.f32 %v15947_v52, %v3946_v12 }
 0x76e   :  { %v3884_v51 = vpop.f32.mrf.mxu1 }
 0x76f   :  { %v15957_v28 = vpack.c.bf16 %v4001_v37, %v4000_v31  ;;  %v3947_v62 = vmul.f32 %v15942_v30, %v3884_v51  ;;  %v3986_v13 = vmax.f32 %v3970_v60, 0.0 }
 0x770   :  { %v3886_v45 = vpop.f32.mrf.mxu1 }
 0x771   :  { %v3971_v53 = vadd.f32 %v15947_v52, %v3947_v62  ;;  %11385 = vmatmul.mubr.msk.bf16.vlgmr.msra.gmra.mxu0 %vm132_vm0, %v15957_v28  ;;  %11393 = vmatmul.mubr.msk.bf16.vlgmr.msra.gmra.mxu1 %vm132_vm0, %v15957_v28  ;;  %v4002_v33 = vmul.f32 %v3986_v13, %v13698_v49 }
 0x772   :  { %v3889_v27 = vpop.f32.mrf.mxu1  ;;  %4138 = vmatprep.mubr.bf16.mxu0 %v19760_v59  ;;  %4251 = vmatprep.mubr.bf16.mxu1 %v19760_v59 }
 0x773   :  { %v3987_v46 = vmax.f32 %v3971_v53, 0.0  ;;  %v3948_v63 = vmul.f32 %v15942_v30, %v3889_v27  ;;  %4337 = vmatpush1.bf16.msra.mxu0 %v11381_v40  ;;  %4450 = vmatpush1.bf16.msra.mxu1 %v11383_v29 }
 0x774   :  { %v3891_v61 = vpop.f32.mrf.mxu1 }
 0x775   :  { %v4003_v14 = vmul.f32 %v3987_v46, %v13698_v49  ;;  %v3972_v20 = vadd.f32 %v15947_v52, %v3948_v63 }
 0x776   :  { %v3892_v58 = vpop.f32.mrf.mxu1 }
 0x777   :  { %v15971_v10 = vpack.c.bf16 %v4003_v14, %v4002_v33  ;;  %v3949_v18 = vmul.f32 %v15942_v30, %v3892_v58  ;;  %v3988_v15 = vmax.f32 %v3972_v20, 0.0 }
 0x778   :  { %v3894_v6 = vpop.f32.mrf.mxu1 }
 0x779   :  { %v3973_v1 = vadd.f32 %v15947_v52, %v3949_v18  ;;  %11386 = vmatmul.mubr.msk.bf16.gmra.mxu0 %vm132_vm0, %v15971_v10  ;;  %11394 = vmatmul.mubr.msk.bf16.gmra.mxu1 %vm132_vm0, %v15971_v10  ;;  %v4004_v8 = vmul.f32 %v3988_v15, %v13698_v49 }
 0x77a   :  { %v3897_v41 = vpop.f32.mrf.mxu1  ;;  %4148 = vmatprep.mubr.bf16.mxu0 %v19760_v59  ;;  %4261 = vmatprep.mubr.bf16.mxu1 %v19760_v59 }
 0x77b   :  { %v3989_v22 = vmax.f32 %v3973_v1, 0.0  ;;  %v3950_v4 = vmul.f32 %v15942_v30, %v3897_v41 }
 0x77c   :  { %v3899_v21 = vpop.f32.mrf.mxu1 }
 0x77d   :  { %v4005_v32 = vmul.f32 %v3989_v22, %v13698_v49  ;;  %v3974_v38 = vadd.f32 %v15947_v52, %v3950_v4 }
 0x77e   :  { %v3900_v2 = vpop.f32.mrf.mxu1 }
 0x77f   :  { %v15985_v36 = vpack.c.bf16 %v4005_v32, %v4004_v8  ;;  %v3951_v54 = vmul.f32 %v15942_v30, %v3900_v2  ;;  %v3990_v42 = vmax.f32 %v3974_v38, 0.0 }
 0x780   :  { %v3902_v17 = vpop.f32.mrf.mxu1 }
 0x781   :  { %v3975_v26 = vadd.f32 %v15947_v52, %v3951_v54  ;;  %11387 = vmatmul.mubr.msk.bf16.gmra.mxu0 %vm132_vm0, %v15985_v36  ;;  %11395 = vmatmul.mubr.msk.bf16.gmra.mxu1 %vm132_vm0, %v15985_v36  ;;  %v4006_v56 = vmul.f32 %v3990_v42, %v13698_v49 }
 0x782   :  { %v3905_v0 = vpop.f32.mrf.mxu1  ;;  %4158 = vmatprep.mubr.bf16.mxu0 %v19760_v59  ;;  %4271 = vmatprep.mubr.bf16.mxu1 %v19760_v59 }
 0x783   :  { %v3991_v11 = vmax.f32 %v3975_v26, 0.0  ;;  %v3952_v55 = vmul.f32 %v15942_v30, %v3905_v0 }
 0x784   :  { %v3907_v16 = vpop.f32.mrf.mxu1 }
 0x785   :  { %v4007_v40 = vmul.f32 %v3991_v11, %v13698_v49  ;;  %v3976_v47 = vadd.f32 %v15947_v52, %v3952_v55 }
 0x786   :  { %v3908_v7 = vpop.f32.mrf.mxu1 }
 0x787   :  { %v15999_v19 = vpack.c.bf16 %v4007_v40, %v4006_v56  ;;  %v3953_v29 = vmul.f32 %v15942_v30, %v3908_v7  ;;  %v3992_v57 = vmax.f32 %v3976_v47, 0.0 }
 0x788   :  { %v3910_v25 = vpop.f32.mrf.mxu1 }
 0x789   :  { %v3977_v3 = vadd.f32 %v15947_v52, %v3953_v29  ;;  %11388 = vmatmul.mubr.msk.bf16.gmra.mxu0 %vm132_vm0, %v15999_v19  ;;  %11396 = vmatmul.mubr.msk.bf16.gmra.mxu1 %vm132_vm0, %v15999_v19  ;;  %v4008_v43 = vmul.f32 %v3992_v57, %v13698_v49 }
 0x78a   :  { %v3913_v5 = vpop.f32.mrf.mxu1  ;;  %4168 = vmatprep.mubr.bf16.mxu0 %v19760_v59  ;;  %4281 = vmatprep.mubr.bf16.mxu1 %v19760_v59 }
 0x78b   :  { %v3993_v50 = vmax.f32 %v3977_v3, 0.0  ;;  %v3954_v44 = vmul.f32 %v15942_v30, %v3913_v5  ;;  %v16130_v3 = vld [vmem:[%s19725_s10 + $0x40] sm:$0xff] }
 0x78c   :  { %v3915_v39 = vpop.f32.mrf.mxu1  ;;  %19861 = vst [vmem:[#allocation19_spill] sm:$0xff] %v16130_v3 }
 0x78d   :  { %v4009_v24 = vmul.f32 %v3993_v50, %v13698_v49  ;;  %v3978_v23 = vadd.f32 %v15947_v52, %v3954_v44  ;;  %v16139_v44 = vld [vmem:[%s19725_s10 + $0x48] sm:$0xff]  ;;  %v16144_v39 = vld [vmem:[%s19725_s10 + $0x60] sm:$0xff] }
 0x78e   :  { %v3916_v48 = vpop.f32.mrf.mxu1  ;;  %19864 = vst [vmem:[#allocation22_spill] sm:$0xff] %v16139_v44  ;;  %19865 = vst [vmem:[#allocation23_spill] sm:$0xff] %v16144_v39 }
 0x78f   :  { %v16013_v35 = vpack.c.bf16 %v4009_v24, %v4008_v43  ;;  %v3955_v12 = vmul.f32 %v15942_v30, %v3916_v48  ;;  %v3994_v31 = vmax.f32 %v3978_v23, 0.0  ;;  %v16149_v43 = vld [vmem:[%s19725_s10 + $0x68] sm:$0xff]  ;;  %v16261_v23 = vld [vmem:[%s19725_s10 + $0xe0] sm:$0xff] }
 0x790   :  { %v3918_v34 = vpop.f32.mrf.mxu1  ;;  %19866 = vst [vmem:[#allocation24_spill] sm:$0xff] %v16149_v43  ;;  %v16280_v24 = vld [vmem:[%s19725_s10 + $0x100] sm:$0xff] }
 0x791   :  { %v3979_v37 = vadd.f32 %v15947_v52, %v3955_v12  ;;  %11389 = vmatmul.mubr.msk.bf16.gmra.mxu0 %vm132_vm0, %v16013_v35  ;;  %11397 = vmatmul.mubr.msk.bf16.gmra.mxu1 %vm132_vm0, %v16013_v35  ;;  %v4010_v13 = vmul.f32 %v3994_v31, %v13698_v49  ;;  %v4628_v12 = vunpack.c.l.bf16 %v16130_v3  ;;  %v4630_v34 = vunpack.c.l.bf16 %v16139_v44  ;;  %19896 = vst [vmem:[#allocation54_spill] sm:$0xff] %v16280_v24  ;;  %v16351_v44 = vld [vmem:[%s19725_s10 + $0x180] sm:$0xff]  ;;  %v16362_v3 = vld [vmem:[%s19725_s10 + $0x188] sm:$0xff] }
 0x792   :  { %v3921_v60 = vpop.f32.mrf.mxu1  ;;  %4178 = vmatprep.mubr.bf16.mxu0 %v19760_v59  ;;  %4291 = vmatprep.mubr.bf16.mxu1 %v19760_v59  ;;  %v4636_v31 = vunpack.c.l.bf16 %v16144_v39 }
 0x793   :  { %v3995_v51 = vmax.f32 %v3979_v37, 0.0  ;;  %v3956_v62 = vmul.f32 %v15942_v30, %v3921_v60  ;;  %v4638_v37 = vunpack.c.l.bf16 %v16149_v43  ;;  %v16394_v43 = vld [vmem:[%s19725_s10 + $0x1c8] sm:$0xff] }
 0x794   :  { %v3923_v45 = vpop.f32.mrf.mxu1  ;;  %v4726_v39 = vunpack.c.l.bf16 %v16394_v43 }
 0x795   :  { %v4011_v53 = vmul.f32 %v3995_v51, %v13698_v49  ;;  %v3980_v27 = vadd.f32 %v15947_v52, %v3956_v62 }
 0x796   :  { %v3924_v46 = vpop.f32.mrf.mxu1 }
 0x797   :  { %v4021_v63 = vpack.c.bf16 %v4011_v53, %v4010_v13  ;;  %v3957_v61 = vmul.f32 %v15942_v30, %v3924_v46  ;;  %v3996_v14 = vmax.f32 %v3980_v27, 0.0 }
 0x798   :  { %v3926_v33 = vpop.f32.mrf.mxu1 }
 0x799   :  { %v3981_v20 = vadd.f32 %v15947_v52, %v3957_v61  ;;  %11390 = vmatmul.mubr.msk.bf16.gmra.mxu0 %vm132_vm0, %v4021_v63  ;;  %11398 = vmatmul.mubr.msk.bf16.gmra.mxu1 %vm132_vm0, %v4021_v63  ;;  %v4012_v1 = vmul.f32 %v3996_v14, %v13698_v49 }
 0x79a   :  { %v3929_v58 = vpop.f32.mrf.mxu1  ;;  %4188 = vmatprep.mubr.bf16.mxu0 %v19760_v59  ;;  %4301 = vmatprep.mubr.bf16.mxu1 %v19760_v59 }
 0x79b   :  { %v3997_v18 = vmax.f32 %v3981_v20, 0.0  ;;  %v3958_v6 = vmul.f32 %v15942_v30, %v3929_v58 }
 0x79c   :  { %v3931_v15 = vpop.f32.mrf.mxu1 }
 0x79d   :  { %v4013_v41 = vmul.f32 %v3997_v18, %v13698_v49  ;;  %v3982_v22 = vadd.f32 %v15947_v52, %v3958_v6 }
 0x79e   :  { %v3932_v4 = vpop.f32.mrf.mxu1 }
 0x79f   :  { %v4022_v21 = vpack.c.bf16 %v4013_v41, %v4012_v1  ;;  %v3959_v8 = vmul.f32 %v15942_v30, %v3932_v4  ;;  %v3998_v38 = vmax.f32 %v3982_v22, 0.0  ;;  %v16099_v30 = vld [vmem:[%s19725_s10 + $0x8] sm:$0xff] }
 0x7a0   :  { %v3934_v32 = vpop.f32.mrf.mxu1  ;;  %19852 = vst [vmem:[#allocation10_spill] sm:$0xff] %v16099_v30  ;;  %v4614_v11 = vunpack.c.l.bf16 %v16099_v30 }
 0x7a1   :  { %v3983_v2 = vadd.f32 %v15947_v52, %v3959_v8  ;;  %11391 = vmatmul.mubr.msk.bf16.gmra.mxu0 %vm132_vm0, %v4022_v21  ;;  %11399 = vmatmul.mubr.msk.bf16.gmra.mxu1 %vm132_vm0, %v4022_v21  ;;  %v4014_v17 = vmul.f32 %v3998_v38, %v13698_v49  ;;  %v16104_v52 = vld [vmem:[%s19725_s10 + $0x20] sm:$0xff] }
 0x7a2   :  { %4198 = vmatprep.mubr.bf16.mxu0 %v19760_v59  ;;  %4311 = vmatprep.mubr.bf16.mxu1 %v19760_v59  ;;  %19853 = vst [vmem:[#allocation11_spill] sm:$0xff] %v16104_v52  ;;  %v4620_v55 = vunpack.c.l.bf16 %v16104_v52  ;;  %v16424_v52 = vld [vmem:[%s19725_s10 + $0x18] sm:$0xff] }
 0x7a3   :  { %v3999_v54 = vmax.f32 %v3983_v2, 0.0 }
 0x7a5   :  { %v4015_v42 = vmul.f32 %v3999_v54, %v13698_v49  ;;  %v16094_v49 = vld [vmem:[%s19725_s10] sm:$0xff] }
 0x7a6   :  { %19851 = vst [vmem:[#allocation9_spill] sm:$0xff] %v16094_v49  ;;  %v4612_v0 = vunpack.c.l.bf16 %v16094_v49 }
 0x7a7   :  { %v4023_v26 = vpack.c.bf16 %v4015_v42, %v4014_v17 }
 0x7a9   :  { %11392 = vmatmul.mubr.msk.bf16.gmra.mxu0 %vm132_vm0, %v4023_v26  ;;  %11400 = vmatmul.mubr.msk.bf16.gmra.mxu1 %vm132_vm0, %v4023_v26 }
 0x7aa   :  { %4354 = vmatprep.mubr.bf16.mxu0 %v19760_v59  ;;  %4467 = vmatprep.mubr.bf16.mxu1 %v19760_v59 }
 0x7b1   :  { %11401 = vmatmul.mubr.msk.bf16.vlgmr.msra.gmra.mxu0 %vm132_vm0, %v15957_v28  ;;  %11409 = vmatmul.mubr.msk.bf16.vlgmr.msra.gmra.mxu1 %vm132_vm0, %v15957_v28  ;;  %v16109_v28 = vld [vmem:[%s19725_s10 + $0x28] sm:$0xff] }
 0x7b2   :  { %4364 = vmatprep.mubr.bf16.mxu0 %v19760_v59  ;;  %4477 = vmatprep.mubr.bf16.mxu1 %v19760_v59  ;;  %19854 = vst [vmem:[#allocation12_spill] sm:$0xff] %v16109_v28  ;;  %v4622_v16 = vunpack.c.l.bf16 %v16109_v28 }
 0x7b9   :  { %11402 = vmatmul.mubr.msk.bf16.gmra.mxu0 %vm132_vm0, %v15971_v10  ;;  %11410 = vmatmul.mubr.msk.bf16.gmra.mxu1 %vm132_vm0, %v15971_v10 }
 0x7ba   :  { %4374 = vmatprep.mubr.bf16.mxu0 %v19760_v59  ;;  %4487 = vmatprep.mubr.bf16.mxu1 %v19760_v59 }
 0x7c1   :  { %11403 = vmatmul.mubr.msk.bf16.gmra.mxu0 %vm132_vm0, %v15985_v36  ;;  %11411 = vmatmul.mubr.msk.bf16.gmra.mxu1 %vm132_vm0, %v15985_v36 }
 0x7c2   :  { %4384 = vmatprep.mubr.bf16.mxu0 %v19760_v59  ;;  %4497 = vmatprep.mubr.bf16.mxu1 %v19760_v59 }
 0x7c9   :  { %11404 = vmatmul.mubr.msk.bf16.gmra.mxu0 %vm132_vm0, %v15999_v19  ;;  %11412 = vmatmul.mubr.msk.bf16.gmra.mxu1 %vm132_vm0, %v15999_v19 }
 0x7ca   :  { %4394 = vmatprep.mubr.bf16.mxu0 %v19760_v59  ;;  %4507 = vmatprep.mubr.bf16.mxu1 %v19760_v59 }
 0x7d1   :  { %11405 = vmatmul.mubr.msk.bf16.gmra.mxu0 %vm132_vm0, %v16013_v35  ;;  %11413 = vmatmul.mubr.msk.bf16.gmra.mxu1 %vm132_vm0, %v16013_v35 }
 0x7d2   :  { %4404 = vmatprep.mubr.bf16.mxu0 %v19760_v59  ;;  %4517 = vmatprep.mubr.bf16.mxu1 %v19760_v59 }
 0x7d9   :  { %11406 = vmatmul.mubr.msk.bf16.gmra.mxu0 %vm132_vm0, %v4021_v63  ;;  %11414 = vmatmul.mubr.msk.bf16.gmra.mxu1 %vm132_vm0, %v4021_v63 }
 0x7da   :  { %4414 = vmatprep.mubr.bf16.mxu0 %v19760_v59  ;;  %4527 = vmatprep.mubr.bf16.mxu1 %v19760_v59 }
 0x7e1   :  { %11407 = vmatmul.mubr.msk.bf16.gmra.mxu0 %vm132_vm0, %v4022_v21  ;;  %11415 = vmatmul.mubr.msk.bf16.gmra.mxu1 %vm132_vm0, %v4022_v21 }
 0x7e2   :  { %4424 = vmatprep.mubr.bf16.mxu0 %v19760_v59  ;;  %4537 = vmatprep.mubr.bf16.mxu1 %v19760_v59 }
 0x7e9   :  { %11408 = vmatmul.mubr.msk.bf16.gmra.mxu0 %vm132_vm0, %v4023_v26  ;;  %11416 = vmatmul.mubr.msk.bf16.gmra.mxu1 %vm132_vm0, %v4023_v26 }
 0x7ea   :  { %4965 = vmatprep.mubr.bf16.mxu0 %v19760_v59  ;;  %5006 = vmatprep.mubr.bf16.mxu1 %v19760_v59  ;;  %v16256_v59 = vld [vmem:[%s19725_s10 + $0xc0] sm:$0xff] }
 0x7eb   :  { %19895 = vst [vmem:[#allocation53_spill] sm:$0xff] %v16256_v59 }
 0x831   :  { %v4130_v10 = vpop.f32.mrf.mxu0  ;;  %v4243_v36 = vpop.f32.mrf.mxu1 }
 0x832   :  { %v16119_v19 = vmul.f32 %v4612_v0, %v4130_v10  ;;  %v16121_v29 = vmul.f32 %v4614_v11, %v4243_v36 }
 0x833   :  { %v16115_v56 = vpop.f32.mrf.mxu0  ;;  %v16117_v40 = vpop.f32.mrf.mxu1 }
 0x834   :  { %19855 = vst [vmem:[#allocation13_spill] sm:$0xff] %v16115_v56  ;;  %19856 = vst [vmem:[#allocation14_spill] sm:$0xff] %v16117_v40  ;;  %v16330_v56 = vld [vmem:[%s19725_s10 + $0x148] sm:$0xff] }
 0x835   :  { %v4134_v47 = vpop.f32.mrf.mxu0  ;;  %v4247_v7 = vpop.f32.mrf.mxu1  ;;  %19857 = vst [vmem:[#allocation15_spill] sm:$0xff] %v16119_v19  ;;  %19858 = vst [vmem:[#allocation16_spill] sm:$0xff] %v16121_v29  ;;  %v16293_v19 = vld [vmem:[%s19725_s10 + $0xc8] sm:$0xff] }
 0x836   :  { %v16123_v25 = vmul.f32 %v4620_v55, %v4134_v47  ;;  %v16125_v57 = vmul.f32 %v4622_v16, %v4247_v7  ;;  %v16344_v29 = vld [vmem:[%s19725_s10 + $0x168] sm:$0xff] }
 0x837   :  { %v16132_v5 = vpop.f32.mrf.mxu0  ;;  %v16134_v50 = vpop.f32.mrf.mxu1 }
 0x838   :  { %19859 = vst [vmem:[#allocation17_spill] sm:$0xff] %v16123_v25  ;;  %19860 = vst [vmem:[#allocation18_spill] sm:$0xff] %v16125_v57  ;;  %v16298_v25 = vld [vmem:[%s19725_s10 + $0x108] sm:$0xff] }
 0x839   :  { %19862 = vst [vmem:[#allocation20_spill] sm:$0xff] %v16132_v5  ;;  %19863 = vst [vmem:[#allocation21_spill] sm:$0xff] %v16134_v50  ;;  %v4140_v48 = vpop.f32.mrf.mxu0  ;;  %v4253_v35 = vpop.f32.mrf.mxu1  ;;  %v16335_v50 = vld [vmem:[%s19725_s10 + $0x160] sm:$0xff] }
 0x83a   :  { %v16163_v13 = vmul.f32 %v4628_v12, %v4140_v48  ;;  %v16165_v53 = vmul.f32 %v4630_v34, %v4253_v35  ;;  %v16234_v48 = vld [vmem:[%s19725_s10 + $0x80] sm:$0xff]  ;;  %19897 = vst [vmem:[#allocation55_spill] sm:$0xff] %v16298_v25  ;;  %v4701_v57 = vunpack.c.h.bf16 %v16335_v50 }
 0x83b   :  { %v16159_v60 = vpop.f32.mrf.mxu0  ;;  %v16161_v51 = vpop.f32.mrf.mxu1  ;;  %19892 = vst [vmem:[#allocation50_spill] sm:$0xff] %v16234_v48  ;;  %v16239_v35 = vld [vmem:[%s19725_s10 + $0xa0] sm:$0xff]  ;;  %v16429_v48 = vld [vmem:[%s19725_s10 + $0x30] sm:$0xff] }
 0x83c   :  { %19867 = vst [vmem:[#allocation25_spill] sm:$0xff] %v16159_v60  ;;  %19868 = vst [vmem:[#allocation26_spill] sm:$0xff] %v16161_v51  ;;  %v16367_v60 = vld [vmem:[%s19725_s10 + $0x1a0] sm:$0xff] }
 0x83d   :  { %v4144_v62 = vpop.f32.mrf.mxu0  ;;  %v4257_v45 = vpop.f32.mrf.mxu1  ;;  %19869 = vst [vmem:[#allocation27_spill] sm:$0xff] %v16163_v13  ;;  %19870 = vst [vmem:[#allocation28_spill] sm:$0xff] %v16165_v53  ;;  %v16317_v13 = vld [vmem:[%s19725_s10 + $0x140] sm:$0xff]  ;;  %v4717_v30 = vunpack.c.h.bf16 %v16367_v60 }
 0x83e   :  { %v16167_v27 = vmul.f32 %v4636_v31, %v4144_v62  ;;  %v16169_v46 = vmul.f32 %v4638_v37, %v4257_v45  ;;  %19893 = vst [vmem:[#allocation51_spill] sm:$0xff] %v16239_v35  ;;  %v16251_v45 = vld [vmem:[%s19725_s10 + $0x88] sm:$0xff]  ;;  %v16303_v31 = vld [vmem:[%s19725_s10 + $0x120] sm:$0xff]  ;;  %19900 = vst [vmem:[#allocation58_spill] sm:$0xff] %v16367_v60 }
 0x83f   :  { %v16171_v63 = vpop.f32.mrf.mxu0  ;;  %v16173_v61 = vpop.f32.mrf.mxu1  ;;  %19894 = vst [vmem:[#allocation52_spill] sm:$0xff] %v16251_v45  ;;  %v16270_v62 = vld [vmem:[%s19725_s10 + $0xa8] sm:$0xff]  ;;  %v4727_v45 = vunpack.c.h.bf16 %v16394_v43  ;;  %v16450_v43 = vld [vmem:[%s19725_s10 + $0x58] sm:$0xff] }
 0x840   :  { %19871 = vst [vmem:[#allocation29_spill] sm:$0xff] %v16167_v27  ;;  %19872 = vst [vmem:[#allocation30_spill] sm:$0xff] %v16169_v46  ;;  %v16275_v37 = vld [vmem:[%s19725_s10 + $0xe8] sm:$0xff] }
 0x841   :  { %19873 = vst [vmem:[#allocation31_spill] sm:$0xff] %v16171_v63  ;;  %19874 = vst [vmem:[#allocation32_spill] sm:$0xff] %v16173_v61  ;;  %v16179_v20 = vpop.f32.mrf.mxu0  ;;  %v16181_v58 = vpop.f32.mrf.mxu1  ;;  %v16312_v46 = vld [vmem:[%s19725_s10 + $0x128] sm:$0xff]  ;;  %v16399_v61 = vld [vmem:[%s19725_s10 + $0x1e0] sm:$0xff] }
 0x842   :  { %19875 = vst [vmem:[#allocation33_spill] sm:$0xff] %v16179_v20  ;;  %19876 = vst [vmem:[#allocation34_spill] sm:$0xff] %v16181_v58  ;;  %v16380_v58 = vld [vmem:[%s19725_s10 + $0x1a8] sm:$0xff]  ;;  %v16385_v20 = vld [vmem:[%s19725_s10 + $0x1c0] sm:$0xff] }
 0x843   :  { %v16183_v18 = vpop.f32.mrf.mxu0  ;;  %v16185_v6 = vpop.f32.mrf.mxu1  ;;  %19901 = vst [vmem:[#allocation59_spill] sm:$0xff] %v16380_v58  ;;  %v4719_v63 = vunpack.c.h.bf16 %v16380_v58  ;;  %v19903_v58 = vunpack.c.h.bf16 %v16239_v35 }
 0x844   :  { %19877 = vst [vmem:[#allocation35_spill] sm:$0xff] %v16183_v18  ;;  %19878 = vst [vmem:[#allocation36_spill] sm:$0xff] %v16185_v6  ;;  %v4724_v6 = vunpack.c.l.bf16 %v16385_v20 }
 0x845   :  { %v16187_v15 = vpop.f32.mrf.mxu0  ;;  %v16189_v1 = vpop.f32.mrf.mxu1 }
 0x846   :  { %19879 = vst [vmem:[#allocation37_spill] sm:$0xff] %v16187_v15  ;;  %19880 = vst [vmem:[#allocation38_spill] sm:$0xff] %v16189_v1  ;;  %v4609_v1 = vld [vmem:[%s19725_s10 + $0x1e8] sm:$0xff]  ;;  %v16415_v15 = vld [vmem:[%s19725_s10 + $0x10] sm:$0xff] }
 0x847   :  { %v16191_v41 = vpop.f32.mrf.mxu0  ;;  %v16193_v22 = vpop.f32.mrf.mxu1  ;;  %v4735_v25 = vunpack.c.h.bf16 %v4609_v1 }
 0x849   :  { %v16195_v4 = vpop.f32.mrf.mxu0  ;;  %v16197_v21 = vpop.f32.mrf.mxu1 }
 0x84a   :  { %19881 = vst [vmem:[#allocation39_spill] sm:$0xff] %v16195_v4  ;;  %19882 = vst [vmem:[#allocation40_spill] sm:$0xff] %v16197_v21  ;;  %v4725_v4 = vunpack.c.h.bf16 %v16385_v20 }
 0x84b   :  { %v16199_v8 = vpop.f32.mrf.mxu0  ;;  %v16201_v32 = vpop.f32.mrf.mxu1 }
 0x84d   :  { %v16203_v38 = vpop.f32.mrf.mxu0  ;;  %v16205_v2 = vpop.f32.mrf.mxu1 }
 0x84f   :  { %v16207_v54 = vpop.f32.mrf.mxu0  ;;  %v16209_v17 = vpop.f32.mrf.mxu1 }
 0x850   :  { %19883 = vst [vmem:[#allocation41_spill] sm:$0xff] %v16209_v17  ;;  %v16443_v17 = vld [vmem:[%s19725_s10 + $0x50] sm:$0xff] }
 0x851   :  { %v16211_v42 = vpop.f32.mrf.mxu0  ;;  %v16213_v26 = vpop.f32.mrf.mxu1 }
 0x852   :  { %19884 = vst [vmem:[#allocation42_spill] sm:$0xff] %v16211_v42  ;;  %19885 = vst [vmem:[#allocation43_spill] sm:$0xff] %v16213_v26  ;;  %v4732_v26 = vunpack.c.l.bf16 %v16399_v61  ;;  %v16438_v42 = vld [vmem:[%s19725_s10 + $0x38] sm:$0xff] }
 0x853   :  { %v16215_v10 = vpop.f32.mrf.mxu0  ;;  %v16217_v36 = vpop.f32.mrf.mxu1 }
 0x854   :  { %19886 = vst [vmem:[#allocation44_spill] sm:$0xff] %v16215_v10  ;;  %19887 = vst [vmem:[#allocation45_spill] sm:$0xff] %v16217_v36 }
 0x855   :  { %v16219_v0 = vpop.f32.mrf.mxu0  ;;  %v16221_v11 = vpop.f32.mrf.mxu1 }
 0x856   :  { %19888 = vst [vmem:[#allocation46_spill] sm:$0xff] %v16219_v0  ;;  %19889 = vst [vmem:[#allocation47_spill] sm:$0xff] %v16221_v11  ;;  %v4734_v11 = vunpack.c.l.bf16 %v4609_v1  ;;  %v4733_v0 = vunpack.c.h.bf16 %v16399_v61  ;;  %v19905_v1 = vunpack.c.h.bf16 %v16270_v62 }
 0x857   :  { %v16223_v55 = vpop.f32.mrf.mxu0  ;;  %v16225_v16 = vpop.f32.mrf.mxu1 }
 0x858   :  { %v16471_v61 = vmul.f32 %v19905_v1, %v16193_v22  ;;  %v19914_v1 = vunpack.c.h.bf16 %v16261_v23 }
 0x859   :  { %v16227_v47 = vpop.f32.mrf.mxu0  ;;  %v16229_v7 = vpop.f32.mrf.mxu1 }
 0x85a   :  { %19890 = vst [vmem:[#allocation48_spill] sm:$0xff] %v16227_v47  ;;  %19891 = vst [vmem:[#allocation49_spill] sm:$0xff] %v16229_v7  ;;  %v19910_v47 = vunpack.c.l.bf16 %v16261_v23  ;;  %v19918_v23 = vunpack.c.h.bf16 %v16330_v56 }
 0x85b   :  { %v16241_v12 = vpop.f32.mrf.mxu0  ;;  %v16243_v34 = vpop.f32.mrf.mxu1  ;;  %19906 = vst [vmem:[#allocation62_spill] sm:$0xff] %v16471_v61 }
 0x85c   :  { %v16486_v7 = vmul.f32 %v19910_v47, %v16203_v38 }
 0x85d   :  { %v16282_v14 = vpop.f32.mrf.mxu0  ;;  %v16284_v33 = vpop.f32.mrf.mxu1 }
 0x85e   :  { %19911 = vst [vmem:[#allocation64_spill] sm:$0xff] %v16486_v7 }
 0x85f   :  { %v16319_v27 = vpop.f32.mrf.mxu0  ;;  %v16321_v40 = vpop.f32.mrf.mxu1 }
 0x861   :  { %v16346_v5 = vpop.f32.mrf.mxu0  ;;  %v16353_v51 = vpop.f32.mrf.mxu1 }
 0x862   :  { %19898 = vst [vmem:[#allocation56_spill] sm:$0xff] %v16346_v5  ;;  %19899 = vst [vmem:[#allocation57_spill] sm:$0xff] %v16353_v51  ;;  %v19907_v5 = vunpack.c.h.bf16 %v16256_v59  ;;  %v19912_v51 = vunpack.c.l.bf16 %v16275_v37 }
 0x863   :  { %v16373_v49 = vpop.f32.mrf.mxu0  ;;  %v16375_v9 = vpop.f32.mrf.mxu1 }
 0x864   :  { %v16476_v20 = vmul.f32 %v19907_v5, %v16199_v8  ;;  %v16491_v22 = vmul.f32 %v19912_v51, %v16205_v2  ;;  %v16496_v5 = vmul.f32 %v19914_v1, %v16207_v54  ;;  %v19915_v8 = vunpack.c.h.bf16 %v16303_v31 }
 0x865   :  { %v16404_v28 = vpop.f32.mrf.mxu0  ;;  %v16407_v53 = vpop.f32.mrf.mxu1  ;;  %v19917_v51 = vunpack.c.h.bf16 %v16317_v13  ;;  %v16516_v54 = vmul.f32 %v19918_v23, %v16243_v34  ;;  %v19920_v34 = vunpack.c.l.bf16 %v16344_v29 }
 0x866   :  { %19902 = vst [vmem:[#allocation60_spill] sm:$0xff] %v16407_v53  ;;  %v16463_v53 = vmul.f32 %v19903_v58, %v16191_v41  ;;  %v19908_v58 = vunpack.c.h.bf16 %v16293_v19  ;;  %19913 = vst [vmem:[#allocation65_spill] sm:$0xff] %v16491_v22 }
 0x867   :  { %v4196_v18 = vpop.f32.mrf.mxu0  ;;  %v4309_v21 = vpop.f32.mrf.mxu1  ;;  %v16511_v2 = vmul.f32 %v19917_v51, %v16241_v12  ;;  %v16529_v23 = vmul.f32 %v19920_v34, %v16284_v33  ;;  %v19923_v33 = vunpack.c.h.bf16 %v16362_v3 }
 0x868   :  { %19904 = vst [vmem:[#allocation61_spill] sm:$0xff] %v16463_v53  ;;  %v16481_v41 = vmul.f32 %v19908_v58, %v16201_v32  ;;  %v16501_v32 = vmul.f32 %v19915_v8, %v16223_v55  ;;  %v19916_v58 = vunpack.c.h.bf16 %v16312_v46  ;;  %v19919_v55 = vunpack.c.l.bf16 %v16335_v50 }
 0x869   :  { %v4200_v36 = vpop.f32.mrf.mxu0  ;;  %v4313_v24 = vpop.f32.mrf.mxu1  ;;  %v4845_v8 = vmul.f32 %v4717_v30, %v4196_v18  ;;  %v19921_v50 = vunpack.c.h.bf16 %v16344_v29 }
 0x86a   :  { %19909 = vst [vmem:[#allocation63_spill] sm:$0xff] %v16481_v41  ;;  %v16506_v38 = vmul.f32 %v19916_v58, %v16225_v16  ;;  %v16521_v1 = vmul.f32 %v19919_v55, %v16282_v14  ;;  %v16524_v16 = vmul.f32 %v4701_v57, %v16319_v27  ;;  %v4847_v58 = vmul.f32 %v4719_v63, %v4309_v21  ;;  %v19931_v55 = vld [vmem:[#allocation57_spill] sm:$0xff] }
 0x86b   :  { %v4202_v10 = vpop.f32.mrf.mxu0  ;;  %v4315_v60 = vpop.f32.mrf.mxu1  ;;  %v16534_v57 = vmul.f32 %v19921_v50, %v16321_v40  ;;  %v4852_v30 = vmul.f32 %v4724_v6, %v4200_v36  ;;  %v4854_v27 = vmul.f32 %v4726_v39, %v4313_v24  ;;  %v16550_v39 = vld [vmem:[%s19725_s10 + $0x78] sm:$0xff] }
 0x86c   :  { %v4853_v51 = vmul.f32 %v4725_v4, %v4202_v10  ;;  %v4855_v35 = vmul.f32 %v4727_v45, %v4315_v60  ;;  %v16539_v60 = vld [vmem:[%s19725_s10 + $0x70] sm:$0xff]  ;;  %v4839_v4 = vmul.f32 %v19923_v33, %v16375_v9  ;;  %v19927_v10 = vld [vmem:[#allocation59_spill] sm:$0xff]  ;;  %v4909_v9 = vpack.c.bf16 %v16524_v16, %v16511_v2 }
 0x86d   :  { %v4204_v47 = vpop.f32.mrf.mxu0  ;;  %v4317_v61 = vpop.f32.mrf.mxu1  ;;  %v19924_v24 = vld [vmem:[#allocation58_spill] sm:$0xff]  ;;  %v19928_v36 = vunpack.c.l.bf16 %v19927_v10  ;;  %v4642_v16 = vunpack.c.l.bf16 %v16550_v39  ;;  %v19949_v10 = vld [vmem:[#allocation48_spill] sm:$0xff] }
 0x86e   :  { %v4860_v53 = vmul.f32 %v4732_v26, %v4204_v47  ;;  %v4862_v22 = vmul.f32 %v4734_v11, %v4317_v61  ;;  %v19925_v6 = vunpack.c.l.bf16 %v19924_v24  ;;  %v19926_v26 = vld [vmem:[#allocation60_spill] sm:$0xff]  ;;  %v4640_v61 = vunpack.c.l.bf16 %v16539_v60  ;;  %v16840_v24 = vld [vmem:[%s19725_s10 + $0xd0] sm:$0xff] }
 0x86f   :  { %v4206_v7 = vpop.f32.mrf.mxu0  ;;  %v4319_v12 = vpop.f32.mrf.mxu1 }
 0x870   :  { %v4861_v41 = vmul.f32 %v4733_v0, %v4206_v7  ;;  %v4863_v59 = vmul.f32 %v4735_v25, %v4319_v12  ;;  %v19922_v25 = vunpack.c.h.bf16 %v16351_v44  ;;  %v4844_v21 = vmul.f32 %v19925_v6, %v16404_v28  ;;  %v16835_v6 = vld [vmem:[%s19725_s10 + $0xb8] sm:$0xff] }
 0x871   :  { %v4356_v63 = vpop.f32.mrf.mxu0  ;;  %v4469_v14 = vpop.f32.mrf.mxu1  ;;  %v4846_v0 = vmul.f32 %v19928_v36, %v19926_v26  ;;  %v4926_v11 = vpack.c.bf16 %v4862_v22, %v4854_v27  ;;  %v19930_v28 = vunpack.c.l.bf16 %v16351_v44  ;;  %v19932_v12 = vunpack.c.l.bf16 %v16362_v3 }
 0x872   :  { %v4837_v18 = vmul.f32 %v19922_v25, %v16373_v49  ;;  %v4925_v29 = vpack.c.bf16 %v4861_v41, %v4853_v51  ;;  %v4927_v40 = vpack.c.bf16 %v4863_v59, %v4855_v35  ;;  %v4924_v49 = vpack.c.bf16 %v4860_v53, %v4852_v30  ;;  %v19929_v41 = vld [vmem:[#allocation56_spill] sm:$0xff] }
 0x873   :  { %v4358_v7 = vpop.f32.mrf.mxu0  ;;  %v4471_v45 = vpop.f32.mrf.mxu1  ;;  %v4919_v35 = vpack.c.bf16 %v4847_v58, %v4839_v4  ;;  %v4836_v47 = vmul.f32 %v19930_v28, %v19929_v41  ;;  %v4838_v53 = vmul.f32 %v19932_v12, %v19931_v55  ;;  %v19933_v22 = vunpack.c.l.bf16 %v16415_v15 }
 0x874   :  { %v4917_v59 = vpack.c.bf16 %v4845_v8, %v4837_v18  ;;  %4933 = vmatprep.subr.bf16.mxu0 %v4925_v29  ;;  %4974 = vmatprep.subr.bf16.mxu1 %v4927_v40  ;;  %v19935_v8 = vunpack.c.l.bf16 %v16424_v52  ;;  %v19937_v44 = vunpack.c.l.bf16 %v16429_v48  ;;  %v19939_v3 = vunpack.c.l.bf16 %v16438_v42 }
 0x875   :  { %v16569_v51 = vmul.f32 %v19933_v22, %v4356_v63  ;;  %v4360_v34 = vpop.f32.mrf.mxu0  ;;  %v4473_v2 = vpop.f32.mrf.mxu1  ;;  %4934 = vmatpush1.bf16.msra.mxu0 %v4924_v49  ;;  %4975 = vmatpush1.bf16.msra.mxu1 %v4926_v11  ;;  %v4641_v27 = vunpack.c.h.bf16 %v16539_v60  ;;  %v4916_v63 = vpack.c.bf16 %v4844_v21, %v4836_v47  ;;  %v4918_v25 = vpack.c.bf16 %v4846_v0, %v4838_v53  ;;  %v19951_v0 = vld [vmem:[#allocation49_spill] sm:$0xff] }
 0x876   :  { %v16574_v58 = vmul.f32 %v19935_v8, %v4469_v14  ;;  %v16578_v50 = vmul.f32 %v19937_v44, %v4360_v34  ;;  %v16582_v30 = vmul.f32 %v19939_v3, %v4473_v2  ;;  %4935 = vmatprep.subr.bf16.mxu0 %v4917_v59  ;;  %4976 = vmatprep.subr.bf16.mxu1 %v4919_v35  ;;  %v19941_v18 = vunpack.c.h.bf16 %v16415_v15  ;;  %v19954_v35 = vld [vmem:[#allocation54_spill] sm:$0xff]  ;;  %v19956_v47 = vld [vmem:[#allocation45_spill] sm:$0xff] }
 0x877   :  { %19934 = vst [vmem:[#allocation58_spill] sm:$0xff] %v16569_v51  ;;  %v19943_v14 = vunpack.c.h.bf16 %v16424_v52  ;;  %v4362_v29 = vpop.f32.mrf.mxu0  ;;  %v4475_v40 = vpop.f32.mrf.mxu1  ;;  %v19945_v60 = vunpack.c.h.bf16 %v16429_v48  ;;  %v19947_v15 = vunpack.c.h.bf16 %v16438_v42  ;;  %v19950_v52 = vunpack.c.l.bf16 %v16317_v13  ;;  %v19953_v42 = vld [vmem:[#allocation44_spill] sm:$0xff]  ;;  %v19957_v13 = vld [vmem:[#allocation55_spill] sm:$0xff]  ;;  %v4602_v51 = vld [vmem:[%s19725_s10 + $0x1b0] sm:$0xff] }
 0x878   :  { %19936 = vst [vmem:[#allocation60_spill] sm:$0xff] %v16574_v58  ;;  %19938 = vst [vmem:[#allocation59_spill] sm:$0xff] %v16578_v50  ;;  %v16587_v33 = vmul.f32 %v19941_v18, %v4358_v7  ;;  %v19952_v49 = vunpack.c.l.bf16 %v16330_v56  ;;  %v4911_v7 = vpack.c.bf16 %v16534_v57, %v16516_v54  ;;  %v4643_v48 = vunpack.c.h.bf16 %v16550_v39  ;;  %v19959_v57 = vld [vmem:[#allocation46_spill] sm:$0xff]  ;;  %v19961_v39 = vld [vmem:[#allocation47_spill] sm:$0xff] }
 0x879   :  { %19940 = vst [vmem:[#allocation56_spill] sm:$0xff] %v16582_v30  ;;  %v16591_v4 = vmul.f32 %v19943_v14, %v4471_v45  ;;  %v16599_v21 = vmul.f32 %v19945_v60, %v4362_v29  ;;  %v16603_v26 = vmul.f32 %v19947_v15, %v4475_v40  ;;  %v4820_v36 = vmul.f32 %v19950_v52, %v19949_v10  ;;  %v4366_v45 = vpop.f32.mrf.mxu0  ;;  %v4479_v59 = vpop.f32.mrf.mxu1  ;;  %v19963_v18 = vld [vmem:[#allocation41_spill] sm:$0xff]  ;;  %v19965_v40 = vld [vmem:[#allocation42_spill] sm:$0xff]  ;;  %v19967_v60 = vld [vmem:[#allocation43_spill] sm:$0xff] }
 0x87a   :  { %19942 = vst [vmem:[#allocation57_spill] sm:$0xff] %v16587_v33  ;;  %v4822_v11 = vmul.f32 %v19952_v49, %v19951_v0  ;;  %4936 = vmatpush1.bf16.msra.mxu0 %v4916_v63  ;;  %4977 = vmatpush1.bf16.msra.mxu1 %v4918_v25  ;;  %v19955_v41 = vunpack.c.h.bf16 %v19954_v35  ;;  %v19958_v55 = vunpack.c.h.bf16 %v19957_v13  ;;  %v19960_v53 = vunpack.c.l.bf16 %v16303_v31  ;;  %v16845_v54 = vld [vmem:[%s19725_s10 + $0xd8] sm:$0xff]  ;;  %v16850_v56 = vld [vmem:[%s19725_s10 + $0xf0] sm:$0xff] }
 0x87b   :  { %19944 = vst [vmem:[#allocation66_spill] sm:$0xff] %v16591_v4  ;;  %19946 = vst [vmem:[#allocation67_spill] sm:$0xff] %v16599_v21  ;;  %4937 = vmatprep.subr.bf16.mxu0 %v4909_v9  ;;  %v19962_v34 = vunpack.c.l.bf16 %v16312_v46  ;;  %v4908_v8 = vpack.c.bf16 %v16521_v1, %v4820_v36  ;;  %4978 = vmatprep.subr.bf16.mxu1 %v4911_v7  ;;  %v4368_v3 = vpop.f32.mrf.mxu0  ;;  %v4481_v63 = vpop.f32.mrf.mxu1  ;;  %v4893_v25 = vpack.c.bf16 %v16496_v5, %v16476_v20  ;;  %v16878_v4 = vld [vmem:[%s19725_s10 + $0x130] sm:$0xff]  ;;  %v16888_v58 = vld [vmem:[%s19725_s10 + $0x178] sm:$0xff] }
 0x87c   :  { %19948 = vst [vmem:[#allocation68_spill] sm:$0xff] %v16603_v26  ;;  %v4805_v28 = vmul.f32 %v19955_v41, %v19953_v42  ;;  %v4807_v12 = vmul.f32 %v19958_v55, %v19956_v47  ;;  %v4812_v22 = vmul.f32 %v19960_v53, %v19959_v57  ;;  %v4910_v44 = vpack.c.bf16 %v16529_v23, %v4822_v11  ;;  %v19981_v47 = vld [vmem:[#allocation52_spill] sm:$0xff]  ;;  %v19983_v55 = vld [vmem:[#allocation53_spill] sm:$0xff] }
 0x87d   :  { %v4814_v2 = vmul.f32 %v19962_v34, %v19961_v39  ;;  %v19964_v9 = vunpack.c.h.bf16 %v16275_v37  ;;  %v4662_v46 = vunpack.c.l.bf16 %v16293_v19  ;;  %v19966_v1 = vunpack.c.l.bf16 %v19954_v35  ;;  %v4370_v37 = vpop.f32.mrf.mxu0  ;;  %v4483_v52 = vpop.f32.mrf.mxu1  ;;  %v19985_v57 = vld [vmem:[#allocation40_spill] sm:$0xff]  ;;  %v16883_v26 = vld [vmem:[%s19725_s10 + $0x170] sm:$0xff] }
 0x87e   :  { %v4901_v31 = vpack.c.bf16 %v16501_v32, %v4805_v28  ;;  %v4903_v29 = vpack.c.bf16 %v16506_v38, %v4807_v12  ;;  %v19968_v15 = vunpack.c.l.bf16 %v19957_v13  ;;  %v19969_v20 = vunpack.c.l.bf16 %v16443_v17  ;;  %4938 = vmatpush1.bf16.msra.mxu0 %v4908_v8  ;;  %4979 = vmatpush1.bf16.msra.mxu1 %v4910_v44  ;;  %v19982_v13 = vld [vmem:[#allocation39_spill] sm:$0xff]  ;;  %v19990_v8 = vld [vmem:[#allocation50_spill] sm:$0xff] }
 0x87f   :  { %v4799_v14 = vmul.f32 %v19964_v9, %v19963_v18  ;;  %v4804_v23 = vmul.f32 %v19966_v1, %v19965_v40  ;;  %v4654_v32 = vunpack.c.l.bf16 %v16270_v62  ;;  %v19971_v19 = vunpack.c.l.bf16 %v16450_v43  ;;  %v4372_v62 = vpop.f32.mrf.mxu0  ;;  %v4485_v41 = vpop.f32.mrf.mxu1  ;;  %v19997_v1 = vld [vmem:[#allocation38_spill] sm:$0xff] }
 0x880   :  { %v4806_v10 = vmul.f32 %v19968_v15, %v19967_v60  ;;  %v16648_v5 = vmul.f32 %v19969_v20, %v4366_v45  ;;  %v16655_v36 = vmul.f32 %v4640_v61, %v4370_v37  ;;  %v16657_v0 = vmul.f32 %v4642_v16, %v4483_v52  ;;  %4939 = vmatprep.subr.bf16.mxu0 %v4901_v31  ;;  %v19994_v31 = vld [vmem:[#allocation37_spill] sm:$0xff]  ;;  %v19998_v60 = vld [vmem:[#allocation64_spill] sm:$0xff] }
 0x881   :  { %v16653_v38 = vmul.f32 %v19971_v19, %v4479_v59  ;;  %4980 = vmatprep.subr.bf16.mxu1 %v4903_v29  ;;  %v4900_v49 = vpack.c.bf16 %v4812_v22, %v4804_v23  ;;  %v19975_v7 = vunpack.c.h.bf16 %v16443_v17  ;;  %v19977_v42 = vunpack.c.h.bf16 %v16450_v43  ;;  %v19986_v22 = vld [vmem:[#allocation63_spill] sm:$0xff]  ;;  %v16681_v34 = vpop.f32.mrf.mxu0  ;;  %v20002_v19 = vld [vmem:[#allocation12_spill] sm:$0xff]  ;;  %v16864_v9 = vld [vmem:[%s19725_s10 + $0x110] sm:$0xff] }
 0x882   :  { %19970 = vst [vmem:[#allocation48_spill] sm:$0xff] %v16648_v5  ;;  %19973 = vst [vmem:[#allocation44_spill] sm:$0xff] %v16655_v36  ;;  %v4902_v11 = vpack.c.bf16 %v4814_v2, %v4806_v10  ;;  %v16671_v59 = vmul.f32 %v4641_v27, %v4372_v62  ;;  %v16673_v28 = vmul.f32 %v4643_v48, %v4485_v41  ;;  %v4646_v17 = vunpack.c.l.bf16 %v19981_v47  ;;  %v16683_v2 = vpop.f32.mrf.mxu1  ;;  %v19989_v27 = vld [vmem:[#allocation35_spill] sm:$0xff]  ;;  %v19999_v10 = vld [vmem:[#allocation65_spill] sm:$0xff] }
 0x883   :  { %19972 = vst [vmem:[#allocation49_spill] sm:$0xff] %v16653_v38  ;;  %19974 = vst [vmem:[#allocation54_spill] sm:$0xff] %v16657_v0  ;;  %v16661_v45 = vmul.f32 %v19975_v7, %v4368_v3  ;;  %v16665_v35 = vmul.f32 %v19977_v42, %v4481_v63  ;;  %v19984_v12 = vunpack.c.l.bf16 %v19983_v55  ;;  %v4790_v53 = vmul.f32 %v4662_v46, %v19985_v57  ;;  %v19992_v3 = vld [vmem:[#allocation36_spill] sm:$0xff]  ;;  %v19995_v29 = vld [vmem:[#allocation51_spill] sm:$0xff]  ;;  %v16701_v37 = vpop.f32.mrf.mxu0 }
 0x884   :  { %19979 = vst [vmem:[#allocation46_spill] sm:$0xff] %v16671_v59  ;;  %19980 = vst [vmem:[#allocation47_spill] sm:$0xff] %v16673_v28  ;;  %v4895_v39 = vpack.c.bf16 %v4799_v14, %v19986_v22  ;;  %4940 = vmatpush1.bf16.msra.mxu0 %v4900_v49  ;;  %4981 = vmatpush1.bf16.msra.mxu1 %v4902_v11  ;;  %v19991_v48 = vunpack.c.h.bf16 %v19990_v8  ;;  %v19993_v63 = vunpack.c.h.bf16 %v19981_v47  ;;  %v19996_v46 = vunpack.c.l.bf16 %v19995_v29  ;;  %v16703_v52 = vpop.f32.mrf.mxu1  ;;  %v20003_v11 = vld [vmem:[#allocation31_spill] sm:$0xff]  ;;  %v20006_v62 = vld [vmem:[#allocation61_spill] sm:$0xff] }
 0x885   :  { %19976 = vst [vmem:[#allocation45_spill] sm:$0xff] %v16661_v45  ;;  %19978 = vst [vmem:[#allocation55_spill] sm:$0xff] %v16665_v35  ;;  %v4788_v43 = vmul.f32 %v19984_v12, %v19982_v13  ;;  %4941 = vmatprep.subr.bf16.mxu0 %v4893_v25  ;;  %v4782_v23 = vmul.f32 %v4654_v32, %v19997_v1  ;;  %v4894_v20 = vpack.c.bf16 %v19999_v10, %v4790_v53  ;;  %v20004_v7 = vld [vmem:[#allocation23_spill] sm:$0xff]  ;;  %v20007_v47 = vld [vmem:[#allocation62_spill] sm:$0xff] }
 0x886   :  { %19987 = vst [vmem:[#allocation41_spill] sm:$0xff] %v16681_v34  ;;  %19988 = vst [vmem:[#allocation42_spill] sm:$0xff] %v16683_v2  ;;  %v4773_v44 = vmul.f32 %v19991_v48, %v19989_v27  ;;  %v4775_v18 = vmul.f32 %v19993_v63, %v19992_v3  ;;  %v4780_v40 = vmul.f32 %v19996_v46, %v19994_v31  ;;  %4982 = vmatprep.subr.bf16.mxu1 %v4895_v39  ;;  %v20008_v32 = vld [vmem:[#allocation32_spill] sm:$0xff]  ;;  %v20011_v57 = vld [vmem:[#allocation33_spill] sm:$0xff]  ;;  %v16718_v48 = vpop.f32.mrf.mxu0  ;;  %v16720_v3 = vpop.f32.mrf.mxu1 }
 0x887   :  { %v4892_v15 = vpack.c.bf16 %v19998_v60, %v4788_v43  ;;  %20000 = vst [vmem:[#allocation43_spill] sm:$0xff] %v16701_v37  ;;  %20001 = vst [vmem:[#allocation52_spill] sm:$0xff] %v16703_v52  ;;  %v4623_v49 = vunpack.c.h.bf16 %v20002_v19  ;;  %v20005_v25 = vunpack.c.h.bf16 %v20004_v7  ;;  %v20009_v55 = vld [vmem:[#allocation24_spill] sm:$0xff]  ;;  %v20012_v53 = vunpack.c.l.bf16 %v19990_v8  ;;  %v20013_v39 = vld [vmem:[#allocation34_spill] sm:$0xff] }
 0x888   :  { %v4885_v41 = vpack.c.bf16 %v20006_v62, %v4773_v44  ;;  %v4887_v13 = vpack.c.bf16 %v20007_v47, %v4775_v18  ;;  %v20010_v12 = vunpack.c.h.bf16 %v20009_v55  ;;  %v4774_v27 = vmul.f32 %v4646_v17, %v20013_v39  ;;  %20014 = vst [vmem:[#allocation39_spill] sm:$0xff] %v16718_v48  ;;  %20015 = vst [vmem:[#allocation53_spill] sm:$0xff] %v16720_v3  ;;  %v20016_v63 = vld [vmem:[#allocation9_spill] sm:$0xff]  ;;  %v20017_v31 = vld [vmem:[#allocation10_spill] sm:$0xff] }
 0x889   :  { %v4765_v42 = vmul.f32 %v20005_v25, %v20003_v11  ;;  %v4772_v22 = vmul.f32 %v20012_v53, %v20011_v57  ;;  %4942 = vmatpush1.bf16.msra.mxu0 %v4892_v15  ;;  %4983 = vmatpush1.bf16.msra.mxu1 %v4894_v20  ;;  %v4613_v44 = vunpack.c.h.bf16 %v20016_v63  ;;  %v4615_v18 = vunpack.c.h.bf16 %v20017_v31  ;;  %v20018_v29 = vld [vmem:[#allocation25_spill] sm:$0xff]  ;;  %v20019_v46 = vld [vmem:[#allocation19_spill] sm:$0xff]  ;;  %v20021_v8 = vld [vmem:[#allocation26_spill] sm:$0xff]  ;;  %v16730_v25 = vpop.f32.mrf.mxu0  ;;  %v16732_v15 = vpop.f32.mrf.mxu1 }
 0x88a   :  { %v4767_v43 = vmul.f32 %v20010_v12, %v20008_v32  ;;  %v20020_v1 = vunpack.c.h.bf16 %v20019_v46  ;;  %4943 = vmatprep.subr.bf16.mxu0 %v4885_v41  ;;  %4984 = vmatprep.subr.bf16.mxu1 %v4887_v13  ;;  %v20022_v10 = vld [vmem:[#allocation22_spill] sm:$0xff]  ;;  %v4886_v7 = vpack.c.bf16 %v4782_v23, %v4774_v27  ;;  %20024 = vst [vmem:[#allocation40_spill] sm:$0xff] %v16730_v25  ;;  %20025 = vst [vmem:[#allocation63_spill] sm:$0xff] %v16732_v15  ;;  %v20026_v20 = vld [vmem:[#allocation20_spill] sm:$0xff] }
 0x88b   :  { %v20023_v19 = vunpack.c.h.bf16 %v20022_v10  ;;  %v4884_v11 = vpack.c.bf16 %v4780_v40, %v4772_v22  ;;  %v20027_v62 = vld [vmem:[#allocation11_spill] sm:$0xff]  ;;  %v20029_v55 = vld [vmem:[#allocation21_spill] sm:$0xff]  ;;  %v16738_v41 = vpop.f32.mrf.mxu0  ;;  %v16740_v13 = vpop.f32.mrf.mxu1  ;;  %v20033_v22 = vld [vmem:[#allocation14_spill] sm:$0xff]  ;;  %20065 = vst [vmem:[#allocation19_spill] sm:$0xff] %v16835_v6  ;;  %v4705_v34 = vunpack.c.h.bf16 %v16883_v26  ;;  %v4721_v52 = vunpack.c.h.bf16 %v4602_v51 }
 0x88c   :  { %v4757_v60 = vmul.f32 %v20020_v1, %v20018_v29  ;;  %v20028_v47 = vunpack.c.h.bf16 %v20027_v62  ;;  %v4751_v12 = vmul.f32 %v4623_v49, %v20029_v55  ;;  %20030 = vst [vmem:[#allocation35_spill] sm:$0xff] %v16738_v41  ;;  %20031 = vst [vmem:[#allocation50_spill] sm:$0xff] %v16740_v13  ;;  %v20032_v40 = vld [vmem:[#allocation13_spill] sm:$0xff]  ;;  %v4743_v39 = vmul.f32 %v4615_v18, %v20033_v22  ;;  %v20039_v46 = vld [vmem:[#allocation27_spill] sm:$0xff] }
 0x88d   :  { %v4759_v17 = vmul.f32 %v20023_v19, %v20021_v8  ;;  %4944 = vmatpush1.bf16.msra.mxu0 %v4884_v11  ;;  %4985 = vmatpush1.bf16.msra.mxu1 %v4886_v7  ;;  %v4741_v23 = vmul.f32 %v4613_v44, %v20032_v40  ;;  %v16744_v27 = vpop.f32.mrf.mxu0  ;;  %v16746_v63 = vpop.f32.mrf.mxu1  ;;  %v20038_v29 = vld [vmem:[#allocation29_spill] sm:$0xff]  ;;  %v20042_v44 = vld [vmem:[#allocation28_spill] sm:$0xff]  ;;  %v20049_v7 = vld [vmem:[#allocation15_spill] sm:$0xff]  ;;  %20066 = vst [vmem:[#allocation26_spill] sm:$0xff] %v16840_v24  ;;  %v4707_v25 = vunpack.c.h.bf16 %v16888_v58 }
 0x88e   :  { %v4749_v32 = vmul.f32 %v20028_v47, %v20026_v20  ;;  %v4877_v57 = vpack.c.bf16 %v4765_v42, %v4757_v60  ;;  %20034 = vst [vmem:[#allocation36_spill] sm:$0xff] %v16744_v27  ;;  %20035 = vst [vmem:[#allocation37_spill] sm:$0xff] %v16746_v63  ;;  %v4871_v49 = vpack.c.bf16 %v4751_v12, %v4743_v39  ;;  %v20041_v60 = vld [vmem:[#allocation30_spill] sm:$0xff]  ;;  %v20048_v11 = vld [vmem:[#allocation17_spill] sm:$0xff] }
 0x88f   :  { %v4879_v53 = vpack.c.bf16 %v4767_v43, %v4759_v17  ;;  %v16748_v42 = vpop.f32.mrf.mxu0  ;;  %v16750_v43 = vpop.f32.mrf.mxu1  ;;  %v20040_v1 = vpack.c.bf16 %v20038_v29, %v20039_v46  ;;  %v20043_v8 = vpack.c.bf16 %v20041_v60, %v20042_v44  ;;  %v20050_v20 = vpack.c.bf16 %v20048_v11, %v20049_v7  ;;  %v20051_v62 = vld [vmem:[#allocation18_spill] sm:$0xff]  ;;  %v20052_v47 = vld [vmem:[#allocation16_spill] sm:$0xff]  ;;  %v16775_v55 = vld [vmem:[%s19726_s11] sm:$0x1]  ;;  %20067 = vst [vmem:[#allocation22_spill] sm:$0xff] %v16845_v54 }
 0x890   :  { %4945 = vmatprep.subr.bf16.mxu0 %v4877_v57  ;;  %v4869_v31 = vpack.c.bf16 %v4749_v32, %v4741_v23  ;;  %20036 = vst [vmem:[#allocation51_spill] sm:$0xff] %v16748_v42  ;;  %20037 = vst [vmem:[#allocation38_spill] sm:$0xff] %v16750_v43  ;;  %v20053_v32 = vpack.c.bf16 %v20051_v62, %v20052_v47  ;;  %v20059_v23 = vmov 0   ;;  %v16820_v47 = vld [vmem:[%s19725_s10 + $0x90] sm:$0xff]  ;;  %v16859_v14 = vld [vmem:[%s19725_s10 + $0xf8] sm:$0xff]  ;;  %v4720_v54 = vunpack.c.l.bf16 %v4602_v51 }
 0x891   :  { %4986 = vmatprep.subr.bf16.mxu1 %v4879_v53  ;;  %4946 = vmatpush1.bf16.msra.mxu0 %v20040_v1  ;;  %v16758_v18 = vpop.f32.mrf.mxu0  ;;  %v16760_v10 = vpop.f32.mrf.mxu1  ;;  %20054 = vst [vmem:[#allocation23_spill] sm:$0xff] %v16775_v55  ;;  %20062 = vst [vmem:[#allocation9_spill] sm:$0xff] %v16820_v47  ;;  %v16897_v0 = vld [vmem:[%s19725_s10 + $0x150] sm:$0xff]  ;;  %v4611_v36 = vld [vmem:[%s19725_s10 + $0x1f8] sm:$0xff] }
 0x892   :  { %4987 = vmatpush1.bf16.msra.mxu1 %v20043_v8  ;;  %4947 = vmatprep.subr.bf16.mxu0 %v4869_v31  ;;  %20044 = vst [vmem:[#allocation64_spill] sm:$0xff] %v16758_v18  ;;  %20045 = vst [vmem:[#allocation65_spill] sm:$0xff] %v16760_v10  ;;  %v4610_v5 = vld [vmem:[%s19725_s10 + $0x1f0] sm:$0xff]  ;;  %v16911_v38 = vld [vmem:[%s19725_s10 + $0x158] sm:$0xff]  ;;  %v4738_v2 = vunpack.c.l.bf16 %v4611_v36  ;;  %v4739_v15 = vunpack.c.h.bf16 %v4611_v36 }
 0x893   :  { %4988 = vmatprep.subr.bf16.mxu1 %v4871_v49  ;;  %v16762_v19 = vpop.f32.mrf.mxu0  ;;  %v16764_v17 = vpop.f32.mrf.mxu1  ;;  %20068 = vst [vmem:[#allocation20_spill] sm:$0xff] %v16850_v56  ;;  %20069 = vst [vmem:[#allocation11_spill] sm:$0xff] %v16859_v14  ;;  %v16917_v28 = vld [vmem:[%s19725_s10 + $0x190] sm:$0xff]  ;;  %v4603_v35 = vld [vmem:[%s19725_s10 + $0x1b8] sm:$0xff]  ;;  %v4736_v13 = vunpack.c.l.bf16 %v4610_v5  ;;  %v4737_v47 = vunpack.c.h.bf16 %v4610_v5 }
 0x894   :  { %20046 = vst [vmem:[#allocation12_spill] sm:$0xff] %v16762_v19  ;;  %20047 = vst [vmem:[#allocation31_spill] sm:$0xff] %v16764_v17  ;;  %v4606_v3 = vld [vmem:[%s19725_s10 + $0x1d0] sm:$0xff]  ;;  %v4607_v48 = vld [vmem:[%s19725_s10 + $0x1d8] sm:$0xff]  ;;  %v4723_v21 = vunpack.c.h.bf16 %v4603_v35  ;;  %v4712_v43 = vunpack.c.l.bf16 %v16917_v28  ;;  %v4713_v17 = vunpack.c.h.bf16 %v16917_v28  ;;  %v4722_v24 = vunpack.c.l.bf16 %v4603_v35 }
 0x895   :  { %4948 = vmatpush1.bf16.msra.mxu0 %v20050_v20  ;;  %v16777_v12 = vpop.f32.mrf.mxu0  ;;  %v16779_v57 = vpop.f32.mrf.mxu1  ;;  %v4729_v41 = vunpack.c.h.bf16 %v4606_v3  ;;  %v4599_v42 = vld [vmem:[%s19725_s10 + $0x198] sm:$0xff]  ;;  %v4728_v63 = vunpack.c.l.bf16 %v4606_v3  ;;  %v4730_v27 = vunpack.c.l.bf16 %v4607_v48 }
 0x896   :  { %4989 = vmatpush1.bf16.msra.mxu1 %v20053_v32  ;;  %20055 = vst [vmem:[#allocation61_spill] sm:$0xff] %v16777_v12  ;;  %20056 = vst [vmem:[#allocation62_spill] sm:$0xff] %v16779_v57  ;;  %v16825_v32 = vld [vmem:[%s19725_s10 + $0x98] sm:$0xff]  ;;  %v4715_v19 = vunpack.c.h.bf16 %v4599_v42 }
 0x897   :  { %v16783_v53 = vpop.f32.mrf.mxu0  ;;  %v16785_v40 = vpop.f32.mrf.mxu1  ;;  %20063 = vst [vmem:[#allocation10_spill] sm:$0xff] %v16825_v32  ;;  %v4731_v32 = vunpack.c.h.bf16 %v4607_v48  ;;  %v4714_v48 = vunpack.c.l.bf16 %v4599_v42 }
 0x898   :  { %4966 = vmatmul.mubr.bf16.vlgmr.msra.gmra.mxu0 %v16775_v55  ;;  %20057 = vst [vmem:[#allocation32_spill] sm:$0xff] %v16783_v53  ;;  %20058 = vst [vmem:[#allocation24_spill] sm:$0xff] %v16785_v40 }
 0x899   :  { %5007 = vmatmul.mubr.bf16.vlgmr.msra.gmra.mxu1 %v16775_v55  ;;  %5047 = vmatprep.mubr.bf16.mxu0 %v20059_v23  ;;  %v16789_v22 = vpop.f32.mrf.mxu0  ;;  %v16791_v39 = vpop.f32.mrf.mxu1  ;;  %v16869_v55 = vld [vmem:[%s19725_s10 + $0x118] sm:$0xff] }
 0x89a   :  { %5088 = vmatprep.mubr.bf16.mxu1 %v20059_v23  ;;  %v16830_v23 = vld [vmem:[%s19725_s10 + $0xb0] sm:$0xff] }
 0x89b   :  { %v16793_v31 = vpop.f32.mrf.mxu0  ;;  %v16795_v49 = vpop.f32.mrf.mxu1  ;;  %20064 = vst [vmem:[#allocation25_spill] sm:$0xff] %v16830_v23 }
 0x89c   :  { %20060 = vst [vmem:[#allocation33_spill] sm:$0xff] %v16793_v31  ;;  %20061 = vst [vmem:[#allocation34_spill] sm:$0xff] %v16795_v49 }
 0x89d   :  { %v16797_v29 = vpop.f32.mrf.mxu0  ;;  %v16799_v46 = vpop.f32.mrf.mxu1 }
 0x89f   :  { %v16801_v1 = vpop.f32.mrf.mxu0  ;;  %v16803_v60 = vpop.f32.mrf.mxu1 }
 0x8a1   :  { %v16805_v44 = vpop.f32.mrf.mxu0  ;;  %v16807_v8 = vpop.f32.mrf.mxu1 }
 0x8a2   :  { %v4833_v3 = vmul.f32 %v4705_v34, %v16805_v44 }
 0x8a3   :  { %v16809_v11 = vpop.f32.mrf.mxu0  ;;  %v16811_v7 = vpop.f32.mrf.mxu1 }
 0x8a5   :  { %v16813_v20 = vpop.f32.mrf.mxu0  ;;  %v16815_v62 = vpop.f32.mrf.mxu1 }
 0x8a6   :  { %v4841_v28 = vmul.f32 %v4713_v17, %v16813_v20  ;;  %v4843_v51 = vmul.f32 %v4715_v19, %v16815_v62 }
 0x8a7   :  { %v16852_v16 = vpop.f32.mrf.mxu0  ;;  %v16854_v61 = vpop.f32.mrf.mxu1 }
 0x8a9   :  { %v4422_v30 = vpop.f32.mrf.mxu0  ;;  %v4535_v33 = vpop.f32.mrf.mxu1 }
 0x8aa   :  { %v4849_v10 = vmul.f32 %v4721_v52, %v4422_v30  ;;  %v4851_v5 = vmul.f32 %v4723_v21, %v4535_v33  ;;  %v4587_v33 = vld [vmem:[%s19725_s10 + $0x138] sm:$0xff]  ;;  %v4850_v21 = vmul.f32 %v4722_v24, %v16854_v61  ;;  %v4840_v52 = vmul.f32 %v4712_v43, %v16809_v11  ;;  %s11283_s10 = sshll.u32 %s12769_s7, 4  ;;  %s11284_s10 = int_to_ptr.vmem [resolvable:$true] %s11283_s10 }
 0x8ab   :  { %v4426_v45 = vpop.f32.mrf.mxu0  ;;  %v4539_v50 = vpop.f32.mrf.mxu1  ;;  %v4691_v34 = vunpack.c.h.bf16 %v4587_v33  ;;  %v4688_v24 = vunpack.c.l.bf16 %v16878_v4  ;;  %v20070_v61 = vunpack.c.h.bf16 %v16897_v0  ;;  %s12739_s4 = scalar_lea.vmem %s11284_s10, 32  ;;  %p12744_p1 = scmp.lt.s32.totalorder %s11284_s10, %s11284_s10 }
 0x8ac   :  { %v4856_v49 = vmul.f32 %v4728_v63, %v4426_v45  ;;  %v4858_v31 = vmul.f32 %v4730_v27, %v4539_v50  ;;  %v4835_v45 = vmul.f32 %v4707_v25, %v16807_v8  ;;  %v4921_v50 = vpack.c.bf16 %v4849_v10, %v4841_v28  ;;  %v20083_v8 = vld [vmem:[#allocation32_spill] sm:$0xff]  ;;  %p12740_p0 = scmp.ne.s32.totalorder %s11284_s10, %s12739_s4  ;;  %p12745_p2 = scmp.lt.s32.totalorder %s12739_s4, %s12739_s4 }
 0x8ad   :  { %v4428_v37 = vpop.f32.mrf.mxu0  ;;  %v4541_v59 = vpop.f32.mrf.mxu1  ;;  %v20071_v25 = vunpack.c.h.bf16 %v16911_v38  ;;  %v20073_v63 = vunpack.c.l.bf16 %v16888_v58  ;;  %v4819_v19 = vmul.f32 %v4691_v34, %v16791_v39  ;;  %v20077_v58 = vld [vmem:[#allocation20_spill] sm:$0xff]  ;;  %v4816_v11 = vmul.f32 %v4688_v24, %v20083_v8 }
 0x8ae   :  { %v4857_v57 = vmul.f32 %v4729_v41, %v4428_v37  ;;  %v4859_v12 = vmul.f32 %v4731_v32, %v4541_v59  ;;  %v4923_v37 = vpack.c.bf16 %v4851_v5, %v4843_v51  ;;  %v20085_v32 = vld [vmem:[#allocation64_spill] sm:$0xff]  ;;  %p12746_p3 = por %p12745_p2, %p12744_p1 }
 0x8af   :  { %v4430_v6 = vpop.f32.mrf.mxu0  ;;  %v4543_v23 = vpop.f32.mrf.mxu1  ;;  %v4827_v41 = vmul.f32 %v20071_v25, %v16799_v46  ;;  %v4834_v42 = vmul.f32 %v20073_v63, %v16803_v60  ;;  %v20082_v60 = vunpack.c.h.bf16 %v16869_v55 }
 0x8b0   :  { %v4864_v36 = vmul.f32 %v4736_v13, %v4430_v6  ;;  %v4866_v18 = vmul.f32 %v4738_v2, %v4543_v23  ;;  %v4848_v6 = vmul.f32 %v4720_v54, %v16852_v16  ;;  %v4690_v54 = vunpack.c.l.bf16 %v4587_v33  ;;  %v20091_v33 = vld [vmem:[#allocation12_spill] sm:$0xff]  ;;  %p12747_p4 = pnand %p12746_p3, %p12740_p0 }
 0x8b1   :  { %v4432_v40 = vpop.f32.mrf.mxu0  ;;  %v4545_v53 = vpop.f32.mrf.mxu1  ;;  %v4825_v16 = vmul.f32 %v20070_v61, %v16797_v29  ;;  %v20072_v13 = vunpack.c.l.bf16 %v16883_v26  ;;  %v4915_v17 = vpack.c.bf16 %v4835_v45, %v4827_v41  ;;  %v20075_v26 = vld [vmem:[#allocation33_spill] sm:$0xff]  ;;  %v20078_v29 = vld [vmem:[#allocation11_spill] sm:$0xff]  ;;  %v20086_v23 = vunpack.c.h.bf16 %v20077_v58 }
 0x8b2   :  { %v4865_v14 = vmul.f32 %v4737_v47, %v4432_v40  ;;  %v4867_v56 = vmul.f32 %v4739_v15, %v4545_v53  ;;  %v4928_v59 = vpack.c.bf16 %v4864_v36, %v4856_v49  ;;  %v4930_v2 = vpack.c.bf16 %v4866_v18, %v4858_v31  ;;  %v20076_v40 = vld [vmem:[#allocation34_spill] sm:$0xff]  ;;  %v20087_v36 = vld [vmem:[#allocation65_spill] sm:$0xff]  ;;  %v20094_v45 = vld [vmem:[#allocation19_spill] sm:$0xff] }
 0x8b3   :  { %v4842_v15 = vmul.f32 %v4714_v48, %v16811_v7  ;;  %v4832_v27 = vmul.f32 %v20072_v13, %v16801_v1  ;;  %v4920_v43 = vpack.c.bf16 %v4848_v6, %v4840_v52  ;;  %v4672_v49 = vunpack.c.l.bf16 %v20077_v58  ;;  %v20081_v1 = vld [vmem:[#allocation62_spill] sm:$0xff]  ;;  %v20084_v7 = vld [vmem:[#allocation24_spill] sm:$0xff]  ;;  %v20097_v52 = vld [vmem:[#allocation37_spill] sm:$0xff] }
 0x8b4   :  { %v4929_v35 = vpack.c.bf16 %v4865_v14, %v4857_v57  ;;  %v4931_v30 = vpack.c.bf16 %v4867_v56, %v4859_v12  ;;  %v4696_v14 = vunpack.c.l.bf16 %v16897_v0  ;;  %v4698_v56 = vunpack.c.l.bf16 %v16911_v38  ;;  %v20109_v58 = vld [vmem:[#allocation43_spill] sm:$0xff] }
 0x8b5   :  { %v4922_v18 = vpack.c.bf16 %v4850_v21, %v4842_v15  ;;  %v20074_v0 = vunpack.c.h.bf16 %v16878_v4  ;;  %v4913_v38 = vpack.c.bf16 %v4833_v3, %v4825_v16  ;;  %v4680_v12 = vunpack.c.l.bf16 %v16864_v9  ;;  %v20079_v4 = vld [vmem:[#allocation61_spill] sm:$0xff]  ;;  %v20092_v21 = vld [vmem:[#allocation31_spill] sm:$0xff]  ;;  %v20100_v16 = vld [vmem:[#allocation38_spill] sm:$0xff] }
 0x8b6   :  { %5015 = vmatprep.subr.bf16.mxu0 %v4929_v35  ;;  %5056 = vmatprep.subr.bf16.mxu1 %v4931_v30  ;;  %v4682_v57 = vunpack.c.l.bf16 %v16869_v55  ;;  %v4824_v53 = vmul.f32 %v4696_v14, %v20075_v26  ;;  %v4826_v31 = vmul.f32 %v4698_v56, %v20076_v40  ;;  %v4674_v46 = vunpack.c.l.bf16 %v20078_v29  ;;  %v20089_v55 = vld [vmem:[#allocation26_spill] sm:$0xff]  ;;  %v20107_v26 = vld [vmem:[#allocation35_spill] sm:$0xff] }
 0x8b7   :  { %5016 = vmatpush1.bf16.msra.mxu0 %v4928_v59  ;;  %5057 = vmatpush1.bf16.msra.mxu1 %v4930_v2  ;;  %v4817_v10 = vmul.f32 %v20074_v0, %v16789_v22  ;;  %v20080_v22 = vunpack.c.h.bf16 %v16864_v9  ;;  %v4811_v44 = vmul.f32 %v20082_v60, %v20081_v1  ;;  %v4818_v20 = vmul.f32 %v4690_v54, %v20084_v7  ;;  %v20090_v35 = vld [vmem:[#allocation22_spill] sm:$0xff]  ;;  %v20093_v2 = vld [vmem:[#allocation25_spill] sm:$0xff]  ;;  %v20099_v54 = vld [vmem:[#allocation51_spill] sm:$0xff] }
 0x8b8   :  { %5017 = vmatprep.subr.bf16.mxu0 %v4921_v50  ;;  %5058 = vmatprep.subr.bf16.mxu1 %v4923_v37  ;;  %v4912_v62 = vpack.c.bf16 %v4832_v27, %v4824_v53  ;;  %v4914_v47 = vpack.c.bf16 %v4834_v42, %v4826_v31  ;;  %v4801_v5 = vmul.f32 %v20086_v23, %v20085_v32  ;;  %v20088_v9 = vunpack.c.h.bf16 %v20078_v29  ;;  %v20095_v37 = vld [vmem:[#allocation36_spill] sm:$0xff]  ;;  %v20108_v40 = vld [vmem:[#allocation50_spill] sm:$0xff]  ;;  %v20114_v60 = vld [vmem:[#allocation53_spill] sm:$0xff] }
 0x8b9   :  { %v4809_v39 = vmul.f32 %v20080_v22, %v20079_v4  ;;  %v4907_v28 = vpack.c.bf16 %v4819_v19, %v4811_v44  ;;  %v4664_v51 = vunpack.c.l.bf16 %v20089_v55  ;;  %v4666_v30 = vunpack.c.l.bf16 %v20090_v35  ;;  %v20101_v27 = vld [vmem:[#allocation40_spill] sm:$0xff]  ;;  %v20116_v32 = vld [vmem:[#allocation42_spill] sm:$0xff] }
 0x8ba   :  { %v4803_v3 = vmul.f32 %v20088_v9, %v20087_v36  ;;  %v4808_v6 = vmul.f32 %v4680_v12, %v20091_v33  ;;  %v4810_v59 = vmul.f32 %v4682_v57, %v20092_v21  ;;  %v4656_v34 = vunpack.c.l.bf16 %v20093_v2  ;;  %v20106_v12 = vld [vmem:[#allocation10_spill] sm:$0xff]  ;;  %v5289_v33 = vld [vmem:[%s19727_s12 + $0x5c0] sm:$0xff] }
 0x8bb   :  { %5018 = vmatpush1.bf16.msra.mxu0 %v4920_v43  ;;  %5059 = vmatpush1.bf16.msra.mxu1 %v4922_v18  ;;  %v4905_v48 = vpack.c.bf16 %v4817_v10, %v4809_v39  ;;  %v4658_v50 = vunpack.c.l.bf16 %v20094_v45  ;;  %v20096_v14 = vunpack.c.h.bf16 %v20089_v55  ;;  %v20098_v15 = vunpack.c.h.bf16 %v20090_v35  ;;  %v20103_v43 = vld [vmem:[#allocation63_spill] sm:$0xff]  ;;  %v20117_v9 = vld [vmem:[#allocation46_spill] sm:$0xff]  ;;  %v20123_v21 = vld [vmem:[#allocation44_spill] sm:$0xff] }
 0x8bc   :  { %5019 = vmatprep.subr.bf16.mxu0 %v4913_v38  ;;  %5060 = vmatprep.subr.bf16.mxu1 %v4915_v17  ;;  %v4800_v61 = vmul.f32 %v4672_v49, %v20099_v54  ;;  %v4802_v25 = vmul.f32 %v4674_v46, %v20100_v16  ;;  %v4904_v41 = vpack.c.bf16 %v4816_v11, %v4808_v6  ;;  %v20102_v63 = vunpack.c.h.bf16 %v20093_v2  ;;  %v20105_v38 = vld [vmem:[#allocation9_spill] sm:$0xff]  ;;  %v20111_v46 = vld [vmem:[#allocation52_spill] sm:$0xff]  ;;  %v20113_v39 = vld [vmem:[#allocation39_spill] sm:$0xff] }
 0x8bd   :  { %v4793_v56 = vmul.f32 %v20096_v14, %v20095_v37  ;;  %v4795_v24 = vmul.f32 %v20098_v15, %v20097_v52  ;;  %v4906_v13 = vpack.c.bf16 %v4818_v20, %v4810_v59  ;;  %v20104_v18 = vunpack.c.h.bf16 %v20094_v45  ;;  %v20121_v55 = vld [vmem:[#allocation55_spill] sm:$0xff]  ;;  %v20124_v59 = vld [vmem:[#allocation48_spill] sm:$0xff]  ;;  %v20127_v45 = vld [vmem:[#allocation49_spill] sm:$0xff] }
 0x8be   :  { %v4785_v42 = vmul.f32 %v20102_v63, %v20101_v27  ;;  %v4648_v17 = vunpack.c.l.bf16 %v20105_v38  ;;  %v4650_v57 = vunpack.c.l.bf16 %v20106_v12  ;;  %v4792_v53 = vmul.f32 %v4664_v51, %v20107_v26  ;;  %v5161_v35 = vld [vmem:[%s19727_s12 + $0x1c0] sm:$0xff]  ;;  %v20130_v14 = vld [vmem:[#allocation57_spill] sm:$0xff]  ;;  %v20133_v15 = vld [vmem:[#allocation66_spill] sm:$0xff] }
 0x8bf   :  { %5020 = vmatpush1.bf16.msra.mxu0 %v4912_v62  ;;  %5061 = vmatpush1.bf16.msra.mxu1 %v4914_v47  ;;  %v4787_v0 = vmul.f32 %v20104_v18, %v20103_v43  ;;  %v4897_v10 = vpack.c.bf16 %v4801_v5, %v4793_v56  ;;  %v4899_v19 = vpack.c.bf16 %v4803_v3, %v4795_v24  ;;  %v20110_v49 = vunpack.c.h.bf16 %v20105_v38  ;;  %v20115_v62 = vld [vmem:[#allocation41_spill] sm:$0xff]  ;;  %v5293_v6 = vld [vmem:[%s19727_s12 + $0x5e0] sm:$0xff]  ;;  %v20136_v63 = vld [vmem:[#allocation58_spill] sm:$0xff] }
 0x8c0   :  { %5021 = vmatprep.subr.bf16.mxu0 %v4905_v48  ;;  %5062 = vmatprep.subr.bf16.mxu1 %v4907_v28  ;;  %v4794_v31 = vmul.f32 %v4666_v30, %v20108_v40  ;;  %v20112_v4 = vunpack.c.h.bf16 %v20106_v12  ;;  %v4784_v1 = vmul.f32 %v4656_v34, %v20113_v39  ;;  %v4786_v44 = vmul.f32 %v4658_v50, %v20114_v60  ;;  %v20118_v3 = vld [vmem:[#allocation45_spill] sm:$0xff]  ;;  %v20120_v28 = vld [vmem:[#allocation47_spill] sm:$0xff]  ;;  %v20126_v34 = vld [vmem:[#allocation54_spill] sm:$0xff] }
 0x8c1   :  { %v4777_v29 = vmul.f32 %v20110_v49, %v20109_v58  ;;  %v4896_v8 = vpack.c.bf16 %v4800_v61, %v4792_v53  ;;  %v4776_v47 = vmul.f32 %v4648_v17, %v20115_v62  ;;  %v4778_v23 = vmul.f32 %v4650_v57, %v20116_v32  ;;  %v5165_v30 = vld [vmem:[%s19727_s12 + $0x1e0] sm:$0xff] }
 0x8c2   :  { %v4779_v22 = vmul.f32 %v20112_v4, %v20111_v46  ;;  %v4898_v11 = vpack.c.bf16 %v4802_v25, %v4794_v31  ;;  %v20119_v48 = vpack.c.bf16 %v20117_v9, %v20118_v3  ;;  %v20122_v51 = vpack.c.bf16 %v20120_v28, %v20121_v55  ;;  %v20129_v37 = vld [vmem:[#allocation67_spill] sm:$0xff]  ;;  %v20132_v52 = vld [vmem:[#allocation68_spill] sm:$0xff] }
 0x8c3   :  { %5022 = vmatpush1.bf16.msra.mxu0 %v4904_v41  ;;  %5063 = vmatpush1.bf16.msra.mxu1 %v4906_v13  ;;  %v4889_v7 = vpack.c.bf16 %v4785_v42, %v4777_v29  ;;  %v4888_v5 = vpack.c.bf16 %v4784_v1, %v4776_v47  ;;  %v4890_v36 = vpack.c.bf16 %v4786_v44, %v4778_v23  ;;  %v5153_v16 = vld [vmem:[%s19727_s12 + $0x180] sm:$0xff] }
 0x8c4   :  { %5023 = vmatprep.subr.bf16.mxu0 %v4897_v10  ;;  %5064 = vmatprep.subr.bf16.mxu1 %v4899_v19  ;;  %v4891_v20 = vpack.c.bf16 %v4787_v0, %v4779_v22  ;;  %v20125_v2 = vpack.c.bf16 %v20123_v21, %v20124_v59  ;;  %v20128_v50 = vpack.c.bf16 %v20126_v34, %v20127_v45  ;;  %v5157_v25 = vld [vmem:[%s19727_s12 + $0x1a0] sm:$0xff] }
 0x8c5   :  { %v20131_v56 = vpack.c.bf16 %v20129_v37, %v20130_v14  ;;  %v20134_v24 = vpack.c.bf16 %v20132_v52, %v20133_v15  ;;  %v11474_v54 = vcombine.high %v5161_v35, %v5165_v30  ;;  %v11602_v61 = vcombine.high %v5289_v33, %v5293_v6  ;;  %v5281_v41 = vld [vmem:[%s19727_s12 + $0x580] sm:$0xff] }
 0x8c6   :  { %v5285_v13 = vld [vmem:[%s19727_s12 + $0x5a0] sm:$0xff]  ;;  %v11473_v10 = vcombine.low %v5161_v35, %v5165_v30  ;;  %v11601_v19 = vcombine.low %v5289_v33, %v5293_v6  ;;  %v11466_v38 = vcombine.high %v5153_v16, %v5157_v25  ;;  %v11465_v31 = vcombine.low %v5153_v16, %v5157_v25 }
 0x8c7   :  { %5024 = vmatpush1.bf16.msra.mxu0 %v4896_v8  ;;  %5065 = vmatpush1.bf16.msra.mxu1 %v4898_v11  ;;  %v20135_v27 = vld [vmem:[#allocation59_spill] sm:$0xff]  ;;  %v20138_v43 = vld [vmem:[#allocation56_spill] sm:$0xff]  ;;  %v11594_v17 = vcombine.high %v5281_v41, %v5285_v13  ;;  %v11593_v58 = vcombine.low %v5281_v41, %v5285_v13 }
 0x8c8   :  { %5025 = vmatprep.subr.bf16.mxu0 %v4889_v7  ;;  %5066 = vmatprep.subr.bf16.mxu1 %v4891_v20  ;;  %v20137_v42 = vpack.c.bf16 %v20135_v27, %v20136_v63  ;;  %v20139_v18 = vld [vmem:[#allocation60_spill] sm:$0xff]  ;;  %v20141_v40 = vld [vmem:[#allocation23_spill] sm:$0xff] }
 0x8c9   :  { %v20140_v0 = vpack.c.bf16 %v20138_v43, %v20139_v18  ;;  %v5145_v12 = vld [vmem:[%s19727_s12 + $0x140] sm:$0xff] }
 0x8ca   :  { %v5149_v57 = vld [vmem:[%s19727_s12 + $0x160] sm:$0xff] }
 0x8cb   :  { %5026 = vmatpush1.bf16.msra.mxu0 %v4888_v5  ;;  %5067 = vmatpush1.bf16.msra.mxu1 %v4890_v36  ;;  %v5273_v26 = vld [vmem:[%s19727_s12 + $0x540] sm:$0xff]  ;;  %v11458_v29 = vcombine.high %v5145_v12, %v5149_v57  ;;  %v11457_v8 = vcombine.low %v5145_v12, %v5149_v57 }
 0x8cc   :  { %5027 = vmatprep.subr.bf16.mxu0 %v20119_v48  ;;  %5068 = vmatprep.subr.bf16.mxu1 %v20122_v51  ;;  %v5277_v53 = vld [vmem:[%s19727_s12 + $0x560] sm:$0xff] }
 0x8cd   :  { %v5137_v49 = vld [vmem:[%s19727_s12 + $0x100] sm:$0xff]  ;;  %v11586_v46 = vcombine.high %v5273_v26, %v5277_v53  ;;  %v11585_v7 = vcombine.low %v5273_v26, %v5277_v53 }
 0x8ce   :  { %v5141_v4 = vld [vmem:[%s19727_s12 + $0x120] sm:$0xff] }
 0x8cf   :  { %5028 = vmatpush1.bf16.msra.mxu0 %v20125_v2  ;;  %5069 = vmatpush1.bf16.msra.mxu1 %v20128_v50  ;;  %v5265_v22 = vld [vmem:[%s19727_s12 + $0x500] sm:$0xff]  ;;  %v11450_v47 = vcombine.high %v5137_v49, %v5141_v4  ;;  %v11449_v3 = vcombine.low %v5137_v49, %v5141_v4 }
 0x8d0   :  { %5029 = vmatprep.subr.bf16.mxu0 %v20131_v56  ;;  %5070 = vmatprep.subr.bf16.mxu1 %v20134_v24  ;;  %v5269_v39 = vld [vmem:[%s19727_s12 + $0x520] sm:$0xff] }
 0x8d1   :  { %v17102_v1 = vld [vmem:[%s19727_s12 + $0x9c0] sm:$0xff]  ;;  %v11578_v32 = vcombine.high %v5265_v22, %v5269_v39  ;;  %v11577_v48 = vcombine.low %v5265_v22, %v5269_v39 }
 0x8d2   :  { %v17107_v60 = vld [vmem:[%s19727_s12 + $0x9e0] sm:$0xff] }
 0x8d3   :  { %5030 = vmatpush1.bf16.msra.mxu0 %v20137_v42  ;;  %5071 = vmatpush1.bf16.msra.mxu1 %v20140_v0  ;;  %v17112_v44 = vld [vmem:[%s19727_s12 + $0xdc0] sm:$0xff]  ;;  %v11729_v20 = vcombine.low %v17102_v1, %v17107_v60 }
 0x8d4   :  { %8177 = vmatprep.subr.bf16.mxu0 %v11474_v54  ;;  %8218 = vmatprep.subr.bf16.mxu1 %v11602_v61  ;;  %v17117_v11 = vld [vmem:[%s19727_s12 + $0xde0] sm:$0xff] }
 0x8d5   :  { %v11857_v62 = vcombine.low %v17112_v44, %v17117_v11  ;;  %v5129_v23 = vld [vmem:[%s19727_s12 + $0xc0] sm:$0xff] }
 0x8d6   :  { %5048 = vmatmul.mubr.bf16.vlgmr.msra.gmra.mxu0 %v20141_v40  ;;  %5089 = vmatmul.mubr.bf16.vlgmr.msra.gmra.mxu1 %v20141_v40  ;;  %v5133_v5 = vld [vmem:[%s19727_s12 + $0xe0] sm:$0xff] }
 0x8d7   :  { %8178 = vmatpush1.bf16.msra.mxu0 %v11473_v10  ;;  %8219 = vmatpush1.bf16.msra.mxu1 %v11601_v19  ;;  %v5257_v36 = vld [vmem:[%s19727_s12 + $0x4c0] sm:$0xff]  ;;  %v11442_v28 = vcombine.high %v5129_v23, %v5133_v5  ;;  %v11441_v6 = vcombine.low %v5129_v23, %v5133_v5 }
 0x8d8   :  { %8179 = vmatprep.subr.bf16.mxu0 %v11466_v38  ;;  %8220 = vmatprep.subr.bf16.mxu1 %v11594_v17  ;;  %v5261_v9 = vld [vmem:[%s19727_s12 + $0x4e0] sm:$0xff] }
 0x8d9   :  { %v11570_v55 = vcombine.high %v5257_v36, %v5261_v9  ;;  %v5121_v51 = vld [vmem:[%s19727_s12 + $0x80] sm:$0xff]  ;;  %v11569_v21 = vcombine.low %v5257_v36, %v5261_v9 }
 0x8da   :  { %v5125_v35 = vld [vmem:[%s19727_s12 + $0xa0] sm:$0xff] }
 0x8db   :  { %8180 = vmatpush1.bf16.msra.mxu0 %v11465_v31  ;;  %8221 = vmatpush1.bf16.msra.mxu1 %v11593_v58  ;;  %v5249_v30 = vld [vmem:[%s19727_s12 + $0x480] sm:$0xff]  ;;  %v11434_v59 = vcombine.high %v5121_v51, %v5125_v35  ;;  %v11433_v14 = vcombine.low %v5121_v51, %v5125_v35 }
 0x8dc   :  { %8181 = vmatprep.subr.bf16.mxu0 %v11458_v29  ;;  %8222 = vmatprep.subr.bf16.mxu1 %v11586_v46  ;;  %v5253_v33 = vld [vmem:[%s19727_s12 + $0x4a0] sm:$0xff] }
 0x8dd   :  { %v11562_v2 = vcombine.high %v5249_v30, %v5253_v33  ;;  %v5113_v34 = vld [vmem:[%s19727_s12 + $0x40] sm:$0xff]  ;;  %v11561_v56 = vcombine.low %v5249_v30, %v5253_v33 }
 0x8de   :  { %v5117_v45 = vld [vmem:[%s19727_s12 + $0x60] sm:$0xff] }
 0x8df   :  { %8182 = vmatpush1.bf16.msra.mxu0 %v11457_v8  ;;  %8223 = vmatpush1.bf16.msra.mxu1 %v11585_v7  ;;  %v5241_v50 = vld [vmem:[%s19727_s12 + $0x440] sm:$0xff]  ;;  %v11426_v52 = vcombine.high %v5113_v34, %v5117_v45  ;;  %v11425_v25 = vcombine.low %v5113_v34, %v5117_v45 }
 0x8e0   :  { %8183 = vmatprep.subr.bf16.mxu0 %v11450_v47  ;;  %8224 = vmatprep.subr.bf16.mxu1 %v11578_v32  ;;  %v5245_v37 = vld [vmem:[%s19727_s12 + $0x460] sm:$0xff] }
 0x8e1   :  { %v11554_v15 = vcombine.high %v5241_v50, %v5245_v37  ;;  %v5105_v24 = vld [vmem:[%s19727_s12] sm:$0xff]  ;;  %v11553_v41 = vcombine.low %v5241_v50, %v5245_v37 }
 0x8e2   :  { %v5109_v54 = vld [vmem:[%s19727_s12 + $0x20] sm:$0xff] }
 0x8e3   :  { %8184 = vmatpush1.bf16.msra.mxu0 %v11449_v3  ;;  %8225 = vmatpush1.bf16.msra.mxu1 %v11577_v48  ;;  %v5233_v61 = vld [vmem:[%s19727_s12 + $0x400] sm:$0xff]  ;;  %v11418_v13 = vcombine.high %v5105_v24, %v5109_v54  ;;  %v11417_v0 = vcombine.low %v5105_v24, %v5109_v54 }
 0x8e4   :  { %8185 = vmatprep.subr.bf16.mxu0 %v11442_v28  ;;  %8226 = vmatprep.subr.bf16.mxu1 %v11570_v55  ;;  %v5237_v16 = vld [vmem:[%s19727_s12 + $0x420] sm:$0xff] }
 0x8e5   :  { %v11546_v27 = vcombine.high %v5233_v61, %v5237_v16  ;;  %v5225_v63 = vld [vmem:[%s19727_s12 + $0x3c0] sm:$0xff]  ;;  %v11545_v10 = vcombine.low %v5233_v61, %v5237_v16 }
 0x8e6   :  { %v5229_v42 = vld [vmem:[%s19727_s12 + $0x3e0] sm:$0xff] }
 0x8e7   :  { %8186 = vmatpush1.bf16.msra.mxu0 %v11441_v6  ;;  %8227 = vmatpush1.bf16.msra.mxu1 %v11569_v21  ;;  %v5353_v43 = vld [vmem:[%s19727_s12 + $0x7c0] sm:$0xff]  ;;  %v11538_v19 = vcombine.high %v5225_v63, %v5229_v42  ;;  %v11537_v53 = vcombine.low %v5225_v63, %v5229_v42 }
 0x8e8   :  { %8187 = vmatprep.subr.bf16.mxu0 %v11434_v59  ;;  %8228 = vmatprep.subr.bf16.mxu1 %v11562_v2  ;;  %v5357_v18 = vld [vmem:[%s19727_s12 + $0x7e0] sm:$0xff] }
 0x8e9   :  { %v11666_v38 = vcombine.high %v5353_v43, %v5357_v18  ;;  %v5217_v17 = vld [vmem:[%s19727_s12 + $0x380] sm:$0xff]  ;;  %v11665_v40 = vcombine.low %v5353_v43, %v5357_v18 }
 0x8ea   :  { %v5221_v12 = vld [vmem:[%s19727_s12 + $0x3a0] sm:$0xff] }
 0x8eb   :  { %8188 = vmatpush1.bf16.msra.mxu0 %v11433_v14  ;;  %8229 = vmatpush1.bf16.msra.mxu1 %v11561_v56  ;;  %v5345_v57 = vld [vmem:[%s19727_s12 + $0x780] sm:$0xff]  ;;  %v11530_v31 = vcombine.high %v5217_v17, %v5221_v12  ;;  %v11529_v22 = vcombine.low %v5217_v17, %v5221_v12  ;;  %v11730_v17 = vcombine.high %v17102_v1, %v17107_v60 }
 0x8ec   :  { %8189 = vmatprep.subr.bf16.mxu0 %v11426_v52  ;;  %8230 = vmatprep.subr.bf16.mxu1 %v11554_v15  ;;  %v5349_v26 = vld [vmem:[%s19727_s12 + $0x7a0] sm:$0xff]  ;;  %v11858_v12 = vcombine.high %v17112_v44, %v17117_v11 }
 0x8ed   :  { %v11658_v58 = vcombine.high %v5345_v57, %v5349_v26  ;;  %v5209_v49 = vld [vmem:[%s19727_s12 + $0x340] sm:$0xff]  ;;  %v11657_v39 = vcombine.low %v5345_v57, %v5349_v26 }
 0x8ee   :  { %v5213_v29 = vld [vmem:[%s19727_s12 + $0x360] sm:$0xff] }
 0x8ef   :  { %8190 = vmatpush1.bf16.msra.mxu0 %v11425_v25  ;;  %8231 = vmatpush1.bf16.msra.mxu1 %v11553_v41  ;;  %v5337_v46 = vld [vmem:[%s19727_s12 + $0x740] sm:$0xff]  ;;  %v11522_v8 = vcombine.high %v5209_v49, %v5213_v29  ;;  %v11521_v36 = vcombine.low %v5209_v49, %v5213_v29 }
 0x8f0   :  { %8191 = vmatprep.subr.bf16.mxu0 %v11418_v13  ;;  %8232 = vmatprep.subr.bf16.mxu1 %v11546_v27  ;;  %v5341_v4 = vld [vmem:[%s19727_s12 + $0x760] sm:$0xff] }
 0x8f1   :  { %v11650_v7 = vcombine.high %v5337_v46, %v5341_v4  ;;  %v5201_v47 = vld [vmem:[%s19727_s12 + $0x300] sm:$0xff]  ;;  %v11649_v9 = vcombine.low %v5337_v46, %v5341_v4 }
 0x8f2   :  { %v5205_v32 = vld [vmem:[%s19727_s12 + $0x320] sm:$0xff] }
 0x8f3   :  { %8192 = vmatpush1.bf16.msra.mxu0 %v11417_v0  ;;  %8233 = vmatpush1.bf16.msra.mxu1 %v11545_v10  ;;  %v5329_v23 = vld [vmem:[%s19727_s12 + $0x700] sm:$0xff]  ;;  %v11514_v3 = vcombine.high %v5201_v47, %v5205_v32  ;;  %v11513_v30 = vcombine.low %v5201_v47, %v5205_v32 }
 0x8f4   :  { %8193 = vmatprep.subr.bf16.mxu0 %v11538_v19  ;;  %8234 = vmatprep.subr.bf16.mxu1 %v11666_v38  ;;  %v5333_v5 = vld [vmem:[%s19727_s12 + $0x720] sm:$0xff] }
 0x8f5   :  { %v11642_v48 = vcombine.high %v5329_v23, %v5333_v5  ;;  %v5193_v28 = vld [vmem:[%s19727_s12 + $0x2c0] sm:$0xff]  ;;  %v11641_v33 = vcombine.low %v5329_v23, %v5333_v5 }
 0x8f6   :  { %v5197_v55 = vld [vmem:[%s19727_s12 + $0x2e0] sm:$0xff] }
 0x8f7   :  { %8194 = vmatpush2.bf16.msra.mxu0 %v11537_v53  ;;  %8235 = vmatpush2.bf16.msra.mxu1 %v11665_v40  ;;  %v5321_v51 = vld [vmem:[%s19727_s12 + $0x6c0] sm:$0xff]  ;;  %v11506_v6 = vcombine.high %v5193_v28, %v5197_v55  ;;  %v11505_v50 = vcombine.low %v5193_v28, %v5197_v55 }
 0x8f8   :  { %8195 = vmatprep.subr.bf16.mxu0 %v11530_v31  ;;  %8236 = vmatprep.subr.bf16.mxu1 %v11658_v58  ;;  %v5325_v35 = vld [vmem:[%s19727_s12 + $0x6e0] sm:$0xff] }
 0x8f9   :  { %v11634_v21 = vcombine.high %v5321_v51, %v5325_v35  ;;  %v5185_v59 = vld [vmem:[%s19727_s12 + $0x280] sm:$0xff]  ;;  %v11633_v37 = vcombine.low %v5321_v51, %v5325_v35 }
 0x8fa   :  { %v5189_v2 = vld [vmem:[%s19727_s12 + $0x2a0] sm:$0xff] }
 0x8fb   :  { %8196 = vmatpush2.bf16.msra.mxu0 %v11529_v22  ;;  %8237 = vmatpush2.bf16.msra.mxu1 %v11657_v39  ;;  %v5313_v34 = vld [vmem:[%s19727_s12 + $0x680] sm:$0xff]  ;;  %v11498_v14 = vcombine.high %v5185_v59, %v5189_v2  ;;  %v11497_v61 = vcombine.low %v5185_v59, %v5189_v2 }
 0x8fc   :  { %8197 = vmatprep.subr.bf16.mxu0 %v11522_v8  ;;  %8238 = vmatprep.subr.bf16.mxu1 %v11650_v7  ;;  %v5317_v45 = vld [vmem:[%s19727_s12 + $0x6a0] sm:$0xff] }
 0x8fd   :  { %v11626_v56 = vcombine.high %v5313_v34, %v5317_v45  ;;  %v5177_v52 = vld [vmem:[%s19727_s12 + $0x240] sm:$0xff]  ;;  %v11625_v16 = vcombine.low %v5313_v34, %v5317_v45 }
 0x8fe   :  { %v5181_v15 = vld [vmem:[%s19727_s12 + $0x260] sm:$0xff] }
 0x8ff   :  { %8198 = vmatpush2.bf16.msra.mxu0 %v11521_v36  ;;  %8239 = vmatpush2.bf16.msra.mxu1 %v11649_v9  ;;  %v5305_v24 = vld [vmem:[%s19727_s12 + $0x640] sm:$0xff]  ;;  %v11490_v25 = vcombine.high %v5177_v52, %v5181_v15  ;;  %v11489_v43 = vcombine.low %v5177_v52, %v5181_v15 }
 0x900   :  { %8199 = vmatprep.subr.bf16.mxu0 %v11514_v3  ;;  %8240 = vmatprep.subr.bf16.mxu1 %v11642_v48  ;;  %v5309_v54 = vld [vmem:[%s19727_s12 + $0x660] sm:$0xff] }
 0x901   :  { %v11618_v41 = vcombine.high %v5305_v24, %v5309_v54  ;;  %v5169_v13 = vld [vmem:[%s19727_s12 + $0x200] sm:$0xff]  ;;  %v11617_v18 = vcombine.low %v5305_v24, %v5309_v54 }
 0x902   :  { %v5173_v27 = vld [vmem:[%s19727_s12 + $0x220] sm:$0xff] }
 0x903   :  { %8200 = vmatpush2.bf16.msra.mxu0 %v11513_v30  ;;  %8241 = vmatpush2.bf16.msra.mxu1 %v11641_v33  ;;  %v5297_v63 = vld [vmem:[%s19727_s12 + $0x600] sm:$0xff]  ;;  %v11482_v0 = vcombine.high %v5169_v13, %v5173_v27  ;;  %v11481_v19 = vcombine.low %v5169_v13, %v5173_v27 }
 0x904   :  { %8201 = vmatprep.subr.bf16.mxu0 %v11506_v6  ;;  %8242 = vmatprep.subr.bf16.mxu1 %v11634_v21  ;;  %v5301_v42 = vld [vmem:[%s19727_s12 + $0x620] sm:$0xff] }
 0x905   :  { %v11610_v10 = vcombine.high %v5297_v63, %v5301_v42  ;;  %v11609_v38 = vcombine.low %v5297_v63, %v5301_v42  ;;  %v5409_v53 = vld [vmem:[%s19727_s12 + $0x980] sm:$0xff] }
 0x906   :  { %v5413_v40 = vld [vmem:[%s19727_s12 + $0x9a0] sm:$0xff] }
 0x907   :  { %8202 = vmatpush2.bf16.msra.mxu0 %v11505_v50  ;;  %8243 = vmatpush2.bf16.msra.mxu1 %v11633_v37  ;;  %v5537_v31 = vld [vmem:[%s19727_s12 + $0xd80] sm:$0xff]  ;;  %v11722_v8 = vcombine.high %v5409_v53, %v5413_v40  ;;  %v11721_v28 = vcombine.low %v5409_v53, %v5413_v40 }
 0x908   :  { %8203 = vmatprep.subr.bf16.mxu0 %v11498_v14  ;;  %8244 = vmatprep.subr.bf16.mxu1 %v11626_v56  ;;  %v5541_v58 = vld [vmem:[%s19727_s12 + $0xda0] sm:$0xff] }
 0x909   :  { %v11850_v7 = vcombine.high %v5537_v31, %v5541_v58  ;;  %v5401_v47 = vld [vmem:[%s19727_s12 + $0x940] sm:$0xff]  ;;  %v11849_v55 = vcombine.low %v5537_v31, %v5541_v58 }
 0x90a   :  { %v5405_v5 = vld [vmem:[%s19727_s12 + $0x960] sm:$0xff] }
 0x90b   :  { %8204 = vmatpush2.bf16.msra.mxu0 %v11497_v61  ;;  %8245 = vmatpush2.bf16.msra.mxu1 %v11625_v16  ;;  %v5529_v36 = vld [vmem:[%s19727_s12 + $0xd40] sm:$0xff]  ;;  %v11714_v51 = vcombine.high %v5401_v47, %v5405_v5  ;;  %v11713_v44 = vcombine.low %v5401_v47, %v5405_v5 }
 0x90c   :  { %8205 = vmatprep.subr.bf16.mxu0 %v11490_v25  ;;  %8246 = vmatprep.subr.bf16.mxu1 %v11618_v41  ;;  %v5533_v9 = vld [vmem:[%s19727_s12 + $0xd60] sm:$0xff] }
 0x90d   :  { %v11842_v35 = vcombine.high %v5529_v36, %v5533_v9  ;;  %v5393_v30 = vld [vmem:[%s19727_s12 + $0x900] sm:$0xff]  ;;  %v11841_v11 = vcombine.low %v5529_v36, %v5533_v9 }
 0x90e   :  { %v5397_v33 = vld [vmem:[%s19727_s12 + $0x920] sm:$0xff] }
 0x90f   :  { %8206 = vmatpush2.bf16.msra.mxu0 %v11489_v43  ;;  %8247 = vmatpush2.bf16.msra.mxu1 %v11617_v18  ;;  %v5521_v1 = vld [vmem:[%s19727_s12 + $0xd00] sm:$0xff]  ;;  %v11705_v34 = vcombine.low %v5393_v30, %v5397_v33 }
 0x910   :  { %8207 = vmatprep.subr.bf16.mxu0 %v11482_v0  ;;  %8248 = vmatprep.subr.bf16.mxu1 %v11610_v10  ;;  %v5525_v60 = vld [vmem:[%s19727_s12 + $0xd20] sm:$0xff] }
 0x911   :  { %v5385_v6 = vld [vmem:[%s19727_s12 + $0x8c0] sm:$0xff]  ;;  %v11833_v45 = vcombine.low %v5521_v1, %v5525_v60 }
 0x912   :  { %v5389_v21 = vld [vmem:[%s19727_s12 + $0x8e0] sm:$0xff] }
 0x913   :  { %8208 = vmatpush2.bf16.msra.mxu0 %v11481_v19  ;;  %8249 = vmatpush2.bf16.msra.mxu1 %v11609_v38  ;;  %v5513_v59 = vld [vmem:[%s19727_s12 + $0xcc0] sm:$0xff]  ;;  %v11698_v50 = vcombine.high %v5385_v6, %v5389_v21  ;;  %v11697_v24 = vcombine.low %v5385_v6, %v5389_v21 }
 0x914   :  { %8259 = vmatprep.subr.bf16.mxu0 %v11730_v17  ;;  %8300 = vmatprep.subr.bf16.mxu1 %v11858_v12  ;;  %v5517_v2 = vld [vmem:[%s19727_s12 + $0xce0] sm:$0xff] }
 0x915   :  { %v11826_v37 = vcombine.high %v5513_v59, %v5517_v2  ;;  %v5377_v14 = vld [vmem:[%s19727_s12 + $0x880] sm:$0xff]  ;;  %v11825_v54 = vcombine.low %v5513_v59, %v5517_v2 }
 0x916   :  { %v5381_v56 = vld [vmem:[%s19727_s12 + $0x8a0] sm:$0xff] }
 0x917   :  { %v5505_v52 = vld [vmem:[%s19727_s12 + $0xc80] sm:$0xff]  ;;  %v11690_v61 = vcombine.high %v5377_v14, %v5381_v56  ;;  %v11689_v63 = vcombine.low %v5377_v14, %v5381_v56 }
 0x918   :  { %v5509_v15 = vld [vmem:[%s19727_s12 + $0xca0] sm:$0xff] }
 0x919   :  { %v11818_v16 = vcombine.high %v5505_v52, %v5509_v15  ;;  %v5369_v25 = vld [vmem:[%s19727_s12 + $0x840] sm:$0xff]  ;;  %v11817_v42 = vcombine.low %v5505_v52, %v5509_v15 }
 0x91a   :  { %v5373_v41 = vld [vmem:[%s19727_s12 + $0x860] sm:$0xff] }
 0x91b   :  { %v5497_v13 = vld [vmem:[%s19727_s12 + $0xc40] sm:$0xff]  ;;  %v11682_v43 = vcombine.high %v5369_v25, %v5373_v41  ;;  %v11681_v17 = vcombine.low %v5369_v25, %v5373_v41 }
 0x91c   :  { %v5501_v27 = vld [vmem:[%s19727_s12 + $0xc60] sm:$0xff] }
 0x91d   :  { %v11810_v18 = vcombine.high %v5497_v13, %v5501_v27  ;;  %v5361_v0 = vld [vmem:[%s19727_s12 + $0x800] sm:$0xff]  ;;  %v11809_v12 = vcombine.low %v5497_v13, %v5501_v27 }
 0x91e   :  { %v5365_v10 = vld [vmem:[%s19727_s12 + $0x820] sm:$0xff] }
 0x91f   :  { %v5489_v19 = vld [vmem:[%s19727_s12 + $0xc00] sm:$0xff] }
 0x920   :  { %v5493_v38 = vld [vmem:[%s19727_s12 + $0xc20] sm:$0xff] }
 0x921   :  { %v5481_v53 = vld [vmem:[%s19727_s12 + $0xbc0] sm:$0xff] }
 0x922   :  { %v5485_v40 = vld [vmem:[%s19727_s12 + $0xbe0] sm:$0xff] }
 0x923   :  { %v5609_v31 = vld [vmem:[%s19727_s12 + $0xfc0] sm:$0xff]  ;;  %v11793_v36 = vcombine.low %v5481_v53, %v5485_v40 }
 0x924   :  { %v5613_v58 = vld [vmem:[%s19727_s12 + $0xfe0] sm:$0xff] }
 0x925   :  { %v5473_v47 = vld [vmem:[%s19727_s12 + $0xb80] sm:$0xff]  ;;  %v11921_v9 = vcombine.low %v5609_v31, %v5613_v58 }
 0x926   :  { %v5605_v5 = vld [vmem:[%s19727_s12 + $0xfa0] sm:$0xff] }
 0x958   :  { %v4967_v57 = vpop.f32.mrf.mxu0 }
 0x959   :  { %v5008_v26 = vpop.f32.mrf.mxu1  ;;  %v17289_v39 = vpack.c.bf16 %v4967_v57, %v4967_v57  ;;  %v11674_v57 = vcombine.high %v5361_v0, %v5365_v10 }
 0x95a   :  { %v17283_v49 = vpack.c.bf16 %v5008_v26, %v5008_v26  ;;  %v4969_v29 = vpop.f32.mrf.mxu0  ;;  %v11802_v26 = vcombine.high %v5489_v19, %v5493_v38 }
 0x95b   :  { %v5010_v46 = vpop.f32.mrf.mxu1  ;;  %v17285_v4 = vpack.c.bf16 %v4969_v29, %v4969_v29  ;;  %v11673_v29 = vcombine.low %v5361_v0, %v5365_v10 }
 0x95c   :  { %v17287_v22 = vpack.c.bf16 %v5010_v46, %v5010_v46  ;;  %v4971_v32 = vpop.f32.mrf.mxu0  ;;  %v11801_v46 = vcombine.low %v5489_v19, %v5493_v38 }
 0x95d   :  { %v5012_v23 = vpop.f32.mrf.mxu1  ;;  %8209 = vmatprep.mubr.bf16.mxu0 %v17285_v4  ;;  %v5477_v32 = vld [vmem:[%s19727_s12 + $0xba0] sm:$0xff] }
 0x95e   :  { %8250 = vmatprep.mubr.bf16.mxu1 %v17287_v22  ;;  %8210 = vmatmul.mubr.bf16.vlgmr.msra.gmra.mxu0 %v17289_v39  ;;  %v4972_v3 = vpop.f32.mrf.mxu0  ;;  %v5601_v23 = vld [vmem:[%s19727_s12 + $0xf80] sm:$0xff] }
 0x95f   :  { %8251 = vmatmul.mubr.bf16.vlgmr.msra.gmra.mxu1 %v17283_v49  ;;  %v5013_v48 = vpop.f32.mrf.mxu1  ;;  %8260 = vmatpush1.bf16.msra.mxu0 %v11729_v20  ;;  %v11706_v20 = vcombine.high %v5393_v30, %v5397_v33  ;;  %v11786_v3 = vcombine.high %v5473_v47, %v5477_v32  ;;  %v11785_v30 = vcombine.low %v5473_v47, %v5477_v32 }
 0x960   :  { %8301 = vmatpush1.bf16.msra.mxu1 %v11857_v62  ;;  %8261 = vmatprep.subr.bf16.mxu0 %v11722_v8  ;;  %v11834_v62 = vcombine.high %v5521_v1, %v5525_v60  ;;  %v11794_v8 = vcombine.high %v5481_v53, %v5485_v40  ;;  %v11914_v48 = vcombine.high %v5601_v23, %v5605_v5 }
 0x961   :  { %8302 = vmatprep.subr.bf16.mxu1 %v11850_v7  ;;  %v11922_v7 = vcombine.high %v5609_v31, %v5613_v58  ;;  %v11913_v33 = vcombine.low %v5601_v23, %v5605_v5 }
 0x963   :  { %8262 = vmatpush1.bf16.msra.mxu0 %v11721_v28  ;;  %v5465_v28 = vld [vmem:[%s19727_s12 + $0xb40] sm:$0xff] }
 0x964   :  { %8303 = vmatpush1.bf16.msra.mxu1 %v11849_v55  ;;  %8263 = vmatprep.subr.bf16.mxu0 %v11714_v51  ;;  %v5469_v55 = vld [vmem:[%s19727_s12 + $0xb60] sm:$0xff] }
 0x965   :  { %8304 = vmatprep.subr.bf16.mxu1 %v11842_v35  ;;  %v5593_v51 = vld [vmem:[%s19727_s12 + $0xf40] sm:$0xff]  ;;  %v11778_v1 = vcombine.high %v5465_v28, %v5469_v55  ;;  %v11777_v6 = vcombine.low %v5465_v28, %v5469_v55 }
 0x966   :  { %v5597_v35 = vld [vmem:[%s19727_s12 + $0xf60] sm:$0xff] }
 0x967   :  { %8264 = vmatpush1.bf16.msra.mxu0 %v11713_v44  ;;  %v11906_v60 = vcombine.high %v5593_v51, %v5597_v35  ;;  %v5457_v44 = vld [vmem:[%s19727_s12 + $0xb00] sm:$0xff]  ;;  %v11905_v21 = vcombine.low %v5593_v51, %v5597_v35  ;;  %v5158_v35 = vld [vmem:[%s19727_s12 + $0x1a8] sm:$0xff] }
 0x968   :  { %8305 = vmatpush1.bf16.msra.mxu1 %v11841_v11  ;;  %8265 = vmatprep.subr.bf16.mxu0 %v11706_v20  ;;  %v5461_v11 = vld [vmem:[%s19727_s12 + $0xb20] sm:$0xff] }
 0x969   :  { %8306 = vmatprep.subr.bf16.mxu1 %v11834_v62  ;;  %v5585_v20 = vld [vmem:[%s19727_s12 + $0xf00] sm:$0xff]  ;;  %v11770_v59 = vcombine.high %v5457_v44, %v5461_v11  ;;  %v11769_v14 = vcombine.low %v5457_v44, %v5461_v11 }
 0x96a   :  { %v5589_v62 = vld [vmem:[%s19727_s12 + $0xf20] sm:$0xff] }
 0x96b   :  { %8266 = vmatpush1.bf16.msra.mxu0 %v11705_v34  ;;  %v11898_v2 = vcombine.high %v5585_v20, %v5589_v62  ;;  %v5449_v34 = vld [vmem:[%s19727_s12 + $0xac0] sm:$0xff]  ;;  %v11897_v56 = vcombine.low %v5585_v20, %v5589_v62  ;;  %v5146_v20 = vld [vmem:[%s19727_s12 + $0x148] sm:$0xff] }
 0x96c   :  { %8307 = vmatpush1.bf16.msra.mxu1 %v11833_v45  ;;  %8267 = vmatprep.subr.bf16.mxu0 %v11698_v50  ;;  %v5453_v45 = vld [vmem:[%s19727_s12 + $0xae0] sm:$0xff] }
 0x96d   :  { %8308 = vmatprep.subr.bf16.mxu1 %v11826_v37  ;;  %v5577_v50 = vld [vmem:[%s19727_s12 + $0xec0] sm:$0xff]  ;;  %v11762_v52 = vcombine.high %v5449_v34, %v5453_v45  ;;  %v11761_v25 = vcombine.low %v5449_v34, %v5453_v45  ;;  %v5274_v34 = vld [vmem:[%s19727_s12 + $0x548] sm:$0xff] }
 0x96e   :  { %v5581_v37 = vld [vmem:[%s19727_s12 + $0xee0] sm:$0xff]  ;;  %v5278_v45 = vld [vmem:[%s19727_s12 + $0x568] sm:$0xff] }
 0x96f   :  { %8268 = vmatpush1.bf16.msra.mxu0 %v11697_v24  ;;  %v11890_v15 = vcombine.high %v5577_v50, %v5581_v37  ;;  %v5441_v24 = vld [vmem:[%s19727_s12 + $0xa80] sm:$0xff]  ;;  %v11889_v41 = vcombine.low %v5577_v50, %v5581_v37 }
 0x970   :  { %8309 = vmatpush1.bf16.msra.mxu1 %v11825_v54  ;;  %8269 = vmatprep.subr.bf16.mxu0 %v11690_v61  ;;  %v5445_v54 = vld [vmem:[%s19727_s12 + $0xaa0] sm:$0xff] }
 0x971   :  { %8310 = vmatprep.subr.bf16.mxu1 %v11818_v16  ;;  %v5569_v61 = vld [vmem:[%s19727_s12 + $0xe80] sm:$0xff]  ;;  %v11754_v13 = vcombine.high %v5441_v24, %v5445_v54  ;;  %v11753_v0 = vcombine.low %v5441_v24, %v5445_v54  ;;  %v5138_v24 = vld [vmem:[%s19727_s12 + $0x108] sm:$0xff] }
 0x972   :  { %v5573_v16 = vld [vmem:[%s19727_s12 + $0xea0] sm:$0xff]  ;;  %v5142_v54 = vld [vmem:[%s19727_s12 + $0x128] sm:$0xff] }
 0x973   :  { %8270 = vmatpush1.bf16.msra.mxu0 %v11689_v63  ;;  %v11882_v27 = vcombine.high %v5569_v61, %v5573_v16  ;;  %v5433_v63 = vld [vmem:[%s19727_s12 + $0xa40] sm:$0xff]  ;;  %v11881_v10 = vcombine.low %v5569_v61, %v5573_v16  ;;  %v5266_v61 = vld [vmem:[%s19727_s12 + $0x508] sm:$0xff] }
 0x974   :  { %8311 = vmatpush1.bf16.msra.mxu1 %v11817_v42  ;;  %8271 = vmatprep.subr.bf16.mxu0 %v11682_v43  ;;  %v5437_v42 = vld [vmem:[%s19727_s12 + $0xa60] sm:$0xff]  ;;  %v5270_v16 = vld [vmem:[%s19727_s12 + $0x528] sm:$0xff] }
 0x975   :  { %8312 = vmatprep.subr.bf16.mxu1 %v11810_v18  ;;  %v5561_v43 = vld [vmem:[%s19727_s12 + $0xe40] sm:$0xff]  ;;  %v11746_v19 = vcombine.high %v5433_v63, %v5437_v42  ;;  %v11745_v53 = vcombine.low %v5433_v63, %v5437_v42  ;;  %v5130_v63 = vld [vmem:[%s19727_s12 + $0xc8] sm:$0xff] }
 0x976   :  { %v5565_v18 = vld [vmem:[%s19727_s12 + $0xe60] sm:$0xff]  ;;  %v5134_v42 = vld [vmem:[%s19727_s12 + $0xe8] sm:$0xff] }
 0x977   :  { %8272 = vmatpush1.bf16.msra.mxu0 %v11681_v17  ;;  %v11874_v38 = vcombine.high %v5561_v43, %v5565_v18  ;;  %v5425_v17 = vld [vmem:[%s19727_s12 + $0xa00] sm:$0xff]  ;;  %v11873_v40 = vcombine.low %v5561_v43, %v5565_v18  ;;  %v5258_v43 = vld [vmem:[%s19727_s12 + $0x4c8] sm:$0xff] }
 0x978   :  { %8313 = vmatpush1.bf16.msra.mxu1 %v11809_v12  ;;  %8273 = vmatprep.subr.bf16.mxu0 %v11674_v57  ;;  %v5429_v12 = vld [vmem:[%s19727_s12 + $0xa20] sm:$0xff]  ;;  %v5262_v18 = vld [vmem:[%s19727_s12 + $0x4e8] sm:$0xff] }
 0x979   :  { %8314 = vmatprep.subr.bf16.mxu1 %v11802_v26  ;;  %v5553_v57 = vld [vmem:[%s19727_s12 + $0xe00] sm:$0xff]  ;;  %v11738_v31 = vcombine.high %v5425_v17, %v5429_v12  ;;  %v11737_v47 = vcombine.low %v5425_v17, %v5429_v12  ;;  %v5122_v17 = vld [vmem:[%s19727_s12 + $0x88] sm:$0xff] }
 0x97a   :  { %v5557_v26 = vld [vmem:[%s19727_s12 + $0xe20] sm:$0xff]  ;;  %v5126_v12 = vld [vmem:[%s19727_s12 + $0xa8] sm:$0xff] }
 0x97b   :  { %8274 = vmatpush1.bf16.msra.mxu0 %v11673_v29  ;;  %v11866_v58 = vcombine.high %v5553_v57, %v5557_v26  ;;  %v5162_v29 = vld [vmem:[%s19727_s12 + $0x1c8] sm:$0xff]  ;;  %v11865_v32 = vcombine.low %v5553_v57, %v5557_v26 }
 0x97c   :  { %8315 = vmatpush1.bf16.msra.mxu1 %v11801_v46  ;;  %8275 = vmatprep.subr.bf16.mxu0 %v11794_v8  ;;  %v5166_v46 = vld [vmem:[%s19727_s12 + $0x1e8] sm:$0xff] }
 0x97d   :  { %8316 = vmatprep.subr.bf16.mxu1 %v11922_v7  ;;  %v5290_v8 = vld [vmem:[%s19727_s12 + $0x5c8] sm:$0xff]  ;;  %v11475_v51 = vcombine.low %v5162_v29, %v5166_v46 }
 0x97e   :  { %v5294_v7 = vld [vmem:[%s19727_s12 + $0x5e8] sm:$0xff] }
 0x97f   :  { %8276 = vmatpush2.bf16.msra.mxu0 %v11793_v36  ;;  %v11476_v36 = vcombine.high %v5162_v29, %v5166_v46  ;;  %v11603_v44 = vcombine.low %v5290_v8, %v5294_v7  ;;  %v5250_v57 = vld [vmem:[%s19727_s12 + $0x488] sm:$0xff] }
 0x980   :  { %8317 = vmatpush2.bf16.msra.mxu1 %v11921_v9  ;;  %8277 = vmatprep.subr.bf16.mxu0 %v11786_v3  ;;  %v11604_v9 = vcombine.high %v5290_v8, %v5294_v7  ;;  %v5154_v3 = vld [vmem:[%s19727_s12 + $0x188] sm:$0xff] }
 0x981   :  { %8318 = vmatprep.subr.bf16.mxu1 %v11914_v48  ;;  %v5254_v26 = vld [vmem:[%s19727_s12 + $0x4a8] sm:$0xff] }
 0x982   :  { %v5114_v29 = vld [vmem:[%s19727_s12 + $0x48] sm:$0xff] }
 0x983   :  { %8278 = vmatpush2.bf16.msra.mxu0 %v11785_v30  ;;  %v5282_v30 = vld [vmem:[%s19727_s12 + $0x588] sm:$0xff] }
 0x984   :  { %8319 = vmatpush2.bf16.msra.mxu1 %v11913_v33  ;;  %8279 = vmatprep.subr.bf16.mxu0 %v11778_v1  ;;  %v5286_v33 = vld [vmem:[%s19727_s12 + $0x5a8] sm:$0xff] }
 0x985   :  { %8320 = vmatprep.subr.bf16.mxu1 %v11906_v60  ;;  %v5118_v46 = vld [vmem:[%s19727_s12 + $0x68] sm:$0xff] }
 0x986   :  { %v5242_v8 = vld [vmem:[%s19727_s12 + $0x448] sm:$0xff] }
 0x987   :  { %8280 = vmatpush2.bf16.msra.mxu0 %v11777_v6  ;;  %v5246_v7 = vld [vmem:[%s19727_s12 + $0x468] sm:$0xff] }
 0x988   :  { %8321 = vmatpush2.bf16.msra.mxu1 %v11905_v21  ;;  %8281 = vmatprep.subr.bf16.mxu0 %v11770_v59  ;;  %v11468_v21 = vcombine.high %v5154_v3, %v5158_v35  ;;  %v11596_v59 = vcombine.high %v5282_v30, %v5286_v33 }
 0x989   :  { %8322 = vmatprep.subr.bf16.mxu1 %v11898_v2  ;;  %v5150_v2 = vld [vmem:[%s19727_s12 + $0x168] sm:$0xff] }
 0x98b   :  { %8282 = vmatpush2.bf16.msra.mxu0 %v11769_v14  ;;  %v11467_v14 = vcombine.low %v5154_v3, %v5158_v35  ;;  %v5234_v3 = vld [vmem:[%s19727_s12 + $0x408] sm:$0xff] }
 0x98c   :  { %8323 = vmatpush2.bf16.msra.mxu1 %v11897_v56  ;;  %8283 = vmatprep.subr.bf16.mxu0 %v11762_v52  ;;  %v11595_v56 = vcombine.low %v5282_v30, %v5286_v33  ;;  %v11460_v52 = vcombine.high %v5146_v20, %v5150_v2  ;;  %v5226_v33 = vld [vmem:[%s19727_s12 + $0x3c8] sm:$0xff] }
 0x98d   :  { %8324 = vmatprep.subr.bf16.mxu1 %v11890_v15  ;;  %v11588_v15 = vcombine.high %v5274_v34, %v5278_v45 }
 0x98f   :  { %8284 = vmatpush2.bf16.msra.mxu0 %v11761_v25  ;;  %v11459_v25 = vcombine.low %v5146_v20, %v5150_v2  ;;  %v5354_v20 = vld [vmem:[%s19727_s12 + $0x7c8] sm:$0xff] }
 0x990   :  { %8325 = vmatpush2.bf16.msra.mxu1 %v11889_v41  ;;  %8285 = vmatprep.subr.bf16.mxu0 %v11754_v13  ;;  %v11587_v41 = vcombine.low %v5274_v34, %v5278_v45  ;;  %v11452_v13 = vcombine.high %v5138_v24, %v5142_v54  ;;  %v5218_v34 = vld [vmem:[%s19727_s12 + $0x388] sm:$0xff] }
 0x991   :  { %8326 = vmatprep.subr.bf16.mxu1 %v11882_v27  ;;  %v11580_v27 = vcombine.high %v5266_v61, %v5270_v16  ;;  %v5222_v45 = vld [vmem:[%s19727_s12 + $0x3a8] sm:$0xff] }
 0x993   :  { %8286 = vmatpush2.bf16.msra.mxu0 %v11753_v0  ;;  %v11451_v0 = vcombine.low %v5138_v24, %v5142_v54  ;;  %v5210_v24 = vld [vmem:[%s19727_s12 + $0x348] sm:$0xff] }
 0x994   :  { %8327 = vmatpush2.bf16.msra.mxu1 %v11881_v10  ;;  %8287 = vmatprep.subr.bf16.mxu0 %v11746_v19  ;;  %v11579_v10 = vcombine.low %v5266_v61, %v5270_v16  ;;  %v11444_v19 = vcombine.high %v5130_v63, %v5134_v42  ;;  %v5214_v54 = vld [vmem:[%s19727_s12 + $0x368] sm:$0xff] }
 0x995   :  { %8328 = vmatprep.subr.bf16.mxu1 %v11874_v38  ;;  %v11572_v38 = vcombine.high %v5258_v43, %v5262_v18  ;;  %v5338_v61 = vld [vmem:[%s19727_s12 + $0x748] sm:$0xff] }
 0x996   :  { %v5049_v23 = vpop.f32.mrf.mxu0  ;;  %v5090_v5 = vpop.f32.mrf.mxu1  ;;  %v5342_v16 = vld [vmem:[%s19727_s12 + $0x768] sm:$0xff] }
 0x997   :  { %8288 = vmatpush2.bf16.msra.mxu0 %v11745_v53  ;;  %v17484_v48 = vpack.c.bf16 %v5090_v5, %v5090_v5  ;;  %v17499_v11 = vpack.c.bf16 %v5049_v23, %v5049_v23  ;;  %v11443_v53 = vcombine.low %v5130_v63, %v5134_v42  ;;  %v11428_v23 = vcombine.high %v5114_v29, %v5118_v46  ;;  %v5202_v63 = vld [vmem:[%s19727_s12 + $0x308] sm:$0xff] }
 0x998   :  { %8329 = vmatpush2.bf16.msra.mxu1 %v11873_v40  ;;  %8289 = vmatprep.subr.bf16.mxu0 %v11738_v31  ;;  %v5051_v28 = vpop.f32.mrf.mxu0  ;;  %v5092_v55 = vpop.f32.mrf.mxu1  ;;  %v11571_v40 = vcombine.low %v5258_v43, %v5262_v18  ;;  %v11436_v31 = vcombine.high %v5122_v17, %v5126_v12  ;;  %v11556_v5 = vcombine.high %v5242_v8, %v5246_v7  ;;  %v5206_v42 = vld [vmem:[%s19727_s12 + $0x328] sm:$0xff] }
 0x999   :  { %8330 = vmatprep.subr.bf16.mxu1 %v11866_v58  ;;  %v17495_v1 = vpack.c.bf16 %v5051_v28, %v5051_v28  ;;  %v17497_v60 = vpack.c.bf16 %v5092_v55, %v5092_v55  ;;  %v11564_v58 = vcombine.high %v5250_v57, %v5254_v26  ;;  %v5238_v28 = vld [vmem:[%s19727_s12 + $0x428] sm:$0xff]  ;;  %v11427_v55 = vcombine.low %v5114_v29, %v5118_v46 }
 0x99a   :  { %v5053_v62 = vpop.f32.mrf.mxu0  ;;  %v5094_v6 = vpop.f32.mrf.mxu1  ;;  %v11548_v30 = vcombine.high %v5234_v3, %v5238_v28  ;;  %v5330_v43 = vld [vmem:[%s19727_s12 + $0x708] sm:$0xff] }
 0x99b   :  { %8290 = vmatpush2.bf16.msra.mxu0 %v11737_v47  ;;  %8291 = vmatprep.mubr.bf16.mxu0 %v17495_v1  ;;  %v11435_v47 = vcombine.low %v5122_v17, %v5126_v12  ;;  %v5358_v62 = vld [vmem:[%s19727_s12 + $0x7e8] sm:$0xff] }
 0x99c   :  { %8331 = vmatpush2.bf16.msra.mxu1 %v11865_v32  ;;  %8341 = vmatprep.subr.bf16.mxu0 %v11476_v36  ;;  %v5054_v50 = vpop.f32.mrf.mxu0  ;;  %v5095_v37 = vpop.f32.mrf.mxu1  ;;  %v11563_v32 = vcombine.low %v5250_v57, %v5254_v26  ;;  %v5106_v36 = vld [vmem:[%s19727_s12 + $0x8] sm:$0xff]  ;;  %v11668_v2 = vcombine.high %v5354_v20, %v5358_v62 }
 0x99d   :  { %8382 = vmatprep.subr.bf16.mxu1 %v11604_v9  ;;  %8332 = vmatprep.mubr.bf16.mxu1 %v17497_v60  ;;  %v5110_v9 = vld [vmem:[%s19727_s12 + $0x28] sm:$0xff] }
 0x99e   :  { %8292 = vmatmul.mubr.bf16.vlgmr.msra.gmra.mxu0 %v17499_v11  ;;  %v11420_v35 = vcombine.high %v5106_v36, %v5110_v9  ;;  %v11419_v6 = vcombine.low %v5106_v36, %v5110_v9  ;;  %v5346_v50 = vld [vmem:[%s19727_s12 + $0x788] sm:$0xff] }
 0x99f   :  { %8333 = vmatmul.mubr.bf16.vlgmr.msra.gmra.mxu1 %v17484_v48  ;;  %8342 = vmatpush1.bf16.msra.mxu0 %v11475_v51  ;;  %v11555_v51 = vcombine.low %v5242_v8, %v5246_v7  ;;  %v5350_v37 = vld [vmem:[%s19727_s12 + $0x7a8] sm:$0xff] }
 0x9a0   :  { %8383 = vmatpush1.bf16.msra.mxu1 %v11603_v44  ;;  %8373 = vmatprep.mubr.bf16.mxu0 %v17285_v4  ;;  %v5230_v44 = vld [vmem:[%s19727_s12 + $0x3e8] sm:$0xff] }
 0x9a1   :  { %8414 = vmatprep.mubr.bf16.mxu1 %v17287_v22  ;;  %8343 = vmatprep.subr.bf16.mxu0 %v11468_v21  ;;  %v11547_v21 = vcombine.low %v5234_v3, %v5238_v28  ;;  %v5334_v18 = vld [vmem:[%s19727_s12 + $0x728] sm:$0xff] }
 0x9a2   :  { %8384 = vmatprep.subr.bf16.mxu1 %v11596_v59  ;;  %v11540_v59 = vcombine.high %v5226_v33, %v5230_v44  ;;  %v5194_v17 = vld [vmem:[%s19727_s12 + $0x2c8] sm:$0xff] }
 0x9a3   :  { %8344 = vmatpush1.bf16.msra.mxu0 %v11467_v14  ;;  %v11539_v14 = vcombine.low %v5226_v33, %v5230_v44  ;;  %v5198_v12 = vld [vmem:[%s19727_s12 + $0x2e8] sm:$0xff] }
 0x9a4   :  { %8385 = vmatpush1.bf16.msra.mxu1 %v11595_v56  ;;  %8345 = vmatprep.subr.bf16.mxu0 %v11460_v52  ;;  %v11667_v56 = vcombine.low %v5354_v20, %v5358_v62  ;;  %v11532_v52 = vcombine.high %v5218_v34, %v5222_v45  ;;  %v5322_v57 = vld [vmem:[%s19727_s12 + $0x6c8] sm:$0xff] }
 0x9a5   :  { %8386 = vmatprep.subr.bf16.mxu1 %v11588_v15  ;;  %v11660_v15 = vcombine.high %v5346_v50, %v5350_v37  ;;  %v5326_v26 = vld [vmem:[%s19727_s12 + $0x6e8] sm:$0xff] }
 0x9a6   :  { %v5186_v29 = vld [vmem:[%s19727_s12 + $0x288] sm:$0xff] }
 0x9a7   :  { %8346 = vmatpush1.bf16.msra.mxu0 %v11459_v25  ;;  %v11531_v25 = vcombine.low %v5218_v34, %v5222_v45  ;;  %v5190_v46 = vld [vmem:[%s19727_s12 + $0x2a8] sm:$0xff] }
 0x9a8   :  { %8387 = vmatpush1.bf16.msra.mxu1 %v11587_v41  ;;  %8347 = vmatprep.subr.bf16.mxu0 %v11452_v13  ;;  %v11659_v41 = vcombine.low %v5346_v50, %v5350_v37  ;;  %v11524_v13 = vcombine.high %v5210_v24, %v5214_v54  ;;  %v5314_v8 = vld [vmem:[%s19727_s12 + $0x688] sm:$0xff] }
 0x9a9   :  { %8388 = vmatprep.subr.bf16.mxu1 %v11580_v27  ;;  %v11652_v27 = vcombine.high %v5338_v61, %v5342_v16  ;;  %v5318_v7 = vld [vmem:[%s19727_s12 + $0x6a8] sm:$0xff] }
 0x9aa   :  { %v5178_v36 = vld [vmem:[%s19727_s12 + $0x248] sm:$0xff] }
 0x9ab   :  { %8348 = vmatpush1.bf16.msra.mxu0 %v11451_v0  ;;  %v11523_v0 = vcombine.low %v5210_v24, %v5214_v54  ;;  %v5182_v9 = vld [vmem:[%s19727_s12 + $0x268] sm:$0xff] }
 0x9ac   :  { %8389 = vmatpush1.bf16.msra.mxu1 %v11579_v10  ;;  %8349 = vmatprep.subr.bf16.mxu0 %v11444_v19  ;;  %v11651_v10 = vcombine.low %v5338_v61, %v5342_v16  ;;  %v11516_v19 = vcombine.high %v5202_v63, %v5206_v42  ;;  %v5306_v3 = vld [vmem:[%s19727_s12 + $0x648] sm:$0xff] }
 0x9ad   :  { %8390 = vmatprep.subr.bf16.mxu1 %v11572_v38  ;;  %v11644_v38 = vcombine.high %v5330_v43, %v5334_v18  ;;  %v5310_v28 = vld [vmem:[%s19727_s12 + $0x668] sm:$0xff] }
 0x9ae   :  { %v5170_v33 = vld [vmem:[%s19727_s12 + $0x208] sm:$0xff] }
 0x9af   :  { %8350 = vmatpush1.bf16.msra.mxu0 %v11443_v53  ;;  %v11515_v53 = vcombine.low %v5202_v63, %v5206_v42  ;;  %v5174_v44 = vld [vmem:[%s19727_s12 + $0x228] sm:$0xff] }
 0x9b0   :  { %8391 = vmatpush1.bf16.msra.mxu1 %v11571_v40  ;;  %8351 = vmatprep.subr.bf16.mxu0 %v11436_v31  ;;  %v11643_v40 = vcombine.low %v5330_v43, %v5334_v18  ;;  %v11508_v31 = vcombine.high %v5194_v17, %v5198_v12  ;;  %v5298_v20 = vld [vmem:[%s19727_s12 + $0x608] sm:$0xff] }
 0x9b1   :  { %8392 = vmatprep.subr.bf16.mxu1 %v11564_v58  ;;  %v11636_v58 = vcombine.high %v5322_v57, %v5326_v26  ;;  %v5302_v62 = vld [vmem:[%s19727_s12 + $0x628] sm:$0xff] }
 0x9b2   :  { %v5418_v34 = vld [vmem:[%s19727_s12 + $0x9c8] sm:$0xff] }
 0x9b3   :  { %8352 = vmatpush1.bf16.msra.mxu0 %v11435_v47  ;;  %v11507_v47 = vcombine.low %v5194_v17, %v5198_v12  ;;  %v5422_v45 = vld [vmem:[%s19727_s12 + $0x9e8] sm:$0xff] }
 0x9b4   :  { %8393 = vmatpush1.bf16.msra.mxu1 %v11563_v32  ;;  %8353 = vmatprep.subr.bf16.mxu0 %v11428_v23  ;;  %v11635_v32 = vcombine.low %v5322_v57, %v5326_v26  ;;  %v11500_v23 = vcombine.high %v5186_v29, %v5190_v46  ;;  %v5546_v50 = vld [vmem:[%s19727_s12 + $0xdc8] sm:$0xff] }
 0x9b5   :  { %8394 = vmatprep.subr.bf16.mxu1 %v11556_v5  ;;  %v11628_v5 = vcombine.high %v5314_v8, %v5318_v7  ;;  %v5550_v37 = vld [vmem:[%s19727_s12 + $0xde8] sm:$0xff] }
 0x9b6   :  { %v5410_v24 = vld [vmem:[%s19727_s12 + $0x988] sm:$0xff] }
 0x9b7   :  { %8354 = vmatpush1.bf16.msra.mxu0 %v11427_v55  ;;  %v11499_v55 = vcombine.low %v5186_v29, %v5190_v46  ;;  %v5414_v54 = vld [vmem:[%s19727_s12 + $0x9a8] sm:$0xff] }
 0x9b8   :  { %8395 = vmatpush1.bf16.msra.mxu1 %v11555_v51  ;;  %8355 = vmatprep.subr.bf16.mxu0 %v11420_v35  ;;  %v11627_v51 = vcombine.low %v5314_v8, %v5318_v7  ;;  %v11492_v35 = vcombine.high %v5178_v36, %v5182_v9  ;;  %v5538_v61 = vld [vmem:[%s19727_s12 + $0xd88] sm:$0xff] }
 0x9b9   :  { %8396 = vmatprep.subr.bf16.mxu1 %v11548_v30  ;;  %v11620_v30 = vcombine.high %v5306_v3, %v5310_v28  ;;  %v5542_v16 = vld [vmem:[%s19727_s12 + $0xda8] sm:$0xff] }
 0x9ba   :  { %v5402_v63 = vld [vmem:[%s19727_s12 + $0x948] sm:$0xff] }
 0x9bb   :  { %8356 = vmatpush1.bf16.msra.mxu0 %v11419_v6  ;;  %v11491_v6 = vcombine.low %v5178_v36, %v5182_v9  ;;  %v5406_v42 = vld [vmem:[%s19727_s12 + $0x968] sm:$0xff] }
 0x9bc   :  { %8397 = vmatpush1.bf16.msra.mxu1 %v11547_v21  ;;  %8357 = vmatprep.subr.bf16.mxu0 %v11540_v59  ;;  %v11619_v21 = vcombine.low %v5306_v3, %v5310_v28  ;;  %v11484_v59 = vcombine.high %v5170_v33, %v5174_v44  ;;  %v5530_v43 = vld [vmem:[%s19727_s12 + $0xd48] sm:$0xff] }
 0x9bd   :  { %8398 = vmatprep.subr.bf16.mxu1 %v11668_v2  ;;  %v11612_v2 = vcombine.high %v5298_v20, %v5302_v62  ;;  %v5534_v18 = vld [vmem:[%s19727_s12 + $0xd68] sm:$0xff] }
 0x9be   :  { %v5394_v17 = vld [vmem:[%s19727_s12 + $0x908] sm:$0xff] }
 0x9bf   :  { %8358 = vmatpush2.bf16.msra.mxu0 %v11539_v14  ;;  %v11483_v14 = vcombine.low %v5170_v33, %v5174_v44  ;;  %v5398_v12 = vld [vmem:[%s19727_s12 + $0x928] sm:$0xff] }
 0x9c0   :  { %8399 = vmatpush2.bf16.msra.mxu1 %v11667_v56  ;;  %8359 = vmatprep.subr.bf16.mxu0 %v11532_v52  ;;  %v11611_v56 = vcombine.low %v5298_v20, %v5302_v62  ;;  %v11732_v52 = vcombine.high %v5418_v34, %v5422_v45  ;;  %v5522_v57 = vld [vmem:[%s19727_s12 + $0xd08] sm:$0xff] }
 0x9c1   :  { %8400 = vmatprep.subr.bf16.mxu1 %v11660_v15  ;;  %v11860_v15 = vcombine.high %v5546_v50, %v5550_v37  ;;  %v5526_v26 = vld [vmem:[%s19727_s12 + $0xd28] sm:$0xff] }
 0x9c2   :  { %v5386_v29 = vld [vmem:[%s19727_s12 + $0x8c8] sm:$0xff] }
 0x9c3   :  { %8360 = vmatpush2.bf16.msra.mxu0 %v11531_v25  ;;  %v11731_v25 = vcombine.low %v5418_v34, %v5422_v45  ;;  %v5390_v46 = vld [vmem:[%s19727_s12 + $0x8e8] sm:$0xff] }
 0x9c4   :  { %8401 = vmatpush2.bf16.msra.mxu1 %v11659_v41  ;;  %8361 = vmatprep.subr.bf16.mxu0 %v11524_v13  ;;  %v11859_v41 = vcombine.low %v5546_v50, %v5550_v37  ;;  %v11724_v13 = vcombine.high %v5410_v24, %v5414_v54  ;;  %v5514_v8 = vld [vmem:[%s19727_s12 + $0xcc8] sm:$0xff] }
 0x9c5   :  { %8402 = vmatprep.subr.bf16.mxu1 %v11652_v27  ;;  %v11852_v27 = vcombine.high %v5538_v61, %v5542_v16  ;;  %v5518_v7 = vld [vmem:[%s19727_s12 + $0xce8] sm:$0xff] }
 0x9c6   :  { %v5378_v36 = vld [vmem:[%s19727_s12 + $0x888] sm:$0xff] }
 0x9c7   :  { %8362 = vmatpush2.bf16.msra.mxu0 %v11523_v0  ;;  %v11723_v0 = vcombine.low %v5410_v24, %v5414_v54  ;;  %v5382_v9 = vld [vmem:[%s19727_s12 + $0x8a8] sm:$0xff] }
 0x9c8   :  { %8403 = vmatpush2.bf16.msra.mxu1 %v11651_v10  ;;  %8363 = vmatprep.subr.bf16.mxu0 %v11516_v19  ;;  %v11851_v10 = vcombine.low %v5538_v61, %v5542_v16  ;;  %v11716_v19 = vcombine.high %v5402_v63, %v5406_v42  ;;  %v5506_v3 = vld [vmem:[%s19727_s12 + $0xc88] sm:$0xff] }
 0x9c9   :  { %8404 = vmatprep.subr.bf16.mxu1 %v11644_v38  ;;  %v11844_v38 = vcombine.high %v5530_v43, %v5534_v18  ;;  %v5510_v28 = vld [vmem:[%s19727_s12 + $0xca8] sm:$0xff] }
 0x9ca   :  { %v5370_v33 = vld [vmem:[%s19727_s12 + $0x848] sm:$0xff] }
 0x9cb   :  { %8364 = vmatpush2.bf16.msra.mxu0 %v11515_v53  ;;  %v11715_v53 = vcombine.low %v5402_v63, %v5406_v42  ;;  %v5374_v44 = vld [vmem:[%s19727_s12 + $0x868] sm:$0xff] }
 0x9cc   :  { %8405 = vmatpush2.bf16.msra.mxu1 %v11643_v40  ;;  %8365 = vmatprep.subr.bf16.mxu0 %v11508_v31  ;;  %v11843_v40 = vcombine.low %v5530_v43, %v5534_v18  ;;  %v11708_v31 = vcombine.high %v5394_v17, %v5398_v12  ;;  %v5498_v20 = vld [vmem:[%s19727_s12 + $0xc48] sm:$0xff] }
 0x9cd   :  { %8406 = vmatprep.subr.bf16.mxu1 %v11636_v58  ;;  %v11836_v58 = vcombine.high %v5522_v57, %v5526_v26  ;;  %v5502_v62 = vld [vmem:[%s19727_s12 + $0xc68] sm:$0xff] }
 0x9ce   :  { %v5362_v34 = vld [vmem:[%s19727_s12 + $0x808] sm:$0xff] }
 0x9cf   :  { %8366 = vmatpush2.bf16.msra.mxu0 %v11507_v47  ;;  %v11707_v47 = vcombine.low %v5394_v17, %v5398_v12  ;;  %v5366_v45 = vld [vmem:[%s19727_s12 + $0x828] sm:$0xff] }
 0x9d0   :  { %8407 = vmatpush2.bf16.msra.mxu1 %v11635_v32  ;;  %8367 = vmatprep.subr.bf16.mxu0 %v11500_v23  ;;  %v11835_v32 = vcombine.low %v5522_v57, %v5526_v26  ;;  %v11700_v23 = vcombine.high %v5386_v29, %v5390_v46  ;;  %v5490_v50 = vld [vmem:[%s19727_s12 + $0xc08] sm:$0xff] }
 0x9d1   :  { %8408 = vmatprep.subr.bf16.mxu1 %v11628_v5  ;;  %v11828_v5 = vcombine.high %v5514_v8, %v5518_v7  ;;  %v5494_v37 = vld [vmem:[%s19727_s12 + $0xc28] sm:$0xff] }
 0x9d2   :  { %v5482_v24 = vld [vmem:[%s19727_s12 + $0xbc8] sm:$0xff] }
 0x9d3   :  { %8368 = vmatpush2.bf16.msra.mxu0 %v11499_v55  ;;  %v11699_v55 = vcombine.low %v5386_v29, %v5390_v46  ;;  %v5486_v54 = vld [vmem:[%s19727_s12 + $0xbe8] sm:$0xff] }
 0x9d4   :  { %8409 = vmatpush2.bf16.msra.mxu1 %v11627_v51  ;;  %8369 = vmatprep.subr.bf16.mxu0 %v11492_v35  ;;  %v11827_v51 = vcombine.low %v5514_v8, %v5518_v7  ;;  %v11692_v35 = vcombine.high %v5378_v36, %v5382_v9  ;;  %v5610_v61 = vld [vmem:[%s19727_s12 + $0xfc8] sm:$0xff] }
 0x9d5   :  { %8410 = vmatprep.subr.bf16.mxu1 %v11620_v30  ;;  %v11820_v30 = vcombine.high %v5506_v3, %v5510_v28  ;;  %v5614_v16 = vld [vmem:[%s19727_s12 + $0xfe8] sm:$0xff] }
 0x9d6   :  { %v5474_v63 = vld [vmem:[%s19727_s12 + $0xb88] sm:$0xff] }
 0x9d7   :  { %8370 = vmatpush2.bf16.msra.mxu0 %v11491_v6  ;;  %v11691_v6 = vcombine.low %v5378_v36, %v5382_v9  ;;  %v5478_v42 = vld [vmem:[%s19727_s12 + $0xba8] sm:$0xff] }
 0x9d8   :  { %8411 = vmatpush2.bf16.msra.mxu1 %v11619_v21  ;;  %8371 = vmatprep.subr.bf16.mxu0 %v11484_v59  ;;  %v11819_v21 = vcombine.low %v5506_v3, %v5510_v28  ;;  %v11684_v59 = vcombine.high %v5370_v33, %v5374_v44  ;;  %v5602_v43 = vld [vmem:[%s19727_s12 + $0xf88] sm:$0xff] }
 0x9d9   :  { %8412 = vmatprep.subr.bf16.mxu1 %v11612_v2  ;;  %v11812_v2 = vcombine.high %v5498_v20, %v5502_v62  ;;  %v5606_v18 = vld [vmem:[%s19727_s12 + $0xfa8] sm:$0xff] }
 0x9da   :  { %v5466_v17 = vld [vmem:[%s19727_s12 + $0xb48] sm:$0xff] }
 0x9db   :  { %8372 = vmatpush2.bf16.msra.mxu0 %v11483_v14  ;;  %v11683_v14 = vcombine.low %v5370_v33, %v5374_v44  ;;  %v5470_v12 = vld [vmem:[%s19727_s12 + $0xb68] sm:$0xff] }
 0x9dc   :  { %8413 = vmatpush2.bf16.msra.mxu1 %v11611_v56  ;;  %8423 = vmatprep.subr.bf16.mxu0 %v11732_v52  ;;  %v11811_v56 = vcombine.low %v5498_v20, %v5502_v62  ;;  %v11676_v52 = vcombine.high %v5362_v34, %v5366_v45  ;;  %v5594_v57 = vld [vmem:[%s19727_s12 + $0xf48] sm:$0xff] }
 0x9dd   :  { %8464 = vmatprep.subr.bf16.mxu1 %v11860_v15  ;;  %v11804_v15 = vcombine.high %v5490_v50, %v5494_v37  ;;  %v5598_v26 = vld [vmem:[%s19727_s12 + $0xf68] sm:$0xff] }
 0x9de   :  { %8374 = vmatmul.mubr.bf16.vlgmr.msra.gmra.mxu0 %v17289_v39  ;;  %v5458_v29 = vld [vmem:[%s19727_s12 + $0xb08] sm:$0xff] }
 0x9df   :  { %8415 = vmatmul.mubr.bf16.vlgmr.msra.gmra.mxu1 %v17283_v49  ;;  %8424 = vmatpush1.bf16.msra.mxu0 %v11731_v25  ;;  %v11675_v25 = vcombine.low %v5362_v34, %v5366_v45  ;;  %v5462_v46 = vld [vmem:[%s19727_s12 + $0xb28] sm:$0xff] }
 0x9e0   :  { %8455 = vmatprep.mubr.bf16.mxu0 %v17495_v1  ;;  %8465 = vmatpush1.bf16.msra.mxu1 %v11859_v41  ;;  %v11803_v41 = vcombine.low %v5490_v50, %v5494_v37  ;;  %v5586_v8 = vld [vmem:[%s19727_s12 + $0xf08] sm:$0xff] }
 0x9e1   :  { %8496 = vmatprep.mubr.bf16.mxu1 %v17497_v60  ;;  %8425 = vmatprep.subr.bf16.mxu0 %v11724_v13  ;;  %v11796_v13 = vcombine.high %v5482_v24, %v5486_v54  ;;  %v5590_v7 = vld [vmem:[%s19727_s12 + $0xf28] sm:$0xff] }
 0x9e2   :  { %8466 = vmatprep.subr.bf16.mxu1 %v11852_v27  ;;  %v11924_v27 = vcombine.high %v5610_v61, %v5614_v16  ;;  %v5450_v36 = vld [vmem:[%s19727_s12 + $0xac8] sm:$0xff] }
 0x9e3   :  { %8426 = vmatpush1.bf16.msra.mxu0 %v11723_v0  ;;  %v11795_v0 = vcombine.low %v5482_v24, %v5486_v54  ;;  %v5454_v9 = vld [vmem:[%s19727_s12 + $0xae8] sm:$0xff] }
 0x9e4   :  { %8467 = vmatpush1.bf16.msra.mxu1 %v11851_v10  ;;  %8427 = vmatprep.subr.bf16.mxu0 %v11716_v19  ;;  %v11923_v10 = vcombine.low %v5610_v61, %v5614_v16  ;;  %v11788_v19 = vcombine.high %v5474_v63, %v5478_v42  ;;  %v5578_v3 = vld [vmem:[%s19727_s12 + $0xec8] sm:$0xff] }
 0x9e5   :  { %8468 = vmatprep.subr.bf16.mxu1 %v11844_v38  ;;  %v11916_v38 = vcombine.high %v5602_v43, %v5606_v18  ;;  %v5582_v28 = vld [vmem:[%s19727_s12 + $0xee8] sm:$0xff] }
 0x9e6   :  { %v5442_v33 = vld [vmem:[%s19727_s12 + $0xa88] sm:$0xff] }
 0x9e7   :  { %8428 = vmatpush1.bf16.msra.mxu0 %v11715_v53  ;;  %v11787_v53 = vcombine.low %v5474_v63, %v5478_v42  ;;  %v5446_v44 = vld [vmem:[%s19727_s12 + $0xaa8] sm:$0xff]  ;;  %v5163_v63 = vld [vmem:[%s19727_s12 + $0x1d0] sm:$0xff] }
 0x9e8   :  { %8469 = vmatpush1.bf16.msra.mxu1 %v11843_v40  ;;  %8429 = vmatprep.subr.bf16.mxu0 %v11708_v31  ;;  %v11915_v40 = vcombine.low %v5602_v43, %v5606_v18  ;;  %v11780_v31 = vcombine.high %v5466_v17, %v5470_v12  ;;  %v5570_v20 = vld [vmem:[%s19727_s12 + $0xe88] sm:$0xff]  ;;  %v5167_v42 = vld [vmem:[%s19727_s12 + $0x1f0] sm:$0xff] }
 0x9e9   :  { %8470 = vmatprep.subr.bf16.mxu1 %v11836_v58  ;;  %v11908_v58 = vcombine.high %v5594_v57, %v5598_v26  ;;  %v5574_v62 = vld [vmem:[%s19727_s12 + $0xea8] sm:$0xff]  ;;  %v5291_v43 = vld [vmem:[%s19727_s12 + $0x5d0] sm:$0xff] }
 0x9ea   :  { %v5434_v34 = vld [vmem:[%s19727_s12 + $0xa48] sm:$0xff]  ;;  %v5295_v18 = vld [vmem:[%s19727_s12 + $0x5f0] sm:$0xff] }
 0x9eb   :  { %8430 = vmatpush1.bf16.msra.mxu0 %v11707_v47  ;;  %v11779_v47 = vcombine.low %v5466_v17, %v5470_v12  ;;  %v5438_v45 = vld [vmem:[%s19727_s12 + $0xa68] sm:$0xff]  ;;  %v5155_v17 = vld [vmem:[%s19727_s12 + $0x190] sm:$0xff] }
 0x9ec   :  { %8471 = vmatpush1.bf16.msra.mxu1 %v11835_v32  ;;  %8431 = vmatprep.subr.bf16.mxu0 %v11700_v23  ;;  %v11907_v32 = vcombine.low %v5594_v57, %v5598_v26  ;;  %v11772_v23 = vcombine.high %v5458_v29, %v5462_v46  ;;  %v5562_v50 = vld [vmem:[%s19727_s12 + $0xe48] sm:$0xff]  ;;  %v5159_v12 = vld [vmem:[%s19727_s12 + $0x1b0] sm:$0xff]  ;;  %v11477_v57 = vcombine.low %v5163_v63, %v5167_v42 }
 0x9ed   :  { %8472 = vmatprep.subr.bf16.mxu1 %v11828_v5  ;;  %v11900_v5 = vcombine.high %v5586_v8, %v5590_v7  ;;  %v5566_v37 = vld [vmem:[%s19727_s12 + $0xe68] sm:$0xff]  ;;  %v5283_v26 = vld [vmem:[%s19727_s12 + $0x590] sm:$0xff] }
 0x9ee   :  { %v5426_v24 = vld [vmem:[%s19727_s12 + $0xa08] sm:$0xff] }
 0x9ef   :  { %8432 = vmatpush1.bf16.msra.mxu0 %v11699_v55  ;;  %v11771_v55 = vcombine.low %v5458_v29, %v5462_v46  ;;  %v5430_v54 = vld [vmem:[%s19727_s12 + $0xa28] sm:$0xff]  ;;  %v5151_v29 = vld [vmem:[%s19727_s12 + $0x170] sm:$0xff] }
 0x9f0   :  { %8473 = vmatpush1.bf16.msra.mxu1 %v11827_v51  ;;  %8433 = vmatprep.subr.bf16.mxu0 %v11692_v35  ;;  %v11899_v51 = vcombine.low %v5586_v8, %v5590_v7  ;;  %v11764_v35 = vcombine.high %v5450_v36, %v5454_v9  ;;  %v5554_v61 = vld [vmem:[%s19727_s12 + $0xe08] sm:$0xff]  ;;  %v5275_v8 = vld [vmem:[%s19727_s12 + $0x550] sm:$0xff] }
 0x9f1   :  { %8474 = vmatprep.subr.bf16.mxu1 %v11820_v30  ;;  %v11892_v30 = vcombine.high %v5578_v3, %v5582_v28  ;;  %v5558_v16 = vld [vmem:[%s19727_s12 + $0xe28] sm:$0xff]  ;;  %v5279_v7 = vld [vmem:[%s19727_s12 + $0x570] sm:$0xff] }
 0x9f3   :  { %8434 = vmatpush1.bf16.msra.mxu0 %v11691_v6  ;;  %v11763_v6 = vcombine.low %v5450_v36, %v5454_v9 }
 0x9f4   :  { %8475 = vmatpush1.bf16.msra.mxu1 %v11819_v21  ;;  %8435 = vmatprep.subr.bf16.mxu0 %v11684_v59  ;;  %v11891_v21 = vcombine.low %v5578_v3, %v5582_v28  ;;  %v11756_v59 = vcombine.high %v5442_v33, %v5446_v44 }
 0x9f5   :  { %8476 = vmatprep.subr.bf16.mxu1 %v11812_v2  ;;  %v11884_v2 = vcombine.high %v5570_v20, %v5574_v62 }
 0x9f7   :  { %8436 = vmatpush1.bf16.msra.mxu0 %v11683_v14  ;;  %v11755_v14 = vcombine.low %v5442_v33, %v5446_v44  ;;  %v5267_v33 = vld [vmem:[%s19727_s12 + $0x510] sm:$0xff] }
 0x9f8   :  { %8477 = vmatpush1.bf16.msra.mxu1 %v11811_v56  ;;  %8437 = vmatprep.subr.bf16.mxu0 %v11676_v52  ;;  %v11883_v56 = vcombine.low %v5570_v20, %v5574_v62  ;;  %v11748_v52 = vcombine.high %v5434_v34, %v5438_v45  ;;  %v5271_v44 = vld [vmem:[%s19727_s12 + $0x530] sm:$0xff] }
 0x9f9   :  { %8478 = vmatprep.subr.bf16.mxu1 %v11804_v15  ;;  %v11876_v15 = vcombine.high %v5562_v50, %v5566_v37 }
 0x9fb   :  { %8438 = vmatpush1.bf16.msra.mxu0 %v11675_v25  ;;  %v11747_v25 = vcombine.low %v5434_v34, %v5438_v45  ;;  %v11582_v45 = vcombine.high %v5267_v33, %v5271_v44 }
 0x9fc   :  { %8479 = vmatpush1.bf16.msra.mxu1 %v11803_v41  ;;  %8439 = vmatprep.subr.bf16.mxu0 %v11796_v13  ;;  %v11875_v41 = vcombine.low %v5562_v50, %v5566_v37  ;;  %v11740_v13 = vcombine.high %v5426_v24, %v5430_v54  ;;  %v5131_v50 = vld [vmem:[%s19727_s12 + $0xd0] sm:$0xff] }
 0x9fd   :  { %8480 = vmatprep.subr.bf16.mxu1 %v11924_v27  ;;  %v11868_v27 = vcombine.high %v5554_v61, %v5558_v16  ;;  %v5135_v37 = vld [vmem:[%s19727_s12 + $0xf0] sm:$0xff] }
 0x9ff   :  { %8440 = vmatpush2.bf16.msra.mxu0 %v11795_v0  ;;  %v11739_v0 = vcombine.low %v5426_v24, %v5430_v54  ;;  %v11446_v24 = vcombine.high %v5131_v50, %v5135_v37 }
 0xa00   :  { %8481 = vmatpush2.bf16.msra.mxu1 %v11923_v10  ;;  %8441 = vmatprep.subr.bf16.mxu0 %v11788_v19  ;;  %v11867_v10 = vcombine.low %v5554_v61, %v5558_v16  ;;  %v11478_v19 = vcombine.high %v5163_v63, %v5167_v42  ;;  %v5123_v61 = vld [vmem:[%s19727_s12 + $0x90] sm:$0xff] }
 0xa01   :  { %8482 = vmatprep.subr.bf16.mxu1 %v11916_v38  ;;  %v11606_v38 = vcombine.high %v5291_v43, %v5295_v18  ;;  %v5127_v16 = vld [vmem:[%s19727_s12 + $0xb0] sm:$0xff] }
 0xa02   :  { %v11438_v63 = vcombine.high %v5123_v61, %v5127_v16 }
 0xa03   :  { %8442 = vmatpush2.bf16.msra.mxu0 %v11787_v53  ;;  %v5287_v53 = vld [vmem:[%s19727_s12 + $0x5b0] sm:$0xff] }
 0xa04   :  { %8483 = vmatpush2.bf16.msra.mxu1 %v11915_v40  ;;  %8443 = vmatprep.subr.bf16.mxu0 %v11780_v31  ;;  %v11605_v40 = vcombine.low %v5291_v43, %v5295_v18  ;;  %v11470_v31 = vcombine.high %v5155_v17, %v5159_v12  ;;  %v11598_v46 = vcombine.high %v5283_v26, %v5287_v53  ;;  %v5115_v43 = vld [vmem:[%s19727_s12 + $0x50] sm:$0xff] }
 0xa05   :  { %8484 = vmatprep.subr.bf16.mxu1 %v11908_v58  ;;  %v5147_v58 = vld [vmem:[%s19727_s12 + $0x150] sm:$0xff]  ;;  %v11597_v36 = vcombine.low %v5283_v26, %v5287_v53 }
 0xa06   :  { %v11462_v9 = vcombine.high %v5147_v58, %v5151_v29  ;;  %v5119_v18 = vld [vmem:[%s19727_s12 + $0x70] sm:$0xff] }
 0xa07   :  { %8444 = vmatpush2.bf16.msra.mxu0 %v11779_v47  ;;  %v5111_v26 = vld [vmem:[%s19727_s12 + $0x30] sm:$0xff] }
 0xa08   :  { %8485 = vmatpush2.bf16.msra.mxu1 %v11907_v32  ;;  %8445 = vmatprep.subr.bf16.mxu0 %v11772_v23  ;;  %v11469_v23 = vcombine.low %v5155_v17, %v5159_v12  ;;  %v11430_v17 = vcombine.high %v5115_v43, %v5119_v18  ;;  %v5235_v53 = vld [vmem:[%s19727_s12 + $0x410] sm:$0xff] }
 0xa09   :  { %8486 = vmatprep.subr.bf16.mxu1 %v11900_v5 }
 0xa0b   :  { %8446 = vmatpush2.bf16.msra.mxu0 %v11771_v55  ;;  %v11590_v55 = vcombine.high %v5275_v8, %v5279_v7 }
 0xa0c   :  { %8487 = vmatpush2.bf16.msra.mxu1 %v11899_v51  ;;  %8447 = vmatprep.subr.bf16.mxu0 %v11764_v35  ;;  %v5139_v51 = vld [vmem:[%s19727_s12 + $0x110] sm:$0xff] }
 0xa0d   :  { %8488 = vmatprep.subr.bf16.mxu1 %v11892_v30  ;;  %v5143_v35 = vld [vmem:[%s19727_s12 + $0x130] sm:$0xff] }
 0xa0f   :  { %8448 = vmatpush2.bf16.msra.mxu0 %v11763_v6  ;;  %v11461_v6 = vcombine.low %v5147_v58, %v5151_v29 }
 0xa10   :  { %8489 = vmatpush2.bf16.msra.mxu1 %v11891_v21  ;;  %8449 = vmatprep.subr.bf16.mxu0 %v11756_v59  ;;  %v11589_v21 = vcombine.low %v5275_v8, %v5279_v7  ;;  %v11454_v59 = vcombine.high %v5139_v51, %v5143_v35  ;;  %v5227_v8 = vld [vmem:[%s19727_s12 + $0x3d0] sm:$0xff] }
 0xa11   :  { %8490 = vmatprep.subr.bf16.mxu1 %v11884_v2  ;;  %v5231_v7 = vld [vmem:[%s19727_s12 + $0x3f0] sm:$0xff] }
 0xa13   :  { %8450 = vmatpush2.bf16.msra.mxu0 %v11755_v14  ;;  %v5259_v14 = vld [vmem:[%s19727_s12 + $0x4d0] sm:$0xff] }
 0xa14   :  { %8491 = vmatpush2.bf16.msra.mxu1 %v11883_v56  ;;  %8451 = vmatprep.subr.bf16.mxu0 %v11748_v52  ;;  %v5263_v56 = vld [vmem:[%s19727_s12 + $0x4f0] sm:$0xff]  ;;  %v11453_v52 = vcombine.low %v5139_v51, %v5143_v35 }
 0xa15   :  { %8492 = vmatprep.subr.bf16.mxu1 %v11876_v15  ;;  %v11581_v15 = vcombine.low %v5267_v33, %v5271_v44  ;;  %v11574_v54 = vcombine.high %v5259_v14, %v5263_v56  ;;  %v5347_v51 = vld [vmem:[%s19727_s12 + $0x790] sm:$0xff]  ;;  %v11541_v33 = vcombine.low %v5227_v8, %v5231_v7 }
 0xa16   :  { %v5351_v35 = vld [vmem:[%s19727_s12 + $0x7b0] sm:$0xff] }
 0xa17   :  { %8452 = vmatpush2.bf16.msra.mxu0 %v11747_v25  ;;  %v5251_v25 = vld [vmem:[%s19727_s12 + $0x490] sm:$0xff] }
 0xa18   :  { %8493 = vmatpush2.bf16.msra.mxu1 %v11875_v41  ;;  %8453 = vmatprep.subr.bf16.mxu0 %v11740_v13  ;;  %v5255_v41 = vld [vmem:[%s19727_s12 + $0x4b0] sm:$0xff]  ;;  %v11445_v13 = vcombine.low %v5131_v50, %v5135_v37 }
 0xa19   :  { %8494 = vmatprep.subr.bf16.mxu1 %v11868_v27  ;;  %v11573_v27 = vcombine.low %v5259_v14, %v5263_v56  ;;  %v11566_v42 = vcombine.high %v5251_v25, %v5255_v41  ;;  %v5203_v14 = vld [vmem:[%s19727_s12 + $0x310] sm:$0xff] }
 0xa1a   :  { %v5207_v56 = vld [vmem:[%s19727_s12 + $0x330] sm:$0xff] }
 0xa1b   :  { %8454 = vmatpush2.bf16.msra.mxu0 %v11739_v0  ;;  %v5243_v0 = vld [vmem:[%s19727_s12 + $0x450] sm:$0xff] }
 0xa1c   :  { %8495 = vmatpush2.bf16.msra.mxu1 %v11867_v10  ;;  %8505 = vmatprep.subr.bf16.mxu0 %v11478_v19  ;;  %v5247_v10 = vld [vmem:[%s19727_s12 + $0x470] sm:$0xff]  ;;  %v11437_v19 = vcombine.low %v5123_v61, %v5127_v16  ;;  %v11518_v61 = vcombine.high %v5203_v14, %v5207_v56 }
 0xa1d   :  { %8546 = vmatprep.subr.bf16.mxu1 %v11606_v38  ;;  %v11565_v38 = vcombine.low %v5251_v25, %v5255_v41  ;;  %v11558_v12 = vcombine.high %v5243_v0, %v5247_v10  ;;  %v11557_v58 = vcombine.low %v5243_v0, %v5247_v10  ;;  %v5195_v25 = vld [vmem:[%s19727_s12 + $0x2d0] sm:$0xff] }
 0xa1e   :  { %8456 = vmatmul.mubr.bf16.vlgmr.msra.gmra.mxu0 %v17499_v11  ;;  %v8211_v47 = vpop.f32.mrf.mxu0  ;;  %v5199_v41 = vld [vmem:[%s19727_s12 + $0x2f0] sm:$0xff] }
 0xa1f   :  { %v8252_v32 = vpop.f32.mrf.mxu1  ;;  %8497 = vmatmul.mubr.bf16.vlgmr.msra.gmra.mxu1 %v17484_v48  ;;  %8506 = vmatpush1.bf16.msra.mxu0 %v11477_v57  ;;  %v5107_v57 = vld [vmem:[%s19727_s12 + $0x10] sm:$0xff] }
 0xa20   :  { %v17909_v5 = vadd.f32 %v8252_v32, %v8211_v47  ;;  %8537 = vmatprep.mubr.bf16.mxu0 %v17285_v4  ;;  %8547 = vmatpush1.bf16.msra.mxu1 %v11605_v40  ;;  %v8213_v3 = vpop.f32.mrf.mxu0  ;;  %v5239_v40 = vld [vmem:[%s19727_s12 + $0x430] sm:$0xff]  ;;  %v11422_v29 = vcombine.high %v5107_v57, %v5111_v26 }
 0xa21   :  { %v8254_v28 = vpop.f32.mrf.mxu1  ;;  %8578 = vmatprep.mubr.bf16.mxu1 %v17287_v22  ;;  %8507 = vmatprep.subr.bf16.mxu0 %v11470_v31  ;;  %v11429_v31 = vcombine.low %v5115_v43, %v5119_v18  ;;  %v5355_v47 = vld [vmem:[%s19727_s12 + $0x7d0] sm:$0xff]  ;;  %v11510_v43 = vcombine.high %v5195_v25, %v5199_v41 }
 0xa22   :  { %v17919_v30 = vadd.f32 %v8254_v28, %v8213_v3  ;;  %8548 = vmatprep.subr.bf16.mxu1 %v11598_v46  ;;  %v8215_v20 = vpop.f32.mrf.mxu0  ;;  %v11550_v46 = vcombine.high %v5235_v53, %v5239_v40  ;;  %v5359_v32 = vld [vmem:[%s19727_s12 + $0x7f0] sm:$0xff] }
 0xa23   :  { %v8256_v62 = vpop.f32.mrf.mxu1  ;;  %8508 = vmatpush1.bf16.msra.mxu0 %v11469_v23  ;;  %v11421_v23 = vcombine.low %v5107_v57, %v5111_v26  ;;  %v11670_v3 = vcombine.high %v5355_v47, %v5359_v32  ;;  %v5219_v28 = vld [vmem:[%s19727_s12 + $0x390] sm:$0xff]  ;;  %v11669_v44 = vcombine.low %v5355_v47, %v5359_v32 }
 0xa24   :  { %8549 = vmatpush1.bf16.msra.mxu1 %v11597_v36  ;;  %8509 = vmatprep.subr.bf16.mxu0 %v11462_v9  ;;  %v8216_v2 = vpop.f32.mrf.mxu0  ;;  %v11549_v36 = vcombine.low %v5235_v53, %v5239_v40  ;;  %v11542_v9 = vcombine.high %v5227_v8, %v5231_v7  ;;  %v11662_v62 = vcombine.high %v5347_v51, %v5351_v35  ;;  %v5187_v0 = vld [vmem:[%s19727_s12 + $0x290] sm:$0xff] }
 0xa25   :  { %v8257_v34 = vpop.f32.mrf.mxu1  ;;  %8550 = vmatprep.subr.bf16.mxu1 %v11590_v55  ;;  %v5223_v55 = vld [vmem:[%s19727_s12 + $0x3b0] sm:$0xff] }
 0xa26   :  { %v11534_v20 = vcombine.high %v5219_v28, %v5223_v55  ;;  %v5343_v2 = vld [vmem:[%s19727_s12 + $0x770] sm:$0xff]  ;;  %v11533_v34 = vcombine.low %v5219_v28, %v5223_v55 }
 0xa27   :  { %8510 = vmatpush1.bf16.msra.mxu0 %v11461_v6  ;;  %v5211_v6 = vld [vmem:[%s19727_s12 + $0x350] sm:$0xff] }
 0xa28   :  { %8551 = vmatpush1.bf16.msra.mxu1 %v11589_v21  ;;  %8511 = vmatprep.subr.bf16.mxu0 %v11454_v59  ;;  %v5215_v21 = vld [vmem:[%s19727_s12 + $0x370] sm:$0xff] }
 0xa29   :  { %8552 = vmatprep.subr.bf16.mxu1 %v11582_v45  ;;  %v5339_v59 = vld [vmem:[%s19727_s12 + $0x750] sm:$0xff]  ;;  %v11661_v45 = vcombine.low %v5347_v51, %v5351_v35  ;;  %v11526_v50 = vcombine.high %v5211_v6, %v5215_v21 }
 0xa2a   :  { %v11654_v37 = vcombine.high %v5339_v59, %v5343_v2  ;;  %v5191_v10 = vld [vmem:[%s19727_s12 + $0x2b0] sm:$0xff] }
 0xa2b   :  { %8512 = vmatpush1.bf16.msra.mxu0 %v11453_v52  ;;  %v5331_v52 = vld [vmem:[%s19727_s12 + $0x710] sm:$0xff]  ;;  %v11502_v57 = vcombine.high %v5187_v0, %v5191_v10 }
 0xa2c   :  { %8553 = vmatpush1.bf16.msra.mxu1 %v11581_v15  ;;  %8513 = vmatprep.subr.bf16.mxu0 %v11446_v24  ;;  %v5335_v15 = vld [vmem:[%s19727_s12 + $0x730] sm:$0xff]  ;;  %v11525_v24 = vcombine.low %v5211_v6, %v5215_v21 }
 0xa2d   :  { %8554 = vmatprep.subr.bf16.mxu1 %v11574_v54  ;;  %v11653_v54 = vcombine.low %v5339_v59, %v5343_v2  ;;  %v11646_v16 = vcombine.high %v5331_v52, %v5335_v15  ;;  %v5179_v53 = vld [vmem:[%s19727_s12 + $0x250] sm:$0xff] }
 0xa2e   :  { %v5183_v40 = vld [vmem:[%s19727_s12 + $0x270] sm:$0xff] }
 0xa2f   :  { %8514 = vmatpush1.bf16.msra.mxu0 %v11445_v13  ;;  %v5323_v13 = vld [vmem:[%s19727_s12 + $0x6d0] sm:$0xff]  ;;  %v11494_v8 = vcombine.high %v5179_v53, %v5183_v40 }
 0xa30   :  { %8555 = vmatpush1.bf16.msra.mxu1 %v11573_v27  ;;  %8515 = vmatprep.subr.bf16.mxu0 %v11438_v63  ;;  %v5327_v27 = vld [vmem:[%s19727_s12 + $0x6f0] sm:$0xff]  ;;  %v11517_v63 = vcombine.low %v5203_v14, %v5207_v56 }
 0xa31   :  { %8556 = vmatprep.subr.bf16.mxu1 %v11566_v42  ;;  %v11645_v42 = vcombine.low %v5331_v52, %v5335_v15  ;;  %v11638_v18 = vcombine.high %v5323_v13, %v5327_v27  ;;  %v5171_v47 = vld [vmem:[%s19727_s12 + $0x210] sm:$0xff] }
 0xa32   :  { %v5175_v32 = vld [vmem:[%s19727_s12 + $0x230] sm:$0xff] }
 0xa33   :  { %8516 = vmatpush1.bf16.msra.mxu0 %v11437_v19  ;;  %v5315_v19 = vld [vmem:[%s19727_s12 + $0x690] sm:$0xff]  ;;  %v11486_v28 = vcombine.high %v5171_v47, %v5175_v32 }
 0xa34   :  { %8557 = vmatpush1.bf16.msra.mxu1 %v11565_v38  ;;  %8517 = vmatprep.subr.bf16.mxu0 %v11430_v17  ;;  %v5319_v38 = vld [vmem:[%s19727_s12 + $0x6b0] sm:$0xff]  ;;  %v11509_v17 = vcombine.low %v5195_v25, %v5199_v41 }
 0xa35   :  { %8558 = vmatprep.subr.bf16.mxu1 %v11558_v12  ;;  %v11637_v12 = vcombine.low %v5323_v13, %v5327_v27  ;;  %v11630_v26 = vcombine.high %v5315_v19, %v5319_v38  ;;  %v5419_v51 = vld [vmem:[%s19727_s12 + $0x9d0] sm:$0xff] }
 0xa36   :  { %v5423_v35 = vld [vmem:[%s19727_s12 + $0x9f0] sm:$0xff] }
 0xa37   :  { %8518 = vmatpush1.bf16.msra.mxu0 %v11429_v31  ;;  %v5307_v31 = vld [vmem:[%s19727_s12 + $0x650] sm:$0xff]  ;;  %v11734_v6 = vcombine.high %v5419_v51, %v5423_v35 }
 0xa38   :  { %8559 = vmatpush1.bf16.msra.mxu1 %v11557_v58  ;;  %8519 = vmatprep.subr.bf16.mxu0 %v11422_v29  ;;  %v5311_v58 = vld [vmem:[%s19727_s12 + $0x670] sm:$0xff]  ;;  %v11501_v29 = vcombine.low %v5187_v0, %v5191_v10 }
 0xa39   :  { %8560 = vmatprep.subr.bf16.mxu1 %v11550_v46  ;;  %v11629_v46 = vcombine.low %v5315_v19, %v5319_v38  ;;  %v11622_v7 = vcombine.high %v5307_v31, %v5311_v58  ;;  %v5411_v59 = vld [vmem:[%s19727_s12 + $0x990] sm:$0xff] }
 0xa3a   :  { %v5415_v2 = vld [vmem:[%s19727_s12 + $0x9b0] sm:$0xff] }
 0xa3b   :  { %8520 = vmatpush1.bf16.msra.mxu0 %v11421_v23  ;;  %v5299_v23 = vld [vmem:[%s19727_s12 + $0x610] sm:$0xff]  ;;  %v11726_v14 = vcombine.high %v5411_v59, %v5415_v2  ;;  %v11725_v41 = vcombine.low %v5411_v59, %v5415_v2 }
 0xa3c   :  { %8561 = vmatpush1.bf16.msra.mxu1 %v11549_v36  ;;  %8521 = vmatprep.subr.bf16.mxu0 %v11542_v9  ;;  %v5303_v36 = vld [vmem:[%s19727_s12 + $0x630] sm:$0xff]  ;;  %v11493_v9 = vcombine.low %v5179_v53, %v5183_v40 }
 0xa3d   :  { %8562 = vmatprep.subr.bf16.mxu1 %v11670_v3  ;;  %v11621_v3 = vcombine.low %v5307_v31, %v5311_v58  ;;  %v11614_v55 = vcombine.high %v5299_v23, %v5303_v36  ;;  %v5403_v56 = vld [vmem:[%s19727_s12 + $0x950] sm:$0xff] }
 0xa3e   :  { %v5407_v52 = vld [vmem:[%s19727_s12 + $0x970] sm:$0xff] }
 0xa3f   :  { %8522 = vmatpush2.bf16.msra.mxu0 %v11541_v33  ;;  %v5547_v33 = vld [vmem:[%s19727_s12 + $0xdd0] sm:$0xff] }
 0xa40   :  { %8563 = vmatpush2.bf16.msra.mxu1 %v11669_v44  ;;  %8523 = vmatprep.subr.bf16.mxu0 %v11534_v20  ;;  %v5551_v44 = vld [vmem:[%s19727_s12 + $0xdf0] sm:$0xff]  ;;  %v11485_v20 = vcombine.low %v5171_v47, %v5175_v32 }
 0xa41   :  { %8564 = vmatprep.subr.bf16.mxu1 %v11662_v62  ;;  %v11613_v62 = vcombine.low %v5299_v23, %v5303_v36  ;;  %v11862_v21 = vcombine.high %v5547_v33, %v5551_v44  ;;  %v5399_v10 = vld [vmem:[%s19727_s12 + $0x930] sm:$0xff] }
 0xa42   :  { %v5523_v19 = vld [vmem:[%s19727_s12 + $0xd10] sm:$0xff] }
 0xa43   :  { %8524 = vmatpush2.bf16.msra.mxu0 %v11533_v34  ;;  %v11733_v34 = vcombine.low %v5419_v51, %v5423_v35 }
 0xa44   :  { %8565 = vmatpush2.bf16.msra.mxu1 %v11661_v45  ;;  %8525 = vmatprep.subr.bf16.mxu0 %v11526_v50  ;;  %v5539_v45 = vld [vmem:[%s19727_s12 + $0xd90] sm:$0xff] }
 0xa45   :  { %8566 = vmatprep.subr.bf16.mxu1 %v11654_v37  ;;  %v5543_v50 = vld [vmem:[%s19727_s12 + $0xdb0] sm:$0xff]  ;;  %v11861_v37 = vcombine.low %v5547_v33, %v5551_v44 }
 0xa46   :  { %v11853_v27 = vcombine.low %v5539_v45, %v5543_v50 }
 0xa47   :  { %8526 = vmatpush2.bf16.msra.mxu0 %v11525_v24 }
 0xa48   :  { %8567 = vmatpush2.bf16.msra.mxu1 %v11653_v54  ;;  %8527 = vmatprep.subr.bf16.mxu0 %v11518_v61  ;;  %v11854_v54 = vcombine.high %v5539_v45, %v5543_v50  ;;  %v5531_v61 = vld [vmem:[%s19727_s12 + $0xd50] sm:$0xff] }
 0xa49   :  { %8568 = vmatprep.subr.bf16.mxu1 %v11646_v16  ;;  %v5535_v16 = vld [vmem:[%s19727_s12 + $0xd70] sm:$0xff] }
 0xa4a   :  { %v11846_v0 = vcombine.high %v5531_v61, %v5535_v16  ;;  %v5363_v50 = vld [vmem:[%s19727_s12 + $0x810] sm:$0xff] }
 0xa4b   :  { %8528 = vmatpush2.bf16.msra.mxu0 %v11517_v63 }
 0xa4c   :  { %8569 = vmatpush2.bf16.msra.mxu1 %v11645_v42  ;;  %8529 = vmatprep.subr.bf16.mxu0 %v11510_v43  ;;  %v11718_v42 = vcombine.high %v5403_v56, %v5407_v52 }
 0xa4d   :  { %8570 = vmatprep.subr.bf16.mxu1 %v11638_v18 }
 0xa4f   :  { %8530 = vmatpush2.bf16.msra.mxu0 %v11509_v17 }
 0xa50   :  { %8571 = vmatpush2.bf16.msra.mxu1 %v11637_v12  ;;  %8531 = vmatprep.subr.bf16.mxu0 %v11502_v57  ;;  %v11717_v57 = vcombine.low %v5403_v56, %v5407_v52  ;;  %v5495_v56 = vld [vmem:[%s19727_s12 + $0xc30] sm:$0xff] }
 0xa51   :  { %8572 = vmatprep.subr.bf16.mxu1 %v11630_v26  ;;  %v11845_v26 = vcombine.low %v5531_v61, %v5535_v16  ;;  %v5483_v61 = vld [vmem:[%s19727_s12 + $0xbd0] sm:$0xff] }
 0xa52   :  { %v5487_v16 = vld [vmem:[%s19727_s12 + $0xbf0] sm:$0xff] }
 0xa53   :  { %8532 = vmatpush2.bf16.msra.mxu0 %v11501_v29  ;;  %v5387_v29 = vld [vmem:[%s19727_s12 + $0x8d0] sm:$0xff] }
 0xa54   :  { %8573 = vmatpush2.bf16.msra.mxu1 %v11629_v46  ;;  %8533 = vmatprep.subr.bf16.mxu0 %v11494_v8  ;;  %v5391_v46 = vld [vmem:[%s19727_s12 + $0x8f0] sm:$0xff] }
 0xa55   :  { %8574 = vmatprep.subr.bf16.mxu1 %v11622_v7  ;;  %v5515_v8 = vld [vmem:[%s19727_s12 + $0xcd0] sm:$0xff]  ;;  %v11702_v23 = vcombine.high %v5387_v29, %v5391_v46  ;;  %v11701_v51 = vcombine.low %v5387_v29, %v5391_v46 }
 0xa56   :  { %v5519_v7 = vld [vmem:[%s19727_s12 + $0xcf0] sm:$0xff] }
 0xa57   :  { %8534 = vmatpush2.bf16.msra.mxu0 %v11493_v9  ;;  %v11830_v36 = vcombine.high %v5515_v8, %v5519_v7  ;;  %v5379_v9 = vld [vmem:[%s19727_s12 + $0x890] sm:$0xff]  ;;  %v11829_v35 = vcombine.low %v5515_v8, %v5519_v7 }
 0xa58   :  { %8575 = vmatpush2.bf16.msra.mxu1 %v11621_v3  ;;  %8535 = vmatprep.subr.bf16.mxu0 %v11486_v28  ;;  %v5383_v3 = vld [vmem:[%s19727_s12 + $0x8b0] sm:$0xff] }
 0xa59   :  { %8576 = vmatprep.subr.bf16.mxu1 %v11614_v55  ;;  %v5507_v28 = vld [vmem:[%s19727_s12 + $0xc90] sm:$0xff]  ;;  %v11694_v33 = vcombine.high %v5379_v9, %v5383_v3  ;;  %v11693_v59 = vcombine.low %v5379_v9, %v5383_v3 }
 0xa5a   :  { %v5511_v55 = vld [vmem:[%s19727_s12 + $0xcb0] sm:$0xff] }
 0xa5b   :  { %8536 = vmatpush2.bf16.msra.mxu0 %v11485_v20  ;;  %v11822_v44 = vcombine.high %v5507_v28, %v5511_v55  ;;  %v5371_v20 = vld [vmem:[%s19727_s12 + $0x850] sm:$0xff]  ;;  %v11821_v2 = vcombine.low %v5507_v28, %v5511_v55 }
 0xa5c   :  { %8577 = vmatpush2.bf16.msra.mxu1 %v11613_v62  ;;  %8587 = vmatprep.subr.bf16.mxu0 %v11734_v6  ;;  %v5375_v62 = vld [vmem:[%s19727_s12 + $0x870] sm:$0xff] }
 0xa5d   :  { %8628 = vmatprep.subr.bf16.mxu1 %v11862_v21  ;;  %v5499_v6 = vld [vmem:[%s19727_s12 + $0xc50] sm:$0xff]  ;;  %v11685_v52 = vcombine.low %v5371_v20, %v5375_v62 }
 0xa5e   :  { %8538 = vmatmul.mubr.bf16.vlgmr.msra.gmra.mxu0 %v17289_v39  ;;  %v8293_v15 = vpop.f32.mrf.mxu0  ;;  %v5503_v21 = vld [vmem:[%s19727_s12 + $0xc70] sm:$0xff] }
 0xa5f   :  { %v8334_v24 = vpop.f32.mrf.mxu1  ;;  %8579 = vmatmul.mubr.bf16.vlgmr.msra.gmra.mxu1 %v17283_v49  ;;  %v8294_v25 = vadd.f32 %v8293_v15, %v17909_v5  ;;  %8588 = vmatpush1.bf16.msra.mxu0 %v11733_v34  ;;  %v5395_v5 = vld [vmem:[%s19727_s12 + $0x910] sm:$0xff]  ;;  %v11686_v34 = vcombine.high %v5371_v20, %v5375_v62  ;;  %v11814_v45 = vcombine.high %v5499_v6, %v5503_v21 }
 0xa60   :  { %8619 = vmatprep.mubr.bf16.mxu0 %v17495_v1  ;;  %8629 = vmatpush1.bf16.msra.mxu1 %v11861_v37  ;;  %v8295_v13 = vpop.f32.mrf.mxu0  ;;  %v11710_v53 = vcombine.high %v5395_v5, %v5399_v10  ;;  %v11709_v47 = vcombine.low %v5395_v5, %v5399_v10  ;;  %v5367_v37 = vld [vmem:[%s19727_s12 + $0x830] sm:$0xff]  ;;  %v11813_v15 = vcombine.low %v5499_v6, %v5503_v21 }
 0xa61   :  { %v8336_v63 = vpop.f32.mrf.mxu1  ;;  %8660 = vmatprep.mubr.bf16.mxu1 %v17497_v60  ;;  %v8296_v43 = vadd.f32 %v8295_v13, %v17919_v30  ;;  %v18113_v18 = vadd.f32 %v8334_v24, %v8294_v25  ;;  %8589 = vmatprep.subr.bf16.mxu0 %v11726_v14  ;;  %v5527_v30 = vld [vmem:[%s19727_s12 + $0xd30] sm:$0xff]  ;;  %v11678_v24 = vcombine.high %v5363_v50, %v5367_v37 }
 0xa62   :  { %8630 = vmatprep.subr.bf16.mxu1 %v11854_v54  ;;  %v8297_v38 = vpop.f32.mrf.mxu0  ;;  %v11838_v58 = vcombine.high %v5523_v19, %v5527_v30  ;;  %v11837_v32 = vcombine.low %v5523_v19, %v5527_v30  ;;  %v5491_v14 = vld [vmem:[%s19727_s12 + $0xc10] sm:$0xff]  ;;  %v11677_v13 = vcombine.low %v5363_v50, %v5367_v37  ;;  %v11797_v19 = vcombine.low %v5483_v61, %v5487_v16 }
 0xa63   :  { %v8338_v17 = vpop.f32.mrf.mxu1  ;;  %v18127_v12 = vadd.f32 %v8336_v63, %v8296_v43  ;;  %8590 = vmatpush1.bf16.msra.mxu0 %v11725_v41  ;;  %v11806_v54 = vcombine.high %v5491_v14, %v5495_v56  ;;  %v5611_v25 = vld [vmem:[%s19727_s12 + $0xfd0] sm:$0xff]  ;;  %v11798_v63 = vcombine.high %v5483_v61, %v5487_v16 }
 0xa64   :  { %8631 = vmatpush1.bf16.msra.mxu1 %v11853_v27  ;;  %8591 = vmatprep.subr.bf16.mxu0 %v11718_v42  ;;  %v8298_v40 = vpop.f32.mrf.mxu0  ;;  %v5615_v41 = vld [vmem:[%s19727_s12 + $0xff0] sm:$0xff]  ;;  %v11805_v27 = vcombine.low %v5491_v14, %v5495_v56 }
 0xa65   :  { %v8339_v31 = vpop.f32.mrf.mxu1  ;;  %8632 = vmatprep.subr.bf16.mxu1 %v11846_v0  ;;  %v11926_v42 = vcombine.high %v5611_v25, %v5615_v41  ;;  %v5475_v43 = vld [vmem:[%s19727_s12 + $0xb90] sm:$0xff]  ;;  %v11925_v30 = vcombine.low %v5611_v25, %v5615_v41 }
 0xa66   :  { %v5479_v0 = vld [vmem:[%s19727_s12 + $0xbb0] sm:$0xff] }
 0xa67   :  { %8592 = vmatpush1.bf16.msra.mxu0 %v11717_v57  ;;  %v5603_v5 = vld [vmem:[%s19727_s12 + $0xf90] sm:$0xff]  ;;  %v11790_v38 = vcombine.high %v5475_v43, %v5479_v0  ;;  %v11789_v31 = vcombine.low %v5475_v43, %v5479_v0 }
 0xa68   :  { %8633 = vmatpush1.bf16.msra.mxu1 %v11845_v26  ;;  %8593 = vmatprep.subr.bf16.mxu0 %v11710_v53  ;;  %v5607_v10 = vld [vmem:[%s19727_s12 + $0xfb0] sm:$0xff] }
 0xa69   :  { %8634 = vmatprep.subr.bf16.mxu1 %v11838_v58  ;;  %v11918_v17 = vcombine.high %v5603_v5, %v5607_v10  ;;  %v5467_v57 = vld [vmem:[%s19727_s12 + $0xb50] sm:$0xff]  ;;  %v11917_v58 = vcombine.low %v5603_v5, %v5607_v10  ;;  %v5164_v5 = vld [vmem:[%s19727_s12 + $0x1d8] sm:$0xff] }
 0xa6a   :  { %v5471_v26 = vld [vmem:[%s19727_s12 + $0xb70] sm:$0xff]  ;;  %v5168_v10 = vld [vmem:[%s19727_s12 + $0x1f8] sm:$0xff] }
 0xa6b   :  { %8594 = vmatpush1.bf16.msra.mxu0 %v11709_v47  ;;  %v5595_v53 = vld [vmem:[%s19727_s12 + $0xf50] sm:$0xff]  ;;  %v11782_v29 = vcombine.high %v5467_v57, %v5471_v26 }
 0xa6c   :  { %8635 = vmatpush1.bf16.msra.mxu1 %v11837_v32  ;;  %8595 = vmatprep.subr.bf16.mxu0 %v11702_v23  ;;  %v5599_v40 = vld [vmem:[%s19727_s12 + $0xf70] sm:$0xff]  ;;  %v11781_v23 = vcombine.low %v5467_v57, %v5471_v26  ;;  %v11480_v57 = vcombine.high %v5164_v5, %v5168_v10 }
 0xa6d   :  { %8636 = vmatprep.subr.bf16.mxu1 %v11830_v36  ;;  %v11910_v46 = vcombine.high %v5595_v53, %v5599_v40  ;;  %v5459_v8 = vld [vmem:[%s19727_s12 + $0xb10] sm:$0xff]  ;;  %v11909_v36 = vcombine.low %v5595_v53, %v5599_v40  ;;  %v5156_v53 = vld [vmem:[%s19727_s12 + $0x198] sm:$0xff] }
 0xa6e   :  { %v5463_v7 = vld [vmem:[%s19727_s12 + $0xb30] sm:$0xff]  ;;  %v5160_v40 = vld [vmem:[%s19727_s12 + $0x1b8] sm:$0xff] }
 0xa6f   :  { %8596 = vmatpush1.bf16.msra.mxu0 %v11701_v51  ;;  %v5587_v47 = vld [vmem:[%s19727_s12 + $0xf10] sm:$0xff]  ;;  %v11774_v9 = vcombine.high %v5459_v8, %v5463_v7 }
 0xa70   :  { %8637 = vmatpush1.bf16.msra.mxu1 %v11829_v35  ;;  %8597 = vmatprep.subr.bf16.mxu0 %v11694_v33  ;;  %v5591_v32 = vld [vmem:[%s19727_s12 + $0xf30] sm:$0xff]  ;;  %v11773_v33 = vcombine.low %v5459_v8, %v5463_v7  ;;  %v11472_v8 = vcombine.high %v5156_v53, %v5160_v40  ;;  %v5148_v7 = vld [vmem:[%s19727_s12 + $0x158] sm:$0xff] }
 0xa71   :  { %8638 = vmatprep.subr.bf16.mxu1 %v11822_v44  ;;  %v11902_v3 = vcombine.high %v5587_v47, %v5591_v32  ;;  %v5451_v28 = vld [vmem:[%s19727_s12 + $0xad0] sm:$0xff]  ;;  %v11901_v44 = vcombine.low %v5587_v47, %v5591_v32  ;;  %v5152_v47 = vld [vmem:[%s19727_s12 + $0x178] sm:$0xff] }
 0xa72   :  { %v5455_v55 = vld [vmem:[%s19727_s12 + $0xaf0] sm:$0xff] }
 0xa73   :  { %8598 = vmatpush1.bf16.msra.mxu0 %v11693_v59  ;;  %v5579_v51 = vld [vmem:[%s19727_s12 + $0xed0] sm:$0xff]  ;;  %v11766_v20 = vcombine.high %v5451_v28, %v5455_v55 }
 0xa74   :  { %8639 = vmatpush1.bf16.msra.mxu1 %v11821_v2  ;;  %8599 = vmatprep.subr.bf16.mxu0 %v11686_v34  ;;  %v5583_v35 = vld [vmem:[%s19727_s12 + $0xef0] sm:$0xff]  ;;  %v11765_v34 = vcombine.low %v5451_v28, %v5455_v55  ;;  %v11471_v55 = vcombine.low %v5156_v53, %v5160_v40 }
 0xa75   :  { %8640 = vmatprep.subr.bf16.mxu1 %v11814_v45  ;;  %v11894_v62 = vcombine.high %v5579_v51, %v5583_v35  ;;  %v5443_v6 = vld [vmem:[%s19727_s12 + $0xa90] sm:$0xff]  ;;  %v11893_v45 = vcombine.low %v5579_v51, %v5583_v35 }
 0xa76   :  { %v5447_v21 = vld [vmem:[%s19727_s12 + $0xab0] sm:$0xff] }
 0xa77   :  { %8600 = vmatpush1.bf16.msra.mxu0 %v11685_v52  ;;  %v5571_v59 = vld [vmem:[%s19727_s12 + $0xe90] sm:$0xff]  ;;  %v11758_v50 = vcombine.high %v5443_v6, %v5447_v21 }
 0xa78   :  { %8641 = vmatpush1.bf16.msra.mxu1 %v11813_v15  ;;  %8601 = vmatprep.subr.bf16.mxu0 %v11678_v24  ;;  %v5575_v2 = vld [vmem:[%s19727_s12 + $0xeb0] sm:$0xff]  ;;  %v11757_v24 = vcombine.low %v5443_v6, %v5447_v21  ;;  %v5140_v6 = vld [vmem:[%s19727_s12 + $0x118] sm:$0xff] }
 0xa79   :  { %8642 = vmatprep.subr.bf16.mxu1 %v11806_v54  ;;  %v11886_v37 = vcombine.high %v5571_v59, %v5575_v2  ;;  %v5435_v14 = vld [vmem:[%s19727_s12 + $0xa50] sm:$0xff]  ;;  %v11885_v54 = vcombine.low %v5571_v59, %v5575_v2  ;;  %v5144_v21 = vld [vmem:[%s19727_s12 + $0x138] sm:$0xff] }
 0xa7a   :  { %v5439_v56 = vld [vmem:[%s19727_s12 + $0xa70] sm:$0xff]  ;;  %v5268_v2 = vld [vmem:[%s19727_s12 + $0x518] sm:$0xff] }
 0xa7b   :  { %8602 = vmatpush1.bf16.msra.mxu0 %v11677_v13  ;;  %v5563_v52 = vld [vmem:[%s19727_s12 + $0xe50] sm:$0xff]  ;;  %v11750_v61 = vcombine.high %v5435_v14, %v5439_v56 }
 0xa7c   :  { %8643 = vmatpush1.bf16.msra.mxu1 %v11805_v27  ;;  %8603 = vmatprep.subr.bf16.mxu0 %v11798_v63  ;;  %v5567_v15 = vld [vmem:[%s19727_s12 + $0xe70] sm:$0xff]  ;;  %v11749_v63 = vcombine.low %v5435_v14, %v5439_v56  ;;  %v11456_v14 = vcombine.high %v5140_v6, %v5144_v21 }
 0xa7d   :  { %8644 = vmatprep.subr.bf16.mxu1 %v11926_v42  ;;  %v11878_v16 = vcombine.high %v5563_v52, %v5567_v15  ;;  %v5427_v25 = vld [vmem:[%s19727_s12 + $0xa10] sm:$0xff]  ;;  %v11877_v42 = vcombine.low %v5563_v52, %v5567_v15  ;;  %v5132_v52 = vld [vmem:[%s19727_s12 + $0xd8] sm:$0xff] }
 0xa7e   :  { %v5431_v41 = vld [vmem:[%s19727_s12 + $0xa30] sm:$0xff]  ;;  %v5136_v15 = vld [vmem:[%s19727_s12 + $0xf8] sm:$0xff] }
 0xa7f   :  { %8604 = vmatpush2.bf16.msra.mxu0 %v11797_v19  ;;  %v5555_v13 = vld [vmem:[%s19727_s12 + $0xe10] sm:$0xff]  ;;  %v11742_v43 = vcombine.high %v5427_v25, %v5431_v41  ;;  %v5292_v19 = vld [vmem:[%s19727_s12 + $0x5d8] sm:$0xff] }
 0xa80   :  { %8645 = vmatpush2.bf16.msra.mxu1 %v11925_v30  ;;  %8605 = vmatprep.subr.bf16.mxu0 %v11790_v38  ;;  %v5559_v27 = vld [vmem:[%s19727_s12 + $0xe30] sm:$0xff]  ;;  %v5296_v30 = vld [vmem:[%s19727_s12 + $0x5f8] sm:$0xff]  ;;  %v11741_v38 = vcombine.low %v5427_v25, %v5431_v41  ;;  %v11448_v25 = vcombine.high %v5132_v52, %v5136_v15 }
 0xa81   :  { %8646 = vmatprep.subr.bf16.mxu1 %v11918_v17  ;;  %v11870_v0 = vcombine.high %v5555_v13, %v5559_v27  ;;  %v11869_v17 = vcombine.low %v5555_v13, %v5559_v27  ;;  %v11608_v26 = vcombine.high %v5292_v19, %v5296_v30  ;;  %v5124_v13 = vld [vmem:[%s19727_s12 + $0x98] sm:$0xff] }
 0xa82   :  { %v5128_v27 = vld [vmem:[%s19727_s12 + $0xb8] sm:$0xff] }
 0xa83   :  { %8606 = vmatpush2.bf16.msra.mxu0 %v11789_v31  ;;  %v11479_v31 = vcombine.low %v5164_v5, %v5168_v10  ;;  %v11440_v5 = vcombine.high %v5124_v13, %v5128_v27 }
 0xa84   :  { %8647 = vmatpush2.bf16.msra.mxu1 %v11917_v58  ;;  %8607 = vmatprep.subr.bf16.mxu0 %v11782_v29  ;;  %v5284_v58 = vld [vmem:[%s19727_s12 + $0x598] sm:$0xff] }
 0xa85   :  { %8648 = vmatprep.subr.bf16.mxu1 %v11910_v46  ;;  %v5288_v29 = vld [vmem:[%s19727_s12 + $0x5b8] sm:$0xff]  ;;  %v11607_v46 = vcombine.low %v5292_v19, %v5296_v30 }
 0xa86   :  { %v5116_v19 = vld [vmem:[%s19727_s12 + $0x58] sm:$0xff] }
 0xa87   :  { %8608 = vmatpush2.bf16.msra.mxu0 %v11781_v23  ;;  %v5120_v30 = vld [vmem:[%s19727_s12 + $0x78] sm:$0xff] }
 0xa88   :  { %8649 = vmatpush2.bf16.msra.mxu1 %v11909_v36  ;;  %8609 = vmatprep.subr.bf16.mxu0 %v11774_v9  ;;  %v11600_v36 = vcombine.high %v5284_v58, %v5288_v29  ;;  %v5276_v9 = vld [vmem:[%s19727_s12 + $0x558] sm:$0xff]  ;;  %v11432_v53 = vcombine.high %v5116_v19, %v5120_v30 }
 0xa89   :  { %8650 = vmatprep.subr.bf16.mxu1 %v11902_v3  ;;  %v5280_v3 = vld [vmem:[%s19727_s12 + $0x578] sm:$0xff] }
 0xa8b   :  { %8610 = vmatpush2.bf16.msra.mxu0 %v11773_v33  ;;  %v11599_v33 = vcombine.low %v5284_v58, %v5288_v29  ;;  %v5112_v58 = vld [vmem:[%s19727_s12 + $0x38] sm:$0xff] }
 0xa8c   :  { %8651 = vmatpush2.bf16.msra.mxu1 %v11901_v44  ;;  %8611 = vmatprep.subr.bf16.mxu0 %v11766_v20  ;;  %v11464_v44 = vcombine.high %v5148_v7, %v5152_v47  ;;  %v5236_v29 = vld [vmem:[%s19727_s12 + $0x418] sm:$0xff] }
 0xa8d   :  { %8652 = vmatprep.subr.bf16.mxu1 %v11894_v62  ;;  %v11592_v62 = vcombine.high %v5276_v9, %v5280_v3 }
 0xa8f   :  { %8612 = vmatpush2.bf16.msra.mxu0 %v11765_v34  ;;  %v11463_v34 = vcombine.low %v5148_v7, %v5152_v47 }
 0xa90   :  { %8653 = vmatpush2.bf16.msra.mxu1 %v11893_v45  ;;  %8613 = vmatprep.subr.bf16.mxu0 %v11758_v50 }
 0xa91   :  { %8654 = vmatprep.subr.bf16.mxu1 %v11886_v37  ;;  %v11591_v37 = vcombine.low %v5276_v9, %v5280_v3  ;;  %v5356_v9 = vld [vmem:[%s19727_s12 + $0x7d8] sm:$0xff] }
 0xa92   :  { %v5360_v3 = vld [vmem:[%s19727_s12 + $0x7f8] sm:$0xff] }
 0xa93   :  { %8614 = vmatpush2.bf16.msra.mxu0 %v11757_v24  ;;  %v5260_v24 = vld [vmem:[%s19727_s12 + $0x4d8] sm:$0xff] }
 0xa94   :  { %8655 = vmatpush2.bf16.msra.mxu1 %v11885_v54  ;;  %8615 = vmatprep.subr.bf16.mxu0 %v11750_v61  ;;  %v5264_v54 = vld [vmem:[%s19727_s12 + $0x4f8] sm:$0xff]  ;;  %v11455_v61 = vcombine.low %v5140_v6, %v5144_v21 }
 0xa95   :  { %8656 = vmatprep.subr.bf16.mxu1 %v11878_v16  ;;  %v11576_v41 = vcombine.high %v5260_v24, %v5264_v54  ;;  %v5348_v6 = vld [vmem:[%s19727_s12 + $0x798] sm:$0xff] }
 0xa96   :  { %v5352_v21 = vld [vmem:[%s19727_s12 + $0x7b8] sm:$0xff] }
 0xa97   :  { %8616 = vmatpush2.bf16.msra.mxu0 %v11749_v63  ;;  %v5252_v63 = vld [vmem:[%s19727_s12 + $0x498] sm:$0xff] }
 0xa98   :  { %8657 = vmatpush2.bf16.msra.mxu1 %v11877_v42  ;;  %8617 = vmatprep.subr.bf16.mxu0 %v11742_v43  ;;  %v5256_v42 = vld [vmem:[%s19727_s12 + $0x4b8] sm:$0xff]  ;;  %v11447_v43 = vcombine.low %v5132_v52, %v5136_v15 }
 0xa99   :  { %8658 = vmatprep.subr.bf16.mxu1 %v11870_v0  ;;  %v11575_v0 = vcombine.low %v5260_v24, %v5264_v54  ;;  %v11568_v10 = vcombine.high %v5252_v63, %v5256_v42  ;;  %v5204_v24 = vld [vmem:[%s19727_s12 + $0x318] sm:$0xff] }
 0xa9a   :  { %v5208_v54 = vld [vmem:[%s19727_s12 + $0x338] sm:$0xff] }
 0xa9b   :  { %8618 = vmatpush2.bf16.msra.mxu0 %v11741_v38  ;;  %v5244_v38 = vld [vmem:[%s19727_s12 + $0x458] sm:$0xff] }
 0xa9c   :  { %8659 = vmatpush2.bf16.msra.mxu1 %v11869_v17  ;;  %8669 = vmatprep.subr.bf16.mxu0 %v11480_v57  ;;  %v5248_v17 = vld [vmem:[%s19727_s12 + $0x478] sm:$0xff]  ;;  %v11439_v57 = vcombine.low %v5124_v13, %v5128_v27  ;;  %v11520_v13 = vcombine.high %v5204_v24, %v5208_v54 }
 0xa9d   :  { %8710 = vmatprep.subr.bf16.mxu1 %v11608_v26  ;;  %v11567_v26 = vcombine.low %v5252_v63, %v5256_v42  ;;  %v11560_v40 = vcombine.high %v5244_v38, %v5248_v17  ;;  %v11559_v7 = vcombine.low %v5244_v38, %v5248_v17  ;;  %v5196_v63 = vld [vmem:[%s19727_s12 + $0x2d8] sm:$0xff] }
 0xa9e   :  { %v8375_v32 = vpop.f32.mrf.mxu0  ;;  %8620 = vmatmul.mubr.bf16.vlgmr.msra.gmra.mxu0 %v17499_v11  ;;  %v5200_v42 = vld [vmem:[%s19727_s12 + $0x2f8] sm:$0xff] }
 0xa9f   :  { %v8416_v23 = vpop.f32.mrf.mxu1  ;;  %8661 = vmatmul.mubr.bf16.vlgmr.msra.gmra.mxu1 %v17484_v48  ;;  %8670 = vmatpush1.bf16.msra.mxu0 %v11479_v31  ;;  %v5108_v31 = vld [vmem:[%s19727_s12 + $0x18] sm:$0xff] }
 0xaa0   :  { %v18310_v28 = vadd.f32 %v8416_v23, %v8375_v32  ;;  %8701 = vmatprep.mubr.bf16.mxu0 %v17285_v4  ;;  %8711 = vmatpush1.bf16.msra.mxu1 %v11607_v46  ;;  %v8377_v51 = vpop.f32.mrf.mxu0  ;;  %v5240_v46 = vld [vmem:[%s19727_s12 + $0x438] sm:$0xff]  ;;  %v11424_v47 = vcombine.high %v5108_v31, %v5112_v58 }
 0xaa1   :  { %v8418_v35 = vpop.f32.mrf.mxu1  ;;  %8742 = vmatprep.mubr.bf16.mxu1 %v17287_v22  ;;  %8671 = vmatprep.subr.bf16.mxu0 %v11472_v8  ;;  %v5272_v22 = vld [vmem:[%s19727_s12 + $0x538] sm:$0xff]  ;;  %v11431_v8 = vcombine.low %v5116_v19, %v5120_v30  ;;  %v11552_v32 = vcombine.high %v5236_v29, %v5240_v46  ;;  %v11512_v19 = vcombine.high %v5196_v63, %v5200_v42 }
 0xaa2   :  { %v18315_v20 = vadd.f32 %v8418_v35, %v8377_v51  ;;  %v8379_v4 = vpop.f32.mrf.mxu0  ;;  %8712 = vmatprep.subr.bf16.mxu1 %v11600_v36  ;;  %v11584_v56 = vcombine.high %v5268_v2, %v5272_v22  ;;  %v11583_v16 = vcombine.low %v5268_v2, %v5272_v22  ;;  %v5228_v23 = vld [vmem:[%s19727_s12 + $0x3d8] sm:$0xff]  ;;  %v11551_v51 = vcombine.low %v5236_v29, %v5240_v46 }
 0xaa3   :  { %v8420_v59 = vpop.f32.mrf.mxu1  ;;  %8672 = vmatpush1.bf16.msra.mxu0 %v11471_v55  ;;  %v5232_v36 = vld [vmem:[%s19727_s12 + $0x3f8] sm:$0xff]  ;;  %v11423_v55 = vcombine.low %v5108_v31, %v5112_v58  ;;  %v11664_v22 = vcombine.high %v5348_v6, %v5352_v21 }
 0xaa4   :  { %8713 = vmatpush1.bf16.msra.mxu1 %v11599_v33  ;;  %v8380_v45 = vpop.f32.mrf.mxu0  ;;  %8673 = vmatprep.subr.bf16.mxu0 %v11464_v44  ;;  %v11544_v35 = vcombine.high %v5228_v23, %v5232_v36  ;;  %v11672_v33 = vcombine.high %v5356_v9, %v5360_v3  ;;  %v5220_v44 = vld [vmem:[%s19727_s12 + $0x398] sm:$0xff]  ;;  %v11543_v4 = vcombine.low %v5228_v23, %v5232_v36 }
 0xaa5   :  { %v8421_v50 = vpop.f32.mrf.mxu1  ;;  %8714 = vmatprep.subr.bf16.mxu1 %v11592_v62  ;;  %v5224_v62 = vld [vmem:[%s19727_s12 + $0x3b8] sm:$0xff]  ;;  %v11671_v59 = vcombine.low %v5356_v9, %v5360_v3 }
 0xaa6   :  { %v11536_v2 = vcombine.high %v5220_v44, %v5224_v62  ;;  %v5216_v45 = vld [vmem:[%s19727_s12 + $0x378] sm:$0xff] }
 0xaa7   :  { %8674 = vmatpush1.bf16.msra.mxu0 %v11463_v34  ;;  %v5212_v34 = vld [vmem:[%s19727_s12 + $0x358] sm:$0xff] }
 0xaa8   :  { %8715 = vmatpush1.bf16.msra.mxu1 %v11591_v37  ;;  %8675 = vmatprep.subr.bf16.mxu0 %v11456_v14  ;;  %v5340_v50 = vld [vmem:[%s19727_s12 + $0x758] sm:$0xff]  ;;  %v11535_v14 = vcombine.low %v5220_v44, %v5224_v62  ;;  %v11528_v52 = vcombine.high %v5212_v34, %v5216_v45 }
 0xaa9   :  { %8716 = vmatprep.subr.bf16.mxu1 %v11584_v56  ;;  %v5344_v37 = vld [vmem:[%s19727_s12 + $0x778] sm:$0xff]  ;;  %v11663_v56 = vcombine.low %v5348_v6, %v5352_v21 }
 0xaaa   :  { %v11656_v15 = vcombine.high %v5340_v50, %v5344_v37  ;;  %v5188_v38 = vld [vmem:[%s19727_s12 + $0x298] sm:$0xff] }
 0xaab   :  { %8676 = vmatpush1.bf16.msra.mxu0 %v11455_v61  ;;  %v5332_v61 = vld [vmem:[%s19727_s12 + $0x718] sm:$0xff] }
 0xaac   :  { %8717 = vmatpush1.bf16.msra.mxu1 %v11583_v16  ;;  %8677 = vmatprep.subr.bf16.mxu0 %v11448_v25  ;;  %v5336_v16 = vld [vmem:[%s19727_s12 + $0x738] sm:$0xff]  ;;  %v11527_v25 = vcombine.low %v5212_v34, %v5216_v45 }
 0xaad   :  { %8718 = vmatprep.subr.bf16.mxu1 %v11576_v41  ;;  %v11655_v41 = vcombine.low %v5340_v50, %v5344_v37  ;;  %v11648_v27 = vcombine.high %v5332_v61, %v5336_v16  ;;  %v5192_v17 = vld [vmem:[%s19727_s12 + $0x2b8] sm:$0xff] }
 0xaae   :  { %v11504_v31 = vcombine.high %v5188_v38, %v5192_v17  ;;  %v5180_v29 = vld [vmem:[%s19727_s12 + $0x258] sm:$0xff] }
 0xaaf   :  { %8678 = vmatpush1.bf16.msra.mxu0 %v11447_v43  ;;  %v5324_v43 = vld [vmem:[%s19727_s12 + $0x6d8] sm:$0xff] }
 0xab0   :  { %8719 = vmatpush1.bf16.msra.mxu1 %v11575_v0  ;;  %8679 = vmatprep.subr.bf16.mxu0 %v11440_v5  ;;  %v5328_v0 = vld [vmem:[%s19727_s12 + $0x6f8] sm:$0xff]  ;;  %v11519_v5 = vcombine.low %v5204_v24, %v5208_v54 }
 0xab1   :  { %8720 = vmatprep.subr.bf16.mxu1 %v11568_v10  ;;  %v11647_v10 = vcombine.low %v5332_v61, %v5336_v16  ;;  %v11640_v30 = vcombine.high %v5324_v43, %v5328_v0  ;;  %v5184_v46 = vld [vmem:[%s19727_s12 + $0x278] sm:$0xff] }
 0xab2   :  { %v11496_v23 = vcombine.high %v5180_v29, %v5184_v46  ;;  %v5172_v9 = vld [vmem:[%s19727_s12 + $0x218] sm:$0xff] }
 0xab3   :  { %8680 = vmatpush1.bf16.msra.mxu0 %v11439_v57  ;;  %v5316_v57 = vld [vmem:[%s19727_s12 + $0x698] sm:$0xff] }
 0xab4   :  { %8721 = vmatpush1.bf16.msra.mxu1 %v11567_v26  ;;  %8681 = vmatprep.subr.bf16.mxu0 %v11432_v53  ;;  %v5320_v26 = vld [vmem:[%s19727_s12 + $0x6b8] sm:$0xff]  ;;  %v11511_v53 = vcombine.low %v5196_v63, %v5200_v42 }
 0xab5   :  { %8722 = vmatprep.subr.bf16.mxu1 %v11560_v40  ;;  %v11639_v40 = vcombine.low %v5324_v43, %v5328_v0  ;;  %v11632_v58 = vcombine.high %v5316_v57, %v5320_v26  ;;  %v5176_v3 = vld [vmem:[%s19727_s12 + $0x238] sm:$0xff] }
 0xab6   :  { %v11488_v44 = vcombine.high %v5172_v9, %v5176_v3  ;;  %v5420_v6 = vld [vmem:[%s19727_s12 + $0x9d8] sm:$0xff] }
 0xab7   :  { %8682 = vmatpush1.bf16.msra.mxu0 %v11431_v8  ;;  %v5308_v8 = vld [vmem:[%s19727_s12 + $0x658] sm:$0xff] }
 0xab8   :  { %8723 = vmatpush1.bf16.msra.mxu1 %v11559_v7  ;;  %8683 = vmatprep.subr.bf16.mxu0 %v11424_v47  ;;  %v5312_v7 = vld [vmem:[%s19727_s12 + $0x678] sm:$0xff]  ;;  %v11503_v47 = vcombine.low %v5188_v38, %v5192_v17 }
 0xab9   :  { %8724 = vmatprep.subr.bf16.mxu1 %v11552_v32  ;;  %v11631_v32 = vcombine.low %v5316_v57, %v5320_v26  ;;  %v11624_v36 = vcombine.high %v5308_v8, %v5312_v7  ;;  %v5424_v21 = vld [vmem:[%s19727_s12 + $0x9f8] sm:$0xff] }
 0xaba   :  { %v11736_v34 = vcombine.high %v5420_v6, %v5424_v21  ;;  %v5412_v50 = vld [vmem:[%s19727_s12 + $0x998] sm:$0xff] }
 0xabb   :  { %8684 = vmatpush1.bf16.msra.mxu0 %v11423_v55  ;;  %v5300_v55 = vld [vmem:[%s19727_s12 + $0x618] sm:$0xff] }
 0xabc   :  { %8725 = vmatpush1.bf16.msra.mxu1 %v11551_v51  ;;  %8685 = vmatprep.subr.bf16.mxu0 %v11544_v35  ;;  %v5304_v51 = vld [vmem:[%s19727_s12 + $0x638] sm:$0xff]  ;;  %v11495_v35 = vcombine.low %v5180_v29, %v5184_v46 }
 0xabd   :  { %8726 = vmatprep.subr.bf16.mxu1 %v11672_v33  ;;  %v11623_v33 = vcombine.low %v5308_v8, %v5312_v7  ;;  %v11616_v62 = vcombine.high %v5300_v55, %v5304_v51  ;;  %v5416_v37 = vld [vmem:[%s19727_s12 + $0x9b8] sm:$0xff] }
 0xabe   :  { %v11728_v24 = vcombine.high %v5412_v50, %v5416_v37  ;;  %v5404_v54 = vld [vmem:[%s19727_s12 + $0x958] sm:$0xff]  ;;  %v11727_v42 = vcombine.low %v5412_v50, %v5416_v37 }
 0xabf   :  { %8686 = vmatpush2.bf16.msra.mxu0 %v11543_v4  ;;  %v5548_v4 = vld [vmem:[%s19727_s12 + $0xdd8] sm:$0xff] }
 0xac0   :  { %8727 = vmatpush2.bf16.msra.mxu1 %v11671_v59  ;;  %8687 = vmatprep.subr.bf16.mxu0 %v11536_v2  ;;  %v5552_v59 = vld [vmem:[%s19727_s12 + $0xdf8] sm:$0xff]  ;;  %v11487_v2 = vcombine.low %v5172_v9, %v5176_v3 }
 0xac1   :  { %8728 = vmatprep.subr.bf16.mxu1 %v11664_v22  ;;  %v11615_v22 = vcombine.low %v5300_v55, %v5304_v51  ;;  %v11864_v45 = vcombine.high %v5548_v4, %v5552_v59  ;;  %v5408_v61 = vld [vmem:[%s19727_s12 + $0x978] sm:$0xff] }
 0xac2   :  { %v11720_v0 = vcombine.high %v5404_v54, %v5408_v61  ;;  %v11719_v17 = vcombine.low %v5404_v54, %v5408_v61  ;;  %v5392_v29 = vld [vmem:[%s19727_s12 + $0x8f8] sm:$0xff] }
 0xac3   :  { %8688 = vmatpush2.bf16.msra.mxu0 %v11535_v14  ;;  %v11735_v14 = vcombine.low %v5420_v6, %v5424_v21  ;;  %v5516_v46 = vld [vmem:[%s19727_s12 + $0xcd8] sm:$0xff] }
 0xac4   :  { %8729 = vmatpush2.bf16.msra.mxu1 %v11663_v56  ;;  %8689 = vmatprep.subr.bf16.mxu0 %v11528_v52  ;;  %v5540_v56 = vld [vmem:[%s19727_s12 + $0xd98] sm:$0xff] }
 0xac5   :  { %8730 = vmatprep.subr.bf16.mxu1 %v11656_v15  ;;  %v5544_v52 = vld [vmem:[%s19727_s12 + $0xdb8] sm:$0xff]  ;;  %v11863_v15 = vcombine.low %v5548_v4, %v5552_v59 }
 0xac6   :  { %v11855_v43 = vcombine.low %v5540_v56, %v5544_v52  ;;  %v5520_v8 = vld [vmem:[%s19727_s12 + $0xcf8] sm:$0xff] }
 0xac7   :  { %8690 = vmatpush2.bf16.msra.mxu0 %v11527_v25  ;;  %v11856_v25 = vcombine.high %v5540_v56, %v5544_v52  ;;  %v5384_v9 = vld [vmem:[%s19727_s12 + $0x8b8] sm:$0xff] }
 0xac8   :  { %8731 = vmatpush2.bf16.msra.mxu1 %v11655_v41  ;;  %8691 = vmatprep.subr.bf16.mxu0 %v11520_v13  ;;  %v5532_v41 = vld [vmem:[%s19727_s12 + $0xd58] sm:$0xff] }
 0xac9   :  { %8732 = vmatprep.subr.bf16.mxu1 %v11648_v27  ;;  %v5536_v13 = vld [vmem:[%s19727_s12 + $0xd78] sm:$0xff] }
 0xaca   :  { %v11847_v26 = vcombine.low %v5532_v41, %v5536_v13  ;;  %v5508_v3 = vld [vmem:[%s19727_s12 + $0xc98] sm:$0xff] }
 0xacb   :  { %8692 = vmatpush2.bf16.msra.mxu0 %v11519_v5  ;;  %v5512_v55 = vld [vmem:[%s19727_s12 + $0xcb8] sm:$0xff] }
 0xacc   :  { %8733 = vmatpush2.bf16.msra.mxu1 %v11647_v10  ;;  %8693 = vmatprep.subr.bf16.mxu0 %v11512_v19  ;;  %v5376_v6 = vld [vmem:[%s19727_s12 + $0x878] sm:$0xff] }
 0xacd   :  { %8734 = vmatprep.subr.bf16.mxu1 %v11640_v30  ;;  %v5524_v30 = vld [vmem:[%s19727_s12 + $0xd18] sm:$0xff] }
 0xace   :  { %v5500_v21 = vld [vmem:[%s19727_s12 + $0xc58] sm:$0xff] }
 0xacf   :  { %8694 = vmatpush2.bf16.msra.mxu0 %v11511_v53  ;;  %v5504_v4 = vld [vmem:[%s19727_s12 + $0xc78] sm:$0xff] }
 0xad0   :  { %8735 = vmatpush2.bf16.msra.mxu1 %v11639_v40  ;;  %8695 = vmatprep.subr.bf16.mxu0 %v11504_v31  ;;  %v5368_v50 = vld [vmem:[%s19727_s12 + $0x838] sm:$0xff]  ;;  %v11815_v52 = vcombine.low %v5500_v21, %v5504_v4 }
 0xad1   :  { %8736 = vmatprep.subr.bf16.mxu1 %v11632_v58  ;;  %v5388_v58 = vld [vmem:[%s19727_s12 + $0x8d8] sm:$0xff] }
 0xad2   :  { %v11703_v51 = vcombine.low %v5388_v58, %v5392_v29  ;;  %v5492_v37 = vld [vmem:[%s19727_s12 + $0xc18] sm:$0xff] }
 0xad3   :  { %8696 = vmatpush2.bf16.msra.mxu0 %v11503_v47  ;;  %v5484_v54 = vld [vmem:[%s19727_s12 + $0xbd8] sm:$0xff] }
 0xad4   :  { %8737 = vmatpush2.bf16.msra.mxu1 %v11631_v32  ;;  %8697 = vmatprep.subr.bf16.mxu0 %v11496_v23  ;;  %v11704_v32 = vcombine.high %v5388_v58, %v5392_v29  ;;  %v11832_v23 = vcombine.high %v5516_v46, %v5520_v8  ;;  %v5488_v61 = vld [vmem:[%s19727_s12 + $0xbf8] sm:$0xff] }
 0xad5   :  { %8738 = vmatprep.subr.bf16.mxu1 %v11624_v36  ;;  %v5380_v36 = vld [vmem:[%s19727_s12 + $0x898] sm:$0xff] }
 0xad6   :  { %v11695_v59 = vcombine.low %v5380_v36, %v5384_v9  ;;  %v5460_v58 = vld [vmem:[%s19727_s12 + $0xb18] sm:$0xff] }
 0xad7   :  { %8698 = vmatpush2.bf16.msra.mxu0 %v11495_v35  ;;  %v11831_v35 = vcombine.low %v5516_v46, %v5520_v8  ;;  %v5464_v29 = vld [vmem:[%s19727_s12 + $0xb38] sm:$0xff] }
 0xad8   :  { %8739 = vmatpush2.bf16.msra.mxu1 %v11623_v33  ;;  %8699 = vmatprep.subr.bf16.mxu0 %v11488_v44  ;;  %v11696_v33 = vcombine.high %v5380_v36, %v5384_v9  ;;  %v11824_v44 = vcombine.high %v5508_v3, %v5512_v55  ;;  %v5588_v46 = vld [vmem:[%s19727_s12 + $0xf18] sm:$0xff] }
 0xad9   :  { %8740 = vmatprep.subr.bf16.mxu1 %v11616_v62  ;;  %v5372_v62 = vld [vmem:[%s19727_s12 + $0x858] sm:$0xff] }
 0xada   :  { %v11687_v56 = vcombine.low %v5372_v62, %v5376_v6  ;;  %v5592_v8 = vld [vmem:[%s19727_s12 + $0xf38] sm:$0xff] }
 0xadb   :  { %8700 = vmatpush2.bf16.msra.mxu0 %v11487_v2  ;;  %v11823_v2 = vcombine.low %v5508_v3, %v5512_v55  ;;  %v5452_v36 = vld [vmem:[%s19727_s12 + $0xad8] sm:$0xff] }
 0xadc   :  { %8741 = vmatpush2.bf16.msra.mxu1 %v11615_v22  ;;  %8751 = vmatprep.subr.bf16.mxu0 %v11736_v34  ;;  %v11688_v22 = vcombine.high %v5372_v62, %v5376_v6  ;;  %v11816_v34 = vcombine.high %v5500_v21, %v5504_v4  ;;  %v5456_v9 = vld [vmem:[%s19727_s12 + $0xaf8] sm:$0xff]  ;;  %v20142_v21 = vld [vmem:[#allocation8_spill] sm:$0xff] }
 0xadd   :  { %8792 = vmatprep.subr.bf16.mxu1 %v11864_v45  ;;  %v5364_v45 = vld [vmem:[%s19727_s12 + $0x818] sm:$0xff]  ;;  %v18647_v4 = vsub.s32 1, %v20142_v21 }
 0xade   :  { %v8457_v16 = vpop.f32.mrf.mxu0  ;;  %8702 = vmatmul.mubr.bf16.vlgmr.msra.gmra.mxu0 %v17289_v39  ;;  %v5580_v3 = vld [vmem:[%s19727_s12 + $0xed8] sm:$0xff] }
 0xadf   :  { %v8458_v27 = vadd.f32 %v8457_v16, %v18310_v28  ;;  %v8498_v63 = vpop.f32.mrf.mxu1  ;;  %8743 = vmatmul.mubr.bf16.vlgmr.msra.gmra.mxu1 %v17283_v49  ;;  %8752 = vmatpush1.bf16.msra.mxu0 %v11735_v14  ;;  %v11848_v28 = vcombine.high %v5532_v41, %v5536_v13  ;;  %v5396_v49 = vld [vmem:[%s19727_s12 + $0x918] sm:$0xff]  ;;  %v11679_v41 = vcombine.low %v5364_v45, %v5368_v50 }
 0xae0   :  { %8783 = vmatprep.mubr.bf16.mxu0 %v17495_v1  ;;  %8793 = vmatpush1.bf16.msra.mxu1 %v11863_v15  ;;  %v18513_v39 = vpop.f32.mrf.mxu0  ;;  %v5400_v1 = vld [vmem:[%s19727_s12 + $0x938] sm:$0xff]  ;;  %v11680_v15 = vcombine.high %v5364_v45, %v5368_v50  ;;  %v11767_v45 = vcombine.low %v5452_v36, %v5456_v9 }
 0xae1   :  { %v18515_v5 = vadd.f32 %v8498_v63, %v8458_v27  ;;  %8824 = vmatprep.mubr.bf16.mxu1 %v17497_v60  ;;  %v18518_v10 = vpop.f32.mrf.mxu1  ;;  %8753 = vmatprep.subr.bf16.mxu0 %v11728_v24  ;;  %v5528_v60 = vld [vmem:[%s19727_s12 + $0xd38] sm:$0xff]  ;;  %v11712_v53 = vcombine.high %v5396_v49, %v5400_v1  ;;  %v11711_v7 = vcombine.low %v5396_v49, %v5400_v1 }
 0xae2   :  { %v8461_v19 = vpop.f32.mrf.mxu0  ;;  %8794 = vmatprep.subr.bf16.mxu1 %v11856_v25  ;;  %v11840_v31 = vcombine.high %v5524_v30, %v5528_v60  ;;  %v11839_v47 = vcombine.low %v5524_v30, %v5528_v60  ;;  %v5496_v14 = vld [vmem:[%s19727_s12 + $0xc38] sm:$0xff]  ;;  %v11800_v27 = vcombine.high %v5484_v54, %v5488_v61  ;;  %v11799_v49 = vcombine.low %v5484_v54, %v5488_v61 }
 0xae3   :  { %v8502_v38 = vpop.f32.mrf.mxu1  ;;  %8754 = vmatpush1.bf16.msra.mxu0 %v11727_v42  ;;  %v11808_v24 = vcombine.high %v5492_v37, %v5496_v14  ;;  %v5612_v16 = vld [vmem:[%s19727_s12 + $0xfd8] sm:$0xff]  ;;  %v11807_v13 = vcombine.low %v5492_v37, %v5496_v14  ;;  %v18663_v14 = vld [vmem:[%s19728_s13] sm:$0xff] }
 0xae4   :  { %8795 = vmatpush1.bf16.msra.mxu1 %v11855_v43  ;;  %v8462_v57 = vpop.f32.mrf.mxu0  ;;  %8755 = vmatprep.subr.bf16.mxu0 %v11720_v0  ;;  %v5616_v25 = vld [vmem:[%s19727_s12 + $0xff8] sm:$0xff] }
 0xae5   :  { %v8503_v40 = vpop.f32.mrf.mxu1  ;;  %8796 = vmatprep.subr.bf16.mxu1 %v11848_v28  ;;  %v11928_v63 = vcombine.high %v5612_v16, %v5616_v25  ;;  %v5476_v42 = vld [vmem:[%s19727_s12 + $0xb98] sm:$0xff]  ;;  %v11927_v1 = vcombine.low %v5612_v16, %v5616_v25 }
 0xae6   :  { %v5480_v43 = vld [vmem:[%s19727_s12 + $0xbb8] sm:$0xff] }
 0xae7   :  { %8756 = vmatpush1.bf16.msra.mxu0 %v11719_v17  ;;  %v5604_v0 = vld [vmem:[%s19727_s12 + $0xf98] sm:$0xff]  ;;  %v11792_v19 = vcombine.high %v5476_v42, %v5480_v43 }
 0xae8   :  { %8797 = vmatpush1.bf16.msra.mxu1 %v11847_v26  ;;  %8757 = vmatprep.subr.bf16.mxu0 %v11712_v53  ;;  %v5608_v28 = vld [vmem:[%s19727_s12 + $0xfb8] sm:$0xff]  ;;  %v11791_v26 = vcombine.low %v5476_v42, %v5480_v43 }
 0xae9   :  { %8798 = vmatprep.subr.bf16.mxu1 %v11840_v31  ;;  %v11920_v30 = vcombine.high %v5604_v0, %v5608_v28  ;;  %v5468_v60 = vld [vmem:[%s19727_s12 + $0xb58] sm:$0xff]  ;;  %v11919_v53 = vcombine.low %v5604_v0, %v5608_v28 }
 0xaea   :  { %v5472_v38 = vld [vmem:[%s19727_s12 + $0xb78] sm:$0xff] }
 0xaeb   :  { %8758 = vmatpush1.bf16.msra.mxu0 %v11711_v7  ;;  %v5596_v17 = vld [vmem:[%s19727_s12 + $0xf58] sm:$0xff]  ;;  %v11784_v40 = vcombine.high %v5468_v60, %v5472_v38  ;;  %v11783_v7 = vcombine.low %v5468_v60, %v5472_v38 }
 0xaec   :  { %8799 = vmatpush1.bf16.msra.mxu1 %v11839_v47  ;;  %8759 = vmatprep.subr.bf16.mxu0 %v11704_v32  ;;  %v5600_v57 = vld [vmem:[%s19727_s12 + $0xf78] sm:$0xff]  ;;  %v11776_v32 = vcombine.high %v5460_v58, %v5464_v29 }
 0xaed   :  { %8800 = vmatprep.subr.bf16.mxu1 %v11832_v23  ;;  %v11912_v31 = vcombine.high %v5596_v17, %v5600_v57  ;;  %v11911_v47 = vcombine.low %v5596_v17, %v5600_v57  ;;  %v11904_v23 = vcombine.high %v5588_v46, %v5592_v8  ;;  %v5584_v55 = vld [vmem:[%s19727_s12 + $0xef8] sm:$0xff] }
 0xaee   :  { %v5444_v62 = vld [vmem:[%s19727_s12 + $0xa98] sm:$0xff]  ;;  %v11895_v50 = vcombine.low %v5580_v3, %v5584_v55 }
 0xaef   :  { %8760 = vmatpush1.bf16.msra.mxu0 %v11703_v51  ;;  %v11775_v51 = vcombine.low %v5460_v58, %v5464_v29  ;;  %v5448_v6 = vld [vmem:[%s19727_s12 + $0xab8] sm:$0xff]  ;;  %v12308_v58 = vld [vmem:[%s19730_s15 + $0xe0] ss:$16 sps:$4 sm:$0xff]  }
 0xaf0   :  { %8801 = vmatpush1.bf16.msra.mxu1 %v11831_v35  ;;  %8761 = vmatprep.subr.bf16.mxu0 %v11696_v33  ;;  %v11903_v35 = vcombine.low %v5588_v46, %v5592_v8  ;;  %v11768_v33 = vcombine.high %v5452_v36, %v5456_v9  ;;  %v11760_v37 = vcombine.high %v5444_v62, %v5448_v6  ;;  %v5556_v0 = vld [vmem:[%s19727_s12 + $0xe18] sm:$0xff]  ;;  %v12311_v46 = vld [vmem:[%s19730_s15 + $0x2e0] ss:$16 sps:$4 sm:$0xff]   ;;  %v12316_v8 = vld [vmem:[%s19730_s15 + $0xc4] ss:$16 sps:$4 sm:$0xff]  }
 0xaf1   :  { %8802 = vmatprep.subr.bf16.mxu1 %v11824_v44  ;;  %v11896_v44 = vcombine.high %v5580_v3, %v5584_v55  ;;  %v11759_v16 = vcombine.low %v5444_v62, %v5448_v6  ;;  %v5560_v28 = vld [vmem:[%s19727_s12 + $0xe38] sm:$0xff]  ;;  %v12314_v9 = vld [vmem:[%s19730_s15 + $0xc0] ss:$16 sps:$4 sm:$0xff]  }
 0xaf2   :  { %v11872_v60 = vcombine.high %v5556_v0, %v5560_v28  ;;  %v12317_v55 = vld [vmem:[%s19730_s15 + $0x2c0] ss:$16 sps:$4 sm:$0xff]  }
 0xaf3   :  { %8762 = vmatpush1.bf16.msra.mxu0 %v11695_v59  ;;  %v5572_v59 = vld [vmem:[%s19727_s12 + $0xe98] sm:$0xff]  ;;  %v12320_v62 = vld [vmem:[%s19730_s15 + $0xa0] ss:$16 sps:$4 sm:$0xff]  }
 0xaf4   :  { %8803 = vmatpush1.bf16.msra.mxu1 %v11823_v2  ;;  %8763 = vmatprep.subr.bf16.mxu0 %v11688_v22  ;;  %v5576_v2 = vld [vmem:[%s19727_s12 + $0xeb8] sm:$0xff]  ;;  %v8460_v22 = vadd.f32 %v18513_v39, %v18315_v20 }
 0xaf5   :  { %8804 = vmatprep.subr.bf16.mxu1 %v11816_v34  ;;  %v18658_v34 = vsub.s32 3, %v20142_v21  ;;  %v5436_v20 = vld [vmem:[%s19727_s12 + $0xa58] sm:$0xff]  ;;  %v11887_v25 = vcombine.low %v5572_v59, %v5576_v2 }
 0xaf6   :  { %v5440_v39 = vld [vmem:[%s19727_s12 + $0xa78] sm:$0xff]  ;;  %v8501_v54 = vadd.f32 %v18518_v10, %v8460_v22 }
 0xaf7   :  { %8764 = vmatpush1.bf16.msra.mxu0 %v11687_v56  ;;  %v11888_v56 = vcombine.high %v5572_v59, %v5576_v2  ;;  %v8850_v61 = vrot.slane %v18663_v14, %v18658_v34  ;;  %v5428_v10 = vld [vmem:[%s19727_s12 + $0xa18] sm:$0xff]  ;;  %v12323_v59 = vld [vmem:[%s19730_s15 + $0x2a0] ss:$16 sps:$4 sm:$0xff]   ;;  %v12328_v2 = vld [vmem:[%s19730_s15 + $0x84] ss:$16 sps:$4 sm:$0xff]  }
 0xaf8   :  { %8805 = vmatpush1.bf16.msra.mxu1 %v11815_v52  ;;  %8765 = vmatprep.subr.bf16.mxu0 %v11680_v15  ;;  %v8842_v52 = vrot.slane %v18663_v14, %v18647_v4  ;;  %v5564_v15 = vld [vmem:[%s19727_s12 + $0xe58] sm:$0xff] }
 0xaf9   :  { %8806 = vmatprep.subr.bf16.mxu1 %v11808_v24  ;;  %v5568_v24 = vld [vmem:[%s19727_s12 + $0xe78] sm:$0xff] }
 0xafa   :  { %v8876_v42 = vmul.f32 %v8842_v52, %v18127_v12  ;;  %v11879_v12 = vcombine.low %v5564_v15, %v5568_v24  ;;  %v12335_v52 = vld [vmem:[%s19730_s15 + $0x260] ss:$16 sps:$4 sm:$0xff]  }
 0xafb   :  { %8766 = vmatpush1.bf16.msra.mxu0 %v11679_v41  ;;  %v11752_v41 = vcombine.high %v5436_v20, %v5440_v39 }
 0xafc   :  { %8807 = vmatpush1.bf16.msra.mxu1 %v11807_v13  ;;  %8767 = vmatprep.subr.bf16.mxu0 %v11800_v27  ;;  %v18685_v13 = vld [vmem:[%s19729_s14] sm:$0xff]  ;;  %v11880_v27 = vcombine.high %v5564_v15, %v5568_v24 }
 0xafd   :  { %8808 = vmatprep.subr.bf16.mxu1 %v11928_v63  ;;  %v5432_v63 = vld [vmem:[%s19727_s12 + $0xa38] sm:$0xff]  ;;  %v8892_v43 = vrot.slane %v18685_v13, %v18647_v4  ;;  %v12340_v15 = vld [vmem:[%s19730_s15 + $0x44] ss:$16 sps:$4 sm:$0xff]  }
 0xafe   :  { %v11743_v57 = vcombine.low %v5428_v10, %v5432_v63  ;;  %v12343_v24 = vld [vmem:[%s19730_s15 + $0x244] ss:$16 sps:$4 sm:$0xff]  }
 0xaff   :  { %8768 = vmatpush2.bf16.msra.mxu0 %v11799_v49  ;;  %v8878_v49 = vmul.f32 %v8850_v61, %v8501_v54  ;;  %v8926_v38 = vadd.f32 %v8892_v43, %v8876_v42  ;;  %v12338_v54 = vld [vmem:[%s19730_s15 + $0x40] ss:$16 sps:$4 sm:$0xff]  }
 0xb00   :  { %8809 = vmatpush2.bf16.msra.mxu1 %v11927_v1  ;;  %8769 = vmatprep.subr.bf16.mxu0 %v11792_v19  ;;  %v8900_v1 = vrot.slane %v18685_v13, %v18658_v34  ;;  %v11751_v19 = vcombine.low %v5436_v20, %v5440_v39  ;;  %v12337_v20 = vld [vmem:[%s19730_s15 + $0x264] ss:$16 sps:$4 sm:$0xff]   ;;  %v12332_v39 = vld [vmem:[%s19730_s15 + $0x60] ss:$16 sps:$4 sm:$0xff]  }
 0xb01   :  { %8810 = vmatprep.subr.bf16.mxu1 %v11920_v30  ;;  %v11744_v30 = vcombine.high %v5428_v10, %v5432_v63  ;;  %v12341_v61 = vld [vmem:[%s19730_s15 + $0x240] ss:$16 sps:$4 sm:$0xff]   ;;  %v12352_v10 = vld [vmem:[%s19730_s15 + $0x4] ss:$16 sps:$4 sm:$0xff]  }
 0xb02   :  { %v8928_v17 = vadd.f32 %v8900_v1, %v8878_v49  ;;  %v12355_v63 = vld [vmem:[%s19730_s15 + $0x204] ss:$16 sps:$4 sm:$0xff]   ;;  %v12350_v42 = vld [vmem:[%s19730_s15] ss:$16 sps:$4 sm:$0xff]  }
 0xb03   :  { %8770 = vmatpush2.bf16.msra.mxu0 %v11791_v26  ;;  %v11871_v26 = vcombine.low %v5556_v0, %v5560_v28  ;;  %v12353_v43 = vld [vmem:[%s19730_s15 + $0x200] ss:$16 sps:$4 sm:$0xff]   ;;  %v12358_v0 = vld [vmem:[%s19730_s15 + $0x1e4] ss:$16 sps:$4 sm:$0xff]  }
 0xb04   :  { %8811 = vmatpush2.bf16.msra.mxu1 %v11919_v53  ;;  %8771 = vmatprep.subr.bf16.mxu0 %v11784_v40  ;;  %v12310_v53 = vld [vmem:[%s19730_s15 + $0xe4] ss:$16 sps:$4 sm:$0xff]   ;;  %v8936_v29 = vmax.f32 %v8928_v17, 0.0  ;;  %v12356_v49 = vld [vmem:[%s19730_s15 + $0x1e0] ss:$16 sps:$4 sm:$0xff]  }
 0xb05   :  { %8812 = vmatprep.subr.bf16.mxu1 %v11912_v31  ;;  %v12313_v40 = vld [vmem:[%s19730_s15 + $0x2e4] ss:$16 sps:$4 sm:$0xff]   ;;  %v8934_v31 = vmax.f32 %v8926_v38, 0.0  ;;  %v12359_v1 = vld [vmem:[%s19730_s15 + $0x3e0] ss:$16 sps:$4 sm:$0xff]  }
 0xb06   :  { %v18726_v36 = vpack.c.bf16 %v8936_v29, %v8936_v29  ;;  %v12361_v28 = vld [vmem:[%s19730_s15 + $0x3e4] ss:$16 sps:$4 sm:$0xff]   ;;  %v12377_v29 = vld [vmem:[%s19730_s15 + $0x380] ss:$16 sps:$4 sm:$0xff]  }
 0xb07   :  { %8772 = vmatpush2.bf16.msra.mxu0 %v11783_v7  ;;  %v12370_v38 = vld [vmem:[%s19730_s15 + $0x1a4] ss:$16 sps:$4 sm:$0xff]  }
 0xb08   :  { %8813 = vmatpush2.bf16.msra.mxu1 %v11911_v47  ;;  %8773 = vmatprep.subr.bf16.mxu0 %v11776_v32  ;;  %v18720_v47 = vpack.c.bf16 %v8934_v31, %v8934_v31  ;;  %v12319_v32 = vld [vmem:[%s19730_s15 + $0x2c4] ss:$16 sps:$4 sm:$0xff]   ;;  %v12374_v31 = vld [vmem:[%s19730_s15 + $0x180] ss:$16 sps:$4 sm:$0xff]  }
 0xb09   :  { %8814 = vmatprep.subr.bf16.mxu1 %v11904_v23  ;;  %v12373_v17 = vld [vmem:[%s19730_s15 + $0x3a4] ss:$16 sps:$4 sm:$0xff]  }
 0xb0b   :  { %8774 = vmatpush2.bf16.msra.mxu0 %v11775_v51 }
 0xb0c   :  { %8815 = vmatpush2.bf16.msra.mxu1 %v11903_v35  ;;  %8775 = vmatprep.subr.bf16.mxu0 %v11768_v33  ;;  %v12325_v35 = vld [vmem:[%s19730_s15 + $0x2a4] ss:$16 sps:$4 sm:$0xff]  }
 0xb0d   :  { %8816 = vmatprep.subr.bf16.mxu1 %v11896_v44 }
 0xb0f   :  { %8776 = vmatpush2.bf16.msra.mxu0 %v11767_v45  ;;  %v12331_v45 = vld [vmem:[%s19730_s15 + $0x284] ss:$16 sps:$4 sm:$0xff]  }
 0xb10   :  { %8817 = vmatpush2.bf16.msra.mxu1 %v11895_v50  ;;  %8777 = vmatprep.subr.bf16.mxu0 %v11760_v37  ;;  %v12326_v50 = vld [vmem:[%s19730_s15 + $0x80] ss:$16 sps:$4 sm:$0xff]  }
 0xb11   :  { %8818 = vmatprep.subr.bf16.mxu1 %v11888_v56  ;;  %v12329_v37 = vld [vmem:[%s19730_s15 + $0x280] ss:$16 sps:$4 sm:$0xff]   ;;  %v12334_v56 = vld [vmem:[%s19730_s15 + $0x64] ss:$16 sps:$4 sm:$0xff]  }
 0xb13   :  { %8778 = vmatpush2.bf16.msra.mxu0 %v11759_v16  ;;  %v12346_v16 = vld [vmem:[%s19730_s15 + $0x24] ss:$16 sps:$4 sm:$0xff]  }
 0xb14   :  { %8819 = vmatpush2.bf16.msra.mxu1 %v11887_v25  ;;  %8779 = vmatprep.subr.bf16.mxu0 %v11752_v41  ;;  %v12349_v25 = vld [vmem:[%s19730_s15 + $0x224] ss:$16 sps:$4 sm:$0xff]   ;;  %v12344_v41 = vld [vmem:[%s19730_s15 + $0x20] ss:$16 sps:$4 sm:$0xff]  }
 0xb15   :  { %8820 = vmatprep.subr.bf16.mxu1 %v11880_v27  ;;  %v12347_v27 = vld [vmem:[%s19730_s15 + $0x220] ss:$16 sps:$4 sm:$0xff]  }
 0xb17   :  { %8780 = vmatpush2.bf16.msra.mxu0 %v11751_v19  ;;  %v12364_v19 = vld [vmem:[%s19730_s15 + $0x1c4] ss:$16 sps:$4 sm:$0xff]  }
 0xb18   :  { %8821 = vmatpush2.bf16.msra.mxu1 %v11879_v12  ;;  %8781 = vmatprep.subr.bf16.mxu0 %v11744_v30  ;;  %v12367_v12 = vld [vmem:[%s19730_s15 + $0x3c4] ss:$16 sps:$4 sm:$0xff]   ;;  %v12362_v30 = vld [vmem:[%s19730_s15 + $0x1c0] ss:$16 sps:$4 sm:$0xff]  }
 0xb19   :  { %8822 = vmatprep.subr.bf16.mxu1 %v11872_v60  ;;  %v12365_v60 = vld [vmem:[%s19730_s15 + $0x3c0] ss:$16 sps:$4 sm:$0xff]  }
 0xb1b   :  { %8782 = vmatpush2.bf16.msra.mxu0 %v11743_v57  ;;  %v12368_v57 = vld [vmem:[%s19730_s15 + $0x1a0] ss:$16 sps:$4 sm:$0xff]  }
 0xb1c   :  { %8823 = vmatpush2.bf16.msra.mxu1 %v11871_v26  ;;  %10485 = vmatprep.subr.bf16.mxu0 %v12310_v53  ;;  %v12371_v26 = vld [vmem:[%s19730_s15 + $0x3a0] ss:$16 sps:$4 sm:$0xff]   ;;  %v12376_v53 = vld [vmem:[%s19730_s15 + $0x184] ss:$16 sps:$4 sm:$0xff]  }
 0xb1d   :  { %10526 = vmatprep.subr.bf16.mxu1 %v12313_v40  ;;  %v12379_v40 = vld [vmem:[%s19730_s15 + $0x384] ss:$16 sps:$4 sm:$0xff]  }
 0xb1e   :  { %v8539_v7 = vpop.f32.mrf.mxu0  ;;  %8784 = vmatmul.mubr.bf16.vlgmr.msra.gmra.mxu0 %v17499_v11 }
 0xb1f   :  { %v8580_v23 = vpop.f32.mrf.mxu1  ;;  %8825 = vmatmul.mubr.bf16.vlgmr.msra.gmra.mxu1 %v17484_v48  ;;  %10486 = vmatpush1.bf16.msra.mxu0 %v12308_v58  ;;  %v12322_v48 = vld [vmem:[%s19730_s15 + $0xa4] ss:$16 sps:$4 sm:$0xff]   ;;  %v18860_v58 = vsub.s32 0, %v20142_v21 }
 0xb20   :  { %v18731_v3 = vadd.f32 %v8580_v23, %v8539_v7  ;;  %10517 = vmatprep.mubr.bf16.mxu0 %v18720_v47  ;;  %10527 = vmatpush1.bf16.msra.mxu1 %v12311_v46  ;;  %v18734_v11 = vpop.f32.mrf.mxu0  ;;  %v12382_v46 = vld [vmem:[%s19730_s15 + $0x164] ss:$16 sps:$4 sm:$0xff]  }
 0xb21   :  { %10558 = vmatprep.mubr.bf16.mxu1 %v18726_v36  ;;  %v18743_v51 = vpop.f32.mrf.mxu1  ;;  %10487 = vmatprep.subr.bf16.mxu0 %v12316_v8  ;;  %v18869_v8 = vsub.s32 2, %v20142_v21  ;;  %v12385_v7 = vld [vmem:[%s19730_s15 + $0x364] ss:$16 sps:$4 sm:$0xff]   ;;  %v8838_v23 = vrot.slane %v18663_v14, %v18860_v58 }
 0xb22   :  { %v8543_v33 = vpop.f32.mrf.mxu0  ;;  %10528 = vmatprep.subr.bf16.mxu1 %v12319_v32  ;;  %v12380_v32 = vld [vmem:[%s19730_s15 + $0x160] ss:$16 sps:$4 sm:$0xff]  }
 0xb23   :  { %v8584_v44 = vpop.f32.mrf.mxu1  ;;  %10488 = vmatpush1.bf16.msra.mxu0 %v12314_v9  ;;  %v12383_v9 = vld [vmem:[%s19730_s15 + $0x360] ss:$16 sps:$4 sm:$0xff]  }
 0xb24   :  { %10529 = vmatpush1.bf16.msra.mxu1 %v12317_v55  ;;  %v8544_v6 = vpop.f32.mrf.mxu0  ;;  %10489 = vmatprep.subr.bf16.mxu0 %v12322_v48  ;;  %v12388_v55 = vld [vmem:[%s19730_s15 + $0x144] ss:$16 sps:$4 sm:$0xff]   ;;  %v8846_v48 = vrot.slane %v18663_v14, %v18869_v8  ;;  %v12386_v33 = vld [vmem:[%s19730_s15 + $0x140] ss:$16 sps:$4 sm:$0xff]   ;;  %v8875_v44 = vmul.f32 %v8838_v23, %v18113_v18 }
 0xb25   :  { %v8585_v22 = vpop.f32.mrf.mxu1  ;;  %10530 = vmatprep.subr.bf16.mxu1 %v12325_v35  ;;  %v12391_v35 = vld [vmem:[%s19730_s15 + $0x344] ss:$16 sps:$4 sm:$0xff]   ;;  %v12389_v6 = vld [vmem:[%s19730_s15 + $0x340] ss:$16 sps:$4 sm:$0xff]  }
 0xb26   :  { %v8896_v22 = vrot.slane %v18685_v13, %v18869_v8  ;;  %v12397_v18 = vld [vmem:[%s19730_s15 + $0x324] ss:$16 sps:$4 sm:$0xff]  }
 0xb27   :  { %10490 = vmatpush1.bf16.msra.mxu0 %v12320_v62  ;;  %v8888_v62 = vrot.slane %v18685_v13, %v18860_v58 }
 0xb28   :  { %10531 = vmatpush1.bf16.msra.mxu1 %v12323_v59  ;;  %10491 = vmatprep.subr.bf16.mxu0 %v12328_v2  ;;  %v12394_v59 = vld [vmem:[%s19730_s15 + $0x124] ss:$16 sps:$4 sm:$0xff]   ;;  %v8877_v2 = vmul.f32 %v8846_v48, %v18515_v5  ;;  %v12395_v5 = vld [vmem:[%s19730_s15 + $0x320] ss:$16 sps:$4 sm:$0xff]  }
 0xb29   :  { %10532 = vmatprep.subr.bf16.mxu1 %v12331_v45  ;;  %v12392_v45 = vld [vmem:[%s19730_s15 + $0x120] ss:$16 sps:$4 sm:$0xff]  }
 0xb2a   :  { %v12482_v48 = vld [vmem:[%s19730_s15 + $0x680] ss:$16 sps:$4 sm:$0xff]  }
 0xb2b   :  { %10492 = vmatpush1.bf16.msra.mxu0 %v12326_v50  ;;  %v8925_v50 = vadd.f32 %v8888_v62, %v8875_v44  ;;  %v12416_v62 = vld [vmem:[%s19730_s15 + $0x460] ss:$16 sps:$4 sm:$0xff]  }
 0xb2c   :  { %10533 = vmatpush1.bf16.msra.mxu1 %v12329_v37  ;;  %10493 = vmatprep.subr.bf16.mxu0 %v12334_v56  ;;  %v12400_v37 = vld [vmem:[%s19730_s15 + $0x104] ss:$16 sps:$4 sm:$0xff]   ;;  %v8927_v56 = vadd.f32 %v8896_v22, %v8877_v2  ;;  %v12419_v22 = vld [vmem:[%s19730_s15 + $0x440] ss:$16 sps:$4 sm:$0xff]  }
 0xb2d   :  { %10534 = vmatprep.subr.bf16.mxu1 %v12337_v20  ;;  %v12403_v20 = vld [vmem:[%s19730_s15 + $0x304] ss:$16 sps:$4 sm:$0xff]  }
 0xb2e   :  { %v12496_v2 = vld [vmem:[%s19730_s15 + $0x644] ss:$16 sps:$4 sm:$0xff]  }
 0xb2f   :  { %10494 = vmatpush1.bf16.msra.mxu0 %v12332_v39  ;;  %v12398_v39 = vld [vmem:[%s19730_s15 + $0x100] ss:$16 sps:$4 sm:$0xff]  }
 0xb30   :  { %10535 = vmatpush1.bf16.msra.mxu1 %v12335_v52  ;;  %10495 = vmatprep.subr.bf16.mxu0 %v12340_v15  ;;  %v8933_v52 = vmax.f32 %v8925_v50, 0.0  ;;  %v12401_v15 = vld [vmem:[%s19730_s15 + $0x300] ss:$16 sps:$4 sm:$0xff]   ;;  %v12502_v50 = vld [vmem:[%s19730_s15 + $0x624] ss:$16 sps:$4 sm:$0xff]  }
 0xb31   :  { %10536 = vmatprep.subr.bf16.mxu1 %v12343_v24  ;;  %v12406_v24 = vld [vmem:[%s19730_s15 + $0x4e4] ss:$16 sps:$4 sm:$0xff]  }
 0xb33   :  { %10496 = vmatpush1.bf16.msra.mxu0 %v12338_v54  ;;  %v8935_v54 = vmax.f32 %v8927_v56, 0.0  ;;  %v12500_v56 = vld [vmem:[%s19730_s15 + $0x620] ss:$16 sps:$4 sm:$0xff]  }
 0xb34   :  { %10537 = vmatpush1.bf16.msra.mxu1 %v12341_v61  ;;  %10497 = vmatprep.subr.bf16.mxu0 %v12346_v16  ;;  %v12466_v61 = vld [vmem:[%s19730_s15 + $0x6e4] ss:$16 sps:$4 sm:$0xff]   ;;  %v12404_v16 = vld [vmem:[%s19730_s15 + $0x4e0] ss:$16 sps:$4 sm:$0xff]  }
 0xb35   :  { %10538 = vmatprep.subr.bf16.mxu1 %v12349_v25  ;;  %v18935_v25 = vpack.c.bf16 %v8933_v52, %v8933_v52  ;;  %v12430_v52 = vld [vmem:[%s19730_s15 + $0x5e4] ss:$16 sps:$4 sm:$0xff]  }
 0xb37   :  { %10498 = vmatpush1.bf16.msra.mxu0 %v12344_v41  ;;  %v12409_v41 = vld [vmem:[%s19730_s15 + $0x4c4] ss:$16 sps:$4 sm:$0xff]  }
 0xb38   :  { %10539 = vmatpush1.bf16.msra.mxu1 %v12347_v27  ;;  %10499 = vmatprep.subr.bf16.mxu0 %v12352_v10  ;;  %v12464_v27 = vld [vmem:[%s19730_s15 + $0x6e0] ss:$16 sps:$4 sm:$0xff]   ;;  %v18943_v10 = vpack.c.bf16 %v8935_v54, %v8935_v54 }
 0xb39   :  { %10540 = vmatprep.subr.bf16.mxu1 %v12355_v63  ;;  %v8857_v63 = vsub.s32 5, %v20142_v21  ;;  %v12428_v54 = vld [vmem:[%s19730_s15 + $0x5e0] ss:$16 sps:$4 sm:$0xff]  }
 0xb3b   :  { %10500 = vmatpush1.bf16.msra.mxu0 %v12350_v42  ;;  %v12472_v42 = vld [vmem:[%s19730_s15 + $0x6c4] ss:$16 sps:$4 sm:$0xff]  }
 0xb3c   :  { %10541 = vmatpush1.bf16.msra.mxu1 %v12353_v43  ;;  %10501 = vmatprep.subr.bf16.mxu0 %v12358_v0  ;;  %v8583_v0 = vadd.f32 %v18743_v51, %v18734_v11  ;;  %v12470_v11 = vld [vmem:[%s19730_s15 + $0x6c0] ss:$16 sps:$4 sm:$0xff]  }
 0xb3d   :  { %10542 = vmatprep.subr.bf16.mxu1 %v12361_v28 }
 0xb3f   :  { %10502 = vmatpush2.bf16.msra.mxu0 %v12356_v49  ;;  %v12407_v49 = vld [vmem:[%s19730_s15 + $0x4c0] ss:$16 sps:$4 sm:$0xff]  }
 0xb40   :  { %10543 = vmatpush2.bf16.msra.mxu1 %v12359_v1  ;;  %10503 = vmatprep.subr.bf16.mxu0 %v12364_v19  ;;  %v12412_v19 = vld [vmem:[%s19730_s15 + $0x4a4] ss:$16 sps:$4 sm:$0xff]  }
 0xb41   :  { %10544 = vmatprep.subr.bf16.mxu1 %v12367_v12 }
 0xb43   :  { %10504 = vmatpush2.bf16.msra.mxu0 %v12362_v30  ;;  %v8858_v30 = vrot.slane %v18663_v14, %v8857_v63 }
 0xb44   :  { %10545 = vmatpush2.bf16.msra.mxu1 %v12365_v60  ;;  %10505 = vmatprep.subr.bf16.mxu0 %v12370_v38  ;;  %v12478_v60 = vld [vmem:[%s19730_s15 + $0x6a4] ss:$16 sps:$4 sm:$0xff]  }
 0xb45   :  { %10546 = vmatprep.subr.bf16.mxu1 %v12373_v17 }
 0xb47   :  { %10506 = vmatpush2.bf16.msra.mxu0 %v12368_v57  ;;  %v8908_v57 = vrot.slane %v18685_v13, %v8857_v63  ;;  %v12436_v63 = vld [vmem:[%s19730_s15 + $0x5a4] ss:$16 sps:$4 sm:$0xff]  }
 0xb48   :  { %10547 = vmatpush2.bf16.msra.mxu1 %v12371_v26  ;;  %10507 = vmatprep.subr.bf16.mxu0 %v12376_v53  ;;  %v12410_v53 = vld [vmem:[%s19730_s15 + $0x4a0] ss:$16 sps:$4 sm:$0xff]  }
 0xb49   :  { %10548 = vmatprep.subr.bf16.mxu1 %v12379_v40 }
 0xb4b   :  { %10508 = vmatpush2.bf16.msra.mxu0 %v12374_v31  ;;  %v12415_v31 = vld [vmem:[%s19730_s15 + $0x484] ss:$16 sps:$4 sm:$0xff]  }
 0xb4c   :  { %10549 = vmatpush2.bf16.msra.mxu1 %v12377_v29  ;;  %10509 = vmatprep.subr.bf16.mxu0 %v12382_v46  ;;  %v12476_v29 = vld [vmem:[%s19730_s15 + $0x6a0] ss:$16 sps:$4 sm:$0xff]  }
 0xb4d   :  { %10550 = vmatprep.subr.bf16.mxu1 %v12385_v7 }
 0xb4f   :  { %10510 = vmatpush2.bf16.msra.mxu0 %v12380_v32  ;;  %v12484_v32 = vld [vmem:[%s19730_s15 + $0x684] ss:$16 sps:$4 sm:$0xff]  }
 0xb50   :  { %10551 = vmatpush2.bf16.msra.mxu1 %v12383_v9  ;;  %10511 = vmatprep.subr.bf16.mxu0 %v12388_v55  ;;  %v12413_v9 = vld [vmem:[%s19730_s15 + $0x480] ss:$16 sps:$4 sm:$0xff]   ;;  %v12418_v55 = vld [vmem:[%s19730_s15 + $0x464] ss:$16 sps:$4 sm:$0xff]  }
 0xb51   :  { %10552 = vmatprep.subr.bf16.mxu1 %v12391_v35 }
 0xb53   :  { %10512 = vmatpush2.bf16.msra.mxu0 %v12386_v33  ;;  %v12490_v33 = vld [vmem:[%s19730_s15 + $0x664] ss:$16 sps:$4 sm:$0xff]  }
 0xb54   :  { %10553 = vmatpush2.bf16.msra.mxu1 %v12389_v6  ;;  %10513 = vmatprep.subr.bf16.mxu0 %v12394_v59  ;;  %v12421_v6 = vld [vmem:[%s19730_s15 + $0x444] ss:$16 sps:$4 sm:$0xff]   ;;  %v12488_v59 = vld [vmem:[%s19730_s15 + $0x660] ss:$16 sps:$4 sm:$0xff]  }
 0xb55   :  { %10554 = vmatprep.subr.bf16.mxu1 %v12397_v18  ;;  %v12424_v18 = vld [vmem:[%s19730_s15 + $0x424] ss:$16 sps:$4 sm:$0xff]  }
 0xb57   :  { %10514 = vmatpush2.bf16.msra.mxu0 %v12392_v45  ;;  %v12494_v45 = vld [vmem:[%s19730_s15 + $0x640] ss:$16 sps:$4 sm:$0xff]  }
 0xb58   :  { %10555 = vmatpush2.bf16.msra.mxu1 %v12395_v5  ;;  %10515 = vmatprep.subr.bf16.mxu0 %v12400_v37  ;;  %v12422_v5 = vld [vmem:[%s19730_s15 + $0x420] ss:$16 sps:$4 sm:$0xff]   ;;  %v12427_v37 = vld [vmem:[%s19730_s15 + $0x404] ss:$16 sps:$4 sm:$0xff]  }
 0xb59   :  { %10556 = vmatprep.subr.bf16.mxu1 %v12403_v20  ;;  %v12508_v20 = vld [vmem:[%s19730_s15 + $0x604] ss:$16 sps:$4 sm:$0xff]  }
 0xb5b   :  { %10516 = vmatpush2.bf16.msra.mxu0 %v12398_v39  ;;  %v12425_v39 = vld [vmem:[%s19730_s15 + $0x400] ss:$16 sps:$4 sm:$0xff]  }
 0xb5c   :  { %10557 = vmatpush2.bf16.msra.mxu1 %v12401_v15  ;;  %10567 = vmatprep.subr.bf16.mxu0 %v12406_v24  ;;  %v12506_v15 = vld [vmem:[%s19730_s15 + $0x600] ss:$16 sps:$4 sm:$0xff]   ;;  %v12514_v24 = vld [vmem:[%s19730_s15 + $0x7e4] ss:$16 sps:$4 sm:$0xff]  }
 0xb5d   :  { %10608 = vmatprep.subr.bf16.mxu1 %v12466_v61  ;;  %v12433_v61 = vld [vmem:[%s19730_s15 + $0x5c4] ss:$16 sps:$4 sm:$0xff]  }
 0xb5e   :  { %v18949_v43 = vpop.f32.mrf.mxu0  ;;  %10518 = vmatmul.mubr.bf16.vlgmr.msra.gmra.mxu0 %v18935_v25 }
 0xb5f   :  { %v18954_v28 = vpop.f32.mrf.mxu1  ;;  %10559 = vmatmul.mubr.bf16.vlgmr.msra.gmra.mxu1 %v18943_v10  ;;  %10568 = vmatpush1.bf16.msra.mxu0 %v12404_v16  ;;  %v12512_v16 = vld [vmem:[%s19730_s15 + $0x7e0] ss:$16 sps:$4 sm:$0xff]  }
 0xb60   :  { %v8623_v1 = vpop.f32.mrf.mxu0  ;;  %10569 = vmatprep.subr.bf16.mxu0 %v12409_v41  ;;  %10609 = vmatpush1.bf16.msra.mxu1 %v12464_v27  ;;  %v12520_v41 = vld [vmem:[%s19730_s15 + $0x7c4] ss:$16 sps:$4 sm:$0xff]   ;;  %v12431_v27 = vld [vmem:[%s19730_s15 + $0x5c0] ss:$16 sps:$4 sm:$0xff]  }
 0xb61   :  { %v8624_v51 = vadd.f32 %v8623_v1, %v8583_v0  ;;  %v8664_v12 = vpop.f32.mrf.mxu1  ;;  %10610 = vmatprep.subr.bf16.mxu1 %v12472_v42  ;;  %v12518_v42 = vld [vmem:[%s19730_s15 + $0x7c0] ss:$16 sps:$4 sm:$0xff]   ;;  %v12526_v0 = vld [vmem:[%s19730_s15 + $0x7a4] ss:$16 sps:$4 sm:$0xff]  }
 0xb62   :  { %v8625_v38 = vpop.f32.mrf.mxu0  ;;  %v12439_v1 = vld [vmem:[%s19730_s15 + $0x584] ss:$16 sps:$4 sm:$0xff]  }
 0xb63   :  { %v8665_v17 = vadd.f32 %v8664_v12, %v8624_v51  ;;  %v8666_v26 = vpop.f32.mrf.mxu1  ;;  %10570 = vmatpush1.bf16.msra.mxu0 %v12407_v49  ;;  %v12434_v49 = vld [vmem:[%s19730_s15 + $0x5a0] ss:$16 sps:$4 sm:$0xff]   ;;  %v8622_v12 = vadd.f32 %v18949_v43, %v18731_v3 }
 0xb64   :  { %v8626_v40 = vpop.f32.mrf.mxu0  ;;  %10571 = vmatprep.subr.bf16.mxu0 %v12412_v19  ;;  %10611 = vmatpush1.bf16.msra.mxu1 %v12470_v11  ;;  %v12524_v19 = vld [vmem:[%s19730_s15 + $0x7a0] ss:$16 sps:$4 sm:$0xff]   ;;  %v12532_v11 = vld [vmem:[%s19730_s15 + $0x784] ss:$16 sps:$4 sm:$0xff]  }
 0xb65   :  { %v8880_v46 = vmul.f32 %v8858_v30, %v8665_v17  ;;  %v8667_v7 = vpop.f32.mrf.mxu1  ;;  %10612 = vmatprep.subr.bf16.mxu1 %v12478_v60  ;;  %v12437_v51 = vld [vmem:[%s19730_s15 + $0x580] ss:$16 sps:$4 sm:$0xff]   ;;  %v8853_v30 = vsub.s32 4, %v20142_v21  ;;  %v12442_v60 = vld [vmem:[%s19730_s15 + $0x564] ss:$16 sps:$4 sm:$0xff]   ;;  %v8663_v43 = vadd.f32 %v18954_v28, %v8622_v12 }
 0xb66   :  { %v12530_v38 = vld [vmem:[%s19730_s15 + $0x780] ss:$16 sps:$4 sm:$0xff]   ;;  %v12538_v17 = vld [vmem:[%s19730_s15 + $0x764] ss:$16 sps:$4 sm:$0xff]   ;;  %v12491_v12 = vld [vmem:[%s19730_s15 + $0x1e8] ss:$16 sps:$4 sm:$0xff]  }
 0xb67   :  { %v8930_v23 = vadd.f32 %v8908_v57, %v8880_v46  ;;  %10572 = vmatpush1.bf16.msra.mxu0 %v12410_v53  ;;  %v12440_v3 = vld [vmem:[%s19730_s15 + $0x560] ss:$16 sps:$4 sm:$0xff]   ;;  %v8854_v57 = vrot.slane %v18663_v14, %v8853_v30  ;;  %v12445_v26 = vld [vmem:[%s19730_s15 + $0x544] ss:$16 sps:$4 sm:$0xff]  }
 0xb68   :  { %10573 = vmatprep.subr.bf16.mxu0 %v12415_v31  ;;  %10613 = vmatpush1.bf16.msra.mxu1 %v12476_v29  ;;  %v12536_v53 = vld [vmem:[%s19730_s15 + $0x760] ss:$16 sps:$4 sm:$0xff]   ;;  %v12544_v40 = vld [vmem:[%s19730_s15 + $0x744] ss:$16 sps:$4 sm:$0xff]   ;;  %v8904_v29 = vrot.slane %v18685_v13, %v8853_v30  ;;  %v12499_v30 = vld [vmem:[%s19730_s15 + $0x1cc] ss:$16 sps:$4 sm:$0xff]  }
 0xb69   :  { %v8938_v35 = vmax.f32 %v8930_v23, 0.0  ;;  %10614 = vmatprep.subr.bf16.mxu1 %v12484_v32  ;;  %v12443_v28 = vld [vmem:[%s19730_s15 + $0x540] ss:$16 sps:$4 sm:$0xff]   ;;  %v8879_v31 = vmul.f32 %v8854_v57, %v8663_v43  ;;  %v12448_v46 = vld [vmem:[%s19730_s15 + $0x524] ss:$16 sps:$4 sm:$0xff]  }
 0xb6a   :  { %v12542_v7 = vld [vmem:[%s19730_s15 + $0x740] ss:$16 sps:$4 sm:$0xff]   ;;  %v12550_v32 = vld [vmem:[%s19730_s15 + $0x724] ss:$16 sps:$4 sm:$0xff]   ;;  %v12509_v43 = vld [vmem:[%s19730_s15 + $0x188] ss:$16 sps:$4 sm:$0xff]  }
 0xb6b   :  { %10574 = vmatpush1.bf16.msra.mxu0 %v12413_v9  ;;  %v18995_v44 = vpack.c.bf16 %v8938_v35, %v8938_v35  ;;  %v12446_v23 = vld [vmem:[%s19730_s15 + $0x520] ss:$16 sps:$4 sm:$0xff]   ;;  %v8929_v9 = vadd.f32 %v8904_v29, %v8879_v31  ;;  %v12556_v35 = vld [vmem:[%s19730_s15 + $0x704] ss:$16 sps:$4 sm:$0xff]   ;;  %v12517_v57 = vld [vmem:[%s19730_s15 + $0x16c] ss:$16 sps:$4 sm:$0xff]  }
 0xb6c   :  { %10575 = vmatprep.subr.bf16.mxu0 %v12418_v55  ;;  %10615 = vmatpush1.bf16.msra.mxu1 %v12482_v48  ;;  %v12451_v55 = vld [vmem:[%s19730_s15 + $0x504] ss:$16 sps:$4 sm:$0xff]   ;;  %v12548_v48 = vld [vmem:[%s19730_s15 + $0x720] ss:$16 sps:$4 sm:$0xff]   ;;  %v12527_v31 = vld [vmem:[%s19730_s15 + $0x128] ss:$16 sps:$4 sm:$0xff]  }
 0xb6d   :  { %10599 = vmatprep.mubr.bf16.mxu0 %v18995_v44  ;;  %10616 = vmatprep.subr.bf16.mxu1 %v12490_v33  ;;  %v12449_v33 = vld [vmem:[%s19730_s15 + $0x500] ss:$16 sps:$4 sm:$0xff]   ;;  %v12535_v29 = vld [vmem:[%s19730_s15 + $0x10c] ss:$16 sps:$4 sm:$0xff]  }
 0xb6f   :  { %10576 = vmatpush1.bf16.msra.mxu0 %v12416_v62  ;;  %v8937_v62 = vmax.f32 %v8929_v9, 0.0  ;;  %v12547_v9 = vld [vmem:[%s19730_s15 + $0x4cc] ss:$16 sps:$4 sm:$0xff]  }
 0xb70   :  { %10577 = vmatprep.subr.bf16.mxu0 %v12421_v6  ;;  %10617 = vmatpush1.bf16.msra.mxu1 %v12488_v59  ;;  %v12454_v6 = vld [vmem:[%s19730_s15 + $0xec] ss:$16 sps:$4 sm:$0xff]   ;;  %v12554_v59 = vld [vmem:[%s19730_s15 + $0x700] ss:$16 sps:$4 sm:$0xff]  }
 0xb71   :  { %10618 = vmatprep.subr.bf16.mxu1 %v12496_v2  ;;  %v12562_v2 = vld [vmem:[%s19730_s15 + $0x2ec] ss:$16 sps:$4 sm:$0xff]  }
 0xb73   :  { %10578 = vmatpush1.bf16.msra.mxu0 %v12419_v22  ;;  %v12452_v22 = vld [vmem:[%s19730_s15 + $0xe8] ss:$16 sps:$4 sm:$0xff]  }
 0xb74   :  { %10579 = vmatprep.subr.bf16.mxu0 %v12424_v18  ;;  %10619 = vmatpush1.bf16.msra.mxu1 %v12494_v45  ;;  %v19151_v18 = vpack.c.bf16 %v8937_v62, %v8937_v62  ;;  %v12457_v45 = vld [vmem:[%s19730_s15 + $0xcc] ss:$16 sps:$4 sm:$0xff]  }
 0xb75   :  { %10620 = vmatprep.subr.bf16.mxu1 %v12502_v50 }
 0xb77   :  { %10580 = vmatpush1.bf16.msra.mxu0 %v12422_v5 }
 0xb78   :  { %10581 = vmatprep.subr.bf16.mxu0 %v12427_v37  ;;  %10621 = vmatpush1.bf16.msra.mxu1 %v12500_v56  ;;  %v12455_v37 = vld [vmem:[%s19730_s15 + $0xc8] ss:$16 sps:$4 sm:$0xff]  }
 0xb79   :  { %10622 = vmatprep.subr.bf16.mxu1 %v12508_v20 }
 0xb7b   :  { %10582 = vmatpush1.bf16.msra.mxu0 %v12425_v39  ;;  %v12460_v39 = vld [vmem:[%s19730_s15 + $0xac] ss:$16 sps:$4 sm:$0xff]  }
 0xb7c   :  { %10583 = vmatprep.subr.bf16.mxu0 %v12430_v52  ;;  %10623 = vmatpush1.bf16.msra.mxu1 %v12506_v15 }
 0xb7d   :  { %10624 = vmatprep.subr.bf16.mxu1 %v12514_v24 }
 0xb7f   :  { %10584 = vmatpush2.bf16.msra.mxu0 %v12428_v54 }
 0xb80   :  { %10585 = vmatprep.subr.bf16.mxu0 %v12433_v61  ;;  %10625 = vmatpush2.bf16.msra.mxu1 %v12512_v16  ;;  %v12463_v61 = vld [vmem:[%s19730_s15 + $0x8c] ss:$16 sps:$4 sm:$0xff]  }
 0xb81   :  { %10626 = vmatprep.subr.bf16.mxu1 %v12520_v41  ;;  %v12461_v41 = vld [vmem:[%s19730_s15 + $0x88] ss:$16 sps:$4 sm:$0xff]  }
 0xb83   :  { %10586 = vmatpush2.bf16.msra.mxu0 %v12431_v27  ;;  %v12469_v27 = vld [vmem:[%s19730_s15 + $0x6c] ss:$16 sps:$4 sm:$0xff]  }
 0xb84   :  { %10587 = vmatprep.subr.bf16.mxu0 %v12436_v63  ;;  %10627 = vmatpush2.bf16.msra.mxu1 %v12518_v42  ;;  %v12467_v63 = vld [vmem:[%s19730_s15 + $0x68] ss:$16 sps:$4 sm:$0xff]   ;;  %v12475_v42 = vld [vmem:[%s19730_s15 + $0x4c] ss:$16 sps:$4 sm:$0xff]  }
 0xb85   :  { %10628 = vmatprep.subr.bf16.mxu1 %v12526_v0  ;;  %v12473_v0 = vld [vmem:[%s19730_s15 + $0x48] ss:$16 sps:$4 sm:$0xff]  }
 0xb87   :  { %10588 = vmatpush2.bf16.msra.mxu0 %v12434_v49  ;;  %v12481_v49 = vld [vmem:[%s19730_s15 + $0x2c] ss:$16 sps:$4 sm:$0xff]  }
 0xb88   :  { %10589 = vmatprep.subr.bf16.mxu0 %v12439_v1  ;;  %10629 = vmatpush2.bf16.msra.mxu1 %v12524_v19  ;;  %v12479_v1 = vld [vmem:[%s19730_s15 + $0x28] ss:$16 sps:$4 sm:$0xff]   ;;  %v12487_v19 = vld [vmem:[%s19730_s15 + $0xc] ss:$16 sps:$4 sm:$0xff]  }
 0xb89   :  { %10630 = vmatprep.subr.bf16.mxu1 %v12532_v11  ;;  %v12485_v11 = vld [vmem:[%s19730_s15 + $0x8] ss:$16 sps:$4 sm:$0xff]  }
 0xb8b   :  { %10590 = vmatpush2.bf16.msra.mxu0 %v12437_v51  ;;  %v12493_v51 = vld [vmem:[%s19730_s15 + $0x1ec] ss:$16 sps:$4 sm:$0xff]  }
 0xb8c   :  { %10591 = vmatprep.subr.bf16.mxu0 %v12442_v60  ;;  %10631 = vmatpush2.bf16.msra.mxu1 %v12530_v38  ;;  %v12497_v60 = vld [vmem:[%s19730_s15 + $0x1c8] ss:$16 sps:$4 sm:$0xff]   ;;  %v12505_v38 = vld [vmem:[%s19730_s15 + $0x1ac] ss:$16 sps:$4 sm:$0xff]  }
 0xb8d   :  { %10632 = vmatprep.subr.bf16.mxu1 %v12538_v17  ;;  %v12503_v17 = vld [vmem:[%s19730_s15 + $0x1a8] ss:$16 sps:$4 sm:$0xff]  }
 0xb8f   :  { %10592 = vmatpush2.bf16.msra.mxu0 %v12440_v3  ;;  %v12511_v3 = vld [vmem:[%s19730_s15 + $0x18c] ss:$16 sps:$4 sm:$0xff]  }
 0xb90   :  { %10593 = vmatprep.subr.bf16.mxu0 %v12445_v26  ;;  %10633 = vmatpush2.bf16.msra.mxu1 %v12536_v53  ;;  %v12515_v26 = vld [vmem:[%s19730_s15 + $0x168] ss:$16 sps:$4 sm:$0xff]   ;;  %v12523_v53 = vld [vmem:[%s19730_s15 + $0x14c] ss:$16 sps:$4 sm:$0xff]  }
 0xb91   :  { %10634 = vmatprep.subr.bf16.mxu1 %v12544_v40  ;;  %v12521_v40 = vld [vmem:[%s19730_s15 + $0x148] ss:$16 sps:$4 sm:$0xff]  }
 0xb93   :  { %10594 = vmatpush2.bf16.msra.mxu0 %v12443_v28  ;;  %v12529_v28 = vld [vmem:[%s19730_s15 + $0x12c] ss:$16 sps:$4 sm:$0xff]  }
 0xb94   :  { %10595 = vmatprep.subr.bf16.mxu0 %v12448_v46  ;;  %10635 = vmatpush2.bf16.msra.mxu1 %v12542_v7  ;;  %v12533_v46 = vld [vmem:[%s19730_s15 + $0x108] ss:$16 sps:$4 sm:$0xff]   ;;  %v12541_v7 = vld [vmem:[%s19730_s15 + $0x4ec] ss:$16 sps:$4 sm:$0xff]  }
 0xb95   :  { %10636 = vmatprep.subr.bf16.mxu1 %v12550_v32  ;;  %v8861_v32 = vsub.s32 6, %v20142_v21 }
 0xb97   :  { %10596 = vmatpush2.bf16.msra.mxu0 %v12446_v23  ;;  %v12539_v23 = vld [vmem:[%s19730_s15 + $0x4e8] ss:$16 sps:$4 sm:$0xff]  }
 0xb98   :  { %10597 = vmatprep.subr.bf16.mxu0 %v12451_v55  ;;  %10637 = vmatpush2.bf16.msra.mxu1 %v12548_v48  ;;  %v8865_v55 = vsub.s32 7, %v20142_v21  ;;  %v12553_v21 = vld [vmem:[%s19730_s15 + $0x4ac] ss:$16 sps:$4 sm:$0xff]  }
 0xb99   :  { %10638 = vmatprep.subr.bf16.mxu1 %v12556_v35 }
 0xb9b   :  { %10598 = vmatpush2.bf16.msra.mxu0 %v12449_v33 }
 0xb9c   :  { %10649 = vmatprep.subr.bf16.mxu0 %v12454_v6  ;;  %10639 = vmatpush2.bf16.msra.mxu1 %v12554_v59  ;;  %v8862_v6 = vrot.slane %v18663_v14, %v8861_v32  ;;  %v12545_v59 = vld [vmem:[%s19730_s15 + $0x4c8] ss:$16 sps:$4 sm:$0xff]  }
 0xb9d   :  { %10690 = vmatprep.subr.bf16.mxu1 %v12562_v2 }
 0xb9e   :  { %v8703_v50 = vpop.f32.mrf.mxu0  ;;  %10600 = vmatmul.mubr.bf16.vlgmr.msra.gmra.mxu0 %v19151_v18 }
 0xb9f   :  { %v8744_v5 = vpop.f32.mrf.mxu1  ;;  %10650 = vmatpush1.bf16.msra.mxu0 %v12452_v22  ;;  %10681 = vmatprep.mubr.bf16.mxu0 %v18720_v47  ;;  %v12458_v47 = vld [vmem:[%s19730_s15 + $0xa8] ss:$16 sps:$4 sm:$0xff]   ;;  %v8912_v22 = vrot.slane %v18685_v13, %v8861_v32  ;;  %v12601_v32 = vld [vmem:[%s19730_s15 + $0x5ac] ss:$16 sps:$4 sm:$0xff]  }
 0xba0   :  { %v19161_v56 = vadd.f32 %v8744_v5, %v8703_v50  ;;  %v19163_v20 = vpop.f32.mrf.mxu0  ;;  %10651 = vmatprep.subr.bf16.mxu0 %v12457_v45  ;;  %v8866_v5 = vrot.slane %v18663_v14, %v8865_v55 }
 0xba1   :  { %v19168_v52 = vpop.f32.mrf.mxu1 }
 0xba2   :  { %v8707_v15 = vpop.f32.mrf.mxu0  ;;  %v8747_v35 = vadd.f32 %v19168_v52, %v19163_v20  ;;  %v8916_v20 = vrot.slane %v18685_v13, %v8865_v55  ;;  %v12551_v52 = vld [vmem:[%s19730_s15 + $0x4a8] ss:$16 sps:$4 sm:$0xff]   ;;  %v12604_v55 = vld [vmem:[%s19730_s15 + $0x20c] ss:$16 sps:$4 sm:$0xff]  }
 0xba3   :  { %v8748_v24 = vpop.f32.mrf.mxu1  ;;  %10652 = vmatpush1.bf16.msra.mxu0 %v12455_v37  ;;  %v12557_v13 = vld [vmem:[%s19730_s15 + $0x488] ss:$16 sps:$4 sm:$0xff]  }
 0xba4   :  { %v8708_v54 = vpop.f32.mrf.mxu0  ;;  %10653 = vmatprep.subr.bf16.mxu0 %v12460_v39  ;;  %v12559_v24 = vld [vmem:[%s19730_s15 + $0x48c] ss:$16 sps:$4 sm:$0xff]  }
 0xba5   :  { %v8749_v16 = vpop.f32.mrf.mxu1 }
 0xba7   :  { %10654 = vmatpush1.bf16.msra.mxu0 %v12458_v47 }
 0xba8   :  { %10655 = vmatprep.subr.bf16.mxu0 %v12463_v61 }
 0xbab   :  { %10656 = vmatpush1.bf16.msra.mxu0 %v12461_v41  ;;  %v12565_v41 = vld [vmem:[%s19730_s15 + $0x46c] ss:$16 sps:$4 sm:$0xff]  }
 0xbac   :  { %10657 = vmatprep.subr.bf16.mxu0 %v12469_v27 }
 0xbaf   :  { %10658 = vmatpush1.bf16.msra.mxu0 %v12467_v63 }
 0xbb0   :  { %10659 = vmatprep.subr.bf16.mxu0 %v12475_v42  ;;  %v12560_v42 = vld [vmem:[%s19730_s15 + $0x2e8] ss:$16 sps:$4 sm:$0xff]  }
 0xbb3   :  { %10660 = vmatpush1.bf16.msra.mxu0 %v12473_v0 }
 0xbb4   :  { %10661 = vmatprep.subr.bf16.mxu0 %v12481_v49  ;;  %v12563_v49 = vld [vmem:[%s19730_s15 + $0x468] ss:$16 sps:$4 sm:$0xff]  }
 0xbb7   :  { %10662 = vmatpush1.bf16.msra.mxu0 %v12479_v1  ;;  %v12568_v1 = vld [vmem:[%s19730_s15 + $0x2cc] ss:$16 sps:$4 sm:$0xff]  }
 0xbb8   :  { %10663 = vmatprep.subr.bf16.mxu0 %v12487_v19  ;;  %v12571_v19 = vld [vmem:[%s19730_s15 + $0x44c] ss:$16 sps:$4 sm:$0xff]  }
 0xbbb   :  { %10664 = vmatpush1.bf16.msra.mxu0 %v12485_v11  ;;  %v12566_v11 = vld [vmem:[%s19730_s15 + $0x2c8] ss:$16 sps:$4 sm:$0xff]  }
 0xbbc   :  { %10665 = vmatprep.subr.bf16.mxu0 %v12493_v51  ;;  %v12569_v51 = vld [vmem:[%s19730_s15 + $0x448] ss:$16 sps:$4 sm:$0xff]  }
 0xbbf   :  { %10666 = vmatpush2.bf16.msra.mxu0 %v12491_v12  ;;  %v12574_v12 = vld [vmem:[%s19730_s15 + $0x2ac] ss:$16 sps:$4 sm:$0xff]  }
 0xbc0   :  { %10667 = vmatprep.subr.bf16.mxu0 %v12499_v30  ;;  %v12577_v30 = vld [vmem:[%s19730_s15 + $0x42c] ss:$16 sps:$4 sm:$0xff]  }
 0xbc3   :  { %10668 = vmatpush2.bf16.msra.mxu0 %v12497_v60  ;;  %v12575_v60 = vld [vmem:[%s19730_s15 + $0x428] ss:$16 sps:$4 sm:$0xff]  }
 0xbc4   :  { %10669 = vmatprep.subr.bf16.mxu0 %v12505_v38  ;;  %v12580_v38 = vld [vmem:[%s19730_s15 + $0x28c] ss:$16 sps:$4 sm:$0xff]  }
 0xbc7   :  { %10670 = vmatpush2.bf16.msra.mxu0 %v12503_v17  ;;  %v12583_v17 = vld [vmem:[%s19730_s15 + $0x40c] ss:$16 sps:$4 sm:$0xff]  }
 0xbc8   :  { %10671 = vmatprep.subr.bf16.mxu0 %v12511_v3  ;;  %v12578_v3 = vld [vmem:[%s19730_s15 + $0x288] ss:$16 sps:$4 sm:$0xff]  }
 0xbcb   :  { %10672 = vmatpush2.bf16.msra.mxu0 %v12509_v43  ;;  %v12581_v43 = vld [vmem:[%s19730_s15 + $0x408] ss:$16 sps:$4 sm:$0xff]  }
 0xbcc   :  { %10673 = vmatprep.subr.bf16.mxu0 %v12517_v57  ;;  %v12586_v57 = vld [vmem:[%s19730_s15 + $0x26c] ss:$16 sps:$4 sm:$0xff]  }
 0xbcf   :  { %10674 = vmatpush2.bf16.msra.mxu0 %v12515_v26  ;;  %v12589_v26 = vld [vmem:[%s19730_s15 + $0x5ec] ss:$16 sps:$4 sm:$0xff]  }
 0xbd0   :  { %10675 = vmatprep.subr.bf16.mxu0 %v12523_v53  ;;  %v12584_v53 = vld [vmem:[%s19730_s15 + $0x268] ss:$16 sps:$4 sm:$0xff]  }
 0xbd3   :  { %10676 = vmatpush2.bf16.msra.mxu0 %v12521_v40  ;;  %v12587_v40 = vld [vmem:[%s19730_s15 + $0x5e8] ss:$16 sps:$4 sm:$0xff]  }
 0xbd4   :  { %10677 = vmatprep.subr.bf16.mxu0 %v12529_v28  ;;  %v12592_v28 = vld [vmem:[%s19730_s15 + $0x24c] ss:$16 sps:$4 sm:$0xff]  }
 0xbd7   :  { %10678 = vmatpush2.bf16.msra.mxu0 %v12527_v31  ;;  %v12595_v31 = vld [vmem:[%s19730_s15 + $0x5cc] ss:$16 sps:$4 sm:$0xff]  }
 0xbd8   :  { %10679 = vmatprep.subr.bf16.mxu0 %v12535_v29  ;;  %v12590_v29 = vld [vmem:[%s19730_s15 + $0x248] ss:$16 sps:$4 sm:$0xff]  }
 0xbdb   :  { %10680 = vmatpush2.bf16.msra.mxu0 %v12533_v46  ;;  %v12593_v46 = vld [vmem:[%s19730_s15 + $0x5c8] ss:$16 sps:$4 sm:$0xff]  }
 0xbdc   :  { %10731 = vmatprep.subr.bf16.mxu0 %v12541_v7  ;;  %v12598_v7 = vld [vmem:[%s19730_s15 + $0x22c] ss:$16 sps:$4 sm:$0xff]  }
 0xbde   :  { %v8785_v48 = vpop.f32.mrf.mxu0  ;;  %10682 = vmatmul.mubr.bf16.vlgmr.msra.gmra.mxu0 %v18935_v25 }
 0xbdf   :  { %v8786_v33 = vadd.f32 %v8785_v48, %v19161_v56  ;;  %v8826_v62 = vpop.f32.mrf.mxu1  ;;  %10732 = vmatpush1.bf16.msra.mxu0 %v12539_v23  ;;  %10763 = vmatprep.mubr.bf16.mxu0 %v18995_v44  ;;  %v12596_v23 = vld [vmem:[%s19730_s15 + $0x228] ss:$16 sps:$4 sm:$0xff]   ;;  %v12607_v48 = vld [vmem:[%s19730_s15 + $0x58c] ss:$16 sps:$4 sm:$0xff]  }
 0xbe0   :  { %v8787_v2 = vpop.f32.mrf.mxu0  ;;  %10733 = vmatprep.subr.bf16.mxu0 %v12547_v9  ;;  %v12599_v9 = vld [vmem:[%s19730_s15 + $0x5a8] ss:$16 sps:$4 sm:$0xff]  }
 0xbe1   :  { %v8827_v25 = vadd.f32 %v8826_v62, %v8786_v33  ;;  %v8788_v45 = vadd.f32 %v8787_v2, %v8747_v35  ;;  %v8828_v50 = vpop.f32.mrf.mxu1  ;;  %v12602_v35 = vld [vmem:[%s19730_s15 + $0x208] ss:$16 sps:$4 sm:$0xff]   ;;  %v12610_v62 = vld [vmem:[%s19730_s15 + $0x3ec] ss:$16 sps:$4 sm:$0xff]  }
 0xbe2   :  { %v8789_v37 = vpop.f32.mrf.mxu0  ;;  %v12605_v33 = vld [vmem:[%s19730_s15 + $0x588] ss:$16 sps:$4 sm:$0xff]  }
 0xbe3   :  { %v8881_v56 = vmul.f32 %v8862_v6, %v8827_v25  ;;  %v8829_v44 = vadd.f32 %v8828_v50, %v8788_v45  ;;  %v8830_v39 = vpop.f32.mrf.mxu1  ;;  %10734 = vmatpush1.bf16.msra.mxu0 %v12545_v59  ;;  %v12613_v6 = vld [vmem:[%s19730_s15 + $0x56c] ss:$16 sps:$4 sm:$0xff]   ;;  %v12608_v59 = vld [vmem:[%s19730_s15 + $0x3e8] ss:$16 sps:$4 sm:$0xff]  }
 0xbe4   :  { %v8790_v15 = vpop.f32.mrf.mxu0  ;;  %10735 = vmatprep.subr.bf16.mxu0 %v12553_v21  ;;  %v12611_v2 = vld [vmem:[%s19730_s15 + $0x568] ss:$16 sps:$4 sm:$0xff]   ;;  %v12616_v21 = vld [vmem:[%s19730_s15 + $0x3cc] ss:$16 sps:$4 sm:$0xff]  }
 0xbe5   :  { %v8931_v47 = vadd.f32 %v8912_v22, %v8881_v56  ;;  %v8882_v54 = vmul.f32 %v8866_v5, %v8829_v44  ;;  %v8831_v14 = vpop.f32.mrf.mxu1  ;;  %v12619_v25 = vld [vmem:[%s19730_s15 + $0x54c] ss:$16 sps:$4 sm:$0xff]   ;;  %v12614_v22 = vld [vmem:[%s19730_s15 + $0x3c8] ss:$16 sps:$4 sm:$0xff]  }
 0xbe6   :  { %v12617_v45 = vld [vmem:[%s19730_s15 + $0x548] ss:$16 sps:$4 sm:$0xff]   ;;  %v12622_v50 = vld [vmem:[%s19730_s15 + $0x3ac] ss:$16 sps:$4 sm:$0xff]  }
 0xbe7   :  { %v8932_v61 = vadd.f32 %v8916_v20, %v8882_v54  ;;  %10736 = vmatpush1.bf16.msra.mxu0 %v12551_v52  ;;  %v8939_v16 = vmax.f32 %v8931_v47, 0.0  ;;  %v12625_v5 = vld [vmem:[%s19730_s15 + $0x52c] ss:$16 sps:$4 sm:$0xff]   ;;  %v12620_v37 = vld [vmem:[%s19730_s15 + $0x3a8] ss:$16 sps:$4 sm:$0xff]  }
 0xbe8   :  { %10737 = vmatprep.subr.bf16.mxu0 %v12559_v24  ;;  %v12623_v56 = vld [vmem:[%s19730_s15 + $0x528] ss:$16 sps:$4 sm:$0xff]   ;;  %v12628_v44 = vld [vmem:[%s19730_s15 + $0x38c] ss:$16 sps:$4 sm:$0xff]  }
 0xbe9   :  { %v8940_v27 = vmax.f32 %v8932_v61, 0.0  ;;  %v19294_v0 = vpack.c.bf16 %v8939_v16, %v8939_v16  ;;  %v12631_v20 = vld [vmem:[%s19730_s15 + $0x50c] ss:$16 sps:$4 sm:$0xff]   ;;  %v12626_v39 = vld [vmem:[%s19730_s15 + $0x388] ss:$16 sps:$4 sm:$0xff]  }
 0xbea   :  { %v12629_v52 = vld [vmem:[%s19730_s15 + $0x508] ss:$16 sps:$4 sm:$0xff]   ;;  %v12634_v15 = vld [vmem:[%s19730_s15 + $0x36c] ss:$16 sps:$4 sm:$0xff]  }
 0xbeb   :  { %10738 = vmatpush1.bf16.msra.mxu0 %v12557_v13  ;;  %v19289_v63 = vpack.c.bf16 %v8940_v27, %v8940_v27  ;;  %v12692_v24 = vld [vmem:[%s19733_s18 + $0x78] sm:$0xff]  }
 0xbec   :  { %10739 = vmatprep.subr.bf16.mxu0 %v12565_v41  ;;  %v12632_v47 = vld [vmem:[%s19730_s15 + $0x368] ss:$16 sps:$4 sm:$0xff]   ;;  %v12637_v54 = vld [vmem:[%s19730_s15 + $0x34c] ss:$16 sps:$4 sm:$0xff]  }
 0xbed   :  { %10640 = vmatprep.mubr.bf16.mxu1 %v19289_v63  ;;  %v12693_v14 = vld [vmem:[%s19733_s18 + $0x38] sm:$0xff]  }
 0xbee   :  { %10641 = vmatmul.mubr.bf16.vlgmr.msra.gmra.mxu1 %v19294_v0  ;;  %v12635_v16 = vld [vmem:[%s19730_s15 + $0x348] ss:$16 sps:$4 sm:$0xff]  }
 0xbef   :  { %10691 = vmatpush1.bf16.msra.mxu1 %v12560_v42  ;;  %10722 = vmatprep.mubr.bf16.mxu1 %v18726_v36  ;;  %v12572_v36 = vld [vmem:[%s19730_s15 + $0x2a8] ss:$16 sps:$4 sm:$0xff]   ;;  %v12640_v42 = vld [vmem:[%s19730_s15 + $0x32c] ss:$16 sps:$4 sm:$0xff]  }
 0xbf0   :  { %10740 = vmatpush1.bf16.msra.mxu0 %v12563_v49  ;;  %10692 = vmatprep.subr.bf16.mxu1 %v12568_v1  ;;  %v12694_v49 = vld [vmem:[%s19733_s18 + $0x70] sm:$0xff]  }
 0xbf1   :  { %10741 = vmatprep.subr.bf16.mxu0 %v12571_v19 }
 0xbf3   :  { %10693 = vmatpush1.bf16.msra.mxu1 %v12566_v11 }
 0xbf4   :  { %10742 = vmatpush1.bf16.msra.mxu0 %v12569_v51  ;;  %10694 = vmatprep.subr.bf16.mxu1 %v12574_v12  ;;  %v12638_v12 = vld [vmem:[%s19730_s15 + $0x328] ss:$16 sps:$4 sm:$0xff]  }
 0xbf5   :  { %10743 = vmatprep.subr.bf16.mxu0 %v12577_v30 }
 0xbf7   :  { %10695 = vmatpush1.bf16.msra.mxu1 %v12572_v36  ;;  %v12643_v36 = vld [vmem:[%s19730_s15 + $0x30c] ss:$16 sps:$4 sm:$0xff]  }
 0xbf8   :  { %10744 = vmatpush1.bf16.msra.mxu0 %v12575_v60  ;;  %10696 = vmatprep.subr.bf16.mxu1 %v12580_v38  ;;  %v12696_v60 = vld [vmem:[%s19733_s18 + $0x68] sm:$0xff]  }
 0xbf9   :  { %10745 = vmatprep.subr.bf16.mxu0 %v12583_v17  ;;  %v12697_v38 = vld [vmem:[%s19733_s18 + $0x28] sm:$0xff]  }
 0xbfb   :  { %10697 = vmatpush1.bf16.msra.mxu1 %v12578_v3  ;;  %v12698_v3 = vld [vmem:[%s19733_s18 + $0x60] sm:$0xff]  }
 0xbfc   :  { %10746 = vmatpush1.bf16.msra.mxu0 %v12581_v43  ;;  %10698 = vmatprep.subr.bf16.mxu1 %v12586_v57  ;;  %v12641_v43 = vld [vmem:[%s19730_s15 + $0x308] ss:$16 sps:$4 sm:$0xff]   ;;  %v12646_v57 = vld [vmem:[%s19730_s15 + $0x6ec] ss:$16 sps:$4 sm:$0xff]  }
 0xbfd   :  { %10747 = vmatprep.subr.bf16.mxu0 %v12589_v26  ;;  %v12699_v26 = vld [vmem:[%s19733_s18 + $0x20] sm:$0xff]  }
 0xbff   :  { %10699 = vmatpush1.bf16.msra.mxu1 %v12584_v53  ;;  %v12700_v53 = vld [vmem:[%s19733_s18 + $0x58] sm:$0xff]  }
 0xc00   :  { %10748 = vmatpush2.bf16.msra.mxu0 %v12587_v40  ;;  %10700 = vmatprep.subr.bf16.mxu1 %v12592_v28  ;;  %v12644_v40 = vld [vmem:[%s19730_s15 + $0x6e8] ss:$16 sps:$4 sm:$0xff]   ;;  %v12649_v28 = vld [vmem:[%s19730_s15 + $0x6cc] ss:$16 sps:$4 sm:$0xff]  }
 0xc01   :  { %10749 = vmatprep.subr.bf16.mxu0 %v12595_v31  ;;  %v12701_v31 = vld [vmem:[%s19733_s18 + $0x18] sm:$0xff]  }
 0xc03   :  { %10701 = vmatpush1.bf16.msra.mxu1 %v12590_v29  ;;  %v12647_v29 = vld [vmem:[%s19730_s15 + $0x6c8] ss:$16 sps:$4 sm:$0xff]  }
 0xc04   :  { %10750 = vmatpush2.bf16.msra.mxu0 %v12593_v46  ;;  %10702 = vmatprep.subr.bf16.mxu1 %v12598_v7  ;;  %v12652_v46 = vld [vmem:[%s19730_s15 + $0x6ac] ss:$16 sps:$4 sm:$0xff]   ;;  %v12702_v7 = vld [vmem:[%s19733_s18 + $0x50] sm:$0xff]  }
 0xc05   :  { %10751 = vmatprep.subr.bf16.mxu0 %v12601_v32  ;;  %v12655_v32 = vld [vmem:[%s19730_s15 + $0x68c] ss:$16 sps:$4 sm:$0xff]  }
 0xc07   :  { %10703 = vmatpush1.bf16.msra.mxu1 %v12596_v23  ;;  %v12704_v23 = vld [vmem:[%s19733_s18 + $0x48] sm:$0xff]  }
 0xc08   :  { %10752 = vmatpush2.bf16.msra.mxu0 %v12599_v9  ;;  %10704 = vmatprep.subr.bf16.mxu1 %v12604_v55  ;;  %v12705_v9 = vld [vmem:[%s19733_s18 + $0x8] sm:$0xff]  }
 0xc09   :  { %10753 = vmatprep.subr.bf16.mxu0 %v12607_v48  ;;  %v12653_v55 = vld [vmem:[%s19730_s15 + $0x688] ss:$16 sps:$4 sm:$0xff]   ;;  %v12658_v48 = vld [vmem:[%s19730_s15 + $0x66c] ss:$16 sps:$4 sm:$0xff]  }
 0xc0b   :  { %10705 = vmatpush1.bf16.msra.mxu1 %v12602_v35  ;;  %v12706_v35 = vld [vmem:[%s19733_s18 + $0x40] sm:$0xff]  }
 0xc0c   :  { %10754 = vmatpush2.bf16.msra.mxu0 %v12605_v33  ;;  %10706 = vmatprep.subr.bf16.mxu1 %v12610_v62  ;;  %v12707_v33 = vld [vmem:[%s19733_s18] sm:$0xff]   ;;  %v12656_v62 = vld [vmem:[%s19730_s15 + $0x668] ss:$16 sps:$4 sm:$0xff]  }
 0xc0d   :  { %10755 = vmatprep.subr.bf16.mxu0 %v12613_v6  ;;  %v12661_v6 = vld [vmem:[%s19730_s15 + $0x64c] ss:$16 sps:$4 sm:$0xff]  }
 0xc0f   :  { %10707 = vmatpush2.bf16.msra.mxu1 %v12608_v59  ;;  %v12659_v59 = vld [vmem:[%s19730_s15 + $0x648] ss:$16 sps:$4 sm:$0xff]  }
 0xc10   :  { %10756 = vmatpush2.bf16.msra.mxu0 %v12611_v2  ;;  %10708 = vmatprep.subr.bf16.mxu1 %v12616_v21  ;;  %v12664_v2 = vld [vmem:[%s19730_s15 + $0x62c] ss:$16 sps:$4 sm:$0xff]   ;;  %v12662_v21 = vld [vmem:[%s19730_s15 + $0x628] ss:$16 sps:$4 sm:$0xff]  }
 0xc11   :  { %10757 = vmatprep.subr.bf16.mxu0 %v12619_v25  ;;  %v12667_v25 = vld [vmem:[%s19730_s15 + $0x60c] ss:$16 sps:$4 sm:$0xff]  }
 0xc13   :  { %10709 = vmatpush2.bf16.msra.mxu1 %v12614_v22  ;;  %v12665_v22 = vld [vmem:[%s19730_s15 + $0x608] ss:$16 sps:$4 sm:$0xff]  }
 0xc14   :  { %10758 = vmatpush2.bf16.msra.mxu0 %v12617_v45  ;;  %10710 = vmatprep.subr.bf16.mxu1 %v12622_v50  ;;  %v12670_v45 = vld [vmem:[%s19730_s15 + $0x7ec] ss:$16 sps:$4 sm:$0xff]   ;;  %v12668_v50 = vld [vmem:[%s19730_s15 + $0x7e8] ss:$16 sps:$4 sm:$0xff]  }
 0xc15   :  { %10759 = vmatprep.subr.bf16.mxu0 %v12625_v5  ;;  %v12673_v5 = vld [vmem:[%s19730_s15 + $0x7cc] ss:$16 sps:$4 sm:$0xff]  }
 0xc17   :  { %10711 = vmatpush2.bf16.msra.mxu1 %v12620_v37  ;;  %v12671_v37 = vld [vmem:[%s19730_s15 + $0x7c8] ss:$16 sps:$4 sm:$0xff]  }
 0xc18   :  { %10760 = vmatpush2.bf16.msra.mxu0 %v12623_v56  ;;  %10712 = vmatprep.subr.bf16.mxu1 %v12628_v44  ;;  %v12676_v56 = vld [vmem:[%s19730_s15 + $0x7ac] ss:$16 sps:$4 sm:$0xff]   ;;  %v12674_v44 = vld [vmem:[%s19730_s15 + $0x7a8] ss:$16 sps:$4 sm:$0xff]  }
 0xc19   :  { %10761 = vmatprep.subr.bf16.mxu0 %v12631_v20  ;;  %v12679_v20 = vld [vmem:[%s19730_s15 + $0x78c] ss:$16 sps:$4 sm:$0xff]  }
 0xc1b   :  { %10713 = vmatpush2.bf16.msra.mxu1 %v12626_v39  ;;  %v12677_v39 = vld [vmem:[%s19730_s15 + $0x788] ss:$16 sps:$4 sm:$0xff]  }
 0xc1c   :  { %10762 = vmatpush2.bf16.msra.mxu0 %v12629_v52  ;;  %10714 = vmatprep.subr.bf16.mxu1 %v12634_v15  ;;  %v12682_v52 = vld [vmem:[%s19730_s15 + $0x76c] ss:$16 sps:$4 sm:$0xff]   ;;  %v12680_v15 = vld [vmem:[%s19730_s15 + $0x768] ss:$16 sps:$4 sm:$0xff]  }
 0xc1d   :  { %12219 = vmatprep.subr.bf16.mxu0 %v12692_v24  ;;  %v12685_v24 = vld [vmem:[%s19730_s15 + $0x74c] ss:$16 sps:$4 sm:$0xff]  }
 0xc1e   :  { %v10519_v61 = vpop.f32.mrf.mxu0 }
 0xc1f   :  { %v10560_v13 = vpop.f32.mrf.mxu1  ;;  %10715 = vmatpush2.bf16.msra.mxu1 %v12632_v47  ;;  %10764 = vmatmul.mubr.bf16.vlgmr.msra.gmra.mxu0 %v19151_v18  ;;  %v12695_v18 = vld [vmem:[%s19733_s18 + $0x30] sm:$0xff]  }
 0xc20   :  { %v19453_v41 = vadd.f32 %v10560_v13, %v10519_v61  ;;  %v10521_v27 = vpop.f32.mrf.mxu0  ;;  %10716 = vmatprep.subr.bf16.mxu1 %v12637_v54  ;;  %12220 = vmatpush3.bf16.msra.mxu0 %v12693_v14  ;;  %v12683_v14 = vld [vmem:[%s19730_s15 + $0x748] ss:$16 sps:$4 sm:$0xff]   ;;  %v12688_v13 = vld [vmem:[%s19730_s15 + $0x72c] ss:$16 sps:$4 sm:$0xff]  }
 0xc21   :  { %v10562_v1 = vpop.f32.mrf.mxu1  ;;  %12221 = vmatprep.subr.bf16.mxu0 %v12694_v49  ;;  %v12691_v49 = vld [vmem:[%s19730_s15 + $0x70c] ss:$16 sps:$4 sm:$0xff]  }
 0xc22   :  { %v19464_v19 = vadd.f32 %v10562_v1, %v10521_v27  ;;  %v10523_v11 = vpop.f32.mrf.mxu0  ;;  %v12708_v1 = vld [vmem:[%s19733_s18 + $0xf8] sm:$0xff]  }
 0xc23   :  { %v10564_v51 = vpop.f32.mrf.mxu1  ;;  %10717 = vmatpush2.bf16.msra.mxu1 %v12635_v16  ;;  %v12710_v11 = vld [vmem:[%s19733_s18 + $0xf0] sm:$0xff]  }
 0xc24   :  { %v10524_v30 = vpop.f32.mrf.mxu0  ;;  %10718 = vmatprep.subr.bf16.mxu1 %v12640_v42  ;;  %12222 = vmatpush3.bf16.msra.mxu0 %v12695_v18  ;;  %v12686_v42 = vld [vmem:[%s19730_s15 + $0x728] ss:$16 sps:$4 sm:$0xff]   ;;  %v12711_v51 = vld [vmem:[%s19733_s18 + $0xb0] sm:$0xff]  }
 0xc25   :  { %v10565_v17 = vpop.f32.mrf.mxu1  ;;  %12223 = vmatprep.subr.bf16.mxu0 %v12696_v60  ;;  %v12689_v18 = vld [vmem:[%s19730_s15 + $0x708] ss:$16 sps:$4 sm:$0xff]   ;;  %v12714_v30 = vld [vmem:[%s19733_s18 + $0xe0] sm:$0xff]  }
 0xc26   :  { %v12716_v60 = vld [vmem:[%s19733_s18 + $0xd8] sm:$0xff]  }
 0xc27   :  { %10719 = vmatpush2.bf16.msra.mxu1 %v12638_v12  ;;  %v12713_v12 = vld [vmem:[%s19733_s18 + $0xa8] sm:$0xff]  }
 0xc28   :  { %10720 = vmatprep.subr.bf16.mxu1 %v12643_v36  ;;  %12224 = vmatpush3.bf16.msra.mxu0 %v12697_v38  ;;  %v12715_v36 = vld [vmem:[%s19733_s18 + $0xa0] sm:$0xff]   ;;  %v12717_v38 = vld [vmem:[%s19733_s18 + $0x98] sm:$0xff]  }
 0xc29   :  { %12225 = vmatprep.subr.bf16.mxu0 %v12698_v3 }
 0xc2b   :  { %10721 = vmatpush2.bf16.msra.mxu1 %v12641_v43 }
 0xc2c   :  { %10772 = vmatprep.subr.bf16.mxu1 %v12646_v57  ;;  %12226 = vmatpush3.bf16.msra.mxu0 %v12699_v26  ;;  %v19645_v26 = vld [vmem:[%s19731_s16] sm:$0xf] }
 0xc2d   :  { %12227 = vmatprep.subr.bf16.mxu0 %v12700_v53  ;;  %v19650_v53 = vld [vmem:[%s19732_s17] sm:$0xf] }
 0xc2e   :  { %10723 = vmatmul.mubr.bf16.vlgmr.msra.gmra.mxu1 %v18943_v10  ;;  %v12703_v10 = vld [vmem:[%s19733_s18 + $0x10] sm:$0xff]  }
 0xc2f   :  { %10773 = vmatpush1.bf16.msra.mxu1 %v12644_v40  ;;  %10804 = vmatprep.mubr.bf16.mxu1 %v19289_v63  ;;  %v12650_v63 = vld [vmem:[%s19730_s15 + $0x6a8] ss:$16 sps:$4 sm:$0xff]   ;;  %v10818_v40 = vrot.slane %v19645_v26, %v18860_v58 }
 0xc30   :  { %10774 = vmatprep.subr.bf16.mxu1 %v12649_v28  ;;  %12228 = vmatpush3.bf16.msra.mxu0 %v12701_v31 }
 0xc31   :  { %12229 = vmatprep.subr.bf16.mxu0 %v12702_v7  ;;  %v12718_v7 = vld [vmem:[%s19733_s18 + $0xd0] sm:$0xff]  }
 0xc33   :  { %10775 = vmatpush1.bf16.msra.mxu1 %v12647_v29  ;;  %v10844_v29 = vrot.slane %v19650_v53, %v18860_v58 }
 0xc34   :  { %10776 = vmatprep.subr.bf16.mxu1 %v12652_v46  ;;  %12230 = vmatpush3.bf16.msra.mxu0 %v12703_v10  ;;  %v10822_v46 = vrot.slane %v19645_v26, %v18647_v4  ;;  %v19664_v10 = vld [vmem:[%s19735_s20] sm:$0xf] }
 0xc35   :  { %12231 = vmatprep.subr.bf16.mxu0 %v12704_v23 }
 0xc37   :  { %10777 = vmatpush1.bf16.msra.mxu1 %v12650_v63 }
 0xc38   :  { %10778 = vmatprep.subr.bf16.mxu1 %v12655_v32  ;;  %12232 = vmatpush3.bf16.msra.mxu0 %v12705_v9  ;;  %v12719_v32 = vld [vmem:[%s19733_s18 + $0x90] sm:$0xff]  }
 0xc39   :  { %12233 = vmatprep.subr.bf16.mxu0 %v12706_v35 }
 0xc3b   :  { %10779 = vmatpush1.bf16.msra.mxu1 %v12653_v55  ;;  %v10848_v55 = vrot.slane %v19650_v53, %v18647_v4 }
 0xc3c   :  { %10780 = vmatprep.subr.bf16.mxu1 %v12658_v48  ;;  %12234 = vmatpush3.bf16.msra.mxu0 %v12707_v33  ;;  %v11235_v33 = vrot.slane %v19664_v10, %v18860_v58  ;;  %v12722_v58 = vld [vmem:[%s19733_s18 + $0xc0] sm:$0xff]  }
 0xc3f   :  { %10781 = vmatpush1.bf16.msra.mxu1 %v12656_v62 }
 0xc40   :  { %10782 = vmatprep.subr.bf16.mxu1 %v12661_v6  ;;  %v12720_v6 = vld [vmem:[%s19733_s18 + $0xc8] sm:$0xff]  }
 0xc43   :  { %10783 = vmatpush1.bf16.msra.mxu1 %v12659_v59 }
 0xc44   :  { %10784 = vmatprep.subr.bf16.mxu1 %v12664_v2  ;;  %v12721_v2 = vld [vmem:[%s19733_s18 + $0x88] sm:$0xff]  }
 0xc47   :  { %10785 = vmatpush1.bf16.msra.mxu1 %v12662_v21 }
 0xc48   :  { %10786 = vmatprep.subr.bf16.mxu1 %v12667_v25 }
 0xc4b   :  { %10787 = vmatpush1.bf16.msra.mxu1 %v12665_v22  ;;  %v11239_v22 = vrot.slane %v19664_v10, %v18647_v4 }
 0xc4c   :  { %10788 = vmatprep.subr.bf16.mxu1 %v12670_v45 }
 0xc4f   :  { %10789 = vmatpush2.bf16.msra.mxu1 %v12668_v50 }
 0xc50   :  { %10790 = vmatprep.subr.bf16.mxu1 %v12673_v5  ;;  %v12723_v5 = vld [vmem:[%s19733_s18 + $0x80] sm:$0xff]  }
 0xc53   :  { %10791 = vmatpush2.bf16.msra.mxu1 %v12671_v37 }
 0xc54   :  { %10792 = vmatprep.subr.bf16.mxu1 %v12676_v56 }
 0xc57   :  { %10793 = vmatpush2.bf16.msra.mxu1 %v12674_v44 }
 0xc58   :  { %10794 = vmatprep.subr.bf16.mxu1 %v12679_v20 }
 0xc5b   :  { %10795 = vmatpush2.bf16.msra.mxu1 %v12677_v39 }
 0xc5c   :  { %10796 = vmatprep.subr.bf16.mxu1 %v12682_v52 }
 0xc5e   :  { %v10601_v47 = vpop.f32.mrf.mxu0 }
 0xc5f   :  { %v10602_v54 = vadd.f32 %v10601_v47, %v19453_v41  ;;  %10797 = vmatpush2.bf16.msra.mxu1 %v12680_v15 }
 0xc60   :  { %v10603_v61 = vpop.f32.mrf.mxu0  ;;  %10798 = vmatprep.subr.bf16.mxu1 %v12685_v24 }
 0xc61   :  { %v10604_v16 = vadd.f32 %v10603_v61, %v19464_v19  ;;  %v12709_v19 = vld [vmem:[%s19733_s18 + $0xb8] sm:$0xff]  }
 0xc62   :  { %v10605_v27 = vpop.f32.mrf.mxu0 }
 0xc63   :  { %10799 = vmatpush2.bf16.msra.mxu1 %v12683_v14 }
 0xc64   :  { %v10606_v41 = vpop.f32.mrf.mxu0  ;;  %10800 = vmatprep.subr.bf16.mxu1 %v12688_v13 }
 0xc65   :  { %v10826_v41 = vrot.slane %v19645_v26, %v18869_v8 }
 0xc67   :  { %10801 = vmatpush2.bf16.msra.mxu1 %v12686_v42 }
 0xc68   :  { %10802 = vmatprep.subr.bf16.mxu1 %v12691_v49 }
 0xc6b   :  { %10803 = vmatpush2.bf16.msra.mxu1 %v12689_v18 }
 0xc6c   :  { %12241 = vmatprep.subr.bf16.mxu1 %v12708_v1  ;;  %v10852_v1 = vrot.slane %v19650_v53, %v18869_v8 }
 0xc6e   :  { %10805 = vmatmul.mubr.bf16.vlgmr.msra.gmra.mxu1 %v19294_v0  ;;  %v12712_v0 = vld [vmem:[%s19733_s18 + $0xe8] sm:$0xff]  }
 0xc6f   :  { %12242 = vmatpush3.bf16.msra.mxu1 %v12709_v19 }
 0xc70   :  { %12243 = vmatprep.subr.bf16.mxu1 %v12710_v11  ;;  %v10830_v11 = vrot.slane %v19645_v26, %v18658_v34 }
 0xc73   :  { %12244 = vmatpush3.bf16.msra.mxu1 %v12711_v51 }
 0xc74   :  { %12245 = vmatprep.subr.bf16.mxu1 %v12712_v0 }
 0xc77   :  { %12246 = vmatpush3.bf16.msra.mxu1 %v12713_v12 }
 0xc78   :  { %12247 = vmatprep.subr.bf16.mxu1 %v12714_v30  ;;  %v10856_v30 = vrot.slane %v19650_v53, %v18658_v34 }
 0xc7b   :  { %12248 = vmatpush3.bf16.msra.mxu1 %v12715_v36 }
 0xc7c   :  { %12249 = vmatprep.subr.bf16.mxu1 %v12716_v60 }
 0xc7f   :  { %12250 = vmatpush3.bf16.msra.mxu1 %v12717_v38  ;;  %v11243_v38 = vrot.slane %v19664_v10, %v18869_v8 }
 0xc80   :  { %12251 = vmatprep.subr.bf16.mxu1 %v12718_v7 }
 0xc83   :  { %12252 = vmatpush3.bf16.msra.mxu1 %v12719_v32 }
 0xc84   :  { %12253 = vmatprep.subr.bf16.mxu1 %v12720_v6 }
 0xc87   :  { %12254 = vmatpush3.bf16.msra.mxu1 %v12721_v2 }
 0xc88   :  { %12255 = vmatprep.subr.bf16.mxu1 %v12722_v58 }
 0xc8b   :  { %12256 = vmatpush3.bf16.msra.mxu1 %v12723_v5 }
 0xc9e   :  { %v10683_v17 = vpop.f32.mrf.mxu0 }
 0xca0   :  { %v10685_v3 = vpop.f32.mrf.mxu0 }
 0xca2   :  { %v10687_v43 = vpop.f32.mrf.mxu0 }
 0xca4   :  { %v10688_v57 = vpop.f32.mrf.mxu0 }
 0xcae   :  { %v10642_v28 = vpop.f32.mrf.mxu1 }
 0xcaf   :  { %v10643_v31 = vadd.f32 %v10642_v28, %v10602_v54 }
 0xcb0   :  { %v10644_v63 = vpop.f32.mrf.mxu1 }
 0xcb1   :  { %v10835_v23 = vmul.f32 %v10818_v40, %v10643_v31  ;;  %v10645_v9 = vadd.f32 %v10644_v63, %v10604_v16  ;;  %v11247_v40 = vrot.slane %v19664_v10, %v18658_v34  ;;  %v12185_v34 = vld [vmem:[%s19734_s19] ss:$0 sm:$0xff] }
 0xcb2   :  { %v10646_v48 = vpop.f32.mrf.mxu1 }
 0xcb3   :  { %v10861_v35 = vadd.f32 %v10844_v29, %v10835_v23  ;;  %v10836_v62 = vmul.f32 %v10822_v46, %v10645_v9 }
 0xcb4   :  { %v10647_v59 = vpop.f32.mrf.mxu1 }
 0xcb5   :  { %v10865_v21 = vmax.f32 %v10861_v35, 0.0  ;;  %v10862_v25 = vadd.f32 %v10848_v55, %v10836_v62 }
 0xcb7   :  { %v11252_v45 = vmul.f32 %v11235_v33, %v10865_v21  ;;  %v10866_v50 = vmax.f32 %v10862_v25, 0.0  ;;  %v10869_v44 = vpack.c.bf16 %v10865_v21, %v10865_v21 }
 0xcb9   :  { %v11253_v37 = vmul.f32 %v11239_v22, %v10866_v50  ;;  %v10870_v56 = vpack.c.bf16 %v10866_v50, %v10866_v50  ;;  %v11257_v4 = vsel %vm11256_vm10, %v11252_v45, 0.0  ;;  %v12218_v45 = vld [vmem:[#allocation4] ss:$0 sm:$0xff] }
 0xcbb   :  { %11168 = vmatprep.mubr.bf16.mxu0 %v10870_v56  ;;  %v11258_v20 = vsel %vm11256_vm10, %v11253_v37, 0.0 }
 0xcbc   :  { %11169 = vmatmul.mubr.bf16.vlgmr.msra.gmra.mxu0 %v10869_v44  ;;  %v11259_v39 = vadd.f32 %v11258_v20, %v11257_v4 }
 0xcdf   :  { %v10765_v52 = vpop.f32.mrf.mxu0 }
 0xce1   :  { %v10767_v15 = vpop.f32.mrf.mxu0 }
 0xce3   :  { %v10769_v24 = vpop.f32.mrf.mxu0 }
 0xce5   :  { %v10770_v47 = vpop.f32.mrf.mxu0 }
 0xcee   :  { %v10724_v54 = vpop.f32.mrf.mxu1 }
 0xcef   :  { %v10725_v16 = vadd.f32 %v10724_v54, %v10683_v17 }
 0xcf0   :  { %v10726_v14 = vpop.f32.mrf.mxu1 }
 0xcf1   :  { %v10727_v27 = vadd.f32 %v10726_v14, %v10685_v3  ;;  %v10766_v42 = vadd.f32 %v10765_v52, %v10725_v16 }
 0xcf2   :  { %v10728_v61 = vpop.f32.mrf.mxu1 }
 0xcf3   :  { %v10768_v19 = vadd.f32 %v10767_v15, %v10727_v27 }
 0xcf4   :  { %v10729_v13 = vpop.f32.mrf.mxu1 }
 0xd2e   :  { %v10806_v49 = vpop.f32.mrf.mxu1 }
 0xd2f   :  { %v10807_v18 = vadd.f32 %v10806_v49, %v10766_v42 }
 0xd30   :  { %v10808_v51 = vpop.f32.mrf.mxu1 }
 0xd31   :  { %v10837_v0 = vmul.f32 %v10826_v41, %v10807_v18  ;;  %v10809_v12 = vadd.f32 %v10808_v51, %v10768_v19 }
 0xd32   :  { %v10810_v36 = vpop.f32.mrf.mxu1 }
 0xd33   :  { %v10863_v60 = vadd.f32 %v10852_v1, %v10837_v0  ;;  %v10838_v17 = vmul.f32 %v10830_v11, %v10809_v12 }
 0xd34   :  { %v10811_v3 = vpop.f32.mrf.mxu1 }
 0xd35   :  { %v10867_v43 = vmax.f32 %v10863_v60, 0.0  ;;  %v10864_v57 = vadd.f32 %v10856_v30, %v10838_v17 }
 0xd37   :  { %v11254_v28 = vmul.f32 %v11243_v38, %v10867_v43  ;;  %v10868_v26 = vmax.f32 %v10864_v57, 0.0  ;;  %v10871_v7 = vpack.c.bf16 %v10867_v43, %v10867_v43 }
 0xd39   :  { %v10872_v31 = vpack.c.bf16 %v10868_v26, %v10868_v26  ;;  %v11255_v29 = vmul.f32 %v11247_v40, %v10868_v26  ;;  %v11260_v46 = vsel %vm11256_vm10, %v11254_v28, 0.0 }
 0xd3a   :  { %v11261_v53 = vadd.f32 %v11260_v46, %v11259_v39 }
 0xd3b   :  { %11208 = vmatprep.mubr.bf16.mxu1 %v10872_v31  ;;  %v11262_v63 = vsel %vm11256_vm10, %v11255_v29, 0.0 }
 0xd3c   :  { %11209 = vmatmul.mubr.bf16.vlgmr.msra.gmra.mxu1 %v10871_v7  ;;  %v11263_v8 = vadd.f32 %v11262_v63, %v11261_v53 }
 0xd7c   :  { %v12235_v32 = vpop.f32.mrf.mxu0 }
 0xd7e   :  { %v12236_v23 = vpop.f32.mrf.mxu0 }
 0xd7f   :  { %v12237_v9 = vadd.f32 %v12236_v23, %v12235_v32 }
 0xd80   :  { %v12238_v55 = vpop.f32.mrf.mxu0 }
 0xd81   :  { %v11171_v33 = vadd.f32 %v12237_v9, %v12185_v34 }
 0xd82   :  { %v12239_v48 = vpop.f32.mrf.mxu0 }
 0xdfc   :  { %v12257_v10 = vpop.f32.mrf.mxu1 }
 0xdfe   :  { %v12258_v35 = vpop.f32.mrf.mxu1 }
 0xdff   :  { %v12259_v62 = vadd.f32 %v12258_v35, %v12257_v10 }
 0xe00   :  { %v12260_v6 = vpop.f32.mrf.mxu1 }
 0xe01   :  { %v11211_v59 = vadd.f32 %v12259_v62, %v11171_v33 }
 0xe02   :  { %v12261_v2 = vpop.f32.mrf.mxu1 }
 0xe03   :  { %v11217_v21 = vsel %vm11216_vm11, %v11211_v59, -inf }
 0xe04   :  { %11218 = vmax.xlane.f32.xlu0 %v11217_v21 }
 0xe08   :  { %11264 = vadd.xlane.f32.xlu0 %v11263_v8 }
 0xe8d   :  { %v11219_v25 = vpop.xlane.xlu0 %11218 }
 0xe8e   :  { %v11220_v22 = vsub.f32 %v11211_v59, %v11219_v25 }
 0xe90   :  { %v11221_v50 = vmul.f32 1.442695, %v11220_v22 }
 0xe91   :  { %v11265_v58 = vpop.xlane.xlu0 %11264 }
 0xe92   :  { %12724 = vpow2.f32 %v11221_v50  ;;  %v11273_v5 = vadd.f32 %v12218_v45, %v11265_v58 }
 0xe94   :  { %12726 = vtanh.f32 %v11273_v5 }
 0xe9f   :  { %v12725_v37 = vpop.eup %12724 }
 0xea0   :  { %v11223_v56 = vsel %vm11216_vm11, %v12725_v37, 0.0 }
 0xea1   :  { %v12727_v44 = vpop.eup %12726  ;;  %11224 = vadd.xlane.f32.xlu1 %v11223_v56 }
 0xea2   :  { %11276 = vst.msk [vmem:[%s19738_s23] sm:$0x3] %vm11275_vm12, %v12727_v44 }
 0xf2a   :  { %v11225_v4 = vpop.xlane.xlu1 %11224 }
 0xf2b   :  { %12728 = vlog2.f32 %v11225_v4 }
 0xf38   :  { %v12729_v20 = vpop.eup %12728 }
 0xf39   :  { %v11227_v39 = vmul.f32 0.6931472, %v12729_v20 }
 0xf3b   :  { %v11228_v52 = vsub.f32 %v11220_v22, %v11227_v39 }
 0xf3d   :  { %11229 = vst.msk [vmem:[#allocation5] sm:$0x3] %vm11216_vm11, %v11228_v52 }
 0xf3e   :  { %12750 = shalt.err (!%p12747_p4)
}
 0xf3f   :  { %s20143_s23 = sld [smem:[#allocation77_spill]] }
 0xf45   :  { %11286 = dma.vmem_to_hbm [thread:$0]  %s11284_s10, 32, %s20143_s23, [#allocation6]  }
 0xf46   :  { %12759 = dma.done.wait [#allocation6], 32  }
 0xf47   :  { %12760 = vsyncadd [#allocation6], 4294967264 }
 0xf48   :  { %11294 = vsyncpa [#allocation6], 1 }

</bundles_post_ra>
